<compile_context>
chip_gen: v7x
topology: tpu7x:2x2x1
jax: 0.10.0
libtpu: 0.0.40
codegen_flags: <defaults>
</compile_context>

<pallas_src>
import functools

import jax
import jax.numpy as jnp
from jax import lax
from jax.experimental import pallas as pl
from jax.experimental.pallas import tpu as pltpu  # noqa: F401  (kept for parity / future scratch use)

FEAT_DIM = 128   # feat_dim (module default 256; 128 chosen as a small lane-aligned size)
K1 = 13          # support-side neighbor count (from module)
K2 = 2           # query-side neighbor count (from module)
HID = 16         # hidden size of the weighting MLPs (from module)


# ---------------- kernel 1: batched self-interaction + cosine similarity ----------------
def self_interaction_and_cosine(v, w_q_t, w_k, b_q_col, b_k_row, k_way):
    B, D = v.shape
    n_query = B - k_way
    v_t = jnp.transpose(v)                                   # (D, B), done once in XLA glue

    def kernel(v_ref, vt_ref, wqt_ref, wk_ref, bq_ref, bk_ref, feat_ref, sim_ref):
        vv = v_ref[...]                                                      # (B, D)
        # q directly in column orientation: qT = Wq^T @ v^T + b_q  -> (D, B).
        # (avoids an identity-matmul transpose of the row-layout q.)
        qt = jnp.dot(wqt_ref[...], vt_ref[...],
                     preferred_element_type=jnp.float32) + bq_ref[...]       # (D, B)
        k = jnp.dot(vv, wk_ref[...],
                    preferred_element_type=jnp.float32) + bk_ref[...]        # (B, D)

        # Per-row outer-product attention; all B rows handled inside one grid step.
        for b in range(B):
            q_col = qt[:, b:b + 1]                                           # (D, 1)
            k_row = k[b:b + 1, :]                                            # (1, D)
            v_row = vv[b:b + 1, :]                                           # (1, D)
            s = q_col * k_row                                                # s[i, j] = q_i * k_j
            s = s - jnp.max(s, axis=0, keepdims=True)                        # softmax over i (torch dim=1)
            e = jnp.exp(s)
            # Do NOT materialize P = e / colsum(e): normalization commutes with v @ e.
            num = jnp.dot(v_row, e, preferred_element_type=jnp.float32)      # (1, D)  (MXU)
            den = jnp.sum(e, axis=0, keepdims=True)                          # (1, D)  (XLU)
            out = num * pl.reciprocal(den, approx=True) + v_row
            feat_ref[b:b + 1, :] = out.astype(feat_ref.dtype)

        # Fused cosine-similarity epilogue (support x queries) -> (k_way, n_query).
        feat = feat_ref[...]
        sup = feat[:k_way, :]
        que = feat[k_way:, :]
        sup_n = sup / jnp.maximum(jnp.sqrt(jnp.sum(sup * sup, axis=1, keepdims=True)), 1e-8)
        que_n = que / jnp.maximum(jnp.sqrt(jnp.sum(que * que, axis=1, keepdims=True)), 1e-8)
        sim_ref[...] = lax.dot_general(sup_n, que_n, (((1,), (1,)), ((), ())),
                                       preferred_element_type=jnp.float32)

    feat, sim = pl.pallas_call(
        kernel,
        out_shape=(jax.ShapeDtypeStruct((B, D), jnp.float32),
                   jax.ShapeDtypeStruct((k_way, n_query), jnp.float32)),
        grid=(1,),
        in_specs=[
            pl.BlockSpec((B, D), lambda i: (0, 0)),
            pl.BlockSpec((D, B), lambda i: (0, 0)),
            pl.BlockSpec((D, D), lambda i: (0, 0)),
            pl.BlockSpec((D, D), lambda i: (0, 0)),
            pl.BlockSpec((D, 1), lambda i: (0, 0)),
            pl.BlockSpec((1, D), lambda i: (0, 0)),
        ],
        out_specs=(pl.BlockSpec((B, D), lambda i: (0, 0)),
                   pl.BlockSpec((k_way, n_query), lambda i: (0, 0))),
    )(v, v_t, w_q_t, w_k, b_q_col, b_k_row)
    return feat, sim


# ------- kernel 2: both neighbor-weighting MLPs + cdist softmax / log_softmax -------
def fusion_and_classify(cat_support, cat_query,
                        sw1, sb1, sw2, sb2, qw1, qb1, qw2, qb2):
    KW, KS, D = cat_support.shape        # (k_way, K1+1, D)
    NQ, KQ, _ = cat_query.shape          # (num_query, K2+1, D)
    H = sw1.shape[0]

    # Lane-dense 2D layout: column n*D + d holds (sample n, feature d); the neighbor
    # axis (K+1) sits on sublanes so each weighting MLP becomes ONE full-width matmul
    # pair instead of a per-sample loop of tiny matmuls.
    cs2d = jnp.transpose(cat_support, (1, 0, 2)).reshape(KS, KW * D)   # (K1+1, KW*D)
    cq2d = jnp.transpose(cat_query, (1, 0, 2)).reshape(KQ, NQ * D)     # (K2+1, NQ*D)

    def kernel(cs_ref, cq_ref, sw1_ref, sb1_ref, sw2_ref, sb2_ref,
               qw1_ref, qb1_ref, qw2_ref, qb2_ref, yp_ref, lp_ref):

        def weighted_sum(x, w1, b1, w2, b2):
            # x: (Kp1, W). MLP over the neighbor (sublane) axis, softmax over neighbors,
            # weighted sum — with the softmax normalization folded into the final scale.
            h = jnp.maximum(jnp.dot(w1, x, preferred_element_type=jnp.float32) + b1, 0.0)
            logits = jnp.dot(w2, h, preferred_element_type=jnp.float32) + b2
            logits = logits - jnp.max(logits, axis=0, keepdims=True)
            e = jnp.exp(logits)
            num = jnp.sum(x * e, axis=0, keepdims=True)
            den = jnp.sum(e, axis=0, keepdims=True)
            return num * pl.reciprocal(den, approx=True)                     # (1, W)

        sf_flat = weighted_sum(cs_ref[...], sw1_ref[...], sb1_ref[...],
                               sw2_ref[...], sb2_ref[...])                   # (1, KW*D)
        qf_flat = weighted_sum(cq_ref[...], qw1_ref[...], qb1_ref[...],
                               qw2_ref[...], qb2_ref[...])                   # (1, NQ*D)

        # Re-stack the lane-concatenated features into (N, D) rows (aligned 128-lane slices).
        sf = jnp.concatenate([sf_flat[:, n * D:(n + 1) * D] for n in range(KW)], axis=0)
        qf = jnp.concatenate([qf_flat[:, n * D:(n + 1) * D] for n in range(NQ)], axis=0)

        # Prototype euclidean distance (cdist) + softmax / log_softmax epilogue.
        qp = lax.dot_general(qf, sf, (((1,), (1,)), ((), ())),
                             preferred_element_type=jnp.float32)             # (NQ, KW)
        qsq = jnp.sum(qf * qf, axis=1, keepdims=True)                        # (NQ, 1)
        ones_row = jnp.ones((1, D), jnp.float32)
        psq = lax.dot_general(ones_row, sf * sf, (((1,), (1,)), ((), ())),
                              preferred_element_type=jnp.float32)            # (1, KW)
        d2 = jnp.maximum(qsq + psq - 2.0 * qp, 0.0)
        neg = -jnp.sqrt(d2)                                                  # -cdist
        m = jnp.max(neg, axis=1, keepdims=True)
        e = jnp.exp(neg - m)
        ssum = jnp.sum(e, axis=1, keepdims=True)
        yp_ref[...] = e / ssum                                               # softmax(-dist)
        lp_ref[...] = (neg - m) - jnp.log(ssum)                              # log_softmax(-dist)

    return pl.pallas_call(
        kernel,
        out_shape=(jax.ShapeDtypeStruct((NQ, KW), jnp.float32),
                   jax.ShapeDtypeStruct((NQ, KW), jnp.float32)),
        grid=(1,),
        in_specs=[
            pl.BlockSpec((KS, KW * D), lambda i: (0, 0)),
            pl.BlockSpec((KQ, NQ * D), lambda i: (0, 0)),
            pl.BlockSpec((H, KS), lambda i: (0, 0)),
            pl.BlockSpec((H, 1), lambda i: (0, 0)),
            pl.BlockSpec((KS, H), lambda i: (0, 0)),
            pl.BlockSpec((KS, 1), lambda i: (0, 0)),
            pl.BlockSpec((H, KQ), lambda i: (0, 0)),
            pl.BlockSpec((H, 1), lambda i: (0, 0)),
            pl.BlockSpec((KQ, H), lambda i: (0, 0)),
            pl.BlockSpec((KQ, 1), lambda i: (0, 0)),
        ],
        out_specs=(pl.BlockSpec((NQ, KW), lambda i: (0, 0)),
                   pl.BlockSpec((NQ, KW), lambda i: (0, 0))),
    )(cs2d, cq2d, sw1, sb1[:, None], sw2, sb2[:, None],
      qw1, qb1[:, None], qw2, qb2[:, None])


# ------------------------- full forward (glue + kernels) -------------------------
@functools.partial(jax.jit, static_argnums=(3, 4))
def cia_forward(params, sample_inpt, label, k_way, n_shot):
    D = sample_inpt.shape[-1]
    support_raw = sample_inpt[: n_shot * k_way]
    query_raw = sample_inpt[n_shot * k_way:]
    num_query = query_raw.shape[0]

    proto = support_raw.reshape(k_way, n_shot, D).mean(axis=1)               # (k, D)
    v = jnp.concatenate([proto, query_raw], axis=0)                          # (k+Q, D)

    feat, sim = self_interaction_and_cosine(
        v, params["w_q"].T, params["w_k"],
        params["b_q"][:, None], params["b_k"][None, :], k_way)

    support = feat[:k_way]
    queries = feat[k_way:]

    # TODO(synk): top-k neighbor selection + index gather have no clean Pallas TPU equivalent; done in JAX.
    _, idx_s = lax.top_k(sim, K1)                 # == argsort(-sim)[:, :K1]   (k, K1)
    gathered_q = queries[idx_s.reshape(-1)].reshape(k_way, K1, D)
    cat_support = jnp.concatenate([support[:, None, :], gathered_q], axis=1)  # (k, K1+1, D)

    _, idx_q = lax.top_k(sim.T, K2)               # == argsort(-sim.T)[:, :K2] (Q, K2)
    gathered_s = support[idx_q.reshape(-1)].reshape(num_query, K2, D)
    cat_query = jnp.concatenate([queries[:, None, :], gathered_s], axis=1)    # (Q, K2+1, D)

    y_pred, log_p_y = fusion_and_classify(
        cat_support, cat_query,
        params["sw1"], params["sb1"], params["sw2"], params["sb2"],
        params["qw1"], params["qb1"], params["qw2"], params["qb2"])

    tgt = label[1]                                                            # query labels
    loss = -jnp.mean(log_p_y[jnp.arange(num_query), tgt])                     # NLLLoss (mean)
    return y_pred, loss


def init_params(key, feat_dim):
    ks = jax.random.split(key, 8)
    d_scale = 1.0 / jnp.sqrt(feat_dim).astype(jnp.float32)
    return {
        # to_qk (Linear(D, 2D)) split into q- and k-halves; semantics: q = v @ w_q + b_q
        "w_q": (jax.random.normal(ks[0], (feat_dim, feat_dim), jnp.float32) * d_scale),
        "w_k": (jax.random.normal(ks[1], (feat_dim, feat_dim), jnp.float32) * d_scale),
        "b_q": (jax.random.normal(ks[2], (feat_dim,), jnp.float32) * 0.01),
        "b_k": (jax.random.normal(ks[3], (feat_dim,), jnp.float32) * 0.01),
        # support_weight: Linear(K1+1, 16) -> ReLU -> Linear(16, K1+1) -> Softmax
        "sw1": (jax.random.normal(ks[4], (HID, K1 + 1), jnp.float32) / jnp.sqrt(K1 + 1.0)),
        "sb1": jnp.zeros((HID,), jnp.float32),
        "sw2": (jax.random.normal(ks[5], (K1 + 1, HID), jnp.float32) / jnp.sqrt(float(HID))),
        "sb2": jnp.zeros((K1 + 1,), jnp.float32),
        # query_weight: Linear(K2+1, 16) -> ReLU -> Linear(16, K2+1) -> Softmax
        "qw1": (jax.random.normal(ks[6], (HID, K2 + 1), jnp.float32) / jnp.sqrt(K2 + 1.0)),
        "qb1": jnp.zeros((HID,), jnp.float32),
        "qw2": (jax.random.normal(ks[7], (K2 + 1, HID), jnp.float32) / jnp.sqrt(float(HID))),
        "qb2": jnp.zeros((K2 + 1,), jnp.float32),
    }


if __name__ == "__main__":
    k_way, n_shot, q_per_class = 4, 2, 4        # num_query = 16 >= K1 = 13; k_way >= K2 = 2
    num_query = k_way * q_per_class
    D = FEAT_DIM

    key = jax.random.PRNGKey(0)
    k_params, k_data = jax.random.split(key)
    params = init_params(k_params, D)

    sample_inpt = jax.random.normal(k_data, (n_shot * k_way + num_query, D), jnp.float32)
    support_labels = jnp.repeat(jnp.arange(k_way, dtype=jnp.int32), n_shot)
    query_labels = jnp.repeat(jnp.arange(k_way, dtype=jnp.int32), q_per_class)
    label = (support_labels, query_labels)

    y_pred, loss = cia_forward(params, sample_inpt, label, k_way, n_shot)
    y_pred = jax.block_until_ready(y_pred)
    loss = jax.block_until_ready(loss)

    assert y_pred.shape == (num_query, k_way)
    assert bool(jnp.isfinite(loss)) and bool(jnp.all(jnp.isfinite(y_pred)))
    assert bool(jnp.allclose(jnp.sum(y_pred, axis=1), 1.0, atol=1e-4))
    print("KERNEL_OK")
</pallas_src>

<mosaic_0001>
module attributes {stable_mosaic.version = 11 : i64} {
  func.func @kernel(%arg0: i32, %arg1: memref<20x128xf32, #tpu.memory_space<vmem>>, %arg2: memref<128x20xf32, #tpu.memory_space<vmem>>, %arg3: memref<128x128xf32, #tpu.memory_space<vmem>>, %arg4: memref<128x128xf32, #tpu.memory_space<vmem>>, %arg5: memref<128x1xf32, #tpu.memory_space<vmem>>, %arg6: memref<1x128xf32, #tpu.memory_space<vmem>>, %arg7: memref<20x128xf32, #tpu.memory_space<vmem>>, %arg8: memref<4x16xf32, #tpu.memory_space<vmem>>) attributes {dimension_semantics = [#tpu.dimension_semantics<arbitrary>], iteration_bounds = array<i64: 1>, scalar_prefetch = 0 : i64, scratch_operands = 0 : i64, tpu.core_type = #tpu.core_type<tc>, window_params = [{pipeline_mode = #tpu.pipeline_mode<synchronous>, transform_indices = @transform_0, window_bounds = array<i64: 20, 128>}, {pipeline_mode = #tpu.pipeline_mode<synchronous>, transform_indices = @transform_1, window_bounds = array<i64: 128, 20>}, {pipeline_mode = #tpu.pipeline_mode<synchronous>, transform_indices = @transform_2, window_bounds = array<i64: 128, 128>}, {pipeline_mode = #tpu.pipeline_mode<synchronous>, transform_indices = @transform_3, window_bounds = array<i64: 128, 128>}, {pipeline_mode = #tpu.pipeline_mode<synchronous>, transform_indices = @transform_4, window_bounds = array<i64: 128, 1>}, {pipeline_mode = #tpu.pipeline_mode<synchronous>, transform_indices = @transform_5, window_bounds = array<i64: 1, 128>}, {pipeline_mode = #tpu.pipeline_mode<synchronous>, transform_indices = @transform_6, window_bounds = array<i64: 20, 128>}, {pipeline_mode = #tpu.pipeline_mode<synchronous>, transform_indices = @transform_7, window_bounds = array<i64: 4, 16>}]} {
    %c0 = arith.constant 0 : index
    %c0_0 = arith.constant 0 : index
    %0 = vector.load %arg1[%c0, %c0_0] : memref<20x128xf32, #tpu.memory_space<vmem>>, vector<20x128xf32>
    %c0_1 = arith.constant 0 : index
    %c0_2 = arith.constant 0 : index
    %1 = vector.load %arg3[%c0_1, %c0_2] : memref<128x128xf32, #tpu.memory_space<vmem>>, vector<128x128xf32>
    %c0_3 = arith.constant 0 : index
    %c0_4 = arith.constant 0 : index
    %2 = vector.load %arg2[%c0_3, %c0_4] : memref<128x20xf32, #tpu.memory_space<vmem>>, vector<128x20xf32>
    %cst = arith.constant dense<0.000000e+00> : vector<128x20xf32>
    %3 = tpu.matmul %1, %2, %cst {dimension_numbers = #tpu.dot_dimension_numbers<[1], [0], [0], [1], [0, 0, 1, 1], [], []>} : vector<128x128xf32>, vector<128x20xf32>, vector<128x20xf32> -> vector<128x20xf32>
    %c0_5 = arith.constant 0 : index
    %c0_6 = arith.constant 0 : index
    %4 = vector.load %arg5[%c0_5, %c0_6] : memref<128x1xf32, #tpu.memory_space<vmem>>, vector<128x1xf32>
    %5 = vector.broadcast %4 : vector<128x1xf32> to vector<128x20xf32>
    %6 = arith.addf %3, %5 : vector<128x20xf32>
    %c0_7 = arith.constant 0 : index
    %c0_8 = arith.constant 0 : index
    %7 = vector.load %arg4[%c0_7, %c0_8] : memref<128x128xf32, #tpu.memory_space<vmem>>, vector<128x128xf32>
    %cst_9 = arith.constant dense<0.000000e+00> : vector<20x128xf32>
    %8 = tpu.matmul %0, %7, %cst_9 {dimension_numbers = #tpu.dot_dimension_numbers<[1], [0], [0], [1], [0, 0, 1, 1], [], []>} : vector<20x128xf32>, vector<128x128xf32>, vector<20x128xf32> -> vector<20x128xf32>
    %c0_10 = arith.constant 0 : index
    %c0_11 = arith.constant 0 : index
    %9 = vector.load %arg6[%c0_10, %c0_11] : memref<1x128xf32, #tpu.memory_space<vmem>>, vector<1x128xf32>
    %10 = vector.broadcast %9 : vector<1x128xf32> to vector<20x128xf32>
    %11 = arith.addf %8, %10 : vector<20x128xf32>
    %12 = vector.extract_strided_slice %6 {offsets = [0, 0], sizes = [128, 1], strides = [1, 1]} : vector<128x20xf32> to vector<128x1xf32>
    %13 = vector.extract_strided_slice %11 {offsets = [0, 0], sizes = [1, 128], strides = [1, 1]} : vector<20x128xf32> to vector<1x128xf32>
    %14 = vector.extract_strided_slice %0 {offsets = [0, 0], sizes = [1, 128], strides = [1, 1]} : vector<20x128xf32> to vector<1x128xf32>
    %15 = vector.broadcast %12 : vector<128x1xf32> to vector<128x128xf32>
    %16 = vector.broadcast %13 : vector<1x128xf32> to vector<128x128xf32>
    %17 = arith.mulf %15, %16 : vector<128x128xf32>
    %cst_12 = arith.constant dense<0xFF800000> : vector<128xf32>
    %18 = vector.multi_reduction <maximumf>, %17, %cst_12 [0] : vector<128x128xf32> to vector<128xf32>
    %19 = vector.shape_cast %18 : vector<128xf32> to vector<1x128xf32>
    %20 = vector.broadcast %19 : vector<1x128xf32> to vector<128x128xf32>
    %21 = arith.subf %17, %20 : vector<128x128xf32>
    %22 = math.exp %21 : vector<128x128xf32>
    %cst_13 = arith.constant dense<0.000000e+00> : vector<1x128xf32>
    %23 = tpu.matmul %14, %22, %cst_13 {dimension_numbers = #tpu.dot_dimension_numbers<[1], [0], [0], [1], [0, 0, 1, 1], [], []>} : vector<1x128xf32>, vector<128x128xf32>, vector<1x128xf32> -> vector<1x128xf32>
    %cst_14 = arith.constant dense<0.000000e+00> : vector<128xf32>
    %24 = vector.multi_reduction <add>, %22, %cst_14 [0] : vector<128x128xf32> to vector<128xf32>
    %25 = vector.shape_cast %24 : vector<128xf32> to vector<1x128xf32>
    %26 = tpu.reciprocal %25 {approx = true} : vector<1x128xf32> -> vector<1x128xf32>
    %27 = arith.mulf %23, %26 : vector<1x128xf32>
    %28 = arith.addf %27, %14 : vector<1x128xf32>
    %c0_15 = arith.constant 0 : index
    %c0_16 = arith.constant 0 : index
    %29 = vector.load %arg7[%c0_15, %c0_16] : memref<20x128xf32, #tpu.memory_space<vmem>>, vector<1x128xf32>
    tpu.vector_store %arg7[%c0_15, %c0_16], %28 {strides = array<i32>} : memref<20x128xf32, #tpu.memory_space<vmem>>, vector<1x128xf32>,
    %30 = vector.extract_strided_slice %6 {offsets = [0, 1], sizes = [128, 1], strides = [1, 1]} : vector<128x20xf32> to vector<128x1xf32>
    %31 = vector.extract_strided_slice %11 {offsets = [1, 0], sizes = [1, 128], strides = [1, 1]} : vector<20x128xf32> to vector<1x128xf32>
    %32 = vector.extract_strided_slice %0 {offsets = [1, 0], sizes = [1, 128], strides = [1, 1]} : vector<20x128xf32> to vector<1x128xf32>
    %33 = vector.broadcast %30 : vector<128x1xf32> to vector<128x128xf32>
    %34 = vector.broadcast %31 : vector<1x128xf32> to vector<128x128xf32>
    %35 = arith.mulf %33, %34 : vector<128x128xf32>
    %cst_17 = arith.constant dense<0xFF800000> : vector<128xf32>
    %36 = vector.multi_reduction <maximumf>, %35, %cst_17 [0] : vector<128x128xf32> to vector<128xf32>
    %37 = vector.shape_cast %36 : vector<128xf32> to vector<1x128xf32>
    %38 = vector.broadcast %37 : vector<1x128xf32> to vector<128x128xf32>
    %39 = arith.subf %35, %38 : vector<128x128xf32>
    %40 = math.exp %39 : vector<128x128xf32>
    %cst_18 = arith.constant dense<0.000000e+00> : vector<1x128xf32>
    %41 = tpu.matmul %32, %40, %cst_18 {dimension_numbers = #tpu.dot_dimension_numbers<[1], [0], [0], [1], [0, 0, 1, 1], [], []>} : vector<1x128xf32>, vector<128x128xf32>, vector<1x128xf32> -> vector<1x128xf32>
    %cst_19 = arith.constant dense<0.000000e+00> : vector<128xf32>
    %42 = vector.multi_reduction <add>, %40, %cst_19 [0] : vector<128x128xf32> to vector<128xf32>
    %43 = vector.shape_cast %42 : vector<128xf32> to vector<1x128xf32>
    %44 = tpu.reciprocal %43 {approx = true} : vector<1x128xf32> -> vector<1x128xf32>
    %45 = arith.mulf %41, %44 : vector<1x128xf32>
    %46 = arith.addf %45, %32 : vector<1x128xf32>
    %c1 = arith.constant 1 : index
    %c0_20 = arith.constant 0 : index
    %47 = vector.load %arg7[%c1, %c0_20] : memref<20x128xf32, #tpu.memory_space<vmem>>, vector<1x128xf32>
    tpu.vector_store %arg7[%c1, %c0_20], %46 {strides = array<i32>} : memref<20x128xf32, #tpu.memory_space<vmem>>, vector<1x128xf32>,
    %48 = vector.extract_strided_slice %6 {offsets = [0, 2], sizes = [128, 1], strides = [1, 1]} : vector<128x20xf32> to vector<128x1xf32>
    %49 = vector.extract_strided_slice %11 {offsets = [2, 0], sizes = [1, 128], strides = [1, 1]} : vector<20x128xf32> to vector<1x128xf32>
    %50 = vector.extract_strided_slice %0 {offsets = [2, 0], sizes = [1, 128], strides = [1, 1]} : vector<20x128xf32> to vector<1x128xf32>
    %51 = vector.broadcast %48 : vector<128x1xf32> to vector<128x128xf32>
    %52 = vector.broadcast %49 : vector<1x128xf32> to vector<128x128xf32>
    %53 = arith.mulf %51, %52 : vector<128x128xf32>
    %cst_21 = arith.constant dense<0xFF800000> : vector<128xf32>
    %54 = vector.multi_reduction <maximumf>, %53, %cst_21 [0] : vector<128x128xf32> to vector<128xf32>
    %55 = vector.shape_cast %54 : vector<128xf32> to vector<1x128xf32>
    %56 = vector.broadcast %55 : vector<1x128xf32> to vector<128x128xf32>
    %57 = arith.subf %53, %56 : vector<128x128xf32>
    %58 = math.exp %57 : vector<128x128xf32>
    %cst_22 = arith.constant dense<0.000000e+00> : vector<1x128xf32>
    %59 = tpu.matmul %50, %58, %cst_22 {dimension_numbers = #tpu.dot_dimension_numbers<[1], [0], [0], [1], [0, 0, 1, 1], [], []>} : vector<1x128xf32>, vector<128x128xf32>, vector<1x128xf32> -> vector<1x128xf32>
    %cst_23 = arith.constant dense<0.000000e+00> : vector<128xf32>
    %60 = vector.multi_reduction <add>, %58, %cst_23 [0] : vector<128x128xf32> to vector<128xf32>
    %61 = vector.shape_cast %60 : vector<128xf32> to vector<1x128xf32>
    %62 = tpu.reciprocal %61 {approx = true} : vector<1x128xf32> -> vector<1x128xf32>
    %63 = arith.mulf %59, %62 : vector<1x128xf32>
    %64 = arith.addf %63, %50 : vector<1x128xf32>
    %c2 = arith.constant 2 : index
    %c0_24 = arith.constant 0 : index
    %65 = vector.load %arg7[%c2, %c0_24] : memref<20x128xf32, #tpu.memory_space<vmem>>, vector<1x128xf32>
    tpu.vector_store %arg7[%c2, %c0_24], %64 {strides = array<i32>} : memref<20x128xf32, #tpu.memory_space<vmem>>, vector<1x128xf32>,
    %66 = vector.extract_strided_slice %6 {offsets = [0, 3], sizes = [128, 1], strides = [1, 1]} : vector<128x20xf32> to vector<128x1xf32>
    %67 = vector.extract_strided_slice %11 {offsets = [3, 0], sizes = [1, 128], strides = [1, 1]} : vector<20x128xf32> to vector<1x128xf32>
    %68 = vector.extract_strided_slice %0 {offsets = [3, 0], sizes = [1, 128], strides = [1, 1]} : vector<20x128xf32> to vector<1x128xf32>
    %69 = vector.broadcast %66 : vector<128x1xf32> to vector<128x128xf32>
    %70 = vector.broadcast %67 : vector<1x128xf32> to vector<128x128xf32>
    %71 = arith.mulf %69, %70 : vector<128x128xf32>
    %cst_25 = arith.constant dense<0xFF800000> : vector<128xf32>
    %72 = vector.multi_reduction <maximumf>, %71, %cst_25 [0] : vector<128x128xf32> to vector<128xf32>
    %73 = vector.shape_cast %72 : vector<128xf32> to vector<1x128xf32>
    %74 = vector.broadcast %73 : vector<1x128xf32> to vector<128x128xf32>
    %75 = arith.subf %71, %74 : vector<128x128xf32>
    %76 = math.exp %75 : vector<128x128xf32>
    %cst_26 = arith.constant dense<0.000000e+00> : vector<1x128xf32>
    %77 = tpu.matmul %68, %76, %cst_26 {dimension_numbers = #tpu.dot_dimension_numbers<[1], [0], [0], [1], [0, 0, 1, 1], [], []>} : vector<1x128xf32>, vector<128x128xf32>, vector<1x128xf32> -> vector<1x128xf32>
    %cst_27 = arith.constant dense<0.000000e+00> : vector<128xf32>
    %78 = vector.multi_reduction <add>, %76, %cst_27 [0] : vector<128x128xf32> to vector<128xf32>
    %79 = vector.shape_cast %78 : vector<128xf32> to vector<1x128xf32>
    %80 = tpu.reciprocal %79 {approx = true} : vector<1x128xf32> -> vector<1x128xf32>
    %81 = arith.mulf %77, %80 : vector<1x128xf32>
    %82 = arith.addf %81, %68 : vector<1x128xf32>
    %c3 = arith.constant 3 : index
    %c0_28 = arith.constant 0 : index
    %83 = vector.load %arg7[%c3, %c0_28] : memref<20x128xf32, #tpu.memory_space<vmem>>, vector<1x128xf32>
    tpu.vector_store %arg7[%c3, %c0_28], %82 {strides = array<i32>} : memref<20x128xf32, #tpu.memory_space<vmem>>, vector<1x128xf32>,
    %84 = vector.extract_strided_slice %6 {offsets = [0, 4], sizes = [128, 1], strides = [1, 1]} : vector<128x20xf32> to vector<128x1xf32>
    %85 = vector.extract_strided_slice %11 {offsets = [4, 0], sizes = [1, 128], strides = [1, 1]} : vector<20x128xf32> to vector<1x128xf32>
    %86 = vector.extract_strided_slice %0 {offsets = [4, 0], sizes = [1, 128], strides = [1, 1]} : vector<20x128xf32> to vector<1x128xf32>
    %87 = vector.broadcast %84 : vector<128x1xf32> to vector<128x128xf32>
    %88 = vector.broadcast %85 : vector<1x128xf32> to vector<128x128xf32>
    %89 = arith.mulf %87, %88 : vector<128x128xf32>
    %cst_29 = arith.constant dense<0xFF800000> : vector<128xf32>
    %90 = vector.multi_reduction <maximumf>, %89, %cst_29 [0] : vector<128x128xf32> to vector<128xf32>
    %91 = vector.shape_cast %90 : vector<128xf32> to vector<1x128xf32>
    %92 = vector.broadcast %91 : vector<1x128xf32> to vector<128x128xf32>
    %93 = arith.subf %89, %92 : vector<128x128xf32>
    %94 = math.exp %93 : vector<128x128xf32>
    %cst_30 = arith.constant dense<0.000000e+00> : vector<1x128xf32>
    %95 = tpu.matmul %86, %94, %cst_30 {dimension_numbers = #tpu.dot_dimension_numbers<[1], [0], [0], [1], [0, 0, 1, 1], [], []>} : vector<1x128xf32>, vector<128x128xf32>, vector<1x128xf32> -> vector<1x128xf32>
    %cst_31 = arith.constant dense<0.000000e+00> : vector<128xf32>
    %96 = vector.multi_reduction <add>, %94, %cst_31 [0] : vector<128x128xf32> to vector<128xf32>
    %97 = vector.shape_cast %96 : vector<128xf32> to vector<1x128xf32>
    %98 = tpu.reciprocal %97 {approx = true} : vector<1x128xf32> -> vector<1x128xf32>
    %99 = arith.mulf %95, %98 : vector<1x128xf32>
    %100 = arith.addf %99, %86 : vector<1x128xf32>
    %c4 = arith.constant 4 : index
    %c0_32 = arith.constant 0 : index
    %101 = vector.load %arg7[%c4, %c0_32] : memref<20x128xf32, #tpu.memory_space<vmem>>, vector<1x128xf32>
    tpu.vector_store %arg7[%c4, %c0_32], %100 {strides = array<i32>} : memref<20x128xf32, #tpu.memory_space<vmem>>, vector<1x128xf32>,
    %102 = vector.extract_strided_slice %6 {offsets = [0, 5], sizes = [128, 1], strides = [1, 1]} : vector<128x20xf32> to vector<128x1xf32>
    %103 = vector.extract_strided_slice %11 {offsets = [5, 0], sizes = [1, 128], strides = [1, 1]} : vector<20x128xf32> to vector<1x128xf32>
    %104 = vector.extract_strided_slice %0 {offsets = [5, 0], sizes = [1, 128], strides = [1, 1]} : vector<20x128xf32> to vector<1x128xf32>
    %105 = vector.broadcast %102 : vector<128x1xf32> to vector<128x128xf32>
    %106 = vector.broadcast %103 : vector<1x128xf32> to vector<128x128xf32>
    %107 = arith.mulf %105, %106 : vector<128x128xf32>
    %cst_33 = arith.constant dense<0xFF800000> : vector<128xf32>
    %108 = vector.multi_reduction <maximumf>, %107, %cst_33 [0] : vector<128x128xf32> to vector<128xf32>
    %109 = vector.shape_cast %108 : vector<128xf32> to vector<1x128xf32>
    %110 = vector.broadcast %109 : vector<1x128xf32> to vector<128x128xf32>
    %111 = arith.subf %107, %110 : vector<128x128xf32>
    %112 = math.exp %111 : vector<128x128xf32>
    %cst_34 = arith.constant dense<0.000000e+00> : vector<1x128xf32>
    %113 = tpu.matmul %104, %112, %cst_34 {dimension_numbers = #tpu.dot_dimension_numbers<[1], [0], [0], [1], [0, 0, 1, 1], [], []>} : vector<1x128xf32>, vector<128x128xf32>, vector<1x128xf32> -> vector<1x128xf32>
    %cst_35 = arith.constant dense<0.000000e+00> : vector<128xf32>
    %114 = vector.multi_reduction <add>, %112, %cst_35 [0] : vector<128x128xf32> to vector<128xf32>
    %115 = vector.shape_cast %114 : vector<128xf32> to vector<1x128xf32>
    %116 = tpu.reciprocal %115 {approx = true} : vector<1x128xf32> -> vector<1x128xf32>
    %117 = arith.mulf %113, %116 : vector<1x128xf32>
    %118 = arith.addf %117, %104 : vector<1x128xf32>
    %c5 = arith.constant 5 : index
    %c0_36 = arith.constant 0 : index
    %119 = vector.load %arg7[%c5, %c0_36] : memref<20x128xf32, #tpu.memory_space<vmem>>, vector<1x128xf32>
    tpu.vector_store %arg7[%c5, %c0_36], %118 {strides = array<i32>} : memref<20x128xf32, #tpu.memory_space<vmem>>, vector<1x128xf32>,
    %120 = vector.extract_strided_slice %6 {offsets = [0, 6], sizes = [128, 1], strides = [1, 1]} : vector<128x20xf32> to vector<128x1xf32>
    %121 = vector.extract_strided_slice %11 {offsets = [6, 0], sizes = [1, 128], strides = [1, 1]} : vector<20x128xf32> to vector<1x128xf32>
    %122 = vector.extract_strided_slice %0 {offsets = [6, 0], sizes = [1, 128], strides = [1, 1]} : vector<20x128xf32> to vector<1x128xf32>
    %123 = vector.broadcast %120 : vector<128x1xf32> to vector<128x128xf32>
    %124 = vector.broadcast %121 : vector<1x128xf32> to vector<128x128xf32>
    %125 = arith.mulf %123, %124 : vector<128x128xf32>
    %cst_37 = arith.constant dense<0xFF800000> : vector<128xf32>
    %126 = vector.multi_reduction <maximumf>, %125, %cst_37 [0] : vector<128x128xf32> to vector<128xf32>
    %127 = vector.shape_cast %126 : vector<128xf32> to vector<1x128xf32>
    %128 = vector.broadcast %127 : vector<1x128xf32> to vector<128x128xf32>
    %129 = arith.subf %125, %128 : vector<128x128xf32>
    %130 = math.exp %129 : vector<128x128xf32>
    %cst_38 = arith.constant dense<0.000000e+00> : vector<1x128xf32>
    %131 = tpu.matmul %122, %130, %cst_38 {dimension_numbers = #tpu.dot_dimension_numbers<[1], [0], [0], [1], [0, 0, 1, 1], [], []>} : vector<1x128xf32>, vector<128x128xf32>, vector<1x128xf32> -> vector<1x128xf32>
    %cst_39 = arith.constant dense<0.000000e+00> : vector<128xf32>
    %132 = vector.multi_reduction <add>, %130, %cst_39 [0] : vector<128x128xf32> to vector<128xf32>
    %133 = vector.shape_cast %132 : vector<128xf32> to vector<1x128xf32>
    %134 = tpu.reciprocal %133 {approx = true} : vector<1x128xf32> -> vector<1x128xf32>
    %135 = arith.mulf %131, %134 : vector<1x128xf32>
    %136 = arith.addf %135, %122 : vector<1x128xf32>
    %c6 = arith.constant 6 : index
    %c0_40 = arith.constant 0 : index
    %137 = vector.load %arg7[%c6, %c0_40] : memref<20x128xf32, #tpu.memory_space<vmem>>, vector<1x128xf32>
    tpu.vector_store %arg7[%c6, %c0_40], %136 {strides = array<i32>} : memref<20x128xf32, #tpu.memory_space<vmem>>, vector<1x128xf32>,
    %138 = vector.extract_strided_slice %6 {offsets = [0, 7], sizes = [128, 1], strides = [1, 1]} : vector<128x20xf32> to vector<128x1xf32>
    %139 = vector.extract_strided_slice %11 {offsets = [7, 0], sizes = [1, 128], strides = [1, 1]} : vector<20x128xf32> to vector<1x128xf32>
    %140 = vector.extract_strided_slice %0 {offsets = [7, 0], sizes = [1, 128], strides = [1, 1]} : vector<20x128xf32> to vector<1x128xf32>
    %141 = vector.broadcast %138 : vector<128x1xf32> to vector<128x128xf32>
    %142 = vector.broadcast %139 : vector<1x128xf32> to vector<128x128xf32>
    %143 = arith.mulf %141, %142 : vector<128x128xf32>
    %cst_41 = arith.constant dense<0xFF800000> : vector<128xf32>
    %144 = vector.multi_reduction <maximumf>, %143, %cst_41 [0] : vector<128x128xf32> to vector<128xf32>
    %145 = vector.shape_cast %144 : vector<128xf32> to vector<1x128xf32>
    %146 = vector.broadcast %145 : vector<1x128xf32> to vector<128x128xf32>
    %147 = arith.subf %143, %146 : vector<128x128xf32>
    %148 = math.exp %147 : vector<128x128xf32>
    %cst_42 = arith.constant dense<0.000000e+00> : vector<1x128xf32>
    %149 = tpu.matmul %140, %148, %cst_42 {dimension_numbers = #tpu.dot_dimension_numbers<[1], [0], [0], [1], [0, 0, 1, 1], [], []>} : vector<1x128xf32>, vector<128x128xf32>, vector<1x128xf32> -> vector<1x128xf32>
    %cst_43 = arith.constant dense<0.000000e+00> : vector<128xf32>
    %150 = vector.multi_reduction <add>, %148, %cst_43 [0] : vector<128x128xf32> to vector<128xf32>
    %151 = vector.shape_cast %150 : vector<128xf32> to vector<1x128xf32>
    %152 = tpu.reciprocal %151 {approx = true} : vector<1x128xf32> -> vector<1x128xf32>
    %153 = arith.mulf %149, %152 : vector<1x128xf32>
    %154 = arith.addf %153, %140 : vector<1x128xf32>
    %c7 = arith.constant 7 : index
    %c0_44 = arith.constant 0 : index
    %155 = vector.load %arg7[%c7, %c0_44] : memref<20x128xf32, #tpu.memory_space<vmem>>, vector<1x128xf32>
    tpu.vector_store %arg7[%c7, %c0_44], %154 {strides = array<i32>} : memref<20x128xf32, #tpu.memory_space<vmem>>, vector<1x128xf32>,
    %156 = vector.extract_strided_slice %6 {offsets = [0, 8], sizes = [128, 1], strides = [1, 1]} : vector<128x20xf32> to vector<128x1xf32>
    %157 = vector.extract_strided_slice %11 {offsets = [8, 0], sizes = [1, 128], strides = [1, 1]} : vector<20x128xf32> to vector<1x128xf32>
    %158 = vector.extract_strided_slice %0 {offsets = [8, 0], sizes = [1, 128], strides = [1, 1]} : vector<20x128xf32> to vector<1x128xf32>
    %159 = vector.broadcast %156 : vector<128x1xf32> to vector<128x128xf32>
    %160 = vector.broadcast %157 : vector<1x128xf32> to vector<128x128xf32>
    %161 = arith.mulf %159, %160 : vector<128x128xf32>
    %cst_45 = arith.constant dense<0xFF800000> : vector<128xf32>
    %162 = vector.multi_reduction <maximumf>, %161, %cst_45 [0] : vector<128x128xf32> to vector<128xf32>
    %163 = vector.shape_cast %162 : vector<128xf32> to vector<1x128xf32>
    %164 = vector.broadcast %163 : vector<1x128xf32> to vector<128x128xf32>
    %165 = arith.subf %161, %164 : vector<128x128xf32>
    %166 = math.exp %165 : vector<128x128xf32>
    %cst_46 = arith.constant dense<0.000000e+00> : vector<1x128xf32>
    %167 = tpu.matmul %158, %166, %cst_46 {dimension_numbers = #tpu.dot_dimension_numbers<[1], [0], [0], [1], [0, 0, 1, 1], [], []>} : vector<1x128xf32>, vector<128x128xf32>, vector<1x128xf32> -> vector<1x128xf32>
    %cst_47 = arith.constant dense<0.000000e+00> : vector<128xf32>
    %168 = vector.multi_reduction <add>, %166, %cst_47 [0] : vector<128x128xf32> to vector<128xf32>
    %169 = vector.shape_cast %168 : vector<128xf32> to vector<1x128xf32>
    %170 = tpu.reciprocal %169 {approx = true} : vector<1x128xf32> -> vector<1x128xf32>
    %171 = arith.mulf %167, %170 : vector<1x128xf32>
    %172 = arith.addf %171, %158 : vector<1x128xf32>
    %c8 = arith.constant 8 : index
    %c0_48 = arith.constant 0 : index
    %173 = vector.load %arg7[%c8, %c0_48] : memref<20x128xf32, #tpu.memory_space<vmem>>, vector<1x128xf32>
    tpu.vector_store %arg7[%c8, %c0_48], %172 {strides = array<i32>} : memref<20x128xf32, #tpu.memory_space<vmem>>, vector<1x128xf32>,
    %174 = vector.extract_strided_slice %6 {offsets = [0, 9], sizes = [128, 1], strides = [1, 1]} : vector<128x20xf32> to vector<128x1xf32>
    %175 = vector.extract_strided_slice %11 {offsets = [9, 0], sizes = [1, 128], strides = [1, 1]} : vector<20x128xf32> to vector<1x128xf32>
    %176 = vector.extract_strided_slice %0 {offsets = [9, 0], sizes = [1, 128], strides = [1, 1]} : vector<20x128xf32> to vector<1x128xf32>
    %177 = vector.broadcast %174 : vector<128x1xf32> to vector<128x128xf32>
    %178 = vector.broadcast %175 : vector<1x128xf32> to vector<128x128xf32>
    %179 = arith.mulf %177, %178 : vector<128x128xf32>
    %cst_49 = arith.constant dense<0xFF800000> : vector<128xf32>
    %180 = vector.multi_reduction <maximumf>, %179, %cst_49 [0] : vector<128x128xf32> to vector<128xf32>
    %181 = vector.shape_cast %180 : vector<128xf32> to vector<1x128xf32>
    %182 = vector.broadcast %181 : vector<1x128xf32> to vector<128x128xf32>
    %183 = arith.subf %179, %182 : vector<128x128xf32>
    %184 = math.exp %183 : vector<128x128xf32>
    %cst_50 = arith.constant dense<0.000000e+00> : vector<1x128xf32>
    %185 = tpu.matmul %176, %184, %cst_50 {dimension_numbers = #tpu.dot_dimension_numbers<[1], [0], [0], [1], [0, 0, 1, 1], [], []>} : vector<1x128xf32>, vector<128x128xf32>, vector<1x128xf32> -> vector<1x128xf32>
    %cst_51 = arith.constant dense<0.000000e+00> : vector<128xf32>
    %186 = vector.multi_reduction <add>, %184, %cst_51 [0] : vector<128x128xf32> to vector<128xf32>
    %187 = vector.shape_cast %186 : vector<128xf32> to vector<1x128xf32>
    %188 = tpu.reciprocal %187 {approx = true} : vector<1x128xf32> -> vector<1x128xf32>
    %189 = arith.mulf %185, %188 : vector<1x128xf32>
    %190 = arith.addf %189, %176 : vector<1x128xf32>
    %c9 = arith.constant 9 : index
    %c0_52 = arith.constant 0 : index
    %191 = vector.load %arg7[%c9, %c0_52] : memref<20x128xf32, #tpu.memory_space<vmem>>, vector<1x128xf32>
    tpu.vector_store %arg7[%c9, %c0_52], %190 {strides = array<i32>} : memref<20x128xf32, #tpu.memory_space<vmem>>, vector<1x128xf32>,
    %192 = vector.extract_strided_slice %6 {offsets = [0, 10], sizes = [128, 1], strides = [1, 1]} : vector<128x20xf32> to vector<128x1xf32>
    %193 = vector.extract_strided_slice %11 {offsets = [10, 0], sizes = [1, 128], strides = [1, 1]} : vector<20x128xf32> to vector<1x128xf32>
    %194 = vector.extract_strided_slice %0 {offsets = [10, 0], sizes = [1, 128], strides = [1, 1]} : vector<20x128xf32> to vector<1x128xf32>
    %195 = vector.broadcast %192 : vector<128x1xf32> to vector<128x128xf32>
    %196 = vector.broadcast %193 : vector<1x128xf32> to vector<128x128xf32>
    %197 = arith.mulf %195, %196 : vector<128x128xf32>
    %cst_53 = arith.constant dense<0xFF800000> : vector<128xf32>
    %198 = vector.multi_reduction <maximumf>, %197, %cst_53 [0] : vector<128x128xf32> to vector<128xf32>
    %199 = vector.shape_cast %198 : vector<128xf32> to vector<1x128xf32>
    %200 = vector.broadcast %199 : vector<1x128xf32> to vector<128x128xf32>
    %201 = arith.subf %197, %200 : vector<128x128xf32>
    %202 = math.exp %201 : vector<128x128xf32>
    %cst_54 = arith.constant dense<0.000000e+00> : vector<1x128xf32>
    %203 = tpu.matmul %194, %202, %cst_54 {dimension_numbers = #tpu.dot_dimension_numbers<[1], [0], [0], [1], [0, 0, 1, 1], [], []>} : vector<1x128xf32>, vector<128x128xf32>, vector<1x128xf32> -> vector<1x128xf32>
    %cst_55 = arith.constant dense<0.000000e+00> : vector<128xf32>
    %204 = vector.multi_reduction <add>, %202, %cst_55 [0] : vector<128x128xf32> to vector<128xf32>
    %205 = vector.shape_cast %204 : vector<128xf32> to vector<1x128xf32>
    %206 = tpu.reciprocal %205 {approx = true} : vector<1x128xf32> -> vector<1x128xf32>
    %207 = arith.mulf %203, %206 : vector<1x128xf32>
    %208 = arith.addf %207, %194 : vector<1x128xf32>
    %c10 = arith.constant 10 : index
    %c0_56 = arith.constant 0 : index
    %209 = vector.load %arg7[%c10, %c0_56] : memref<20x128xf32, #tpu.memory_space<vmem>>, vector<1x128xf32>
    tpu.vector_store %arg7[%c10, %c0_56], %208 {strides = array<i32>} : memref<20x128xf32, #tpu.memory_space<vmem>>, vector<1x128xf32>,
    %210 = vector.extract_strided_slice %6 {offsets = [0, 11], sizes = [128, 1], strides = [1, 1]} : vector<128x20xf32> to vector<128x1xf32>
    %211 = vector.extract_strided_slice %11 {offsets = [11, 0], sizes = [1, 128], strides = [1, 1]} : vector<20x128xf32> to vector<1x128xf32>
    %212 = vector.extract_strided_slice %0 {offsets = [11, 0], sizes = [1, 128], strides = [1, 1]} : vector<20x128xf32> to vector<1x128xf32>
    %213 = vector.broadcast %210 : vector<128x1xf32> to vector<128x128xf32>
    %214 = vector.broadcast %211 : vector<1x128xf32> to vector<128x128xf32>
    %215 = arith.mulf %213, %214 : vector<128x128xf32>
    %cst_57 = arith.constant dense<0xFF800000> : vector<128xf32>
    %216 = vector.multi_reduction <maximumf>, %215, %cst_57 [0] : vector<128x128xf32> to vector<128xf32>
    %217 = vector.shape_cast %216 : vector<128xf32> to vector<1x128xf32>
    %218 = vector.broadcast %217 : vector<1x128xf32> to vector<128x128xf32>
    %219 = arith.subf %215, %218 : vector<128x128xf32>
    %220 = math.exp %219 : vector<128x128xf32>
    %cst_58 = arith.constant dense<0.000000e+00> : vector<1x128xf32>
    %221 = tpu.matmul %212, %220, %cst_58 {dimension_numbers = #tpu.dot_dimension_numbers<[1], [0], [0], [1], [0, 0, 1, 1], [], []>} : vector<1x128xf32>, vector<128x128xf32>, vector<1x128xf32> -> vector<1x128xf32>
    %cst_59 = arith.constant dense<0.000000e+00> : vector<128xf32>
    %222 = vector.multi_reduction <add>, %220, %cst_59 [0] : vector<128x128xf32> to vector<128xf32>
    %223 = vector.shape_cast %222 : vector<128xf32> to vector<1x128xf32>
    %224 = tpu.reciprocal %223 {approx = true} : vector<1x128xf32> -> vector<1x128xf32>
    %225 = arith.mulf %221, %224 : vector<1x128xf32>
    %226 = arith.addf %225, %212 : vector<1x128xf32>
    %c11 = arith.constant 11 : index
    %c0_60 = arith.constant 0 : index
    %227 = vector.load %arg7[%c11, %c0_60] : memref<20x128xf32, #tpu.memory_space<vmem>>, vector<1x128xf32>
    tpu.vector_store %arg7[%c11, %c0_60], %226 {strides = array<i32>} : memref<20x128xf32, #tpu.memory_space<vmem>>, vector<1x128xf32>,
    %228 = vector.extract_strided_slice %6 {offsets = [0, 12], sizes = [128, 1], strides = [1, 1]} : vector<128x20xf32> to vector<128x1xf32>
    %229 = vector.extract_strided_slice %11 {offsets = [12, 0], sizes = [1, 128], strides = [1, 1]} : vector<20x128xf32> to vector<1x128xf32>
    %230 = vector.extract_strided_slice %0 {offsets = [12, 0], sizes = [1, 128], strides = [1, 1]} : vector<20x128xf32> to vector<1x128xf32>
    %231 = vector.broadcast %228 : vector<128x1xf32> to vector<128x128xf32>
    %232 = vector.broadcast %229 : vector<1x128xf32> to vector<128x128xf32>
    %233 = arith.mulf %231, %232 : vector<128x128xf32>
    %cst_61 = arith.constant dense<0xFF800000> : vector<128xf32>
    %234 = vector.multi_reduction <maximumf>, %233, %cst_61 [0] : vector<128x128xf32> to vector<128xf32>
    %235 = vector.shape_cast %234 : vector<128xf32> to vector<1x128xf32>
    %236 = vector.broadcast %235 : vector<1x128xf32> to vector<128x128xf32>
    %237 = arith.subf %233, %236 : vector<128x128xf32>
    %238 = math.exp %237 : vector<128x128xf32>
    %cst_62 = arith.constant dense<0.000000e+00> : vector<1x128xf32>
    %239 = tpu.matmul %230, %238, %cst_62 {dimension_numbers = #tpu.dot_dimension_numbers<[1], [0], [0], [1], [0, 0, 1, 1], [], []>} : vector<1x128xf32>, vector<128x128xf32>, vector<1x128xf32> -> vector<1x128xf32>
    %cst_63 = arith.constant dense<0.000000e+00> : vector<128xf32>
    %240 = vector.multi_reduction <add>, %238, %cst_63 [0] : vector<128x128xf32> to vector<128xf32>
    %241 = vector.shape_cast %240 : vector<128xf32> to vector<1x128xf32>
    %242 = tpu.reciprocal %241 {approx = true} : vector<1x128xf32> -> vector<1x128xf32>
    %243 = arith.mulf %239, %242 : vector<1x128xf32>
    %244 = arith.addf %243, %230 : vector<1x128xf32>
    %c12 = arith.constant 12 : index
    %c0_64 = arith.constant 0 : index
    %245 = vector.load %arg7[%c12, %c0_64] : memref<20x128xf32, #tpu.memory_space<vmem>>, vector<1x128xf32>
    tpu.vector_store %arg7[%c12, %c0_64], %244 {strides = array<i32>} : memref<20x128xf32, #tpu.memory_space<vmem>>, vector<1x128xf32>,
    %246 = vector.extract_strided_slice %6 {offsets = [0, 13], sizes = [128, 1], strides = [1, 1]} : vector<128x20xf32> to vector<128x1xf32>
    %247 = vector.extract_strided_slice %11 {offsets = [13, 0], sizes = [1, 128], strides = [1, 1]} : vector<20x128xf32> to vector<1x128xf32>
    %248 = vector.extract_strided_slice %0 {offsets = [13, 0], sizes = [1, 128], strides = [1, 1]} : vector<20x128xf32> to vector<1x128xf32>
    %249 = vector.broadcast %246 : vector<128x1xf32> to vector<128x128xf32>
    %250 = vector.broadcast %247 : vector<1x128xf32> to vector<128x128xf32>
    %251 = arith.mulf %249, %250 : vector<128x128xf32>
    %cst_65 = arith.constant dense<0xFF800000> : vector<128xf32>
    %252 = vector.multi_reduction <maximumf>, %251, %cst_65 [0] : vector<128x128xf32> to vector<128xf32>
    %253 = vector.shape_cast %252 : vector<128xf32> to vector<1x128xf32>
    %254 = vector.broadcast %253 : vector<1x128xf32> to vector<128x128xf32>
    %255 = arith.subf %251, %254 : vector<128x128xf32>
    %256 = math.exp %255 : vector<128x128xf32>
    %cst_66 = arith.constant dense<0.000000e+00> : vector<1x128xf32>
    %257 = tpu.matmul %248, %256, %cst_66 {dimension_numbers = #tpu.dot_dimension_numbers<[1], [0], [0], [1], [0, 0, 1, 1], [], []>} : vector<1x128xf32>, vector<128x128xf32>, vector<1x128xf32> -> vector<1x128xf32>
    %cst_67 = arith.constant dense<0.000000e+00> : vector<128xf32>
    %258 = vector.multi_reduction <add>, %256, %cst_67 [0] : vector<128x128xf32> to vector<128xf32>
    %259 = vector.shape_cast %258 : vector<128xf32> to vector<1x128xf32>
    %260 = tpu.reciprocal %259 {approx = true} : vector<1x128xf32> -> vector<1x128xf32>
    %261 = arith.mulf %257, %260 : vector<1x128xf32>
    %262 = arith.addf %261, %248 : vector<1x128xf32>
    %c13 = arith.constant 13 : index
    %c0_68 = arith.constant 0 : index
    %263 = vector.load %arg7[%c13, %c0_68] : memref<20x128xf32, #tpu.memory_space<vmem>>, vector<1x128xf32>
    tpu.vector_store %arg7[%c13, %c0_68], %262 {strides = array<i32>} : memref<20x128xf32, #tpu.memory_space<vmem>>, vector<1x128xf32>,
    %264 = vector.extract_strided_slice %6 {offsets = [0, 14], sizes = [128, 1], strides = [1, 1]} : vector<128x20xf32> to vector<128x1xf32>
    %265 = vector.extract_strided_slice %11 {offsets = [14, 0], sizes = [1, 128], strides = [1, 1]} : vector<20x128xf32> to vector<1x128xf32>
    %266 = vector.extract_strided_slice %0 {offsets = [14, 0], sizes = [1, 128], strides = [1, 1]} : vector<20x128xf32> to vector<1x128xf32>
    %267 = vector.broadcast %264 : vector<128x1xf32> to vector<128x128xf32>
    %268 = vector.broadcast %265 : vector<1x128xf32> to vector<128x128xf32>
    %269 = arith.mulf %267, %268 : vector<128x128xf32>
    %cst_69 = arith.constant dense<0xFF800000> : vector<128xf32>
    %270 = vector.multi_reduction <maximumf>, %269, %cst_69 [0] : vector<128x128xf32> to vector<128xf32>
    %271 = vector.shape_cast %270 : vector<128xf32> to vector<1x128xf32>
    %272 = vector.broadcast %271 : vector<1x128xf32> to vector<128x128xf32>
    %273 = arith.subf %269, %272 : vector<128x128xf32>
    %274 = math.exp %273 : vector<128x128xf32>
    %cst_70 = arith.constant dense<0.000000e+00> : vector<1x128xf32>
    %275 = tpu.matmul %266, %274, %cst_70 {dimension_numbers = #tpu.dot_dimension_numbers<[1], [0], [0], [1], [0, 0, 1, 1], [], []>} : vector<1x128xf32>, vector<128x128xf32>, vector<1x128xf32> -> vector<1x128xf32>
    %cst_71 = arith.constant dense<0.000000e+00> : vector<128xf32>
    %276 = vector.multi_reduction <add>, %274, %cst_71 [0] : vector<128x128xf32> to vector<128xf32>
    %277 = vector.shape_cast %276 : vector<128xf32> to vector<1x128xf32>
    %278 = tpu.reciprocal %277 {approx = true} : vector<1x128xf32> -> vector<1x128xf32>
    %279 = arith.mulf %275, %278 : vector<1x128xf32>
    %280 = arith.addf %279, %266 : vector<1x128xf32>
    %c14 = arith.constant 14 : index
    %c0_72 = arith.constant 0 : index
    %281 = vector.load %arg7[%c14, %c0_72] : memref<20x128xf32, #tpu.memory_space<vmem>>, vector<1x128xf32>
    tpu.vector_store %arg7[%c14, %c0_72], %280 {strides = array<i32>} : memref<20x128xf32, #tpu.memory_space<vmem>>, vector<1x128xf32>,
    %282 = vector.extract_strided_slice %6 {offsets = [0, 15], sizes = [128, 1], strides = [1, 1]} : vector<128x20xf32> to vector<128x1xf32>
    %283 = vector.extract_strided_slice %11 {offsets = [15, 0], sizes = [1, 128], strides = [1, 1]} : vector<20x128xf32> to vector<1x128xf32>
    %284 = vector.extract_strided_slice %0 {offsets = [15, 0], sizes = [1, 128], strides = [1, 1]} : vector<20x128xf32> to vector<1x128xf32>
    %285 = vector.broadcast %282 : vector<128x1xf32> to vector<128x128xf32>
    %286 = vector.broadcast %283 : vector<1x128xf32> to vector<128x128xf32>
    %287 = arith.mulf %285, %286 : vector<128x128xf32>
    %cst_73 = arith.constant dense<0xFF800000> : vector<128xf32>
    %288 = vector.multi_reduction <maximumf>, %287, %cst_73 [0] : vector<128x128xf32> to vector<128xf32>
    %289 = vector.shape_cast %288 : vector<128xf32> to vector<1x128xf32>
    %290 = vector.broadcast %289 : vector<1x128xf32> to vector<128x128xf32>
    %291 = arith.subf %287, %290 : vector<128x128xf32>
    %292 = math.exp %291 : vector<128x128xf32>
    %cst_74 = arith.constant dense<0.000000e+00> : vector<1x128xf32>
    %293 = tpu.matmul %284, %292, %cst_74 {dimension_numbers = #tpu.dot_dimension_numbers<[1], [0], [0], [1], [0, 0, 1, 1], [], []>} : vector<1x128xf32>, vector<128x128xf32>, vector<1x128xf32> -> vector<1x128xf32>
    %cst_75 = arith.constant dense<0.000000e+00> : vector<128xf32>
    %294 = vector.multi_reduction <add>, %292, %cst_75 [0] : vector<128x128xf32> to vector<128xf32>
    %295 = vector.shape_cast %294 : vector<128xf32> to vector<1x128xf32>
    %296 = tpu.reciprocal %295 {approx = true} : vector<1x128xf32> -> vector<1x128xf32>
    %297 = arith.mulf %293, %296 : vector<1x128xf32>
    %298 = arith.addf %297, %284 : vector<1x128xf32>
    %c15 = arith.constant 15 : index
    %c0_76 = arith.constant 0 : index
    %299 = vector.load %arg7[%c15, %c0_76] : memref<20x128xf32, #tpu.memory_space<vmem>>, vector<1x128xf32>
    tpu.vector_store %arg7[%c15, %c0_76], %298 {strides = array<i32>} : memref<20x128xf32, #tpu.memory_space<vmem>>, vector<1x128xf32>,
    %300 = vector.extract_strided_slice %6 {offsets = [0, 16], sizes = [128, 1], strides = [1, 1]} : vector<128x20xf32> to vector<128x1xf32>
    %301 = vector.extract_strided_slice %11 {offsets = [16, 0], sizes = [1, 128], strides = [1, 1]} : vector<20x128xf32> to vector<1x128xf32>
    %302 = vector.extract_strided_slice %0 {offsets = [16, 0], sizes = [1, 128], strides = [1, 1]} : vector<20x128xf32> to vector<1x128xf32>
    %303 = vector.broadcast %300 : vector<128x1xf32> to vector<128x128xf32>
    %304 = vector.broadcast %301 : vector<1x128xf32> to vector<128x128xf32>
    %305 = arith.mulf %303, %304 : vector<128x128xf32>
    %cst_77 = arith.constant dense<0xFF800000> : vector<128xf32>
    %306 = vector.multi_reduction <maximumf>, %305, %cst_77 [0] : vector<128x128xf32> to vector<128xf32>
    %307 = vector.shape_cast %306 : vector<128xf32> to vector<1x128xf32>
    %308 = vector.broadcast %307 : vector<1x128xf32> to vector<128x128xf32>
    %309 = arith.subf %305, %308 : vector<128x128xf32>
    %310 = math.exp %309 : vector<128x128xf32>
    %cst_78 = arith.constant dense<0.000000e+00> : vector<1x128xf32>
    %311 = tpu.matmul %302, %310, %cst_78 {dimension_numbers = #tpu.dot_dimension_numbers<[1], [0], [0], [1], [0, 0, 1, 1], [], []>} : vector<1x128xf32>, vector<128x128xf32>, vector<1x128xf32> -> vector<1x128xf32>
    %cst_79 = arith.constant dense<0.000000e+00> : vector<128xf32>
    %312 = vector.multi_reduction <add>, %310, %cst_79 [0] : vector<128x128xf32> to vector<128xf32>
    %313 = vector.shape_cast %312 : vector<128xf32> to vector<1x128xf32>
    %314 = tpu.reciprocal %313 {approx = true} : vector<1x128xf32> -> vector<1x128xf32>
    %315 = arith.mulf %311, %314 : vector<1x128xf32>
    %316 = arith.addf %315, %302 : vector<1x128xf32>
    %c16 = arith.constant 16 : index
    %c0_80 = arith.constant 0 : index
    %317 = vector.load %arg7[%c16, %c0_80] : memref<20x128xf32, #tpu.memory_space<vmem>>, vector<1x128xf32>
    tpu.vector_store %arg7[%c16, %c0_80], %316 {strides = array<i32>} : memref<20x128xf32, #tpu.memory_space<vmem>>, vector<1x128xf32>,
    %318 = vector.extract_strided_slice %6 {offsets = [0, 17], sizes = [128, 1], strides = [1, 1]} : vector<128x20xf32> to vector<128x1xf32>
    %319 = vector.extract_strided_slice %11 {offsets = [17, 0], sizes = [1, 128], strides = [1, 1]} : vector<20x128xf32> to vector<1x128xf32>
    %320 = vector.extract_strided_slice %0 {offsets = [17, 0], sizes = [1, 128], strides = [1, 1]} : vector<20x128xf32> to vector<1x128xf32>
    %321 = vector.broadcast %318 : vector<128x1xf32> to vector<128x128xf32>
    %322 = vector.broadcast %319 : vector<1x128xf32> to vector<128x128xf32>
    %323 = arith.mulf %321, %322 : vector<128x128xf32>
    %cst_81 = arith.constant dense<0xFF800000> : vector<128xf32>
    %324 = vector.multi_reduction <maximumf>, %323, %cst_81 [0] : vector<128x128xf32> to vector<128xf32>
    %325 = vector.shape_cast %324 : vector<128xf32> to vector<1x128xf32>
    %326 = vector.broadcast %325 : vector<1x128xf32> to vector<128x128xf32>
    %327 = arith.subf %323, %326 : vector<128x128xf32>
    %328 = math.exp %327 : vector<128x128xf32>
    %cst_82 = arith.constant dense<0.000000e+00> : vector<1x128xf32>
    %329 = tpu.matmul %320, %328, %cst_82 {dimension_numbers = #tpu.dot_dimension_numbers<[1], [0], [0], [1], [0, 0, 1, 1], [], []>} : vector<1x128xf32>, vector<128x128xf32>, vector<1x128xf32> -> vector<1x128xf32>
    %cst_83 = arith.constant dense<0.000000e+00> : vector<128xf32>
    %330 = vector.multi_reduction <add>, %328, %cst_83 [0] : vector<128x128xf32> to vector<128xf32>
    %331 = vector.shape_cast %330 : vector<128xf32> to vector<1x128xf32>
    %332 = tpu.reciprocal %331 {approx = true} : vector<1x128xf32> -> vector<1x128xf32>
    %333 = arith.mulf %329, %332 : vector<1x128xf32>
    %334 = arith.addf %333, %320 : vector<1x128xf32>
    %c17 = arith.constant 17 : index
    %c0_84 = arith.constant 0 : index
    %335 = vector.load %arg7[%c17, %c0_84] : memref<20x128xf32, #tpu.memory_space<vmem>>, vector<1x128xf32>
    tpu.vector_store %arg7[%c17, %c0_84], %334 {strides = array<i32>} : memref<20x128xf32, #tpu.memory_space<vmem>>, vector<1x128xf32>,
    %336 = vector.extract_strided_slice %6 {offsets = [0, 18], sizes = [128, 1], strides = [1, 1]} : vector<128x20xf32> to vector<128x1xf32>
    %337 = vector.extract_strided_slice %11 {offsets = [18, 0], sizes = [1, 128], strides = [1, 1]} : vector<20x128xf32> to vector<1x128xf32>
    %338 = vector.extract_strided_slice %0 {offsets = [18, 0], sizes = [1, 128], strides = [1, 1]} : vector<20x128xf32> to vector<1x128xf32>
    %339 = vector.broadcast %336 : vector<128x1xf32> to vector<128x128xf32>
    %340 = vector.broadcast %337 : vector<1x128xf32> to vector<128x128xf32>
    %341 = arith.mulf %339, %340 : vector<128x128xf32>
    %cst_85 = arith.constant dense<0xFF800000> : vector<128xf32>
    %342 = vector.multi_reduction <maximumf>, %341, %cst_85 [0] : vector<128x128xf32> to vector<128xf32>
    %343 = vector.shape_cast %342 : vector<128xf32> to vector<1x128xf32>
    %344 = vector.broadcast %343 : vector<1x128xf32> to vector<128x128xf32>
    %345 = arith.subf %341, %344 : vector<128x128xf32>
    %346 = math.exp %345 : vector<128x128xf32>
    %cst_86 = arith.constant dense<0.000000e+00> : vector<1x128xf32>
    %347 = tpu.matmul %338, %346, %cst_86 {dimension_numbers = #tpu.dot_dimension_numbers<[1], [0], [0], [1], [0, 0, 1, 1], [], []>} : vector<1x128xf32>, vector<128x128xf32>, vector<1x128xf32> -> vector<1x128xf32>
    %cst_87 = arith.constant dense<0.000000e+00> : vector<128xf32>
    %348 = vector.multi_reduction <add>, %346, %cst_87 [0] : vector<128x128xf32> to vector<128xf32>
    %349 = vector.shape_cast %348 : vector<128xf32> to vector<1x128xf32>
    %350 = tpu.reciprocal %349 {approx = true} : vector<1x128xf32> -> vector<1x128xf32>
    %351 = arith.mulf %347, %350 : vector<1x128xf32>
    %352 = arith.addf %351, %338 : vector<1x128xf32>
    %c18 = arith.constant 18 : index
    %c0_88 = arith.constant 0 : index
    %353 = vector.load %arg7[%c18, %c0_88] : memref<20x128xf32, #tpu.memory_space<vmem>>, vector<1x128xf32>
    tpu.vector_store %arg7[%c18, %c0_88], %352 {strides = array<i32>} : memref<20x128xf32, #tpu.memory_space<vmem>>, vector<1x128xf32>,
    %354 = vector.extract_strided_slice %6 {offsets = [0, 19], sizes = [128, 1], strides = [1, 1]} : vector<128x20xf32> to vector<128x1xf32>
    %355 = vector.extract_strided_slice %11 {offsets = [19, 0], sizes = [1, 128], strides = [1, 1]} : vector<20x128xf32> to vector<1x128xf32>
    %356 = vector.extract_strided_slice %0 {offsets = [19, 0], sizes = [1, 128], strides = [1, 1]} : vector<20x128xf32> to vector<1x128xf32>
    %357 = vector.broadcast %354 : vector<128x1xf32> to vector<128x128xf32>
    %358 = vector.broadcast %355 : vector<1x128xf32> to vector<128x128xf32>
    %359 = arith.mulf %357, %358 : vector<128x128xf32>
    %cst_89 = arith.constant dense<0xFF800000> : vector<128xf32>
    %360 = vector.multi_reduction <maximumf>, %359, %cst_89 [0] : vector<128x128xf32> to vector<128xf32>
    %361 = vector.shape_cast %360 : vector<128xf32> to vector<1x128xf32>
    %362 = vector.broadcast %361 : vector<1x128xf32> to vector<128x128xf32>
    %363 = arith.subf %359, %362 : vector<128x128xf32>
    %364 = math.exp %363 : vector<128x128xf32>
    %cst_90 = arith.constant dense<0.000000e+00> : vector<1x128xf32>
    %365 = tpu.matmul %356, %364, %cst_90 {dimension_numbers = #tpu.dot_dimension_numbers<[1], [0], [0], [1], [0, 0, 1, 1], [], []>} : vector<1x128xf32>, vector<128x128xf32>, vector<1x128xf32> -> vector<1x128xf32>
    %cst_91 = arith.constant dense<0.000000e+00> : vector<128xf32>
    %366 = vector.multi_reduction <add>, %364, %cst_91 [0] : vector<128x128xf32> to vector<128xf32>
    %367 = vector.shape_cast %366 : vector<128xf32> to vector<1x128xf32>
    %368 = tpu.reciprocal %367 {approx = true} : vector<1x128xf32> -> vector<1x128xf32>
    %369 = arith.mulf %365, %368 : vector<1x128xf32>
    %370 = arith.addf %369, %356 : vector<1x128xf32>
    %c19 = arith.constant 19 : index
    %c0_92 = arith.constant 0 : index
    %371 = vector.load %arg7[%c19, %c0_92] : memref<20x128xf32, #tpu.memory_space<vmem>>, vector<1x128xf32>
    tpu.vector_store %arg7[%c19, %c0_92], %370 {strides = array<i32>} : memref<20x128xf32, #tpu.memory_space<vmem>>, vector<1x128xf32>,
    %c0_93 = arith.constant 0 : index
    %c0_94 = arith.constant 0 : index
    %372 = vector.load %arg7[%c0_93, %c0_94] : memref<20x128xf32, #tpu.memory_space<vmem>>, vector<20x128xf32>
    %373 = vector.extract_strided_slice %372 {offsets = [0, 0], sizes = [4, 128], strides = [1, 1]} : vector<20x128xf32> to vector<4x128xf32>
    %374 = vector.extract_strided_slice %372 {offsets = [4, 0], sizes = [16, 128], strides = [1, 1]} : vector<20x128xf32> to vector<16x128xf32>
    %375 = arith.mulf %373, %373 : vector<4x128xf32>
    %cst_95 = arith.constant dense<0.000000e+00> : vector<4xf32>
    %376 = vector.multi_reduction <add>, %375, %cst_95 [1] : vector<4x128xf32> to vector<4xf32>
    %377 = vector.shape_cast %376 : vector<4xf32> to vector<4x1xf32>
    %378 = math.sqrt %377 : vector<4x1xf32>
    %cst_96 = arith.constant 9.99999993E-9 : f32
    %379 = vector.broadcast %cst_96 : f32 to vector<4x1xf32>
    %380 = arith.maximumf %378, %379 : vector<4x1xf32>
    %381 = vector.broadcast %380 : vector<4x1xf32> to vector<4x128xf32>
    %382 = arith.divf %373, %381 : vector<4x128xf32>
    %383 = arith.mulf %374, %374 : vector<16x128xf32>
    %cst_97 = arith.constant dense<0.000000e+00> : vector<16xf32>
    %384 = vector.multi_reduction <add>, %383, %cst_97 [1] : vector<16x128xf32> to vector<16xf32>
    %385 = vector.shape_cast %384 : vector<16xf32> to vector<16x1xf32>
    %386 = math.sqrt %385 : vector<16x1xf32>
    %cst_98 = arith.constant 9.99999993E-9 : f32
    %387 = vector.broadcast %cst_98 : f32 to vector<16x1xf32>
    %388 = arith.maximumf %386, %387 : vector<16x1xf32>
    %389 = vector.broadcast %388 : vector<16x1xf32> to vector<16x128xf32>
    %390 = arith.divf %374, %389 : vector<16x128xf32>
    %cst_99 = arith.constant dense<0.000000e+00> : vector<4x16xf32>
    %391 = tpu.matmul %382, %390, %cst_99 {dimension_numbers = #tpu.dot_dimension_numbers<[1], [1], [0], [0], [0, 0, 1, 0], [], []>} : vector<4x128xf32>, vector<16x128xf32>, vector<4x16xf32> -> vector<4x16xf32>
    %c0_100 = arith.constant 0 : index
    %c0_101 = arith.constant 0 : index
    %392 = vector.load %arg8[%c0_100, %c0_101] : memref<4x16xf32, #tpu.memory_space<vmem>>, vector<4x16xf32>
    tpu.vector_store %arg8[%c0_100, %c0_101], %391 {strides = array<i32>} : memref<4x16xf32, #tpu.memory_space<vmem>>, vector<4x16xf32>,
    return
  }
  func.func @transform_0(%arg0: i32) -> (i32, i32) {
    %c0_i32 = arith.constant 0 : i32
    %c0_i32_0 = arith.constant 0 : i32
    %c0_i32_1 = arith.constant 0 : i32
    return %c0_i32, %c0_i32_0 : i32, i32
  }
  func.func @transform_1(%arg0: i32) -> (i32, i32) {
    %c0_i32 = arith.constant 0 : i32
    %c0_i32_0 = arith.constant 0 : i32
    %c0_i32_1 = arith.constant 0 : i32
    return %c0_i32, %c0_i32_0 : i32, i32
  }
  func.func @transform_2(%arg0: i32) -> (i32, i32) {
    %c0_i32 = arith.constant 0 : i32
    %c0_i32_0 = arith.constant 0 : i32
    %c0_i32_1 = arith.constant 0 : i32
    return %c0_i32, %c0_i32_0 : i32, i32
  }
  func.func @transform_3(%arg0: i32) -> (i32, i32) {
    %c0_i32 = arith.constant 0 : i32
    %c0_i32_0 = arith.constant 0 : i32
    %c0_i32_1 = arith.constant 0 : i32
    return %c0_i32, %c0_i32_0 : i32, i32
  }
  func.func @transform_4(%arg0: i32) -> (i32, i32) {
    %c0_i32 = arith.constant 0 : i32
    %c0_i32_0 = arith.constant 0 : i32
    %c0_i32_1 = arith.constant 0 : i32
    return %c0_i32, %c0_i32_0 : i32, i32
  }
  func.func @transform_5(%arg0: i32) -> (i32, i32) {
    %c0_i32 = arith.constant 0 : i32
    %c0_i32_0 = arith.constant 0 : i32
    %c0_i32_1 = arith.constant 0 : i32
    return %c0_i32, %c0_i32_0 : i32, i32
  }
  func.func @transform_6(%arg0: i32) -> (i32, i32) {
    %c0_i32 = arith.constant 0 : i32
    %c0_i32_0 = arith.constant 0 : i32
    %c0_i32_1 = arith.constant 0 : i32
    return %c0_i32, %c0_i32_0 : i32, i32
  }
  func.func @transform_7(%arg0: i32) -> (i32, i32) {
    %c0_i32 = arith.constant 0 : i32
    %c0_i32_0 = arith.constant 0 : i32
    %c0_i32_1 = arith.constant 0 : i32
    return %c0_i32, %c0_i32_0 : i32, i32
  }
}

module attributes {stable_mosaic.version = 11 : i64} {
  func.func @kernel(%arg0: i32, %arg1: memref<14x512xf32, #tpu.memory_space<vmem>>, %arg2: memref<3x2048xf32, #tpu.memory_space<vmem>>, %arg3: memref<16x14xf32, #tpu.memory_space<vmem>>, %arg4: memref<16x1xf32, #tpu.memory_space<vmem>>, %arg5: memref<14x16xf32, #tpu.memory_space<vmem>>, %arg6: memref<14x1xf32, #tpu.memory_space<vmem>>, %arg7: memref<16x3xf32, #tpu.memory_space<vmem>>, %arg8: memref<16x1xf32, #tpu.memory_space<vmem>>, %arg9: memref<3x16xf32, #tpu.memory_space<vmem>>, %arg10: memref<3x1xf32, #tpu.memory_space<vmem>>, %arg11: memref<16x4xf32, #tpu.memory_space<vmem>>, %arg12: memref<16x4xf32, #tpu.memory_space<vmem>>) attributes {dimension_semantics = [#tpu.dimension_semantics<arbitrary>], iteration_bounds = array<i64: 1>, scalar_prefetch = 0 : i64, scratch_operands = 0 : i64, tpu.core_type = #tpu.core_type<tc>, window_params = [{pipeline_mode = #tpu.pipeline_mode<synchronous>, transform_indices = @transform_0, window_bounds = array<i64: 14, 512>}, {pipeline_mode = #tpu.pipeline_mode<synchronous>, transform_indices = @transform_1, window_bounds = array<i64: 3, 2048>}, {pipeline_mode = #tpu.pipeline_mode<synchronous>, transform_indices = @transform_2, window_bounds = array<i64: 16, 14>}, {pipeline_mode = #tpu.pipeline_mode<synchronous>, transform_indices = @transform_3, window_bounds = array<i64: 16, 1>}, {pipeline_mode = #tpu.pipeline_mode<synchronous>, transform_indices = @transform_4, window_bounds = array<i64: 14, 16>}, {pipeline_mode = #tpu.pipeline_mode<synchronous>, transform_indices = @transform_5, window_bounds = array<i64: 14, 1>}, {pipeline_mode = #tpu.pipeline_mode<synchronous>, transform_indices = @transform_6, window_bounds = array<i64: 16, 3>}, {pipeline_mode = #tpu.pipeline_mode<synchronous>, transform_indices = @transform_7, window_bounds = array<i64: 16, 1>}, {pipeline_mode = #tpu.pipeline_mode<synchronous>, transform_indices = @transform_8, window_bounds = array<i64: 3, 16>}, {pipeline_mode = #tpu.pipeline_mode<synchronous>, transform_indices = @transform_9, window_bounds = array<i64: 3, 1>}, {pipeline_mode = #tpu.pipeline_mode<synchronous>, transform_indices = @transform_10, window_bounds = array<i64: 16, 4>}, {pipeline_mode = #tpu.pipeline_mode<synchronous>, transform_indices = @transform_11, window_bounds = array<i64: 16, 4>}]} {
    %c0 = arith.constant 0 : index
    %c0_0 = arith.constant 0 : index
    %0 = vector.load %arg1[%c0, %c0_0] : memref<14x512xf32, #tpu.memory_space<vmem>>, vector<14x512xf32>
    %c0_1 = arith.constant 0 : index
    %c0_2 = arith.constant 0 : index
    %1 = vector.load %arg3[%c0_1, %c0_2] : memref<16x14xf32, #tpu.memory_space<vmem>>, vector<16x14xf32>
    %c0_3 = arith.constant 0 : index
    %c0_4 = arith.constant 0 : index
    %2 = vector.load %arg4[%c0_3, %c0_4] : memref<16x1xf32, #tpu.memory_space<vmem>>, vector<16x1xf32>
    %c0_5 = arith.constant 0 : index
    %c0_6 = arith.constant 0 : index
    %3 = vector.load %arg5[%c0_5, %c0_6] : memref<14x16xf32, #tpu.memory_space<vmem>>, vector<14x16xf32>
    %c0_7 = arith.constant 0 : index
    %c0_8 = arith.constant 0 : index
    %4 = vector.load %arg6[%c0_7, %c0_8] : memref<14x1xf32, #tpu.memory_space<vmem>>, vector<14x1xf32>
    %cst = arith.constant dense<0.000000e+00> : vector<16x512xf32>
    %5 = tpu.matmul %1, %0, %cst {dimension_numbers = #tpu.dot_dimension_numbers<[1], [0], [0], [1], [0, 0, 1, 1], [], []>} : vector<16x14xf32>, vector<14x512xf32>, vector<16x512xf32> -> vector<16x512xf32>
    %6 = vector.broadcast %2 : vector<16x1xf32> to vector<16x512xf32>
    %7 = arith.addf %5, %6 : vector<16x512xf32>
    %cst_9 = arith.constant 0.000000e+00 : f32
    %8 = vector.broadcast %cst_9 : f32 to vector<16x512xf32>
    %9 = arith.maximumf %7, %8 : vector<16x512xf32>
    %cst_10 = arith.constant dense<0.000000e+00> : vector<14x512xf32>
    %10 = tpu.matmul %3, %9, %cst_10 {dimension_numbers = #tpu.dot_dimension_numbers<[1], [0], [0], [1], [0, 0, 1, 1], [], []>} : vector<14x16xf32>, vector<16x512xf32>, vector<14x512xf32> -> vector<14x512xf32>
    %11 = vector.broadcast %4 : vector<14x1xf32> to vector<14x512xf32>
    %12 = arith.addf %10, %11 : vector<14x512xf32>
    %cst_11 = arith.constant dense<0xFF800000> : vector<512xf32>
    %13 = vector.multi_reduction <maximumf>, %12, %cst_11 [0] : vector<14x512xf32> to vector<512xf32>
    %14 = vector.shape_cast %13 : vector<512xf32> to vector<1x512xf32>
    %15 = vector.broadcast %14 : vector<1x512xf32> to vector<14x512xf32>
    %16 = arith.subf %12, %15 : vector<14x512xf32>
    %17 = math.exp %16 : vector<14x512xf32>
    %18 = arith.mulf %0, %17 : vector<14x512xf32>
    %cst_12 = arith.constant dense<0.000000e+00> : vector<512xf32>
    %19 = vector.multi_reduction <add>, %18, %cst_12 [0] : vector<14x512xf32> to vector<512xf32>
    %20 = vector.shape_cast %19 : vector<512xf32> to vector<1x512xf32>
    %cst_13 = arith.constant dense<0.000000e+00> : vector<512xf32>
    %21 = vector.multi_reduction <add>, %17, %cst_13 [0] : vector<14x512xf32> to vector<512xf32>
    %22 = vector.shape_cast %21 : vector<512xf32> to vector<1x512xf32>
    %23 = tpu.reciprocal %22 {approx = true} : vector<1x512xf32> -> vector<1x512xf32>
    %24 = arith.mulf %20, %23 : vector<1x512xf32>
    %c0_14 = arith.constant 0 : index
    %c0_15 = arith.constant 0 : index
    %25 = vector.load %arg2[%c0_14, %c0_15] : memref<3x2048xf32, #tpu.memory_space<vmem>>, vector<3x2048xf32>
    %c0_16 = arith.constant 0 : index
    %c0_17 = arith.constant 0 : index
    %26 = vector.load %arg7[%c0_16, %c0_17] : memref<16x3xf32, #tpu.memory_space<vmem>>, vector<16x3xf32>
    %c0_18 = arith.constant 0 : index
    %c0_19 = arith.constant 0 : index
    %27 = vector.load %arg8[%c0_18, %c0_19] : memref<16x1xf32, #tpu.memory_space<vmem>>, vector<16x1xf32>
    %c0_20 = arith.constant 0 : index
    %c0_21 = arith.constant 0 : index
    %28 = vector.load %arg9[%c0_20, %c0_21] : memref<3x16xf32, #tpu.memory_space<vmem>>, vector<3x16xf32>
    %c0_22 = arith.constant 0 : index
    %c0_23 = arith.constant 0 : index
    %29 = vector.load %arg10[%c0_22, %c0_23] : memref<3x1xf32, #tpu.memory_space<vmem>>, vector<3x1xf32>
    %cst_24 = arith.constant dense<0.000000e+00> : vector<16x2048xf32>
    %30 = tpu.matmul %26, %25, %cst_24 {dimension_numbers = #tpu.dot_dimension_numbers<[1], [0], [0], [1], [0, 0, 1, 1], [], []>} : vector<16x3xf32>, vector<3x2048xf32>, vector<16x2048xf32> -> vector<16x2048xf32>
    %31 = vector.broadcast %27 : vector<16x1xf32> to vector<16x2048xf32>
    %32 = arith.addf %30, %31 : vector<16x2048xf32>
    %cst_25 = arith.constant 0.000000e+00 : f32
    %33 = vector.broadcast %cst_25 : f32 to vector<16x2048xf32>
    %34 = arith.maximumf %32, %33 : vector<16x2048xf32>
    %cst_26 = arith.constant dense<0.000000e+00> : vector<3x2048xf32>
    %35 = tpu.matmul %28, %34, %cst_26 {dimension_numbers = #tpu.dot_dimension_numbers<[1], [0], [0], [1], [0, 0, 1, 1], [], []>} : vector<3x16xf32>, vector<16x2048xf32>, vector<3x2048xf32> -> vector<3x2048xf32>
    %36 = vector.broadcast %29 : vector<3x1xf32> to vector<3x2048xf32>
    %37 = arith.addf %35, %36 : vector<3x2048xf32>
    %cst_27 = arith.constant dense<0xFF800000> : vector<2048xf32>
    %38 = vector.multi_reduction <maximumf>, %37, %cst_27 [0] : vector<3x2048xf32> to vector<2048xf32>
    %39 = vector.shape_cast %38 : vector<2048xf32> to vector<1x2048xf32>
    %40 = vector.broadcast %39 : vector<1x2048xf32> to vector<3x2048xf32>
    %41 = arith.subf %37, %40 : vector<3x2048xf32>
    %42 = math.exp %41 : vector<3x2048xf32>
    %43 = arith.mulf %25, %42 : vector<3x2048xf32>
    %cst_28 = arith.constant dense<0.000000e+00> : vector<2048xf32>
    %44 = vector.multi_reduction <add>, %43, %cst_28 [0] : vector<3x2048xf32> to vector<2048xf32>
    %45 = vector.shape_cast %44 : vector<2048xf32> to vector<1x2048xf32>
    %cst_29 = arith.constant dense<0.000000e+00> : vector<2048xf32>
    %46 = vector.multi_reduction <add>, %42, %cst_29 [0] : vector<3x2048xf32> to vector<2048xf32>
    %47 = vector.shape_cast %46 : vector<2048xf32> to vector<1x2048xf32>
    %48 = tpu.reciprocal %47 {approx = true} : vector<1x2048xf32> -> vector<1x2048xf32>
    %49 = arith.mulf %45, %48 : vector<1x2048xf32>
    %50 = vector.extract_strided_slice %24 {offsets = [0, 0], sizes = [1, 128], strides = [1, 1]} : vector<1x512xf32> to vector<1x128xf32>
    %51 = vector.extract_strided_slice %24 {offsets = [0, 128], sizes = [1, 128], strides = [1, 1]} : vector<1x512xf32> to vector<1x128xf32>
    %52 = vector.extract_strided_slice %24 {offsets = [0, 256], sizes = [1, 128], strides = [1, 1]} : vector<1x512xf32> to vector<1x128xf32>
    %53 = vector.extract_strided_slice %24 {offsets = [0, 384], sizes = [1, 128], strides = [1, 1]} : vector<1x512xf32> to vector<1x128xf32>
    %54 = tpu.concatenate %50, %51, %52, %53 in 0 : vector<1x128xf32>, vector<1x128xf32>, vector<1x128xf32>, vector<1x128xf32> -> vector<4x128xf32>
    %55 = vector.extract_strided_slice %49 {offsets = [0, 0], sizes = [1, 128], strides = [1, 1]} : vector<1x2048xf32> to vector<1x128xf32>
    %56 = vector.extract_strided_slice %49 {offsets = [0, 128], sizes = [1, 128], strides = [1, 1]} : vector<1x2048xf32> to vector<1x128xf32>
    %57 = vector.extract_strided_slice %49 {offsets = [0, 256], sizes = [1, 128], strides = [1, 1]} : vector<1x2048xf32> to vector<1x128xf32>
    %58 = vector.extract_strided_slice %49 {offsets = [0, 384], sizes = [1, 128], strides = [1, 1]} : vector<1x2048xf32> to vector<1x128xf32>
    %59 = vector.extract_strided_slice %49 {offsets = [0, 512], sizes = [1, 128], strides = [1, 1]} : vector<1x2048xf32> to vector<1x128xf32>
    %60 = vector.extract_strided_slice %49 {offsets = [0, 640], sizes = [1, 128], strides = [1, 1]} : vector<1x2048xf32> to vector<1x128xf32>
    %61 = vector.extract_strided_slice %49 {offsets = [0, 768], sizes = [1, 128], strides = [1, 1]} : vector<1x2048xf32> to vector<1x128xf32>
    %62 = vector.extract_strided_slice %49 {offsets = [0, 896], sizes = [1, 128], strides = [1, 1]} : vector<1x2048xf32> to vector<1x128xf32>
    %63 = vector.extract_strided_slice %49 {offsets = [0, 1024], sizes = [1, 128], strides = [1, 1]} : vector<1x2048xf32> to vector<1x128xf32>
    %64 = vector.extract_strided_slice %49 {offsets = [0, 1152], sizes = [1, 128], strides = [1, 1]} : vector<1x2048xf32> to vector<1x128xf32>
    %65 = vector.extract_strided_slice %49 {offsets = [0, 1280], sizes = [1, 128], strides = [1, 1]} : vector<1x2048xf32> to vector<1x128xf32>
    %66 = vector.extract_strided_slice %49 {offsets = [0, 1408], sizes = [1, 128], strides = [1, 1]} : vector<1x2048xf32> to vector<1x128xf32>
    %67 = vector.extract_strided_slice %49 {offsets = [0, 1536], sizes = [1, 128], strides = [1, 1]} : vector<1x2048xf32> to vector<1x128xf32>
    %68 = vector.extract_strided_slice %49 {offsets = [0, 1664], sizes = [1, 128], strides = [1, 1]} : vector<1x2048xf32> to vector<1x128xf32>
    %69 = vector.extract_strided_slice %49 {offsets = [0, 1792], sizes = [1, 128], strides = [1, 1]} : vector<1x2048xf32> to vector<1x128xf32>
    %70 = vector.extract_strided_slice %49 {offsets = [0, 1920], sizes = [1, 128], strides = [1, 1]} : vector<1x2048xf32> to vector<1x128xf32>
    %71 = tpu.concatenate %55, %56, %57, %58, %59, %60, %61, %62, %63, %64, %65, %66, %67, %68, %69, %70 in 0 : vector<1x128xf32>, vector<1x128xf32>, vector<1x128xf32>, vector<1x128xf32>, vector<1x128xf32>, vector<1x128xf32>, vector<1x128xf32>, vector<1x128xf32>, vector<1x128xf32>, vector<1x128xf32>, vector<1x128xf32>, vector<1x128xf32>, vector<1x128xf32>, vector<1x128xf32>, vector<1x128xf32>, vector<1x128xf32> -> vector<16x128xf32>
    %cst_30 = arith.constant dense<0.000000e+00> : vector<16x4xf32>
    %72 = tpu.matmul %71, %54, %cst_30 {dimension_numbers = #tpu.dot_dimension_numbers<[1], [1], [0], [0], [0, 0, 1, 0], [], []>} : vector<16x128xf32>, vector<4x128xf32>, vector<16x4xf32> -> vector<16x4xf32>
    %73 = arith.mulf %71, %71 : vector<16x128xf32>
    %cst_31 = arith.constant dense<0.000000e+00> : vector<16xf32>
    %74 = vector.multi_reduction <add>, %73, %cst_31 [1] : vector<16x128xf32> to vector<16xf32>
    %75 = vector.shape_cast %74 : vector<16xf32> to vector<16x1xf32>
    %cst_32 = arith.constant 1.000000e+00 : f32
    %76 = vector.broadcast %cst_32 : f32 to vector<1x128xf32>
    %77 = arith.mulf %54, %54 : vector<4x128xf32>
    %cst_33 = arith.constant dense<0.000000e+00> : vector<1x4xf32>
    %78 = tpu.matmul %76, %77, %cst_33 {dimension_numbers = #tpu.dot_dimension_numbers<[1], [1], [0], [0], [0, 0, 1, 0], [], []>} : vector<1x128xf32>, vector<4x128xf32>, vector<1x4xf32> -> vector<1x4xf32>
    %79 = vector.broadcast %75 : vector<16x1xf32> to vector<16x4xf32>
    %80 = vector.broadcast %78 : vector<1x4xf32> to vector<16x4xf32>
    %81 = arith.addf %79, %80 : vector<16x4xf32>
    %cst_34 = arith.constant 2.000000e+00 : f32
    %82 = vector.broadcast %cst_34 : f32 to vector<16x4xf32>
    %83 = arith.mulf %82, %72 : vector<16x4xf32>
    %84 = arith.subf %81, %83 : vector<16x4xf32>
    %cst_35 = arith.constant 0.000000e+00 : f32
    %85 = vector.broadcast %cst_35 : f32 to vector<16x4xf32>
    %86 = arith.maximumf %84, %85 : vector<16x4xf32>
    %87 = math.sqrt %86 : vector<16x4xf32>
    %cst_36 = arith.constant 0.000000e+00 : f32
    %88 = vector.broadcast %cst_36 : f32 to vector<16x4xf32>
    %89 = arith.subf %88, %87 : vector<16x4xf32>
    %cst_37 = arith.constant dense<0xFF800000> : vector<16xf32>
    %90 = vector.multi_reduction <maximumf>, %89, %cst_37 [1] : vector<16x4xf32> to vector<16xf32>
    %91 = vector.shape_cast %90 : vector<16xf32> to vector<16x1xf32>
    %92 = vector.broadcast %91 : vector<16x1xf32> to vector<16x4xf32>
    %93 = arith.subf %89, %92 : vector<16x4xf32>
    %94 = math.exp %93 : vector<16x4xf32>
    %cst_38 = arith.constant dense<0.000000e+00> : vector<16xf32>
    %95 = vector.multi_reduction <add>, %94, %cst_38 [1] : vector<16x4xf32> to vector<16xf32>
    %96 = vector.shape_cast %95 : vector<16xf32> to vector<16x1xf32>
    %97 = vector.broadcast %96 : vector<16x1xf32> to vector<16x4xf32>
    %98 = arith.divf %94, %97 : vector<16x4xf32>
    %c0_39 = arith.constant 0 : index
    %c0_40 = arith.constant 0 : index
    %99 = vector.load %arg11[%c0_39, %c0_40] : memref<16x4xf32, #tpu.memory_space<vmem>>, vector<16x4xf32>
    tpu.vector_store %arg11[%c0_39, %c0_40], %98 {strides = array<i32>} : memref<16x4xf32, #tpu.memory_space<vmem>>, vector<16x4xf32>,
    %100 = vector.broadcast %91 : vector<16x1xf32> to vector<16x4xf32>
    %101 = arith.subf %89, %100 : vector<16x4xf32>
    %102 = math.log %96 : vector<16x1xf32>
    %103 = vector.broadcast %102 : vector<16x1xf32> to vector<16x4xf32>
    %104 = arith.subf %101, %103 : vector<16x4xf32>
    %c0_41 = arith.constant 0 : index
    %c0_42 = arith.constant 0 : index
    %105 = vector.load %arg12[%c0_41, %c0_42] : memref<16x4xf32, #tpu.memory_space<vmem>>, vector<16x4xf32>
    tpu.vector_store %arg12[%c0_41, %c0_42], %104 {strides = array<i32>} : memref<16x4xf32, #tpu.memory_space<vmem>>, vector<16x4xf32>,
    return
  }
  func.func @transform_0(%arg0: i32) -> (i32, i32) {
    %c0_i32 = arith.constant 0 : i32
    %c0_i32_0 = arith.constant 0 : i32
    %c0_i32_1 = arith.constant 0 : i32
    return %c0_i32, %c0_i32_0 : i32, i32
  }
  func.func @transform_1(%arg0: i32) -> (i32, i32) {
    %c0_i32 = arith.constant 0 : i32
    %c0_i32_0 = arith.constant 0 : i32
    %c0_i32_1 = arith.constant 0 : i32
    return %c0_i32, %c0_i32_0 : i32, i32
  }
  func.func @transform_2(%arg0: i32) -> (i32, i32) {
    %c0_i32 = arith.constant 0 : i32
    %c0_i32_0 = arith.constant 0 : i32
    %c0_i32_1 = arith.constant 0 : i32
    return %c0_i32, %c0_i32_0 : i32, i32
  }
  func.func @transform_3(%arg0: i32) -> (i32, i32) {
    %c0_i32 = arith.constant 0 : i32
    %c0_i32_0 = arith.constant 0 : i32
    %c0_i32_1 = arith.constant 0 : i32
    return %c0_i32, %c0_i32_0 : i32, i32
  }
  func.func @transform_4(%arg0: i32) -> (i32, i32) {
    %c0_i32 = arith.constant 0 : i32
    %c0_i32_0 = arith.constant 0 : i32
    %c0_i32_1 = arith.constant 0 : i32
    return %c0_i32, %c0_i32_0 : i32, i32
  }
  func.func @transform_5(%arg0: i32) -> (i32, i32) {
    %c0_i32 = arith.constant 0 : i32
    %c0_i32_0 = arith.constant 0 : i32
    %c0_i32_1 = arith.constant 0 : i32
    return %c0_i32, %c0_i32_0 : i32, i32
  }
  func.func @transform_6(%arg0: i32) -> (i32, i32) {
    %c0_i32 = arith.constant 0 : i32
    %c0_i32_0 = arith.constant 0 : i32
    %c0_i32_1 = arith.constant 0 : i32
    return %c0_i32, %c0_i32_0 : i32, i32
  }
  func.func @transform_7(%arg0: i32) -> (i32, i32) {
    %c0_i32 = arith.constant 0 : i32
    %c0_i32_0 = arith.constant 0 : i32
    %c0_i32_1 = arith.constant 0 : i32
    return %c0_i32, %c0_i32_0 : i32, i32
  }
  func.func @transform_8(%arg0: i32) -> (i32, i32) {
    %c0_i32 = arith.constant 0 : i32
    %c0_i32_0 = arith.constant 0 : i32
    %c0_i32_1 = arith.constant 0 : i32
    return %c0_i32, %c0_i32_0 : i32, i32
  }
  func.func @transform_9(%arg0: i32) -> (i32, i32) {
    %c0_i32 = arith.constant 0 : i32
    %c0_i32_0 = arith.constant 0 : i32
    %c0_i32_1 = arith.constant 0 : i32
    return %c0_i32, %c0_i32_0 : i32, i32
  }
  func.func @transform_10(%arg0: i32) -> (i32, i32) {
    %c0_i32 = arith.constant 0 : i32
    %c0_i32_0 = arith.constant 0 : i32
    %c0_i32_1 = arith.constant 0 : i32
    return %c0_i32, %c0_i32_0 : i32, i32
  }
  func.func @transform_11(%arg0: i32) -> (i32, i32) {
    %c0_i32 = arith.constant 0 : i32
    %c0_i32_0 = arith.constant 0 : i32
    %c0_i32_1 = arith.constant 0 : i32
    return %c0_i32, %c0_i32_0 : i32, i32
  }
}

</mosaic_0001>

<bundles_post_ra>
// kernel: cia_forward.3
= control target key start
LH: loop header
LB: loop body
LE: loop exit
PB: predicated region body
PF: predicated region fallthrough
CT: control target
= control target key end

     0   :  { %vm70_vm0 = vcmask 1045504   ;;  %vm2825_vm1 = vmmov 1   ;;  %v2826_v3 = vmov 0.0   ;;  %v2827_v8 = vmov 0   ;;  %s3554_s0 = inlined_call_operand.vmem [shape: f32[14,512], index: 0, kind: input, shape index: {}]   ;;  %s3555_s3 = inlined_call_operand.vmem [shape: f32[16,1], index: 3, kind: input, shape index: {}]   ;;  %s3556_s2 = inlined_call_operand.vmem [shape: f32[16,14], index: 2, kind: input, shape index: {}]   ;;  %s3557_s5 = inlined_call_operand.vmem [shape: f32[14,1], index: 5, kind: input, shape index: {}]   ;;  %s3558_s9 = inlined_call_operand.vmem [shape: f32[3,1], index: 9, kind: input, shape index: {}]   ;;  %s3559_s7 = inlined_call_operand.vmem [shape: f32[16,1], index: 7, kind: input, shape index: {}]   ;;  %s3560_s1 = inlined_call_operand.vmem [shape: f32[3,2048], index: 1, kind: input, shape index: {}]   ;;  %s3561_s4 = inlined_call_operand.vmem [shape: f32[14,16], index: 4, kind: input, shape index: {}]   ;;  %s3562_s6 = inlined_call_operand.vmem [shape: f32[16,3], index: 6, kind: input, shape index: {}]   ;;  %s3563_s8 = inlined_call_operand.vmem [shape: f32[3,16], index: 8, kind: input, shape index: {}]   ;;  %s3564_s10 = inlined_call_operand.vmem [shape: f32[16,4], index: 10, kind: output, shape index: {0}]   ;;  %s3565_s11 = inlined_call_operand.vmem [shape: f32[16,4], index: 11, kind: output, shape index: {1}]  }
   0x1   :  { %v2893_v0 = vld [vmem:[%s3554_s0 + $0x8] sm:$0xff]  ;;  %vm2901_vm2 = vmpackc.low %vm70_vm0, %vm2825_vm1  ;;  %147 = vmatprep.mubr.f32.mxu0 %v2826_v3  ;;  %224 = vmatprep.mubr.f32.mxu1 %v2826_v3  ;;  %v2912_v5 = vld [vmem:[%s3554_s0 + $0x18] sm:$0xff]  ;;  %vm63_vm3 = vcmask 113664   ;;  %vm599_vm4 = vcmask 1042432   ;;  %vm255_vm5 = vcmask 130048   ;;  %vm592_vm6 = vcmask 23552  }
   0x2   :  { %v2898_v1 = vld [vmem:[%s3554_s0 + $0x28] sm:$0x3f]  ;;  %v2917_v6 = vld [vmem:[%s3554_s0 + $0x38] sm:$0x3f]  ;;  %v2922_v7 = vld [vmem:[%s3554_s0] sm:$0xff]  ;;  %2703 = vset.pattern.permute.xlu0 %v2827_v8  ;;  %2704 = vset.pattern.permute.xlu1 %v2827_v8  ;;  %vm2828_vm7 = vmmov 0  }
   0x3   :  { %v2646_v4 = vpack.c.bf16 %v2898_v1, %v2893_v0  ;;  %v2652_v9 = vpack.c.bf16 %v2917_v6, %v2912_v5  ;;  %v2929_v10 = vld [vmem:[%s3554_s0 + $0x20] sm:$0x3f]  ;;  %v2934_v11 = vld [vmem:[%s3554_s0 + $0x10] sm:$0xff]  ;;  %v48_v17 = vld [vmem:[%s3555_s3 + $0x8] sm:$0xff]  ;;  %vm2336_vm8 = vcmask 1040384   ;;  %vm2338_vm9 = vcmask 1041408  }
   0x4   :  { %v2939_v12 = vld [vmem:[%s3554_s0 + $0x30] sm:$0x3f]  ;;  %v2649_v13 = vpack.c.bf16 %v2929_v10, %v2922_v7  ;;  %v47_v15 = vld [vmem:[%s3555_s3] sm:$0xff]  ;;  %v46_v18 = vld [vmem:[%s3556_s2 + $0x8] sm:$0xff]  ;;  %vm2344_vm10 = vcmask 1043456   ;;  %vm2346_vm11 = vcmask 1044480  }
   0x5   :  { %2648 = vmatprep.subr.msk.bf16.mxu0 %vm2901_vm2, %v2646_v4  ;;  %v2655_v14 = vpack.c.bf16 %v2939_v12, %v2934_v11  ;;  %2654 = vmatprep.subr.msk.bf16.mxu1 %vm2901_vm2, %v2652_v9  ;;  %v45_v16 = vld [vmem:[%s3556_s2] sm:$0xff]  ;;  %v52_v19 = vld [vmem:[%s3557_s5 + $0x8] sm:$0x3f]  ;;  %v554_v58 = vld [vmem:[%s3560_s1 + $0x10] sm:$0x77]  ;;  %vm2349_vm12 = vcmask 1046528  }
   0x6   :  { %55 = vperm.xlu0 %2703, %v47_v15   ;;  %2651 = vmatpush1.bf16.msk.msra.mxu0 %vm2901_vm2, %v2649_v13  ;;  %v565_v20 = vld [vmem:[%s3558_s9] sm:$0x7]  ;;  %v563_v22 = vld [vmem:[%s3559_s7 + $0x8] sm:$0xff]  ;;  %v555_v59 = vld [vmem:[%s3560_s1 + $0x18] sm:$0x77]  ;;  %v586_v61 = vcombine.high %v554_v58, %v554_v58 }
   0x7   :  { %2657 = vmatpush1.bf16.msk.msra.mxu1 %vm2901_vm2, %v2655_v14  ;;  %v562_v21 = vld [vmem:[%s3559_s7] sm:$0xff]  ;;  %v553_v47 = vld [vmem:[%s3560_s1 + $0x8] sm:$0x77]  ;;  %v587_v62 = vcombine.high %v555_v59, %v555_v59  ;;  %v558_v15 = vld [vmem:[%s3560_s1 + $0x30] sm:$0x77] }
   0x8   :  { %568 = vperm.xlu1 %2704, %v562_v21   ;;  %v51_v23 = vld [vmem:[%s3557_s5] sm:$0xff]  ;;  %v585_v57 = vcombine.high %v553_v47, %v553_v47  ;;  %v50_v63 = vld [vmem:[%s3561_s4 + $0x8] sm:$0x3f] }
   0x9   :  { %2581 = vmatmul.mubr.msk.f32.vlgmr.msra.gmra.mrb[0].mxu0 %vm63_vm3, %v45_v16  ;;  %v552_v42 = vld [vmem:[%s3560_s1] sm:$0x77]  ;;  %v557_v4 = vld [vmem:[%s3560_s1 + $0x28] sm:$0x77] }
   0xa   :  { %2585 = vmatmul.mubr.msk.f32.vlgmr.msra.gmra.mrb[0].mxu1 %vm63_vm3, %v45_v16  ;;  %153 = vmatprep.mubr.f32.mxu0 %v2826_v3  ;;  %v584_v56 = vcombine.high %v552_v42, %v552_v42  ;;  %v49_v60 = vld [vmem:[%s3561_s4] sm:$0xff]  ;;  %v589_v13 = vcombine.high %v557_v4, %v557_v4  ;;  %v561_v14 = vld [vmem:[%s3562_s6 + $0x8] sm:$0xff]  ;;  %v559_v16 = vld [vmem:[%s3560_s1 + $0x38] sm:$0x77] }
   0xb   :  { %230 = vmatprep.mubr.f32.mxu1 %v2826_v3  ;;  %60 = vperm.xlu0 %2703, %v48_v17   ;;  %v556_v2 = vld [vmem:[%s3560_s1 + $0x20] sm:$0x77]  ;;  %v590_v17 = vcombine.high %v558_v15, %v558_v15 }
   0xc   :  { %573 = vperm.xlu1 %2704, %v563_v22   ;;  %v560_v8 = vld [vmem:[%s3562_s6] sm:$0xff]  ;;  %v588_v9 = vcombine.high %v556_v2, %v556_v2 }
   0xd   :  { %2582 = vmatmul.mubr.msk.f32.gmra.mrb[2].mxu0 %vm63_vm3, %v46_v18 }
   0xe   :  { %2586 = vmatmul.mubr.msk.f32.gmra.mrb[2].mxu1 %vm63_vm3, %v46_v18  ;;  %326 = vmatprep.mubr.f32.mxu0 %v2826_v3  ;;  %v591_v18 = vcombine.high %v559_v16, %v559_v16 }
   0xf   :  { %403 = vmatprep.mubr.f32.mxu1 %v2826_v3  ;;  %252 = vperm.xlu0 %2703, %v52_v19  }
  0x10   :  { %247 = vperm.xlu1 %2704, %v51_v23  }
  0x13   :  { %1282 = vperm.xlu0 %2703, %v565_v20  }
  0x85   :  { %v56_v24 = vpop.permute.xlu0 %55 }
  0x87   :  { %v3076_v19 = vpop.permute.xlu1 %568 }
  0x8a   :  { %v61_v29 = vpop.permute.xlu0 %60 }
  0x8b   :  { %v3078_v20 = vpop.permute.xlu1 %573 }
  0xdc   :  { %v149_v25 = vpop.f32.mrb[0].mxu0 }
  0xdd   :  { %v226_v26 = vpop.f32.mrb[0].mxu1  ;;  %v151_v27 = vpop.f32.mrb[1].mxu0  ;;  %v150_v30 = vadd.f32 %v149_v25, %v56_v24 }
  0xde   :  { %v228_v28 = vpop.f32.mrb[1].mxu1  ;;  %v227_v31 = vadd.f32 %v226_v26, %v56_v24  ;;  %v152_v32 = vadd.f32 %v151_v27, %v56_v24  ;;  %v253_v25 = vpop.permute.xlu0 %252 }
  0xdf   :  { %v229_v33 = vadd.f32 %v228_v28, %v56_v24  ;;  %v237_v43 = vmax.f32 %v150_v30, 0.0  ;;  %v248_v26 = vpop.permute.xlu1 %247 }
  0xe0   :  { %v155_v34 = vpop.f32.mrb[2].mxu0  ;;  %v239_v44 = vmax.f32 %v227_v31, 0.0  ;;  %v238_v48 = vmax.f32 %v152_v32, 0.0 }
  0xe1   :  { %v232_v35 = vpop.f32.mrb[2].mxu1  ;;  %v156_v36 = vadd.f32 %v155_v34, %v61_v29  ;;  %v157_v38 = vpop.f32.mrb[3].mxu0  ;;  %v240_v49 = vmax.f32 %v229_v33, 0.0 }
  0xe2   :  { %v233_v37 = vadd.f32 %v232_v35, %v61_v29  ;;  %v234_v39 = vpop.f32.mrb[3].mxu1  ;;  %v158_v40 = vadd.f32 %v157_v38, %v61_v29 }
  0xe3   :  { %v235_v41 = vadd.f32 %v234_v39, %v61_v29  ;;  %v241_v45 = vmax.f32 %v156_v36, 0.0 }
  0xe4   :  { %v243_v46 = vmax.f32 %v233_v37, 0.0  ;;  %v242_v50 = vmax.f32 %v158_v40, 0.0 }
  0xe5   :  { %v244_v51 = vmax.f32 %v235_v41, 0.0  ;;  %v2660_v52 = vpack.c.bf16 %v241_v45, %v237_v43 }
  0xe6   :  { %v2664_v53 = vpack.c.bf16 %v243_v46, %v239_v44  ;;  %v2658_v54 = vpack.c.bf16 %v242_v50, %v238_v48 }
  0xe7   :  { %v2662_v55 = vpack.c.bf16 %v244_v51, %v240_v49 }
  0xe8   :  { %2659 = vmatprep.subr.bf16.mxu0 %v2658_v54 }
  0xe9   :  { %2663 = vmatprep.subr.bf16.mxu1 %v2662_v55  ;;  %2661 = vmatpush1.bf16.msra.mxu0 %v2660_v52 }
  0xea   :  { %2665 = vmatpush1.bf16.msra.mxu1 %v2664_v53  ;;  %2591 = vmatprep.subr.msk.mxu0 %vm599_vm4, %v584_v56 }
  0xeb   :  { %2595 = vmatprep.subr.msk.mxu1 %vm599_vm4, %v585_v57 }
  0xec   :  { %2587 = vmatmul.mubr.msk.f32.vlgmr.msra.gmra.mrb[4].mxu0 %vm255_vm5, %v49_v60 }
  0xed   :  { %2589 = vmatmul.mubr.msk.f32.vlgmr.msra.gmra.mrb[4].mxu1 %vm255_vm5, %v49_v60  ;;  %332 = vmatprep.mubr.f32.mxu0 %v2826_v3 }
  0xee   :  { %409 = vmatprep.mubr.f32.mxu1 %v2826_v3  ;;  %2592 = vmatpush1.msk.msra.mxu0 %vm599_vm4, %v552_v42 }
  0xef   :  { %2596 = vmatpush1.msk.msra.mxu1 %vm599_vm4, %v553_v47  ;;  %2599 = vmatprep.subr.msk.mxu0 %vm599_vm4, %v586_v61 }
  0xf0   :  { %2603 = vmatprep.subr.msk.mxu1 %vm599_vm4, %v587_v62  ;;  %2588 = vmatmul.mubr.msk.f32.gmra.mrb[6].mxu0 %vm255_vm5, %v50_v63 }
  0xf1   :  { %2590 = vmatmul.mubr.msk.f32.gmra.mrb[6].mxu1 %vm255_vm5, %v50_v63  ;;  %696 = vmatprep.mubr.f32.mxu0 %v2826_v3 }
  0xf2   :  { %773 = vmatprep.mubr.f32.mxu1 %v2826_v3 }
  0xf4   :  { %2593 = vmatmul.mubr.msk.f32.vlgmr.msra.gmra.mrb[8].mxu0 %vm592_vm6, %v560_v8 }
  0xf5   :  { %2597 = vmatmul.mubr.msk.f32.vlgmr.msra.gmra.mrb[8].mxu1 %vm592_vm6, %v560_v8  ;;  %702 = vmatprep.mubr.f32.mxu0 %v2826_v3 }
  0xf6   :  { %779 = vmatprep.mubr.f32.mxu1 %v2826_v3  ;;  %2600 = vmatpush1.msk.msra.mxu0 %vm599_vm4, %v554_v58 }
  0xf7   :  { %2604 = vmatpush1.msk.msra.mxu1 %vm599_vm4, %v555_v59  ;;  %2607 = vmatprep.subr.msk.mxu0 %vm599_vm4, %v588_v9 }
  0xf8   :  { %2611 = vmatprep.subr.msk.mxu1 %vm599_vm4, %v589_v13  ;;  %2594 = vmatmul.mubr.msk.f32.gmra.mrb[10].mxu0 %vm592_vm6, %v561_v14 }
  0xf9   :  { %2598 = vmatmul.mubr.msk.f32.gmra.mrb[10].mxu1 %vm592_vm6, %v561_v14  ;;  %850 = vmatprep.mubr.f32.mxu0 %v2826_v3 }
  0xfa   :  { %927 = vmatprep.mubr.f32.mxu1 %v2826_v3 }
  0xfc   :  { %2601 = vmatmul.mubr.msk.f32.vlgmr.msra.gmra.mrb[12].mxu0 %vm592_vm6, %v560_v8 }
  0xfd   :  { %2605 = vmatmul.mubr.msk.f32.vlgmr.msra.gmra.mrb[12].mxu1 %vm592_vm6, %v560_v8  ;;  %856 = vmatprep.mubr.f32.mxu0 %v2826_v3 }
  0xfe   :  { %933 = vmatprep.mubr.f32.mxu1 %v2826_v3  ;;  %2608 = vmatpush1.msk.msra.mxu0 %vm599_vm4, %v556_v2 }
  0xff   :  { %2612 = vmatpush1.msk.msra.mxu1 %vm599_vm4, %v557_v4  ;;  %2615 = vmatprep.subr.msk.mxu0 %vm599_vm4, %v590_v17 }
 0x100   :  { %2619 = vmatprep.subr.msk.mxu1 %vm599_vm4, %v591_v18  ;;  %2602 = vmatmul.mubr.msk.f32.gmra.mrb[14].mxu0 %vm592_vm6, %v561_v14 }
 0x101   :  { %2606 = vmatmul.mubr.msk.f32.gmra.mrb[14].mxu1 %vm592_vm6, %v561_v14  ;;  %1004 = vmatprep.mubr.f32.mxu0 %v2826_v3 }
 0x102   :  { %1081 = vmatprep.mubr.f32.mxu1 %v2826_v3 }
 0x104   :  { %2609 = vmatmul.mubr.msk.f32.vlgmr.msra.gmra.mrb[16].mxu0 %vm592_vm6, %v560_v8 }
 0x105   :  { %2613 = vmatmul.mubr.msk.f32.vlgmr.msra.gmra.mrb[16].mxu1 %vm592_vm6, %v560_v8  ;;  %1010 = vmatprep.mubr.f32.mxu0 %v2826_v3 }
 0x106   :  { %1087 = vmatprep.mubr.f32.mxu1 %v2826_v3  ;;  %2616 = vmatpush1.msk.msra.mxu0 %vm599_vm4, %v558_v15 }
 0x107   :  { %2620 = vmatpush1.msk.msra.mxu1 %vm599_vm4, %v559_v16 }
 0x108   :  { %2610 = vmatmul.mubr.msk.f32.gmra.mrb[18].mxu0 %vm592_vm6, %v561_v14 }
 0x109   :  { %2614 = vmatmul.mubr.msk.f32.gmra.mrb[18].mxu1 %vm592_vm6, %v561_v14  ;;  %1158 = vmatprep.mubr.f32.mxu0 %v2826_v3 }
 0x10a   :  { %1235 = vmatprep.mubr.f32.mxu1 %v2826_v3 }
 0x10c   :  { %2617 = vmatmul.mubr.msk.f32.vlgmr.msra.gmra.mrb[20].mxu0 %vm592_vm6, %v560_v8 }
 0x10d   :  { %2621 = vmatmul.mubr.msk.f32.vlgmr.msra.gmra.mrb[20].mxu1 %vm592_vm6, %v560_v8  ;;  %1164 = vmatprep.mubr.f32.mxu0 %v2826_v3 }
 0x10e   :  { %1241 = vmatprep.mubr.f32.mxu1 %v2826_v3 }
 0x110   :  { %2618 = vmatmul.mubr.msk.f32.gmra.mrb[22].mxu0 %vm592_vm6, %v561_v14 }
 0x111   :  { %2622 = vmatmul.mubr.msk.f32.gmra.mrb[22].mxu1 %vm592_vm6, %v561_v14  ;;  %1352 = vmatprep.mubr.f32.mxu0 %v2826_v3 }
 0x112   :  { %1423 = vmatprep.mubr.f32.mxu1 %v2826_v3 }
 0x1bf   :  { %v328_v21 = vpop.f32.mrb[4].mxu0 }
 0x1c0   :  { %v405_v22 = vpop.f32.mrb[4].mxu1  ;;  %v330_v23 = vpop.f32.mrb[5].mxu0  ;;  %v3084_v33 = vadd.f32 %v328_v21, %v248_v26 }
 0x1c1   :  { %v407_v24 = vpop.f32.mrb[5].mxu1  ;;  %v3086_v34 = vadd.f32 %v405_v22, %v248_v26  ;;  %v3096_v39 = vadd.f32 %v330_v23, %v248_v26 }
 0x1c2   :  { %v3098_v40 = vadd.f32 %v407_v24, %v248_v26 }
 0x1c3   :  { %v334_v27 = vpop.f32.mrb[6].mxu0 }
 0x1c4   :  { %v411_v28 = vpop.f32.mrb[6].mxu1  ;;  %v3080_v29 = vadd.f32 %v334_v27, %v253_v25  ;;  %v336_v31 = vpop.f32.mrb[7].mxu0 }
 0x1c5   :  { %v3082_v30 = vadd.f32 %v411_v28, %v253_v25  ;;  %v413_v32 = vpop.f32.mrb[7].mxu1  ;;  %v3088_v35 = vadd.f32 %v336_v31, %v253_v25 }
 0x1c6   :  { %v3090_v36 = vadd.f32 %v413_v32, %v253_v25  ;;  %v416_v37 = vsel %vm70_vm0, %v3080_v29, -inf }
 0x1c7   :  { %v432_v38 = vsel %vm70_vm0, %v3082_v30, -inf  ;;  %v417_v41 = vmax.f32 %v3084_v33, %v416_v37  ;;  %v424_v43 = vsel %vm70_vm0, %v3088_v35, -inf  ;;  %v698_v45 = vpop.f32.mrb[8].mxu0 }
 0x1c8   :  { %v433_v42 = vmax.f32 %v3086_v34, %v432_v38  ;;  %v440_v44 = vsel %vm70_vm0, %v3090_v36, -inf  ;;  %v775_v46 = vpop.f32.mrb[8].mxu1  ;;  %v425_v47 = vmax.f32 %v3096_v39, %v424_v43  ;;  %v699_v49 = vadd.f32 %v698_v45, %v3076_v19  ;;  %v700_v51 = vpop.f32.mrb[9].mxu0 }
 0x1c9   :  { %v441_v48 = vmax.f32 %v3098_v40, %v440_v44  ;;  %v776_v50 = vadd.f32 %v775_v46, %v3076_v19  ;;  %v777_v52 = vpop.f32.mrb[9].mxu1  ;;  %v418_v53 = vrot.slane %v417_v41, 4  ;;  %v701_v55 = vadd.f32 %v700_v51, %v3076_v19 }
 0x1ca   :  { %v434_v54 = vrot.slane %v433_v42, 4  ;;  %v778_v56 = vadd.f32 %v777_v52, %v3076_v19  ;;  %v426_v57 = vrot.slane %v425_v47, 4  ;;  %v1248_v59 = vmax.f32 %v699_v49, 0.0 }
 0x1cb   :  { %v442_v58 = vrot.slane %v441_v48, 4  ;;  %v1250_v60 = vmax.f32 %v776_v50, 0.0  ;;  %v419_v61 = vmax.f32 %v417_v41, %v418_v53  ;;  %v1249_v63 = vmax.f32 %v701_v55, 0.0  ;;  %v704_v4 = vpop.f32.mrb[10].mxu0 }
 0x1cc   :  { %v435_v62 = vmax.f32 %v433_v42, %v434_v54  ;;  %v1251_v2 = vmax.f32 %v778_v56, 0.0  ;;  %v781_v8 = vpop.f32.mrb[10].mxu1  ;;  %v427_v9 = vmax.f32 %v425_v47, %v426_v57  ;;  %v705_v14 = vadd.f32 %v704_v4, %v3078_v20  ;;  %v706_v16 = vpop.f32.mrb[11].mxu0 }
 0x1cd   :  { %v443_v13 = vmax.f32 %v441_v48, %v442_v58  ;;  %v782_v15 = vadd.f32 %v781_v8, %v3078_v20  ;;  %v783_v17 = vpop.f32.mrb[11].mxu1  ;;  %v420_v18 = vrot.slane %v419_v61, 2  ;;  %v707_v22 = vadd.f32 %v706_v16, %v3078_v20 }
 0x1ce   :  { %v436_v21 = vrot.slane %v435_v62, 2  ;;  %v784_v23 = vadd.f32 %v783_v17, %v3078_v20  ;;  %v428_v24 = vrot.slane %v427_v9, 2  ;;  %v1264_v26 = vmax.f32 %v705_v14, 0.0 }
 0x1cf   :  { %v444_v25 = vrot.slane %v443_v13, 2  ;;  %v1266_v27 = vmax.f32 %v782_v15, 0.0  ;;  %v421_v28 = vmax.f32 %v419_v61, %v420_v18  ;;  %v1265_v32 = vmax.f32 %v707_v22, 0.0  ;;  %v852_v38 = vpop.f32.mrb[12].mxu0 }
 0x1d0   :  { %v437_v31 = vmax.f32 %v435_v62, %v436_v21  ;;  %v1267_v37 = vmax.f32 %v784_v23, 0.0  ;;  %v929_v41 = vpop.f32.mrb[12].mxu1  ;;  %v429_v42 = vmax.f32 %v427_v9, %v428_v24  ;;  %v2668_v44 = vpack.c.bf16 %v1264_v26, %v1248_v59  ;;  %v854_v46 = vpop.f32.mrb[13].mxu0 }
 0x1d1   :  { %v445_v43 = vmax.f32 %v443_v13, %v444_v25  ;;  %v2672_v45 = vpack.c.bf16 %v1266_v27, %v1250_v60  ;;  %v931_v47 = vpop.f32.mrb[13].mxu1  ;;  %v422_v48 = vrot.slane %v421_v28, 1  ;;  %v2666_v50 = vpack.c.bf16 %v1265_v32, %v1249_v63  ;;  %v3127_v13 = vld [vmem:[%s3563_s8] sm:$0x7] }
 0x1d2   :  { %v438_v49 = vrot.slane %v437_v31, 1  ;;  %v2670_v51 = vpack.c.bf16 %v1267_v37, %v1251_v2  ;;  %v430_v52 = vrot.slane %v429_v42, 1  ;;  %v853_v54 = vadd.f32 %v852_v38, %v3076_v19 }
 0x1d3   :  { %v446_v53 = vrot.slane %v445_v43, 1  ;;  %v930_v55 = vadd.f32 %v929_v41, %v3076_v19  ;;  %v423_v56 = vmax.f32 %v421_v28, %v422_v48  ;;  %v3119_v58 = vadd.f32 %v854_v46, %v3076_v19  ;;  %v858_v60 = vpop.f32.mrb[14].mxu0  ;;  %2667 = vmatprep.subr.bf16.mxu0 %v2666_v50 }
 0x1d4   :  { %v439_v57 = vmax.f32 %v437_v31, %v438_v49  ;;  %v3122_v59 = vadd.f32 %v931_v47, %v3076_v19  ;;  %v935_v61 = vpop.f32.mrb[14].mxu1  ;;  %v431_v62 = vmax.f32 %v429_v42, %v430_v52  ;;  %v1252_v2 = vmax.f32 %v853_v54, 0.0  ;;  %2671 = vmatprep.subr.bf16.mxu1 %v2670_v51  ;;  %v860_v8 = vpop.f32.mrb[15].mxu0  ;;  %2669 = vmatpush1.bf16.msra.mxu0 %v2668_v44 }
 0x1d5   :  { %v447_v63 = vmax.f32 %v445_v43, %v446_v53  ;;  %v1254_v4 = vmax.f32 %v930_v55, 0.0  ;;  %v937_v9 = vpop.f32.mrb[15].mxu1  ;;  %v448_v14 = vsub.f32 %v3084_v33, %v423_v56  ;;  %v452_v15 = vsub.f32 %v3080_v29, %v423_v56  ;;  %2673 = vmatpush1.bf16.msra.mxu1 %v2672_v45 }
 0x1d6   :  { %v450_v16 = vsub.f32 %v3086_v34, %v439_v57  ;;  %v454_v17 = vsub.f32 %v3082_v30, %v439_v57  ;;  %v449_v18 = vsub.f32 %v3096_v39, %v431_v62  ;;  %v453_v21 = vsub.f32 %v3088_v35, %v431_v62 }
 0x1d7   :  { %v451_v22 = vsub.f32 %v3098_v40, %v447_v63  ;;  %v455_v23 = vsub.f32 %v3090_v36, %v447_v63  ;;  %v456_v24 = vmul.f32 1.442695, %v448_v14  ;;  %v464_v25 = vmul.f32 1.442695, %v452_v15  ;;  %2623 = vmatmul.mubr.msk.f32.vlgmr.msra.gmra.mrb[24].mxu0 %vm255_vm5, %v3127_v13  ;;  %v1006_v40 = vpop.f32.mrb[16].mxu0 }
 0x1d8   :  { %v460_v26 = vmul.f32 1.442695, %v450_v16  ;;  %v859_v33 = vadd.f32 %v858_v60, %v3078_v20  ;;  %v468_v29 = vmul.f32 1.442695, %v454_v17  ;;  %v458_v34 = vmul.f32 1.442695, %v449_v18  ;;  %2624 = vmatmul.mubr.msk.f32.vlgmr.msra.gmra.mrb[24].mxu1 %vm255_vm5, %v3127_v13  ;;  %1494 = vmatprep.mubr.f32.mxu0 %v2826_v3 }
 0x1d9   :  { %v466_v30 = vmul.f32 1.442695, %v453_v21  ;;  %v936_v27 = vadd.f32 %v935_v61, %v3078_v20  ;;  %2713 = vpow2.f32 %v456_v24  ;;  %v462_v35 = vmul.f32 1.442695, %v451_v22  ;;  %1565 = vmatprep.mubr.f32.mxu1 %v2826_v3  ;;  %v1083_v37 = vpop.f32.mrb[16].mxu1  ;;  %v1008_v38 = vpop.f32.mrb[17].mxu0 }
 0x1da   :  { %v470_v36 = vmul.f32 1.442695, %v455_v23  ;;  %v1253_v39 = vmax.f32 %v3119_v58, 0.0  ;;  %2715 = vpow2.f32 %v464_v25  ;;  %v1255_v28 = vmax.f32 %v3122_v59, 0.0  ;;  %v1085_v44 = vpop.f32.mrb[17].mxu1 }
 0x1db   :  { %v1268_v31 = vmax.f32 %v859_v33, 0.0  ;;  %v1270_v32 = vmax.f32 %v936_v27, 0.0  ;;  %2717 = vpow2.f32 %v460_v26  ;;  %v861_v41 = vadd.f32 %v860_v8, %v3078_v20  ;;  %v1012_v45 = vpop.f32.mrb[18].mxu0 }
 0x1dc   :  { %v938_v42 = vadd.f32 %v937_v9, %v3078_v20  ;;  %v1007_v43 = vadd.f32 %v1006_v40, %v3076_v19  ;;  %2719 = vpow2.f32 %v468_v29  ;;  %v1084_v48 = vadd.f32 %v1083_v37, %v3076_v19  ;;  %v1089_v49 = vpop.f32.mrb[18].mxu1  ;;  %v1014_v50 = vpop.f32.mrb[19].mxu0 }
 0x1dd   :  { %v2676_v46 = vpack.c.bf16 %v1268_v31, %v1252_v2  ;;  %v2680_v47 = vpack.c.bf16 %v1270_v32, %v1254_v4  ;;  %2721 = vpow2.f32 %v458_v34  ;;  %v1269_v51 = vmax.f32 %v861_v41, 0.0  ;;  %v1091_v54 = vpop.f32.mrb[19].mxu1 }
 0x1de   :  { %v1271_v52 = vmax.f32 %v938_v42, 0.0  ;;  %v1256_v53 = vmax.f32 %v1007_v43, 0.0  ;;  %2723 = vpow2.f32 %v466_v30  ;;  %v1258_v55 = vmax.f32 %v1084_v48, 0.0 }
 0x1df   :  { %v1009_v56 = vadd.f32 %v1008_v38, %v3076_v19  ;;  %v1086_v57 = vadd.f32 %v1085_v44, %v3076_v19  ;;  %2725 = vpow2.f32 %v462_v35  ;;  %v2674_v58 = vpack.c.bf16 %v1269_v51, %v1253_v39  ;;  %v1160_v61 = vpop.f32.mrb[20].mxu0 }
 0x1e0   :  { %v2678_v59 = vpack.c.bf16 %v1271_v52, %v1255_v28  ;;  %v1013_v60 = vadd.f32 %v1012_v45, %v3078_v20  ;;  %v1237_v62 = vpop.f32.mrb[20].mxu1  ;;  %2727 = vpow2.f32 %v470_v36  ;;  %v1090_v4 = vadd.f32 %v1089_v49, %v3078_v20  ;;  %v1162_v8 = vpop.f32.mrb[21].mxu0 }
 0x1e1   :  { %v1257_v63 = vmax.f32 %v1009_v56, 0.0  ;;  %v1259_v2 = vmax.f32 %v1086_v57, 0.0  ;;  %v1239_v9 = vpop.f32.mrb[21].mxu1  ;;  %2675 = vmatprep.subr.bf16.mxu0 %v2674_v58  ;;  %v1015_v15 = vadd.f32 %v1014_v50, %v3078_v20  ;;  %v1092_v16 = vadd.f32 %v1091_v54, %v3078_v20 }
 0x1e2   :  { %v1272_v14 = vmax.f32 %v1013_v60, 0.0  ;;  %2679 = vmatprep.subr.bf16.mxu1 %v2678_v59  ;;  %v3158_v17 = vadd.f32 %v1160_v61, %v3076_v19  ;;  %v1274_v18 = vmax.f32 %v1090_v4, 0.0  ;;  %2677 = vmatpush1.bf16.msra.mxu0 %v2676_v46  ;;  %v3161_v21 = vadd.f32 %v1237_v62, %v3076_v19 }
 0x1e3   :  { %2681 = vmatpush1.bf16.msra.mxu1 %v2680_v47  ;;  %v3164_v22 = vadd.f32 %v1162_v8, %v3076_v19  ;;  %v3167_v23 = vadd.f32 %v1239_v9, %v3076_v19  ;;  %v2714_v24 = vpop.eup %2713  ;;  %v1273_v26 = vmax.f32 %v1015_v15, 0.0  ;;  %v1275_v33 = vmax.f32 %v1092_v16, 0.0  ;;  %v1166_v34 = vpop.f32.mrb[22].mxu0 }
 0x1e4   :  { %v2684_v25 = vpack.c.bf16 %v1272_v14, %v1256_v53  ;;  %v1260_v29 = vmax.f32 %v3158_v17, 0.0  ;;  %v1243_v30 = vpop.f32.mrb[22].mxu1  ;;  %v2716_v27 = vpop.eup %2715  ;;  %v472_v35 = vmul.f32 %v2714_v24, %v2922_v7  ;;  %v2688_v36 = vpack.c.bf16 %v1274_v18, %v1258_v55 }
 0x1e5   :  { %v1262_v39 = vmax.f32 %v3161_v21, 0.0  ;;  %v1261_v40 = vmax.f32 %v3164_v22, 0.0  ;;  %v1168_v28 = vpop.f32.mrb[23].mxu0  ;;  %v1245_v31 = vpop.f32.mrb[23].mxu1  ;;  %v476_v32 = vmul.f32 %v2716_v27, %v2929_v10  ;;  %v512_v37 = vsel %vm70_vm0, %v2716_v27, 0.0  ;;  %2625 = vmatmul.mubr.msk.f32.vlgmr.msra.gmra.mrb[26].mxu0 %vm255_vm5, %v3127_v13 }
 0x1e6   :  { %v2718_v19 = vpop.eup %2717  ;;  %v2682_v38 = vpack.c.bf16 %v1273_v26, %v1257_v63  ;;  %v2686_v41 = vpack.c.bf16 %v1275_v33, %v1259_v2  ;;  %2626 = vmatmul.mubr.msk.f32.vlgmr.msra.gmra.mrb[26].mxu1 %vm255_vm5, %v3127_v13  ;;  %v513_v42 = vadd.f32 %v2714_v24, %v512_v37  ;;  %v1263_v43 = vmax.f32 %v3167_v23, 0.0  ;;  %1636 = vmatprep.mubr.f32.mxu0 %v2826_v3 }
 0x1e7   :  { %v2720_v7 = vpop.eup %2719  ;;  %v1167_v44 = vadd.f32 %v1166_v34, %v3078_v20  ;;  %v1244_v45 = vadd.f32 %v1243_v30, %v3078_v20  ;;  %1707 = vmatprep.mubr.f32.mxu1 %v2826_v3  ;;  %v480_v46 = vsel %vm70_vm0, %v476_v32, 0.0  ;;  %v1169_v49 = vadd.f32 %v1168_v28, %v3078_v20 }
 0x1e8   :  { %v2722_v10 = vpop.eup %2721  ;;  %v478_v47 = vmul.f32 %v2720_v7, %v2939_v12  ;;  %v528_v48 = vsel %vm70_vm0, %v2720_v7, 0.0  ;;  %2683 = vmatprep.subr.bf16.mxu0 %v2682_v38  ;;  %2687 = vmatprep.subr.bf16.mxu1 %v2686_v41  ;;  %v481_v51 = vadd.f32 %v480_v46, %v472_v35  ;;  %v514_v52 = vrot.slane %v513_v42, 4 }
 0x1e9   :  { %v2724_v50 = vpop.eup %2723  ;;  %v529_v53 = vadd.f32 %v2718_v19, %v528_v48  ;;  %v473_v54 = vmul.f32 %v2722_v10, %v2893_v0  ;;  %2685 = vmatpush1.bf16.msra.mxu0 %v2684_v25  ;;  %2689 = vmatpush1.bf16.msra.mxu1 %v2688_v36  ;;  %v1276_v58 = vmax.f32 %v1167_v44, 0.0  ;;  %v1278_v63 = vmax.f32 %v1244_v45, 0.0 }
 0x1ea   :  { %v2726_v55 = vpop.eup %2725  ;;  %v496_v56 = vsel %vm70_vm0, %v478_v47, 0.0  ;;  %v477_v57 = vmul.f32 %v2724_v50, %v2898_v1  ;;  %v520_v12 = vsel %vm70_vm0, %v2724_v50, 0.0  ;;  %v515_v60 = vadd.f32 %v514_v52, %v513_v42 }
 0x1eb   :  { %v2728_v59 = vpop.eup %2727  ;;  %v530_v61 = vrot.slane %v529_v53, 4  ;;  %v521_v62 = vadd.f32 %v2722_v10, %v520_v12  ;;  %v2692_v8 = vpack.c.bf16 %v1276_v58, %v1260_v29  ;;  %v2696_v17 = vpack.c.bf16 %v1278_v63, %v1262_v39 }
 0x1ec   :  { %v488_v2 = vsel %vm70_vm0, %v477_v57, 0.0  ;;  %v479_v4 = vmul.f32 %v2728_v59, %v2917_v6  ;;  %v536_v0 = vsel %vm70_vm0, %v2728_v59, 0.0  ;;  %2627 = vmatmul.mubr.msk.f32.vlgmr.msra.gmra.mrb[28].mxu0 %vm255_vm5, %v3127_v13  ;;  %2628 = vmatmul.mubr.msk.f32.vlgmr.msra.gmra.mrb[28].mxu1 %vm255_vm5, %v3127_v13  ;;  %v516_v1 = vrot.slane %v515_v60, 2 }
 0x1ed   :  { %v531_v9 = vadd.f32 %v530_v61, %v529_v53  ;;  %v489_v14 = vadd.f32 %v488_v2, %v473_v54  ;;  %v522_v15 = vrot.slane %v521_v62, 4  ;;  %1778 = vmatprep.mubr.f32.mxu0 %v2826_v3  ;;  %1849 = vmatprep.mubr.f32.mxu1 %v2826_v3  ;;  %v537_v16 = vadd.f32 %v2726_v55, %v536_v0 }
 0x1ee   :  { %v1277_v6 = vmax.f32 %v1169_v49, 0.0  ;;  %v1246_v18 = vadd.f32 %v1245_v31, %v3078_v20  ;;  %v517_v21 = vadd.f32 %v516_v1, %v515_v60  ;;  %v474_v24 = vmul.f32 %v2718_v19, %v2934_v11 }
 0x1ef   :  { %v532_v22 = vrot.slane %v531_v9, 2  ;;  %v523_v23 = vadd.f32 %v522_v15, %v521_v62  ;;  %v538_v25 = vrot.slane %v537_v16, 4  ;;  %v475_v29 = vmul.f32 %v2726_v55, %v2912_v5 }
 0x1f0   :  { %v2690_v26 = vpack.c.bf16 %v1277_v6, %v1261_v40  ;;  %v1279_v33 = vmax.f32 %v1246_v18, 0.0  ;;  %v518_v34 = vrot.slane %v517_v21, 1  ;;  %v482_v35 = vrot.slane %v481_v51, 4  ;;  %v3214_v18 = vpop.permute.xlu0 %1282 }
 0x1f1   :  { %v533_v30 = vadd.f32 %v532_v22, %v531_v9  ;;  %v524_v27 = vrot.slane %v523_v23, 2  ;;  %v539_v36 = vadd.f32 %v538_v25, %v537_v16  ;;  %v490_v39 = vrot.slane %v489_v14, 4 }
 0x1f2   :  { %v2694_v28 = vpack.c.bf16 %v1279_v33, %v1263_v43  ;;  %2691 = vmatprep.subr.bf16.mxu0 %v2690_v26  ;;  %v497_v32 = vadd.f32 %v496_v56, %v474_v24  ;;  %v519_v20 = vadd.f32 %v518_v34, %v517_v21  ;;  %v483_v38 = vadd.f32 %v482_v35, %v481_v51 }
 0x1f3   :  { %v534_v31 = vrot.slane %v533_v30, 1  ;;  %v525_v37 = vadd.f32 %v524_v27, %v523_v23  ;;  %2693 = vmatpush1.bf16.msra.mxu0 %v2692_v8  ;;  %v540_v11 = vrot.slane %v539_v36, 2  ;;  %v491_v40 = vadd.f32 %v490_v39, %v489_v14 }
 0x1f4   :  { %2695 = vmatprep.subr.bf16.mxu1 %v2694_v28  ;;  %v498_v19 = vrot.slane %v497_v32, 4  ;;  %v504_v5 = vsel %vm70_vm0, %v479_v4, 0.0  ;;  %v484_v7 = vrot.slane %v483_v38, 2  ;;  %2729 = vrcp.f32 %v519_v20 }
 0x1f5   :  { %v526_v41 = vrot.slane %v525_v37, 1  ;;  %2697 = vmatpush1.bf16.msra.mxu1 %v2696_v17  ;;  %v505_v42 = vadd.f32 %v504_v5, %v475_v29  ;;  %v535_v44 = vadd.f32 %v534_v31, %v533_v30  ;;  %v541_v43 = vadd.f32 %v540_v11, %v539_v36 }
 0x1f6   :  { %2629 = vmatmul.mubr.msk.f32.vlgmr.msra.gmra.mrb[30].mxu0 %vm255_vm5, %v3127_v13  ;;  %v492_v45 = vrot.slane %v491_v40, 2  ;;  %v499_v10 = vadd.f32 %v498_v19, %v497_v32  ;;  %2641 = vmatprep.subr.mxu1 %v2826_v3  ;;  %v485_v47 = vadd.f32 %v484_v7, %v483_v38  ;;  %v2829_v6 = vmov 1.0  }
 0x1f7   :  { %v527_v46 = vadd.f32 %v526_v41, %v525_v37  ;;  %v506_v48 = vrot.slane %v505_v42, 4  ;;  %2731 = vrcp.f32 %v535_v44  ;;  %v542_v50 = vrot.slane %v541_v43, 1 }
 0x1f8   :  { %2630 = vmatmul.mubr.msk.f32.vlgmr.msra.gmra.mrb[30].mxu1 %vm255_vm5, %v3127_v13  ;;  %v500_v49 = vrot.slane %v499_v10, 2  ;;  %v493_v52 = vadd.f32 %v492_v45, %v491_v40  ;;  %v486_v55 = vrot.slane %v485_v47, 1 }
 0x1f9   :  { %v507_v51 = vadd.f32 %v506_v48, %v505_v42  ;;  %2733 = vrcp.f32 %v527_v46  ;;  %2643 = vmatprep.mubr.msk.f32.mxu1 %vm2828_vm7, %v2826_v3  ;;  %v543_v54 = vadd.f32 %v542_v50, %v541_v43 }
 0x1fa   :  { %v501_v53 = vadd.f32 %v500_v49, %v499_v10  ;;  %v494_v58 = vrot.slane %v493_v52, 1  ;;  %v487_v59 = vadd.f32 %v486_v55, %v485_v47 }
 0x1fb   :  { %v508_v56 = vrot.slane %v507_v51, 2  ;;  %2735 = vrcp.f32 %v543_v54 }
 0x1fc   :  { %v502_v57 = vrot.slane %v501_v53, 1  ;;  %v495_v2 = vadd.f32 %v494_v58, %v493_v52 }
 0x1fd   :  { %v509_v12 = vadd.f32 %v508_v56, %v507_v51 }
 0x1fe   :  { %v2730_v60 = vpop.eup %2729  ;;  %v503_v61 = vadd.f32 %v502_v57, %v501_v53 }
 0x1ff   :  { %v510_v62 = vrot.slane %v509_v12, 1  ;;  %v548_v63 = vmul.f32 %v2730_v60, %v487_v59 }
 0x201   :  { %v2732_v13 = vpop.eup %2731  ;;  %v511_v8 = vadd.f32 %v510_v62, %v509_v12 }
 0x202   :  { %v550_v4 = vmul.f32 %v2732_v13, %v503_v61 }
 0x203   :  { %v2734_v0 = vpop.eup %2733 }
 0x204   :  { %v549_v3 = vmul.f32 %v2734_v0, %v495_v2 }
 0x205   :  { %v2736_v1 = vpop.eup %2735 }
 0x206   :  { %v2337_v9 = vsel %vm2336_vm8, %v548_v63, %v549_v3  ;;  %v551_v14 = vmul.f32 %v2736_v1, %v511_v8 }
 0x207   :  { %v2339_v15 = vsel %vm2338_vm9, %v2337_v9, %v550_v4 }
 0x208   :  { %v2340_v16 = vsel %vm599_vm4, %v2339_v15, %v551_v14 }
 0x209   :  { %2636 = vmatprep.subr.mxu0 %v2340_v16  ;;  %v2439_v17 = vmul.f32 %v2340_v16, %v2340_v16 }
 0x20a   :  { %2637 = vmatpush3.xpose.msra.mxu0 %v2340_v16 }
 0x20b   :  { %2642 = vmatpush3.xpose.msra.mxu1 %v2439_v17 }
 0x20e   :  { %2644 = vmatmul.mubr.f32.vlgmr.msra.gmra.mrb[32].mxu1 %v2829_v6 }
 0x2aa   :  { %v1354_v21 = vpop.f32.mrb[24].mxu0 }
 0x2ab   :  { %v1355_v22 = vadd.f32 %v1354_v21, %v3214_v18  ;;  %v1425_v23 = vpop.f32.mrb[24].mxu1  ;;  %v1356_v24 = vpop.f32.mrb[25].mxu0 }
 0x2ac   :  { %v1426_v25 = vadd.f32 %v1425_v23, %v3214_v18  ;;  %v1357_v26 = vadd.f32 %v1356_v24, %v3214_v18  ;;  %v1427_v33 = vpop.f32.mrb[25].mxu1 }
 0x2ad   :  { %v1856_v29 = vsel %vm599_vm4, %v1355_v22, -inf  ;;  %v1428_v34 = vadd.f32 %v1427_v33, %v3214_v18 }
 0x2ae   :  { %v1857_v30 = vrot.slane %v1856_v29, 4  ;;  %v1870_v27 = vsel %vm599_vm4, %v1426_v25, -inf  ;;  %v1863_v35 = vsel %vm599_vm4, %v1357_v26, -inf }
 0x2af   :  { %v1871_v36 = vrot.slane %v1870_v27, 4  ;;  %v1864_v28 = vrot.slane %v1863_v35, 4  ;;  %v1877_v39 = vsel %vm599_vm4, %v1428_v34, -inf }
 0x2b0   :  { %v1858_v32 = vmax.f32 %v1856_v29, %v1857_v30  ;;  %v1878_v20 = vrot.slane %v1877_v39, 4 }
 0x2b1   :  { %v1872_v31 = vmax.f32 %v1870_v27, %v1871_v36  ;;  %v1865_v37 = vmax.f32 %v1863_v35, %v1864_v28 }
 0x2b2   :  { %v1859_v38 = vrot.slane %v1858_v32, 2  ;;  %v1879_v11 = vmax.f32 %v1877_v39, %v1878_v20 }
 0x2b3   :  { %v1873_v40 = vrot.slane %v1872_v31, 2  ;;  %v1866_v19 = vrot.slane %v1865_v37, 2 }
 0x2b4   :  { %v1860_v5 = vmax.f32 %v1858_v32, %v1859_v38  ;;  %v1880_v41 = vrot.slane %v1879_v11, 2 }
 0x2b5   :  { %v1874_v7 = vmax.f32 %v1872_v31, %v1873_v40  ;;  %v1867_v42 = vmax.f32 %v1865_v37, %v1866_v19 }
 0x2b6   :  { %v1861_v44 = vrot.slane %v1860_v5, 1  ;;  %v1881_v43 = vmax.f32 %v1879_v11, %v1880_v41 }
 0x2b7   :  { %v1875_v45 = vrot.slane %v1874_v7, 1  ;;  %v1868_v10 = vrot.slane %v1867_v42, 1 }
 0x2b8   :  { %v1862_v46 = vmax.f32 %v1860_v5, %v1861_v44  ;;  %v1882_v47 = vrot.slane %v1881_v43, 1  ;;  %v1496_v48 = vpop.f32.mrb[26].mxu0 }
 0x2b9   :  { %v1567_v49 = vpop.f32.mrb[26].mxu1  ;;  %v1876_v50 = vmax.f32 %v1874_v7, %v1875_v45  ;;  %v1869_v51 = vmax.f32 %v1867_v42, %v1868_v10  ;;  %v3225_v52 = vadd.f32 %v1496_v48, %v3214_v18  ;;  %v1498_v54 = vpop.f32.mrb[27].mxu0 }
 0x2ba   :  { %v3228_v53 = vadd.f32 %v1567_v49, %v3214_v18  ;;  %v1569_v55 = vpop.f32.mrb[27].mxu1  ;;  %v1968_v56 = vsub.f32 %v1355_v22, %v1862_v46  ;;  %v1883_v57 = vmax.f32 %v1881_v43, %v1882_v47  ;;  %v3231_v12 = vadd.f32 %v1498_v54, %v3214_v18 }
 0x2bb   :  { %v3234_v58 = vadd.f32 %v1569_v55, %v3214_v18  ;;  %v1970_v59 = vsub.f32 %v1426_v25, %v1876_v50  ;;  %v1969_v60 = vsub.f32 %v1357_v26, %v1869_v51  ;;  %v1884_v61 = vsel %vm599_vm4, %v3225_v52, -inf }
 0x2bc   :  { %v1898_v13 = vsel %vm599_vm4, %v3228_v53, -inf  ;;  %v1984_v62 = vmul.f32 1.442695, %v1968_v56  ;;  %v1971_v63 = vsub.f32 %v1428_v34, %v1883_v57  ;;  %v1885_v2 = vrot.slane %v1884_v61, 4 }
 0x2bd   :  { %v1899_v4 = vrot.slane %v1898_v13, 4  ;;  %v1988_v0 = vmul.f32 1.442695, %v1970_v59  ;;  %v1986_v3 = vmul.f32 1.442695, %v1969_v60  ;;  %v1891_v8 = vsel %vm599_vm4, %v3231_v12, -inf }
 0x2be   :  { %v1905_v1 = vsel %vm599_vm4, %v3234_v58, -inf  ;;  %2737 = vpow2.f32 %v1984_v62  ;;  %v1990_v9 = vmul.f32 1.442695, %v1971_v63  ;;  %v1886_v14 = vmax.f32 %v1884_v61, %v1885_v2 }
 0x2bf   :  { %v1900_v15 = vmax.f32 %v1898_v13, %v1899_v4  ;;  %v1638_v16 = vpop.f32.mrb[28].mxu0  ;;  %v1709_v17 = vpop.f32.mrb[28].mxu1  ;;  %2739 = vpow2.f32 %v1988_v0  ;;  %v1892_v6 = vrot.slane %v1891_v8, 4  ;;  %v1906_v21 = vrot.slane %v1905_v1, 4 }
 0x2c0   :  { %v3245_v22 = vadd.f32 %v1638_v16, %v3214_v18  ;;  %v1640_v23 = vpop.f32.mrb[29].mxu0  ;;  %v1711_v24 = vpop.f32.mrb[29].mxu1  ;;  %2741 = vpow2.f32 %v1986_v3  ;;  %v1887_v25 = vrot.slane %v1886_v14, 2  ;;  %v3248_v33 = vadd.f32 %v1709_v17, %v3214_v18 }
 0x2c1   :  { %v1901_v26 = vrot.slane %v1900_v15, 2  ;;  %2743 = vpow2.f32 %v1990_v9  ;;  %v1893_v29 = vmax.f32 %v1891_v8, %v1892_v6  ;;  %v1907_v34 = vmax.f32 %v1905_v1, %v1906_v21 }
 0x2c2   :  { %v1912_v30 = vsel %vm599_vm4, %v3245_v22, -inf  ;;  %v1888_v27 = vmax.f32 %v1886_v14, %v1887_v25  ;;  %v1926_v28 = vsel %vm599_vm4, %v3248_v33, -inf  ;;  %v3255_v31 = vadd.f32 %v1640_v23, %v3214_v18 }
 0x2c3   :  { %v1902_v35 = vmax.f32 %v1900_v15, %v1901_v26  ;;  %v1913_v36 = vrot.slane %v1912_v30, 4  ;;  %v1894_v39 = vrot.slane %v1893_v29, 2  ;;  %v1908_v32 = vrot.slane %v1907_v34, 2 }
 0x2c4   :  { %v1927_v20 = vrot.slane %v1926_v28, 4  ;;  %v1889_v37 = vrot.slane %v1888_v27, 1  ;;  %v3258_v40 = vadd.f32 %v1711_v24, %v3214_v18  ;;  %v1919_v7 = vsel %vm599_vm4, %v3255_v31, -inf  ;;  %v2817_v24 = vld [vmem:[%s3560_s1] sm:$0x77] }
 0x2c5   :  { %v1903_v38 = vrot.slane %v1902_v35, 1  ;;  %v1914_v11 = vmax.f32 %v1912_v30, %v1913_v36  ;;  %v1895_v19 = vmax.f32 %v1893_v29, %v1894_v39  ;;  %v1909_v5 = vmax.f32 %v1907_v34, %v1908_v32 }
 0x2c6   :  { %v1928_v41 = vmax.f32 %v1926_v28, %v1927_v20  ;;  %v1890_v42 = vmax.f32 %v1888_v27, %v1889_v37  ;;  %v1920_v45 = vrot.slane %v1919_v7, 4  ;;  %v3264_v48 = vsel %vm599_vm4, %v3258_v40, -inf }
 0x2c7   :  { %v1904_v44 = vmax.f32 %v1902_v35, %v1903_v38  ;;  %v1915_v43 = vrot.slane %v1914_v11, 2  ;;  %v1896_v10 = vrot.slane %v1895_v19, 1  ;;  %v1910_v46 = vrot.slane %v1909_v5, 1 }
 0x2c8   :  { %v1929_v47 = vrot.slane %v1928_v41, 2  ;;  %v2738_v49 = vpop.eup %2737  ;;  %v1972_v50 = vsub.f32 %v3225_v52, %v1890_v42  ;;  %v3270_v55 = vmax.f32 %v1919_v7, %v1920_v45 }
 0x2c9   :  { %v1974_v51 = vsub.f32 %v3228_v53, %v1904_v44  ;;  %v3268_v54 = vmax.f32 %v1914_v11, %v1915_v43  ;;  %v3272_v56 = vpop.f32.mrb[30].mxu0  ;;  %v2740_v57 = vpop.eup %2739  ;;  %v2192_v59 = vsel %vm599_vm4, %v2738_v49, 0.0  ;;  %v3275_v60 = vmax.f32 %v1895_v19, %v1896_v10 }
 0x2ca   :  { %v3277_v61 = vmax.f32 %v1909_v5, %v1910_v46  ;;  %v3279_v13 = vmax.f32 %v1928_v41, %v1929_v47  ;;  %v3281_v62 = vpop.f32.mrb[31].mxu0  ;;  %v2742_v52 = vpop.eup %2741  ;;  %v2193_v63 = vrot.slane %v2192_v59, 4  ;;  %v2206_v53 = vsel %vm599_vm4, %v2740_v57, 0.0 }
 0x2cb   :  { %v1992_v2 = vmul.f32 1.442695, %v1972_v50  ;;  %v1996_v4 = vmul.f32 1.442695, %v1974_v51  ;;  %v2744_v0 = vpop.eup %2743  ;;  %v2207_v3 = vrot.slane %v2206_v53, 4  ;;  %v2032_v8 = vcombine.low %v2738_v49, %v2742_v52  ;;  %v3287_v14 = vpop.f32.mrb[30].mxu1 }
 0x2cc   :  { %v2199_v1 = vsel %vm599_vm4, %v2742_v52, 0.0  ;;  %v1973_v9 = vsub.f32 %v3231_v12, %v3275_v60  ;;  %v2194_v15 = vadd.f32 %v2193_v63, %v2192_v59  ;;  %v2033_v17 = vcombine.low %v2740_v57, %v2744_v0  ;;  %v3290_v21 = vpop.f32.mrb[31].mxu1  ;;  %v2818_v12 = vld [vmem:[%s3560_s1 + $0x8] sm:$0x77] }
 0x2cd   :  { %v2200_v16 = vrot.slane %v2199_v1, 4  ;;  %v2213_v6 = vsel %vm599_vm4, %v2744_v0, 0.0  ;;  %v2208_v23 = vadd.f32 %v2207_v3, %v2206_v53  ;;  %v2048_v25 = vmul.f32 %v2817_v24, %v2032_v8 }
 0x2ce   :  { %v2214_v26 = vrot.slane %v2213_v6, 4  ;;  %2745 = vpow2.f32 %v1992_v2  ;;  %v2195_v29 = vrot.slane %v2194_v15, 2  ;;  %v2049_v30 = vmul.f32 %v2818_v12, %v2033_v17 }
 0x2cf   :  { %v2201_v34 = vadd.f32 %v2200_v16, %v2199_v1  ;;  %2747 = vpow2.f32 %v1996_v4  ;;  %v2209_v27 = vrot.slane %v2208_v23, 2  ;;  %v2064_v35 = vcombine.high %v2048_v25, %v2048_v25 }
 0x2d0   :  { %v2080_v36 = vsel %vm599_vm4, %v2048_v25, 0.0  ;;  %v2215_v28 = vadd.f32 %v2214_v26, %v2213_v6  ;;  %v2196_v39 = vadd.f32 %v2195_v29, %v2194_v15  ;;  %v2065_v37 = vcombine.high %v2049_v30, %v2049_v30 }
 0x2d1   :  { %v2081_v32 = vrot.slane %v2080_v36, 4  ;;  %v2202_v20 = vrot.slane %v2201_v34, 2  ;;  %v2210_v38 = vadd.f32 %v2209_v27, %v2208_v23  ;;  %v2087_v11 = vsel %vm599_vm4, %v2064_v35, 0.0 }
 0x2d2   :  { %v2094_v19 = vsel %vm599_vm4, %v2049_v30, 0.0  ;;  %v2216_v5 = vrot.slane %v2215_v28, 2  ;;  %v2197_v41 = vrot.slane %v2196_v39, 1  ;;  %v2088_v42 = vrot.slane %v2087_v11, 4 }
 0x2d3   :  { %v2082_v7 = vadd.f32 %v2081_v32, %v2080_v36  ;;  %v2203_v44 = vadd.f32 %v2202_v20, %v2201_v34  ;;  %v2211_v43 = vrot.slane %v2210_v38, 1  ;;  %v2095_v45 = vrot.slane %v2094_v19, 4 }
 0x2d4   :  { %v3302_v10 = vsel %vm599_vm4, %v2065_v37, 0.0  ;;  %v2217_v46 = vadd.f32 %v2216_v5, %v2215_v28  ;;  %v2198_v47 = vadd.f32 %v2197_v41, %v2196_v39  ;;  %v2089_v50 = vadd.f32 %v2088_v42, %v2087_v11 }
 0x2d5   :  { %v2083_v49 = vrot.slane %v2082_v7, 2  ;;  %v2204_v51 = vrot.slane %v2203_v44, 1  ;;  %v2212_v57 = vadd.f32 %v2211_v43, %v2210_v38  ;;  %v3304_v59 = vadd.f32 %v2095_v45, %v2094_v19 }
 0x2d6   :  { %v2102_v60 = vrot.slane %v3302_v10, 4  ;;  %v2218_v52 = vrot.slane %v2217_v46, 1  ;;  %2749 = vrcp.f32 %v2198_v47  ;;  %v2090_v53 = vrot.slane %v2089_v50, 2 }
 0x2d7   :  { %v3307_v63 = vadd.f32 %v2083_v49, %v2082_v7  ;;  %v2205_v2 = vadd.f32 %v2204_v51, %v2203_v44  ;;  %2751 = vrcp.f32 %v2212_v57  ;;  %v2097_v0 = vrot.slane %v3304_v59, 2 }
 0x2d8   :  { %v3309_v4 = vpop.eup %2745  ;;  %v2219_v3 = vadd.f32 %v2218_v52, %v2217_v46  ;;  %v1994_v8 = vmul.f32 1.442695, %v1973_v9  ;;  %v3315_v16 = vadd.f32 %v2090_v53, %v2089_v50  ;;  %v1975_v24 = vsub.f32 %v3234_v58, %v3277_v61 }
 0x2d9   :  { %v3312_v1 = vpop.eup %2747  ;;  %v2085_v15 = vrot.slane %v3307_v63, 1  ;;  %2753 = vrcp.f32 %v2205_v2  ;;  %v2220_v17 = vsel %vm599_vm4, %v3309_v4, 0.0  ;;  %v1917_v9 = vrot.slane %v3268_v54, 1 }
 0x2da   :  { %2755 = vrcp.f32 %v2219_v3  ;;  %v2221_v6 = vrot.slane %v2220_v17, 4  ;;  %v2234_v23 = vsel %vm599_vm4, %v3312_v1, 0.0  ;;  %v1931_v26 = vrot.slane %v3279_v13, 1 }
 0x2db   :  { %v2235_v25 = vrot.slane %v2234_v23, 4  ;;  %2757 = vpow2.f32 %v1994_v8  ;;  %v1998_v34 = vmul.f32 1.442695, %v1975_v24  ;;  %v1922_v12 = vrot.slane %v3270_v55, 2 }
 0x2dc   :  { %v2222_v29 = vadd.f32 %v2221_v6, %v2220_v17  ;;  %v1934_v30 = vrot.slane %v3264_v48, 4  ;;  %v1918_v35 = vmax.f32 %v3268_v54, %v1917_v9  ;;  %v1932_v36 = vmax.f32 %v3279_v13, %v1931_v26 }
 0x2dd   :  { %v2236_v27 = vadd.f32 %v2235_v25, %v2234_v23  ;;  %v3331_v58 = vadd.f32 %v3272_v56, %v3214_v18  ;;  %2759 = vpow2.f32 %v1998_v34  ;;  %v1923_v28 = vmax.f32 %v3270_v55, %v1922_v12 }
 0x2de   :  { %v2223_v61 = vrot.slane %v2222_v29, 2  ;;  %v1935_v39 = vmax.f32 %v3264_v48, %v1934_v30  ;;  %v1976_v20 = vsub.f32 %v3245_v22, %v1918_v35  ;;  %v1978_v37 = vsub.f32 %v3248_v33, %v1932_v36 }
 0x2df   :  { %v2237_v32 = vrot.slane %v2236_v27, 2  ;;  %v1940_v54 = vsel %vm599_vm4, %v3331_v58, -inf  ;;  %v1924_v13 = vrot.slane %v1923_v28, 1  ;;  %v3343_v48 = vadd.f32 %v3287_v14, %v3214_v18 }
 0x2e0   :  { %v2224_v38 = vadd.f32 %v2223_v61, %v2222_v29  ;;  %v1936_v11 = vrot.slane %v1935_v39, 2  ;;  %v1941_v19 = vrot.slane %v1940_v54, 4  ;;  %v3339_v56 = vpop.eup %2749  ;;  %v2000_v41 = vmul.f32 1.442695, %v1976_v20  ;;  %v2819_v29 = vld [vmem:[%s3560_s1 + $0x10] sm:$0x77] }
 0x2e1   :  { %v2238_v5 = vadd.f32 %v2237_v32, %v2236_v27  ;;  %v2004_v7 = vmul.f32 1.442695, %v1978_v37  ;;  %v3345_v55 = vpop.eup %2751  ;;  %v1925_v33 = vmax.f32 %v1923_v28, %v1924_v13  ;;  %v3347_v43 = vpop.f32.mrb[32].mxu1  ;;  %v1954_v47 = vsel %vm599_vm4, %v3343_v48, -inf }
 0x2e2   :  { %v2225_v22 = vrot.slane %v2224_v38, 1  ;;  %v1937_v42 = vmax.f32 %v1935_v39, %v1936_v11  ;;  %v1942_v44 = vmax.f32 %v1940_v54, %v1941_v19  ;;  %2761 = vpow2.f32 %v2000_v41  ;;  %v2645_v14 = vpop.f32.mrb[33].mxu1 }
 0x2e3   :  { %v3349_v45 = vpop.eup %2753  ;;  %v2239_v46 = vrot.slane %v2238_v5, 1  ;;  %v3355_v49 = vadd.f32 %v3281_v62, %v3214_v18  ;;  %2763 = vpow2.f32 %v2004_v7  ;;  %v1977_v57 = vsub.f32 %v3255_v31, %v1925_v33 }
 0x2e4   :  { %v3357_v50 = vpop.eup %2755  ;;  %v2226_v51 = vadd.f32 %v2225_v22, %v2224_v38  ;;  %v1938_v52 = vrot.slane %v1937_v42, 1  ;;  %v1943_v3 = vrot.slane %v1942_v44, 2  ;;  %v1955_v8 = vrot.slane %v1954_v47, 4 }
 0x2e5   :  { %v2758_v53 = vpop.eup %2757  ;;  %v3360_v2 = vadd.f32 %v2239_v46, %v2238_v5  ;;  %v1947_v17 = vsel %vm599_vm4, %v3355_v49, -inf  ;;  %v2002_v23 = vmul.f32 1.442695, %v1977_v57  ;;  %v3373_v30 = vadd.f32 %v3290_v21, %v3214_v18  ;;  %v2820_v21 = vld [vmem:[%s3560_s1 + $0x18] sm:$0x77] }
 0x2e6   :  { %2765 = vrcp.f32 %v2226_v51  ;;  %v2034_v62 = vcombine.low %v3309_v4, %v2758_v53  ;;  %v2227_v6 = vsel %vm599_vm4, %v2758_v53, 0.0  ;;  %v1939_v25 = vmax.f32 %v1937_v42, %v1938_v52 }
 0x2e7   :  { %v2228_v24 = vrot.slane %v2227_v6, 4  ;;  %v1944_v9 = vmax.f32 %v1942_v44, %v1943_v3  ;;  %v1956_v26 = vmax.f32 %v1954_v47, %v1955_v8  ;;  %v2760_v31 = vpop.eup %2759  ;;  %2767 = vpow2.f32 %v2002_v23 }
 0x2e8   :  { %v3369_v34 = vmul.f32 %v2819_v29, %v2034_v62  ;;  %v1948_v12 = vrot.slane %v1947_v17, 4  ;;  %v2035_v27 = vcombine.low %v3312_v1, %v2760_v31  ;;  %v2241_v35 = vsel %vm599_vm4, %v2760_v31, 0.0 }
 0x2e9   :  { %v2229_v4 = vadd.f32 %v2228_v24, %v2227_v6  ;;  %v1979_v36 = vsub.f32 %v3258_v40, %v1939_v25  ;;  %v2242_v39 = vrot.slane %v2241_v35, 4  ;;  %v1945_v32 = vrot.slane %v1944_v9, 1 }
 0x2ea   :  { %v2066_v61 = vcombine.high %v3369_v34, %v3369_v34  ;;  %v3382_v28 = vsel %vm599_vm4, %v3369_v34, 0.0  ;;  %v3388_v1 = vmul.f32 %v2820_v21, %v2035_v27  ;;  %v1957_v38 = vrot.slane %v1956_v26, 2 }
 0x2eb   :  { %v2109_v20 = vrot.slane %v3382_v28, 4  ;;  %v2230_v18 = vrot.slane %v2229_v4, 2  ;;  %v2006_v37 = vmul.f32 1.442695, %v1979_v36  ;;  %v2243_v40 = vadd.f32 %v2242_v39, %v2241_v35  ;;  %v2821_v39 = vld [vmem:[%s3560_s1 + $0x20] sm:$0x77] }
 0x2ec   :  { %v1946_v54 = vmax.f32 %v1944_v9, %v1945_v32  ;;  %v1949_v13 = vmax.f32 %v1947_v17, %v1948_v12  ;;  %v2762_v11 = vpop.eup %2761  ;;  %v1961_v5 = vsel %vm599_vm4, %v3373_v30, -inf  ;;  %v2067_v41 = vcombine.high %v3388_v1, %v3388_v1 }
 0x2ed   :  { %v2231_v19 = vadd.f32 %v2230_v18, %v2229_v4  ;;  %2769 = vpow2.f32 %v2006_v37  ;;  %v2764_v7 = vpop.eup %2763  ;;  %v2244_v22 = vrot.slane %v2243_v40, 2  ;;  %v2248_v33 = vsel %vm599_vm4, %v2762_v11, 0.0 }
 0x2ee   :  { %v1980_v42 = vsub.f32 %v3331_v58, %v1946_v54  ;;  %v1958_v44 = vmax.f32 %v1956_v26, %v1957_v38  ;;  %v2249_v47 = vrot.slane %v2248_v33, 4  ;;  %v2262_v14 = vsel %vm599_vm4, %v2764_v7, 0.0 }
 0x2ef   :  { %v2232_v46 = vrot.slane %v2231_v19, 1  ;;  %v1950_v51 = vrot.slane %v1949_v13, 2  ;;  %v3399_v52 = vadd.f32 %v2244_v22, %v2243_v40  ;;  %v2263_v53 = vrot.slane %v2262_v14, 4 }
 0x2f0   :  { %v3397_v57 = vpop.eup %2765  ;;  %v2008_v3 = vmul.f32 1.442695, %v1980_v42  ;;  %v1959_v8 = vrot.slane %v1958_v44, 1  ;;  %v2250_v62 = vadd.f32 %v2249_v47, %v2248_v33  ;;  %v1962_v23 = vrot.slane %v1961_v5, 4 }
 0x2f1   :  { %v2233_v17 = vadd.f32 %v2232_v46, %v2231_v19  ;;  %v1951_v6 = vmax.f32 %v1949_v13, %v1950_v51  ;;  %v2768_v24 = vpop.eup %2767  ;;  %v2246_v58 = vrot.slane %v3399_v52, 1  ;;  %v2264_v25 = vadd.f32 %v2263_v53, %v2262_v14 }
 0x2f2   :  { %2771 = vpow2.f32 %v2008_v3  ;;  %v1960_v9 = vmax.f32 %v1958_v44, %v1959_v8  ;;  %v2251_v26 = vrot.slane %v2250_v62, 2  ;;  %v2036_v31 = vcombine.low %v2762_v11, %v2768_v24  ;;  %v2822_v3 = vld [vmem:[%s3560_s1 + $0x28] sm:$0x77] }
 0x2f3   :  { %2773 = vrcp.f32 %v2233_v17  ;;  %v2255_v29 = vsel %vm599_vm4, %v2768_v24, 0.0  ;;  %v2265_v12 = vrot.slane %v2264_v25, 2  ;;  %v1952_v35 = vrot.slane %v1951_v6, 1 }
 0x2f4   :  { %v2256_v4 = vrot.slane %v2255_v29, 4  ;;  %v1982_v27 = vsub.f32 %v3343_v48, %v1960_v9  ;;  %v2252_v36 = vadd.f32 %v2251_v26, %v2250_v62  ;;  %v2052_v32 = vmul.f32 %v2821_v39, %v2036_v31 }
 0x2f5   :  { %v1963_v18 = vmax.f32 %v1961_v5, %v1962_v23  ;;  %v3410_v21 = vadd.f32 %v2085_v15, %v3307_v63  ;;  %v2266_v37 = vadd.f32 %v2265_v12, %v2264_v25  ;;  %v1953_v38 = vmax.f32 %v1951_v6, %v1952_v35 }
 0x2f6   :  { %v2257_v40 = vadd.f32 %v2256_v4, %v2255_v29  ;;  %v2012_v54 = vmul.f32 1.442695, %v1982_v27  ;;  %v2253_v11 = vrot.slane %v2252_v36, 1  ;;  %v2068_v48 = vcombine.high %v2052_v32, %v2052_v32 }
 0x2f7   :  { %v2770_v13 = vpop.eup %2769  ;;  %v2136_v19 = vsel %vm599_vm4, %v2052_v32, 0.0  ;;  %v1964_v22 = vrot.slane %v1963_v18, 2  ;;  %v2267_v33 = vrot.slane %v2266_v37, 1  ;;  %v1981_v62 = vsub.f32 %v3355_v49, %v1953_v38 }
 0x2f8   :  { %v2137_v42 = vrot.slane %v2136_v19, 4  ;;  %v2258_v44 = vrot.slane %v2257_v40, 2  ;;  %v2037_v46 = vcombine.low %v2764_v7, %v2770_v13  ;;  %v2254_v5 = vadd.f32 %v2253_v11, %v2252_v36 }
 0x2f9   :  { %v2143_v47 = vsel %vm599_vm4, %v2068_v48, 0.0  ;;  %v2269_v63 = vsel %vm599_vm4, %v2770_v13, 0.0  ;;  %2775 = vpow2.f32 %v2012_v54  ;;  %v2268_v15 = vadd.f32 %v2267_v33, %v2266_v37 }
 0x2fa   :  { %v2138_v14 = vadd.f32 %v2137_v42, %v2136_v19  ;;  %v2144_v51 = vrot.slane %v2143_v47, 4  ;;  %v2259_v53 = vadd.f32 %v2258_v44, %v2257_v40  ;;  %2777 = vrcp.f32 %v2254_v5 }
 0x2fb   :  { %v2053_v8 = vmul.f32 %v2822_v3, %v2037_v46  ;;  %v2270_v17 = vrot.slane %v2269_v63, 4  ;;  %2779 = vrcp.f32 %v2268_v15  ;;  %v2010_v32 = vmul.f32 1.442695, %v1981_v62 }
 0x2fc   :  { %v3419_v7 = vpop.eup %2771  ;;  %v2139_v6 = vrot.slane %v2138_v14, 2  ;;  %v2145_v23 = vadd.f32 %v2144_v51, %v2143_v47  ;;  %v2260_v24 = vrot.slane %v2259_v53, 1  ;;  %v1965_v19 = vmax.f32 %v1963_v18, %v1964_v22 }
 0x2fd   :  { %v3421_v25 = vpop.eup %2773  ;;  %v2069_v9 = vcombine.high %v2053_v8, %v2053_v8  ;;  %v2150_v26 = vsel %vm599_vm4, %v2053_v8, 0.0  ;;  %v2271_v31 = vadd.f32 %v2270_v17, %v2269_v63  ;;  %v2276_v29 = vsel %vm599_vm4, %v3419_v7, 0.0 }
 0x2fe   :  { %v3426_v12 = vadd.f32 %v2139_v6, %v2138_v14  ;;  %v2146_v4 = vrot.slane %v2145_v23, 2  ;;  %v2261_v27 = vadd.f32 %v2260_v24, %v2259_v53  ;;  %v2151_v49 = vrot.slane %v2150_v26, 4 }
 0x2ff   :  { %v2157_v35 = vsel %vm599_vm4, %v2069_v9, 0.0  ;;  %v2272_v36 = vrot.slane %v2271_v31, 2  ;;  %v2277_v39 = vrot.slane %v2276_v29, 4  ;;  %v2092_v33 = vrot.slane %v3315_v16, 1 }
 0x300   :  { %v2141_v37 = vrot.slane %v3426_v12, 1  ;;  %v3430_v40 = vadd.f32 %v2146_v4, %v2145_v23  ;;  %2781 = vrcp.f32 %v2261_v27  ;;  %v2152_v54 = vadd.f32 %v2151_v49, %v2150_v26 }
 0x301   :  { %v2158_v38 = vrot.slane %v2157_v35, 4  ;;  %v2273_v13 = vadd.f32 %v2272_v36, %v2271_v31  ;;  %v2278_v11 = vadd.f32 %v2277_v39, %v2276_v29  ;;  %2783 = vpow2.f32 %v2010_v32 }
 0x302   :  { %v2153_v48 = vrot.slane %v2152_v54, 2  ;;  %v2098_v42 = vadd.f32 %v2097_v0, %v3304_v59  ;;  %v2103_v63 = vadd.f32 %v2102_v60, %v3302_v10  ;;  %v1966_v22 = vrot.slane %v1965_v19, 1 }
 0x303   :  { %v3436_v44 = vpop.eup %2775  ;;  %v3438_v46 = vadd.f32 %v2158_v38, %v2157_v35  ;;  %v2274_v5 = vrot.slane %v2273_v13, 1  ;;  %v2279_v47 = vrot.slane %v2278_v11, 2  ;;  %v3448_v14 = vadd.f32 %v2092_v33, %v3315_v16 }
 0x304   :  { %v3443_v15 = vadd.f32 %v2153_v48, %v2152_v54  ;;  %v2290_v18 = vsel %vm599_vm4, %v3436_v44, 0.0  ;;  %v3450_v59 = vpop.eup %2777  ;;  %v2099_v3 = vrot.slane %v2098_v42, 1  ;;  %v1967_v17 = vmax.f32 %v1965_v19, %v1966_v22  ;;  %v2823_v19 = vld [vmem:[%s3560_s1 + $0x30] sm:$0x77] }
 0x305   :  { %v2275_v0 = vadd.f32 %v2274_v5, %v2273_v13  ;;  %v2280_v51 = vadd.f32 %v2279_v47, %v2278_v11  ;;  %v2291_v53 = vrot.slane %v2290_v18, 4  ;;  %v3452_v8 = vpop.eup %2779  ;;  %v2104_v62 = vrot.slane %v2103_v63, 2 }
 0x306   :  { %v2110_v10 = vadd.f32 %v2109_v20, %v3382_v28  ;;  %v2115_v60 = vsel %vm599_vm4, %v2066_v61, 0.0  ;;  %v2100_v23 = vadd.f32 %v2099_v3, %v2098_v42  ;;  %v1983_v24 = vsub.f32 %v3373_v30, %v1967_v17 }
 0x307   :  { %2785 = vrcp.f32 %v2275_v0  ;;  %v2281_v16 = vrot.slane %v2280_v51, 1  ;;  %v2292_v6 = vadd.f32 %v2291_v53, %v2290_v18  ;;  %v2105_v9 = vadd.f32 %v2104_v62, %v2103_v63 }
 0x308   :  { %v2111_v26 = vrot.slane %v2110_v10, 2  ;;  %v2116_v31 = vrot.slane %v2115_v60, 4  ;;  %v2122_v27 = vsel %vm599_vm4, %v3388_v1, 0.0  ;;  %v2129_v34 = vsel %vm599_vm4, %v2067_v41, 0.0 }
 0x309   :  { %v2282_v29 = vadd.f32 %v2281_v16, %v2280_v51  ;;  %v2293_v4 = vrot.slane %v2292_v6, 2  ;;  %v2014_v28 = vmul.f32 1.442695, %v1983_v24  ;;  %v2106_v20 = vrot.slane %v2105_v9, 1 }
 0x30a   :  { %v3468_v61 = vpop.eup %2781  ;;  %v2112_v49 = vadd.f32 %v2111_v26, %v2110_v10  ;;  %v2117_v35 = vadd.f32 %v2116_v31, %v2115_v60  ;;  %v2123_v39 = vrot.slane %v2122_v27, 4  ;;  %v2130_v32 = vrot.slane %v2129_v34, 4 }
 0x30b   :  { %v2784_v30 = vpop.eup %2783  ;;  %2787 = vrcp.f32 %v2282_v29  ;;  %v2294_v36 = vadd.f32 %v2293_v4, %v2292_v6  ;;  %v2107_v13 = vadd.f32 %v2106_v20, %v2105_v9  ;;  %v2320_v16 = vmul.f32 %v3339_v56, %v3410_v21 }
 0x30c   :  { %v2038_v54 = vcombine.low %v3419_v7, %v2784_v30  ;;  %v2283_v38 = vsel %vm599_vm4, %v2784_v30, 0.0  ;;  %2789 = vpow2.f32 %v2014_v28  ;;  %v2113_v41 = vrot.slane %v2112_v49, 1 }
 0x30d   :  { %v2295_v1 = vrot.slane %v2294_v36, 1  ;;  %v2284_v11 = vrot.slane %v2283_v38, 4  ;;  %v2118_v48 = vrot.slane %v2117_v35, 2  ;;  %v2124_v42 = vadd.f32 %v2123_v39, %v2122_v27  ;;  %v2824_v39 = vld [vmem:[%s3560_s1 + $0x38] sm:$0x77] }
 0x30e   :  { %v3475_v33 = vmul.f32 %v2823_v19, %v2038_v54  ;;  %v2131_v5 = vadd.f32 %v2130_v32, %v2129_v34  ;;  %v2247_v7 = vadd.f32 %v2246_v58, %v3399_v52  ;;  %v2114_v18 = vadd.f32 %v2113_v41, %v2112_v49 }
 0x30f   :  { %v2296_v47 = vadd.f32 %v2295_v1, %v2294_v36  ;;  %v2285_v63 = vadd.f32 %v2284_v11, %v2283_v38  ;;  %v2119_v22 = vadd.f32 %v2118_v48, %v2117_v35  ;;  %v2125_v53 = vrot.slane %v2124_v42, 2 }
 0x310   :  { %v2070_v0 = vcombine.high %v3475_v33, %v3475_v33  ;;  %v2164_v51 = vsel %vm599_vm4, %v3475_v33, 0.0  ;;  %v2132_v3 = vrot.slane %v2131_v5, 2  ;;  %v2321_v29 = vmul.f32 %v3349_v45, %v3448_v14 }
 0x311   :  { %v3484_v17 = vpop.eup %2785  ;;  %2791 = vrcp.f32 %v2296_v47  ;;  %v2165_v62 = vrot.slane %v2164_v51, 4  ;;  %v2286_v10 = vrot.slane %v2285_v63, 2  ;;  %v2120_v52 = vrot.slane %v2119_v22, 1 }
 0x312   :  { %v2126_v58 = vadd.f32 %v2125_v53, %v2124_v42  ;;  %v2133_v60 = vadd.f32 %v2132_v3, %v2131_v5  ;;  %2793 = vrcp.f32 %v3360_v2  ;;  %v2322_v4 = vmul.f32 %v3345_v55, %v2100_v23 }
 0x313   :  { %v2166_v6 = vadd.f32 %v2165_v62, %v2164_v51  ;;  %v2287_v24 = vadd.f32 %v2286_v10, %v2285_v63  ;;  %v2121_v9 = vadd.f32 %v2120_v52, %v2119_v22  ;;  %2795 = vrcp.f32 %v2247_v7 }
 0x314   :  { %v2127_v26 = vrot.slane %v2126_v58, 1  ;;  %v2134_v31 = vrot.slane %v2133_v60, 1  ;;  %v2323_v28 = vmul.f32 %v3357_v50, %v2107_v13  ;;  %v2324_v2 = vmul.f32 %v3397_v57, %v2114_v18 }
 0x315   :  { %v3492_v27 = vpop.eup %2787  ;;  %v2288_v34 = vrot.slane %v2287_v24, 1  ;;  %v2325_v56 = vmul.f32 %v3421_v25, %v2121_v9  ;;  %v2341_v35 = vsel %vm2336_vm8, %v2320_v16, %v2321_v29  ;;  %v2142_v45 = vadd.f32 %v2141_v37, %v3426_v12 }
 0x316   :  { %v2790_v21 = vpop.eup %2789  ;;  %v2128_v20 = vadd.f32 %v2127_v26, %v2126_v58  ;;  %v2135_v49 = vadd.f32 %v2134_v31, %v2133_v60  ;;  %v2342_v50 = vsel %vm2338_vm9, %v2341_v35, %v2322_v4  ;;  %v2148_v30 = vrot.slane %v3430_v40, 1 }
 0x317   :  { %v2289_v55 = vadd.f32 %v2288_v34, %v2287_v24  ;;  %v2039_v14 = vcombine.low %v3436_v44, %v2790_v21  ;;  %v2297_v23 = vsel %vm599_vm4, %v2790_v21, 0.0  ;;  %v2343_v25 = vsel %vm599_vm4, %v2342_v50, %v2323_v28 }
 0x318   :  { %v2298_v57 = vrot.slane %v2297_v23, 4  ;;  %v2155_v36 = vrot.slane %v3443_v15, 1  ;;  %v2345_v37 = vsel %vm2344_vm10, %v2343_v25, %v2324_v2  ;;  %v2160_v44 = vrot.slane %v3438_v46, 2 }
 0x319   :  { %2797 = vrcp.f32 %v2289_v55  ;;  %v2055_v12 = vmul.f32 %v2824_v39, %v2039_v14  ;;  %v2347_v54 = vsel %vm2346_vm11, %v2345_v37, %v2325_v56  ;;  %v2149_v38 = vadd.f32 %v2148_v30, %v3430_v40 }
 0x31a   :  { %v2299_v32 = vadd.f32 %v2298_v57, %v2297_v23  ;;  %v2156_v13 = vadd.f32 %v2155_v36, %v3443_v15  ;;  %v2161_v41 = vadd.f32 %v2160_v44, %v3438_v46  ;;  %v2167_v48 = vrot.slane %v2166_v6, 2 }
 0x31b   :  { %v2792_v1 = vpop.eup %2791  ;;  %v2071_v11 = vcombine.high %v2055_v12, %v2055_v12  ;;  %v2171_v19 = vsel %vm599_vm4, %v2070_v0, 0.0  ;;  %v2178_v7 = vsel %vm599_vm4, %v2055_v12, 0.0  ;;  %v2328_v47 = vmul.f32 %v3450_v59, %v2142_v45 }
 0x31c   :  { %v2794_v33 = vpop.eup %2793  ;;  %v2300_v42 = vrot.slane %v2299_v32, 2  ;;  %v2172_v5 = vrot.slane %v2171_v19, 4  ;;  %v2162_v22 = vrot.slane %v2161_v41, 1  ;;  %v2168_v40 = vadd.f32 %v2167_v48, %v2166_v6 }
 0x31d   :  { %v2796_v63 = vpop.eup %2795  ;;  %v2326_v18 = vmul.f32 %v2794_v33, %v2128_v20  ;;  %v2179_v51 = vrot.slane %v2178_v7, 4  ;;  %v2185_v46 = vsel %vm599_vm4, %v2071_v11, 0.0  ;;  %v2329_v26 = vmul.f32 %v3468_v61, %v2149_v38 }
 0x31e   :  { %v2301_v15 = vadd.f32 %v2300_v42, %v2299_v32  ;;  %v2327_v53 = vmul.f32 %v2796_v63, %v2135_v49  ;;  %v2173_v3 = vadd.f32 %v2172_v5, %v2171_v19  ;;  %v2163_v0 = vadd.f32 %v2162_v22, %v2161_v41 }
 0x31f   :  { %v2348_v62 = vsel %vm70_vm0, %v2347_v54, %v2326_v18  ;;  %v2169_v10 = vrot.slane %v2168_v40, 1  ;;  %v2180_v52 = vadd.f32 %v2179_v51, %v2178_v7  ;;  %v2186_v59 = vrot.slane %v2185_v46, 4 }
 0x320   :  { %v2302_v58 = vrot.slane %v2301_v15, 1  ;;  %v2350_v60 = vsel %vm2349_vm12, %v2348_v62, %v2327_v53  ;;  %v2174_v16 = vrot.slane %v2173_v3, 2  ;;  %v2330_v34 = vmul.f32 %v3452_v8, %v2156_v13 }
 0x321   :  { %2638 = vmatprep.mubr.f32.mxu0 %v2350_v60  ;;  %v2433_v24 = vmul.f32 %v2350_v60, %v2350_v60  ;;  %v2170_v9 = vadd.f32 %v2169_v10, %v2168_v40  ;;  %v2181_v6 = vrot.slane %v2180_v52, 2  ;;  %v2187_v29 = vadd.f32 %v2186_v59, %v2185_v46 }
 0x322   :  { %v2175_v31 = vadd.f32 %v2174_v16, %v2173_v3  ;;  %v2303_v4 = vadd.f32 %v2302_v58, %v2301_v15  ;;  %v2331_v56 = vmul.f32 %v3484_v17, %v2163_v0  ;;  %v2351_v20 = vsel %vm2336_vm8, %v2328_v47, %v2329_v26 }
 0x323   :  { %v2798_v28 = vpop.eup %2797  ;;  %2435 = vadd.xlane.f32.xlu1 %v2433_v24  ;;  %v2182_v2 = vadd.f32 %v2181_v6, %v2180_v52  ;;  %v2332_v21 = vmul.f32 %v3492_v27, %v2170_v9  ;;  %v2188_v35 = vrot.slane %v2187_v29, 2  ;;  %v2352_v45 = vsel %vm2338_vm9, %v2351_v20, %v2330_v34 }
 0x324   :  { %v2176_v49 = vrot.slane %v2175_v31, 1  ;;  %2799 = vrcp.f32 %v2303_v4  ;;  %v2353_v55 = vsel %vm599_vm4, %v2352_v45, %v2331_v56  ;;  %v2510_v32 = vlaneseq }
 0x325   :  { %v2183_v61 = vrot.slane %v2182_v2, 1  ;;  %v2189_v23 = vadd.f32 %v2188_v35, %v2187_v29  ;;  %v2354_v8 = vsel %vm2344_vm10, %v2353_v55, %v2332_v21 }
 0x326   :  { %v2177_v14 = vadd.f32 %v2176_v49, %v2175_v31  ;;  %v2511_v54 = vshrl.u32 %v2510_v32, 7 }
 0x327   :  { %v2184_v50 = vadd.f32 %v2183_v61, %v2182_v2  ;;  %v2190_v25 = vrot.slane %v2189_v23, 1 }
 0x328   :  { %v2333_v57 = vmul.f32 %v2798_v28, %v2177_v14  ;;  %v2512_v38 = vsub.s32 0, %v2511_v54 }
 0x329   :  { %v2334_v17 = vmul.f32 %v2792_v1, %v2184_v50  ;;  %v2191_v36 = vadd.f32 %v2190_v25, %v2189_v23 }
 0x32a   :  { %v2355_v27 = vsel %vm2346_vm11, %v2354_v8, %v2333_v57  ;;  %v2513_v13 = vrot.slane %v3347_v43, %v2512_v38 }
 0x32b   :  { %v2356_v30 = vsel %vm70_vm0, %v2355_v27, %v2334_v17  ;;  %vm2538_vm0 = vcmask 31744  }
 0x32e   :  { %v2800_v39 = vpop.eup %2799 }
 0x32f   :  { %v2335_v12 = vmul.f32 %v2800_v39, %v2191_v36 }
 0x331   :  { %v2357_v37 = vsel %vm2349_vm12, %v2356_v30, %v2335_v12 }
 0x332   :  { %2639 = vmatmul.mubr.f32.vlgmr.msra.gmra.mrb[32].mxu0 %v2357_v37  ;;  %v2434_v44 = vmul.f32 %v2357_v37, %v2357_v37 }
 0x334   :  { %2437 = vadd.xlane.f32.xlu0 %v2434_v44 }
 0x3b0   :  { %v2436_v41 = vpop.xlane.xlu1 %2435 }
 0x3b1   :  { %v2514_v42 = vadd.f32 %v2513_v13, %v2436_v41 }
 0x3c1   :  { %v2438_v11 = vpop.xlane.xlu0 %2437 }
 0x3c2   :  { %v2515_v48 = vadd.f32 %v2513_v13, %v2438_v11 }
 0x405   :  { %v2640_v1 = vpop.f32.mrb[32].mxu0 }
 0x406   :  { %v2517_v19 = vmul.f32 2.0, %v2640_v1  ;;  %v2424_v33 = vpop.f32.mrb[33].mxu0 }
 0x407   :  { %v2516_v5 = vmul.f32 2.0, %v2424_v33 }
 0x408   :  { %v2519_v7 = vsub.f32 %v2515_v48, %v2517_v19 }
 0x409   :  { %v2518_v47 = vsub.f32 %v2514_v42, %v2516_v5 }
 0x40a   :  { %v2521_v63 = vmax.f32 %v2519_v7, 0.0 }
 0x40b   :  { %v2520_v18 = vmax.f32 %v2518_v47, 0.0 }
 0x40c   :  { %2801 = vrsqrt.f32 %v2521_v63  ;;  %vm2531_vm13 = vcmp.eq.f32.partialorder %v2521_v63, inf  ;;  %v2534_v15 = vand.u32 2147483648, %v2521_v63  ;;  %vm2533_vm14 = vcmp.eq.f32.partialorder %v2521_v63, 0.0 }
 0x40d   :  { %2803 = vrsqrt.f32 %v2520_v18  ;;  %vm2524_vm15 = vcmp.eq.f32.partialorder %v2520_v18, inf  ;;  %v2527_v3 = vand.u32 2147483648, %v2520_v18  ;;  %vm2526_vm1 = vcmp.eq.f32.partialorder %v2520_v18, 0.0 }
 0x416   :  { %v2802_v22 = vpop.eup %2801 }
 0x417   :  { %v2804_v40 = vpop.eup %2803  ;;  %v2530_v51 = vmul.f32 %v2802_v22, %v2521_v63 }
 0x418   :  { %v2523_v43 = vmul.f32 %v2804_v40, %v2520_v18 }
 0x419   :  { %v2532_v53 = vsel %vm2531_vm13, %v2521_v63, %v2530_v51 }
 0x41a   :  { %v2535_v46 = vsel %vm2533_vm14, %v2534_v15, %v2532_v53  ;;  %v2525_v62 = vsel %vm2524_vm15, %v2520_v18, %v2523_v43 }
 0x41b   :  { %v2537_v0 = vsub.f32 0.0, %v2535_v46  ;;  %v2528_v10 = vsel %vm2526_vm1, %v2527_v3, %v2525_v62 }
 0x41c   :  { %v2536_v52 = vsub.f32 0.0, %v2528_v10 }
 0x41d   :  { %v2542_v58 = vsel %vm2538_vm0, %v2537_v0, -inf }
 0x41e   :  { %2543 = vmax.xlane.f32.xlu1 %v2542_v58  ;;  %v2539_v60 = vsel %vm2538_vm0, %v2536_v52, -inf }
 0x41f   :  { %2540 = vmax.xlane.f32.xlu0 %v2539_v60 }
 0x4ab   :  { %v2544_v16 = vpop.xlane.xlu1 %2543 }
 0x4ac   :  { %v2546_v59 = vsub.f32 %v2537_v0, %v2544_v16  ;;  %v2541_v24 = vpop.xlane.xlu0 %2540 }
 0x4ad   :  { %v2545_v9 = vsub.f32 %v2536_v52, %v2541_v24 }
 0x4ae   :  { %v2549_v6 = vmul.f32 1.442695, %v2546_v59 }
 0x4af   :  { %v2547_v26 = vmul.f32 1.442695, %v2545_v9 }
 0x4b0   :  { %2805 = vpow2.f32 %v2549_v6 }
 0x4b1   :  { %2807 = vpow2.f32 %v2547_v26 }
 0x4ba   :  { %v2806_v31 = vpop.eup %2805 }
 0x4bb   :  { %v2808_v29 = vpop.eup %2807  ;;  %v2554_v4 = vsel %vm2538_vm0, %v2806_v31, 0.0 }
 0x4bc   :  { %2555 = vadd.xlane.f32.xlu1 %v2554_v4  ;;  %v2551_v34 = vsel %vm2538_vm0, %v2808_v29, 0.0 }
 0x4bd   :  { %2552 = vadd.xlane.f32.xlu0 %v2551_v34 }
 0x549   :  { %v2556_v28 = vpop.xlane.xlu1 %2555 }
 0x54a   :  { %2809 = vrcp.f32 %v2556_v28  ;;  %v2553_v2 = vpop.xlane.xlu0 %2552 }
 0x54b   :  { %2811 = vlog2.f32 %v2556_v28 }
 0x54c   :  { %2813 = vrcp.f32 %v2553_v2 }
 0x54d   :  { %2815 = vlog2.f32 %v2553_v2 }
 0x554   :  { %v2810_v56 = vpop.eup %2809 }
 0x555   :  { %v2812_v21 = vpop.eup %2811  ;;  %v2560_v20 = vmul.f32 %v2810_v56, %v2806_v31 }
 0x556   :  { %v2814_v49 = vpop.eup %2813  ;;  %v2566_v35 = vmul.f32 0.6931472, %v2812_v21 }
 0x557   :  { %v2816_v45 = vpop.eup %2815  ;;  %2562 = vst.msk [vmem:[%s3564_s10 + $0x8] sm:$0xff] %vm2538_vm0, %v2560_v20  ;;  %v2558_v61 = vmul.f32 %v2814_v49, %v2808_v29 }
 0x558   :  { %v2568_v55 = vsub.f32 %v2546_v59, %v2566_v35  ;;  %v2564_v14 = vmul.f32 0.6931472, %v2816_v45 }
 0x559   :  { %2561 = vst.msk [vmem:[%s3564_s10] sm:$0xff] %vm2538_vm0, %v2558_v61 }
 0x55a   :  { %2570 = vst.msk [vmem:[%s3565_s11 + $0x8] sm:$0xff] %vm2538_vm0, %v2568_v55  ;;  %v2567_v23 = vsub.f32 %v2545_v9, %v2564_v14 }
 0x55c   :  { %2569 = vst.msk [vmem:[%s3565_s11] sm:$0xff] %vm2538_vm0, %v2567_v23 }

// kernel: cia_forward.2
= control target key start
LH: loop header
LB: loop body
LE: loop exit
PB: predicated region body
PF: predicated region fallthrough
CT: control target
= control target key end

     0   :  { %v13543_v3 = vmov 0   ;;  %v13537_v6 = vmov 0.0|0.0   ;;  %vm8201_vm0 = vmmov 0   ;;  %v13539_v7 = vmov 0.0   ;;  %s13529_s1 = inlined_call_operand.vmem [shape: f32[128,20], index: 1, kind: input, shape index: {}]   ;;  %s13530_s2 = inlined_call_operand.vmem [shape: f32[128,128], index: 2, kind: input, shape index: {}]   ;;  %s13531_s4 = inlined_call_operand.vmem [shape: f32[128,1], index: 4, kind: input, shape index: {}]   ;;  %s13532_s3 = inlined_call_operand.vmem [shape: f32[128,128], index: 3, kind: input, shape index: {}]   ;;  %s13533_s0 = inlined_call_operand.vmem [shape: f32[20,128], index: 0, kind: input, shape index: {}]   ;;  %s13534_s5 = inlined_call_operand.vmem [shape: f32[1,128], index: 5, kind: input, shape index: {}]   ;;  %s13535_s6 = inlined_call_operand.vmem [shape: f32[20,128], index: 6, kind: output, shape index: {0}]   ;;  %s13536_s7 = inlined_call_operand.vmem [shape: f32[4,16], index: 7, kind: output, shape index: {1}]  }
   0x1   :  { %v44_v0 = vld [vmem:[%s13529_s1] sm:$0xff]  ;;  %v45_v1 = vld [vmem:[%s13529_s1 + $0x8] sm:$0xff]  ;;  %v46_v2 = vld [vmem:[%s13529_s1 + $0x10] sm:$0xff]  ;;  %7327 = vset.pattern.permute.xlu0 %v13543_v3  ;;  %7328 = vset.pattern.permute.xlu1 %v13543_v3  ;;  %vm5437_vm1 = vcmask 1047556   ;;  %vm5421_vm2 = vcmask 1043456   ;;  %vm5556_vm11 = vcmask 125952  }
   0x2   :  { %v6765_v4 = vpack.c.bf16 %v45_v1, %v44_v0  ;;  %v47_v5 = vld [vmem:[%s13529_s1 + $0x18] sm:$0xff]  ;;  %6797 = vmatprep.subr.bf16.mxu1 %v13537_v6  ;;  %6049 = vmatprep.mubr.msk.f32.mxu1 %vm8201_vm0, %v13539_v7  ;;  %v48_v9 = vld [vmem:[%s13529_s1 + $0x20] sm:$0xff]  ;;  %v49_v10 = vld [vmem:[%s13529_s1 + $0x28] sm:$0xff] }
   0x3   :  { %v6769_v8 = vpack.c.bf16 %v47_v5, %v46_v2  ;;  %v6773_v11 = vpack.c.bf16 %v49_v10, %v48_v9  ;;  %v28_v12 = vld [vmem:[%s13530_s2] sm:$0xff]  ;;  %v50_v13 = vld [vmem:[%s13529_s1 + $0x30] sm:$0xff]  ;;  %v51_v14 = vld [vmem:[%s13529_s1 + $0x38] sm:$0xff] }
   0x4   :  { %6766 = vmatprep.subr.bf16.mxu0 %v6765_v4  ;;  %5993 = vmatprep.mubr.f32.mxu0 %v28_v12  ;;  %v6777_v15 = vpack.c.bf16 %v51_v14, %v50_v13  ;;  %v52_v16 = vld [vmem:[%s13529_s1 + $0x40] sm:$0xff]  ;;  %v53_v17 = vld [vmem:[%s13529_s1 + $0x48] sm:$0xff]  ;;  %v54_v21 = vld [vmem:[%s13529_s1 + $0x50] sm:$0xff] }
   0x5   :  { %6768 = vmatpush3.bf16.msra.mxu0 %v6765_v4  ;;  %v60_v18 = vld [vmem:[%s13531_s4] sm:$0xff]  ;;  %v61_v19 = vld [vmem:[%s13531_s4 + $0x8] sm:$0xff]  ;;  %v6781_v20 = vpack.c.bf16 %v53_v17, %v52_v16  ;;  %v62_v22 = vld [vmem:[%s13531_s4 + $0x10] sm:$0xff] }
   0x6   :  { %6770 = vmatprep.subr.bf16.mxu0 %v6769_v8  ;;  %78 = vperm.xlu0 %7327, %v60_v18   ;;  %v301_v23 = vld [vmem:[%s13532_s3] sm:$0xff]  ;;  %v55_v24 = vld [vmem:[%s13529_s1 + $0x58] sm:$0xff]  ;;  %v302_v25 = vld [vmem:[%s13532_s3 + $0x8] sm:$0xff] }
   0x7   :  { %88 = vperm.xlu1 %7328, %v62_v22   ;;  %v303_v26 = vld [vmem:[%s13532_s3 + $0x10] sm:$0xff]  ;;  %v6798_v27 = vpack.c.bf16 %v302_v25, %v301_v23  ;;  %v63_v28 = vld [vmem:[%s13531_s4 + $0x18] sm:$0xff]  ;;  %v64_v30 = vld [vmem:[%s13531_s4 + $0x20] sm:$0xff]  ;;  %v6785_v31 = vpack.c.bf16 %v55_v24, %v54_v21  ;;  %v13547_v23 = vmov 2  }
   0x8   :  { %v304_v29 = vld [vmem:[%s13532_s3 + $0x18] sm:$0xff]  ;;  %v56_v32 = vld [vmem:[%s13529_s1 + $0x60] sm:$0xff]  ;;  %v57_v34 = vld [vmem:[%s13529_s1 + $0x68] sm:$0xff] }
   0x9   :  { %6772 = vmatpush3.bf16.msra.mxu0 %v6769_v8  ;;  %6799 = vmatpush3.bf16.msra.mxu1 %v6798_v27  ;;  %v6801_v33 = vpack.c.bf16 %v304_v29, %v303_v26  ;;  %v305_v35 = vld [vmem:[%s13532_s3 + $0x20] sm:$0xff]  ;;  %v306_v36 = vld [vmem:[%s13532_s3 + $0x28] sm:$0xff]  ;;  %v66_v38 = vld [vmem:[%s13531_s4 + $0x30] sm:$0xff]  ;;  %v6789_v39 = vpack.c.bf16 %v57_v34, %v56_v32  ;;  %v13555_v32 = vmov 1  }
   0xa   :  { %6774 = vmatprep.subr.bf16.mxu0 %v6773_v11  ;;  %83 = vperm.xlu0 %7327, %v61_v19   ;;  %v65_v37 = vld [vmem:[%s13531_s4 + $0x28] sm:$0xff]  ;;  %v58_v40 = vld [vmem:[%s13529_s1 + $0x70] sm:$0xff]  ;;  %v6804_v41 = vpack.c.bf16 %v306_v36, %v305_v35  ;;  %v59_v42 = vld [vmem:[%s13529_s1 + $0x78] sm:$0xff]  ;;  %v13553_v35 = vmov 6   ;;  %v13551_v36 = vmov 3  }
   0xb   :  { %93 = vperm.xlu1 %7328, %v63_v28   ;;  %6800 = vmatprep.subr.bf16.mxu1 %v13537_v6  ;;  %v307_v43 = vld [vmem:[%s13532_s3 + $0x30] sm:$0xff]  ;;  %v308_v44 = vld [vmem:[%s13532_s3 + $0x38] sm:$0xff]  ;;  %v68_v46 = vld [vmem:[%s13531_s4 + $0x40] sm:$0xff]  ;;  %v6793_v47 = vpack.c.bf16 %v59_v42, %v58_v40 }
   0xc   :  { %v67_v45 = vld [vmem:[%s13531_s4 + $0x38] sm:$0xff]  ;;  %v6807_v48 = vpack.c.bf16 %v308_v44, %v307_v43  ;;  %v309_v49 = vld [vmem:[%s13532_s3 + $0x40] sm:$0xff]  ;;  %v310_v50 = vld [vmem:[%s13532_s3 + $0x48] sm:$0xff]  ;;  %v13545_v43 = vmov 5  }
   0xd   :  { %6776 = vmatpush3.bf16.msra.mxu0 %v6773_v11  ;;  %6802 = vmatpush3.bf16.msra.mxu1 %v6801_v33  ;;  %v69_v51 = vld [vmem:[%s13531_s4 + $0x48] sm:$0xff]  ;;  %v70_v52 = vld [vmem:[%s13531_s4 + $0x50] sm:$0xff]  ;;  %v6810_v53 = vpack.c.bf16 %v310_v50, %v309_v49  ;;  %v312_v55 = vld [vmem:[%s13532_s3 + $0x58] sm:$0xff] }
   0xe   :  { %6778 = vmatprep.subr.bf16.mxu0 %v6777_v15  ;;  %98 = vperm.xlu0 %7327, %v64_v30   ;;  %v311_v54 = vld [vmem:[%s13532_s3 + $0x50] sm:$0xff]  ;;  %v71_v56 = vld [vmem:[%s13531_s4 + $0x58] sm:$0xff]  ;;  %v29_v57 = vld [vmem:[%s13530_s2 + $0x8] sm:$0xff] }
   0xf   :  { %103 = vperm.xlu1 %7328, %v65_v37   ;;  %6803 = vmatprep.subr.bf16.mxu1 %v13537_v6  ;;  %v72_v58 = vld [vmem:[%s13531_s4 + $0x60] sm:$0xff]  ;;  %v30_v59 = vld [vmem:[%s13530_s2 + $0x10] sm:$0xff]  ;;  %v6813_v60 = vpack.c.bf16 %v312_v55, %v311_v54  ;;  %v314_v62 = vld [vmem:[%s13532_s3 + $0x68] sm:$0xff]  ;;  %v13541_v54 = vmov 7  }
  0x10   :  { %v313_v61 = vld [vmem:[%s13532_s3 + $0x60] sm:$0xff]  ;;  %v73_v63 = vld [vmem:[%s13531_s4 + $0x68] sm:$0xff]  ;;  %v31_v0 = vld [vmem:[%s13530_s2 + $0x18] sm:$0xff] }
  0x11   :  { %6780 = vmatpush3.bf16.msra.mxu0 %v6777_v15  ;;  %6805 = vmatpush3.bf16.msra.mxu1 %v6804_v41  ;;  %v74_v1 = vld [vmem:[%s13531_s4 + $0x70] sm:$0xff]  ;;  %v32_v2 = vld [vmem:[%s13530_s2 + $0x20] sm:$0xff]  ;;  %v6816_v4 = vpack.c.bf16 %v314_v62, %v313_v61  ;;  %v316_v8 = vld [vmem:[%s13532_s3 + $0x78] sm:$0xff] }
  0x12   :  { %6782 = vmatprep.subr.bf16.mxu0 %v6781_v20  ;;  %108 = vperm.xlu0 %7327, %v66_v38   ;;  %v315_v5 = vld [vmem:[%s13532_s3 + $0x70] sm:$0xff]  ;;  %v75_v9 = vld [vmem:[%s13531_s4 + $0x78] sm:$0xff]  ;;  %v33_v10 = vld [vmem:[%s13530_s2 + $0x28] sm:$0xff] }
  0x13   :  { %113 = vperm.xlu1 %7328, %v67_v45   ;;  %6806 = vmatprep.subr.bf16.mxu1 %v13537_v6  ;;  %v34_v11 = vld [vmem:[%s13530_s2 + $0x30] sm:$0xff]  ;;  %v6819_v12 = vpack.c.bf16 %v316_v8, %v315_v5  ;;  %v35_v13 = vld [vmem:[%s13530_s2 + $0x38] sm:$0xff]  ;;  %v36_v14 = vld [vmem:[%s13530_s2 + $0x40] sm:$0xff] }
  0x14   :  { %v25_v15 = vld [vmem:[%s13533_s0] sm:$0xff]  ;;  %v37_v16 = vld [vmem:[%s13530_s2 + $0x48] sm:$0xff]  ;;  %v38_v17 = vld [vmem:[%s13530_s2 + $0x50] sm:$0xff] }
  0x15   :  { %6784 = vmatpush3.bf16.msra.mxu0 %v6781_v20  ;;  %6808 = vmatpush3.bf16.msra.mxu1 %v6807_v48  ;;  %v39_v18 = vld [vmem:[%s13530_s2 + $0x58] sm:$0xff]  ;;  %v40_v19 = vld [vmem:[%s13530_s2 + $0x60] sm:$0xff]  ;;  %v41_v20 = vld [vmem:[%s13530_s2 + $0x68] sm:$0xff] }
  0x16   :  { %6786 = vmatprep.subr.bf16.mxu0 %v6785_v31  ;;  %118 = vperm.xlu0 %7327, %v68_v46   ;;  %v42_v21 = vld [vmem:[%s13530_s2 + $0x70] sm:$0xff]  ;;  %v43_v22 = vld [vmem:[%s13530_s2 + $0x78] sm:$0xff] }
  0x17   :  { %123 = vperm.xlu1 %7328, %v69_v51   ;;  %6809 = vmatprep.subr.bf16.mxu1 %v13537_v6 }
  0x19   :  { %6788 = vmatpush3.bf16.msra.mxu0 %v6785_v31  ;;  %6811 = vmatpush3.bf16.msra.mxu1 %v6810_v53  ;;  %v13549_v31 = vmov 4  }
  0x1a   :  { %6790 = vmatprep.subr.bf16.mxu0 %v6789_v39  ;;  %128 = vperm.xlu0 %7327, %v70_v52  }
  0x1b   :  { %133 = vperm.xlu1 %7328, %v71_v56   ;;  %6812 = vmatprep.subr.bf16.mxu1 %v13537_v6 }
  0x1d   :  { %6792 = vmatpush3.bf16.msra.mxu0 %v6789_v39  ;;  %6814 = vmatpush3.bf16.msra.mxu1 %v6813_v60  ;;  %v26_v60 = vld [vmem:[%s13533_s0 + $0x8] sm:$0xff] }
  0x1e   :  { %6794 = vmatprep.subr.bf16.mxu0 %v6793_v47  ;;  %138 = vperm.xlu0 %7327, %v72_v58  }
  0x1f   :  { %143 = vperm.xlu1 %7328, %v73_v63   ;;  %6815 = vmatprep.subr.bf16.mxu1 %v13537_v6 }
  0x21   :  { %6796 = vmatpush3.bf16.msra.mxu0 %v6793_v47  ;;  %6817 = vmatpush3.bf16.msra.mxu1 %v6816_v4 }
  0x22   :  { %6821 = vmatprep.subr.bf16.mxu0 %v13537_v6  ;;  %148 = vperm.xlu0 %7327, %v74_v1  }
  0x23   :  { %153 = vperm.xlu1 %7328, %v75_v9   ;;  %6818 = vmatprep.subr.bf16.mxu1 %v13537_v6 }
  0x24   :  { %5994 = vmatmul.mubr.f32.vlgmr.msra.gmra.mrb[0].mxu0 %v29_v57 }
  0x25   :  { %5996 = vmatprep.mubr.f32.mxu0 %v30_v59  ;;  %6820 = vmatpush3.bf16.msra.mxu1 %v6819_v12 }
  0x26   :  { %6845 = vmatprep.subr.bf16.mxu1 %v13537_v6  ;;  %7330 = vset.pattern.permute.xlu0 %v13547_v23 }
  0x28   :  { %5997 = vmatmul.mubr.f32.gmra.mrb[2].mxu0 %v31_v0  ;;  %6050 = vmatmul.mubr.f32.vlgmr.msra.gmra.mrb[0].mxu1 %v25_v15 }
  0x29   :  { %5999 = vmatprep.mubr.f32.mxu0 %v32_v2  ;;  %6052 = vmatprep.mubr.msk.f32.mxu1 %vm8201_vm0, %v13539_v7 }
  0x2c   :  { %6000 = vmatmul.mubr.f32.gmra.mrb[4].mxu0 %v33_v10  ;;  %6053 = vmatmul.mubr.f32.gmra.mrb[2].mxu1 %v26_v60 }
  0x2d   :  { %6002 = vmatprep.mubr.f32.mxu0 %v34_v11  ;;  %6055 = vmatprep.mubr.msk.f32.mxu1 %vm8201_vm0, %v13539_v7 }
  0x30   :  { %6003 = vmatmul.mubr.f32.gmra.mrb[6].mxu0 %v35_v13 }
  0x31   :  { %6005 = vmatprep.mubr.f32.mxu0 %v36_v14 }
  0x34   :  { %6006 = vmatmul.mubr.f32.gmra.mrb[8].mxu0 %v37_v16 }
  0x35   :  { %6008 = vmatprep.mubr.f32.mxu0 %v38_v17 }
  0x38   :  { %6009 = vmatmul.mubr.f32.gmra.mrb[10].mxu0 %v39_v18 }
  0x39   :  { %6011 = vmatprep.mubr.f32.mxu0 %v40_v19 }
  0x3c   :  { %6012 = vmatmul.mubr.f32.gmra.mrb[12].mxu0 %v41_v20 }
  0x3d   :  { %6014 = vmatprep.mubr.f32.mxu0 %v42_v21 }
  0x40   :  { %6015 = vmatmul.mubr.f32.gmra.mrb[14].mxu0 %v43_v22 }
  0x41   :  { %6090 = vmatprep.mubr.msk.f32.mxu0 %vm8201_vm0, %v13539_v7 }
  0x85   :  { %v79_v24 = vpop.permute.xlu0 %78 }
  0x86   :  { %v89_v49 = vpop.permute.xlu1 %88 }
  0x89   :  { %v84_v25 = vpop.permute.xlu0 %83 }
  0x8a   :  { %v94_v52 = vpop.permute.xlu1 %93 }
  0x8d   :  { %v99_v58 = vpop.permute.xlu0 %98 }
  0x8e   :  { %v104_v56 = vpop.permute.xlu1 %103 }
  0x91   :  { %v109_v63 = vpop.permute.xlu0 %108 }
  0x92   :  { %v114_v61 = vpop.permute.xlu1 %113 }
  0x95   :  { %v119_v1 = vpop.permute.xlu0 %118 }
  0x96   :  { %v124_v2 = vpop.permute.xlu1 %123 }
  0x99   :  { %v8614_v4 = vpop.permute.xlu0 %128 }
  0x9a   :  { %v8616_v5 = vpop.permute.xlu1 %133 }
  0x9d   :  { %v8622_v8 = vpop.permute.xlu0 %138 }
  0x9e   :  { %v8624_v9 = vpop.permute.xlu1 %143 }
  0xa1   :  { %v8630_v10 = vpop.permute.xlu0 %148 }
  0xa2   :  { %v8635_v12 = vpop.permute.xlu1 %153 }
  0xf7   :  { %v5995_v26 = vpop.f32.mrb[0].mxu0 }
  0xf8   :  { %v8476_v27 = vadd.f32 %v5995_v26, %v84_v25  ;;  %v222_v28 = vpop.f32.mrb[1].mxu0 }
  0xf9   :  { %v8496_v41 = vadd.f32 %v222_v28, %v79_v24 }
  0xfa   :  { %14001 = vst [vmem:[#allocation2_spill] sm:$0xff] %v8476_v27  ;;  %924 = vperm.xlu0 %7330, %v8476_v27   ;;  %411 = vperm.xlu1 %7328, %v8476_v27  }
  0xfb   :  { %v5998_v29 = vpop.f32.mrb[2].mxu0  ;;  %v8494_v39 = vpop.f32.mrb[0].mxu1  ;;  %14002 = vst [vmem:[#allocation3_spill] sm:$0xff] %v8496_v41 }
  0xfc   :  { %v232_v30 = vpop.f32.mrb[3].mxu0  ;;  %v6051_v40 = vpop.f32.mrb[1].mxu1  ;;  %v8530_v53 = vadd.f32 %v5998_v29, %v94_v52 }
  0xfd   :  { %v8544_v55 = vadd.f32 %v232_v30, %v89_v49 }
  0xfe   :  { %7332 = vset.pattern.permute.xlu0 %v13549_v31  ;;  %7329 = vset.pattern.permute.xlu1 %v13555_v32  ;;  %14003 = vst [vmem:[#allocation4_spill] sm:$0xff] %v8530_v53 }
  0xff   :  { %1424 = vperm.xlu0 %7332, %v8476_v27   ;;  %673 = vperm.xlu1 %7329, %v8476_v27   ;;  %v6001_v33 = vpop.f32.mrb[4].mxu0  ;;  %14004 = vst [vmem:[#allocation5_spill] sm:$0xff] %v8544_v55 }
 0x100   :  { %v8484_v34 = vpop.f32.mrb[5].mxu0  ;;  %v8550_v57 = vadd.f32 %v6001_v33, %v104_v56 }
 0x101   :  { %v8565_v59 = vadd.f32 %v8484_v34, %v99_v58 }
 0x102   :  { %14005 = vst [vmem:[#allocation6_spill] sm:$0xff] %v8550_v57 }
 0x103   :  { %7334 = vset.pattern.permute.xlu0 %v13553_v35  ;;  %7331 = vset.pattern.permute.xlu1 %v13551_v36  ;;  %v8488_v37 = vpop.f32.mrb[6].mxu0  ;;  %14006 = vst [vmem:[#allocation7_spill] sm:$0xff] %v8565_v59 }
 0x104   :  { %1924 = vperm.xlu0 %7334, %v8476_v27   ;;  %1174 = vperm.xlu1 %7331, %v8476_v27   ;;  %v8492_v38 = vpop.f32.mrb[7].mxu0  ;;  %v8589_v62 = vadd.f32 %v8488_v37, %v114_v61 }
 0x105   :  { %v8604_v0 = vadd.f32 %v8492_v38, %v109_v63 }
 0x106   :  { %14007 = vst [vmem:[#allocation8_spill] sm:$0xff] %v8589_v62 }
 0x107   :  { %v8498_v42 = vpop.f32.mrb[8].mxu0  ;;  %14008 = vst [vmem:[#allocation9_spill] sm:$0xff] %v8604_v0 }
 0x108   :  { %7335 = vset.pattern.permute.xlu0 %v13543_v3  ;;  %7333 = vset.pattern.permute.xlu1 %v13545_v43  ;;  %v8502_v44 = vpop.f32.mrb[9].mxu0  ;;  %v8633_v11 = vadd.f32 %v8498_v42, %v124_v2 }
 0x109   :  { %1674 = vperm.xlu1 %7333, %v8476_v27   ;;  %406 = vperm.xlu0 %7335, %v8496_v41   ;;  %v8670_v21 = vadd.f32 %v8502_v44, %v119_v1 }
 0x10a   :  { %14009 = vst [vmem:[#allocation10_spill] sm:$0xff] %v8633_v11 }
 0x10b   :  { %v8506_v45 = vpop.f32.mrb[10].mxu0  ;;  %14010 = vst [vmem:[#allocation11_spill] sm:$0xff] %v8670_v21 }
 0x10c   :  { %v8508_v46 = vpop.f32.mrb[11].mxu0  ;;  %v8706_v34 = vadd.f32 %v8506_v45, %v8616_v5 }
 0x10d   :  { %7337 = vset.pattern.permute.xlu1 %v13547_v23  ;;  %7336 = vset.pattern.permute.xlu0 %v13555_v32  ;;  %v8734_v49 = vadd.f32 %v8508_v46, %v8614_v4 }
 0x10e   :  { %920 = vperm.xlu1 %7337, %v8496_v41   ;;  %669 = vperm.xlu0 %7336, %v8496_v41   ;;  %14011 = vst [vmem:[#allocation12_spill] sm:$0xff] %v8706_v34 }
 0x10f   :  { %v8514_v47 = vpop.f32.mrb[12].mxu0  ;;  %14012 = vst [vmem:[#allocation13_spill] sm:$0xff] %v8734_v49 }
 0x110   :  { %v8516_v48 = vpop.f32.mrb[13].mxu0  ;;  %v8762_v63 = vadd.f32 %v8514_v47, %v8624_v9 }
 0x111   :  { %v8790_v6 = vadd.f32 %v8516_v48, %v8622_v8 }
 0x112   :  { %7339 = vset.pattern.permute.xlu1 %v13549_v31  ;;  %7338 = vset.pattern.permute.xlu0 %v13551_v36  ;;  %14014 = vst [vmem:[#allocation15_spill] sm:$0xff] %v8762_v63 }
 0x113   :  { %v8520_v50 = vpop.f32.mrb[14].mxu0  ;;  %1420 = vperm.xlu1 %7339, %v8496_v41   ;;  %1170 = vperm.xlu0 %7338, %v8496_v41   ;;  %14018 = vst [vmem:[#allocation19_spill] sm:$0xff] %v8790_v6 }
 0x114   :  { %v8524_v51 = vpop.f32.mrb[15].mxu0 }
 0x117   :  { %7341 = vset.pattern.permute.xlu1 %v13553_v35  ;;  %7340 = vset.pattern.permute.xlu0 %v13545_v43 }
 0x118   :  { %1920 = vperm.xlu1 %7341, %v8496_v41   ;;  %1670 = vperm.xlu0 %7340, %v8496_v41  }
 0x11c   :  { %7342 = vset.pattern.permute.xlu1 %v13541_v54  ;;  %7344 = vset.pattern.permute.xlu0 %v13555_v32 }
 0x11d   :  { %2170 = vperm.xlu1 %7342, %v8496_v41   ;;  %681 = vperm.xlu0 %7344, %v8530_v53  }
 0x121   :  { %7343 = vset.pattern.permute.xlu1 %v13543_v3  ;;  %7346 = vset.pattern.permute.xlu0 %v13551_v36 }
 0x122   :  { %421 = vperm.xlu1 %7343, %v8530_v53   ;;  %1182 = vperm.xlu0 %7346, %v8530_v53  }
 0x126   :  { %7345 = vset.pattern.permute.xlu1 %v13547_v23  ;;  %7348 = vset.pattern.permute.xlu0 %v13545_v43 }
 0x127   :  { %932 = vperm.xlu1 %7345, %v8530_v53   ;;  %1682 = vperm.xlu0 %7348, %v8530_v53  }
 0x12b   :  { %7347 = vset.pattern.permute.xlu1 %v13549_v31  ;;  %7351 = vset.pattern.permute.xlu0 %v13543_v3 }
 0x12c   :  { %1432 = vperm.xlu1 %7347, %v8530_v53   ;;  %416 = vperm.xlu0 %7351, %v8544_v55  }
 0x130   :  { %7349 = vset.pattern.permute.xlu1 %v13553_v35  ;;  %7360 = vset.pattern.permute.xlu0 %v13555_v32 }
 0x131   :  { %1932 = vperm.xlu1 %7349, %v8530_v53   ;;  %689 = vperm.xlu0 %7360, %v8550_v57  }
 0x135   :  { %7350 = vset.pattern.permute.xlu1 %v13541_v54  ;;  %7362 = vset.pattern.permute.xlu0 %v13551_v36 }
 0x136   :  { %2182 = vperm.xlu1 %7350, %v8530_v53   ;;  %1190 = vperm.xlu0 %7362, %v8550_v57  }
 0x13a   :  { %7352 = vset.pattern.permute.xlu1 %v13555_v32  ;;  %7364 = vset.pattern.permute.xlu0 %v13545_v43 }
 0x13b   :  { %677 = vperm.xlu1 %7352, %v8544_v55   ;;  %1690 = vperm.xlu0 %7364, %v8550_v57  }
 0x13f   :  { %7353 = vset.pattern.permute.xlu1 %v13547_v23  ;;  %7367 = vset.pattern.permute.xlu0 %v13543_v3 }
 0x140   :  { %928 = vperm.xlu1 %7353, %v8544_v55   ;;  %426 = vperm.xlu0 %7367, %v8565_v59  }
 0x144   :  { %7354 = vset.pattern.permute.xlu1 %v13551_v36  ;;  %7369 = vset.pattern.permute.xlu0 %v13547_v23 }
 0x145   :  { %1178 = vperm.xlu1 %7354, %v8544_v55   ;;  %936 = vperm.xlu0 %7369, %v8565_v59  }
 0x149   :  { %7355 = vset.pattern.permute.xlu1 %v13549_v31  ;;  %7371 = vset.pattern.permute.xlu0 %v13549_v31 }
 0x14a   :  { %1428 = vperm.xlu1 %7355, %v8544_v55   ;;  %1436 = vperm.xlu0 %7371, %v8565_v59  }
 0x14e   :  { %7356 = vset.pattern.permute.xlu1 %v13545_v43  ;;  %7373 = vset.pattern.permute.xlu0 %v13553_v35 }
 0x14f   :  { %1678 = vperm.xlu1 %7356, %v8544_v55   ;;  %1936 = vperm.xlu0 %7373, %v8565_v59  }
 0x153   :  { %7357 = vset.pattern.permute.xlu1 %v13553_v35  ;;  %7375 = vset.pattern.permute.xlu0 %v13555_v32 }
 0x154   :  { %1928 = vperm.xlu1 %7357, %v8544_v55   ;;  %697 = vperm.xlu0 %7375, %v8589_v62  }
 0x158   :  { %7358 = vset.pattern.permute.xlu1 %v13541_v54  ;;  %7377 = vset.pattern.permute.xlu0 %v13551_v36 }
 0x159   :  { %2178 = vperm.xlu1 %7358, %v8544_v55   ;;  %1198 = vperm.xlu0 %7377, %v8589_v62  }
 0x15d   :  { %7359 = vset.pattern.permute.xlu1 %v13543_v3  ;;  %7379 = vset.pattern.permute.xlu0 %v13545_v43 }
 0x15e   :  { %431 = vperm.xlu1 %7359, %v8550_v57   ;;  %1698 = vperm.xlu0 %7379, %v8589_v62  }
 0x162   :  { %7361 = vset.pattern.permute.xlu1 %v13547_v23  ;;  %7382 = vset.pattern.permute.xlu0 %v13543_v3 }
 0x163   :  { %940 = vperm.xlu1 %7361, %v8550_v57   ;;  %436 = vperm.xlu0 %7382, %v8604_v0  }
 0x167   :  { %7363 = vset.pattern.permute.xlu1 %v13549_v31  ;;  %7384 = vset.pattern.permute.xlu0 %v13547_v23 }
 0x168   :  { %1440 = vperm.xlu1 %7363, %v8550_v57   ;;  %944 = vperm.xlu0 %7384, %v8604_v0  }
 0x16c   :  { %7365 = vset.pattern.permute.xlu1 %v13553_v35  ;;  %7386 = vset.pattern.permute.xlu0 %v13549_v31 }
 0x16d   :  { %1940 = vperm.xlu1 %7365, %v8550_v57   ;;  %1444 = vperm.xlu0 %7386, %v8604_v0  }
 0x171   :  { %7366 = vset.pattern.permute.xlu1 %v13541_v54  ;;  %7388 = vset.pattern.permute.xlu0 %v13553_v35 }
 0x172   :  { %2190 = vperm.xlu1 %7366, %v8550_v57   ;;  %1944 = vperm.xlu0 %7388, %v8604_v0  }
 0x176   :  { %7368 = vset.pattern.permute.xlu1 %v13555_v32  ;;  %7390 = vset.pattern.permute.xlu0 %v13555_v32 }
 0x177   :  { %685 = vperm.xlu1 %7368, %v8565_v59   ;;  %705 = vperm.xlu0 %7390, %v8633_v11  }
 0x179   :  { %v8641_v13 = vpop.permute.xlu0 %924  ;;  %v8643_v14 = vpop.permute.xlu1 %411 }
 0x17b   :  { %7370 = vset.pattern.permute.xlu1 %v13551_v36  ;;  %7392 = vset.pattern.permute.xlu0 %v13551_v36 }
 0x17c   :  { %1186 = vperm.xlu1 %7370, %v8565_v59   ;;  %1206 = vperm.xlu0 %7392, %v8633_v11  }
 0x17e   :  { %v8649_v15 = vpop.permute.xlu0 %1424  ;;  %v8651_v16 = vpop.permute.xlu1 %673 }
 0x180   :  { %7372 = vset.pattern.permute.xlu1 %v13545_v43  ;;  %7394 = vset.pattern.permute.xlu0 %v13545_v43 }
 0x181   :  { %1686 = vperm.xlu1 %7372, %v8565_v59   ;;  %1706 = vperm.xlu0 %7394, %v8633_v11  }
 0x183   :  { %v8657_v17 = vpop.permute.xlu0 %1924  ;;  %v8659_v18 = vpop.permute.xlu1 %1174 }
 0x185   :  { %7374 = vset.pattern.permute.xlu1 %v13543_v3  ;;  %7395 = vset.pattern.permute.xlu0 %v13553_v35 }
 0x186   :  { %441 = vperm.xlu1 %7374, %v8589_v62   ;;  %1956 = vperm.xlu0 %7395, %v8633_v11  }
 0x188   :  { %v8665_v19 = vpop.permute.xlu1 %1674  ;;  %v8667_v20 = vpop.permute.xlu0 %406 }
 0x18a   :  { %7376 = vset.pattern.permute.xlu1 %v13547_v23  ;;  %7396 = vset.pattern.permute.xlu0 %v13543_v3 }
 0x18b   :  { %948 = vperm.xlu1 %7376, %v8589_v62   ;;  %446 = vperm.xlu0 %7396, %v8670_v21  }
 0x18d   :  { %v8676_v22 = vpop.permute.xlu1 %920  ;;  %v8678_v24 = vpop.permute.xlu0 %669 }
 0x18f   :  { %7378 = vset.pattern.permute.xlu1 %v13549_v31  ;;  %7398 = vset.pattern.permute.xlu0 %v13547_v23 }
 0x190   :  { %1448 = vperm.xlu1 %7378, %v8589_v62   ;;  %952 = vperm.xlu0 %7398, %v8670_v21  }
 0x192   :  { %v8684_v25 = vpop.permute.xlu1 %1420  ;;  %v8686_v26 = vpop.permute.xlu0 %1170 }
 0x194   :  { %7380 = vset.pattern.permute.xlu1 %v13553_v35  ;;  %7400 = vset.pattern.permute.xlu0 %v13549_v31 }
 0x195   :  { %1948 = vperm.xlu1 %7380, %v8589_v62   ;;  %1452 = vperm.xlu0 %7400, %v8670_v21  }
 0x197   :  { %v8692_v28 = vpop.permute.xlu1 %1920  ;;  %v8694_v29 = vpop.permute.xlu0 %1670 }
 0x199   :  { %7381 = vset.pattern.permute.xlu1 %v13541_v54  ;;  %7402 = vset.pattern.permute.xlu0 %v13553_v35 }
 0x19a   :  { %2198 = vperm.xlu1 %7381, %v8589_v62   ;;  %1952 = vperm.xlu0 %7402, %v8670_v21  }
 0x19c   :  { %v8700_v30 = vpop.permute.xlu1 %2170  ;;  %v8702_v33 = vpop.permute.xlu0 %681 }
 0x19e   :  { %7383 = vset.pattern.permute.xlu1 %v13555_v32  ;;  %7404 = vset.pattern.permute.xlu0 %v13555_v32 }
 0x19f   :  { %693 = vperm.xlu1 %7383, %v8604_v0   ;;  %713 = vperm.xlu0 %7404, %v8706_v34  }
 0x1a1   :  { %v8712_v37 = vpop.permute.xlu1 %421  ;;  %v8714_v38 = vpop.permute.xlu0 %1182 }
 0x1a3   :  { %7385 = vset.pattern.permute.xlu1 %v13551_v36  ;;  %7406 = vset.pattern.permute.xlu0 %v13551_v36 }
 0x1a4   :  { %1194 = vperm.xlu1 %7385, %v8604_v0   ;;  %1214 = vperm.xlu0 %7406, %v8706_v34  }
 0x1a6   :  { %v8720_v40 = vpop.permute.xlu1 %932  ;;  %v8722_v42 = vpop.permute.xlu0 %1682 }
 0x1a8   :  { %7387 = vset.pattern.permute.xlu1 %v13545_v43  ;;  %7408 = vset.pattern.permute.xlu0 %v13545_v43 }
 0x1a9   :  { %1694 = vperm.xlu1 %7387, %v8604_v0   ;;  %1714 = vperm.xlu0 %7408, %v8706_v34  }
 0x1ab   :  { %v8728_v44 = vpop.permute.xlu1 %1432  ;;  %v8730_v45 = vpop.permute.xlu0 %416 }
 0x1ad   :  { %7389 = vset.pattern.permute.xlu1 %v13543_v3  ;;  %7410 = vset.pattern.permute.xlu0 %v13543_v3 }
 0x1ae   :  { %451 = vperm.xlu1 %7389, %v8633_v11   ;;  %456 = vperm.xlu0 %7410, %v8734_v49  }
 0x1b0   :  { %v8740_v52 = vpop.permute.xlu1 %1932  ;;  %v8742_v56 = vpop.permute.xlu0 %689 }
 0x1b2   :  { %7391 = vset.pattern.permute.xlu1 %v13547_v23  ;;  %7412 = vset.pattern.permute.xlu0 %v13547_v23 }
 0x1b3   :  { %956 = vperm.xlu1 %7391, %v8633_v11   ;;  %960 = vperm.xlu0 %7412, %v8734_v49  }
 0x1b5   :  { %v8748_v46 = vpop.permute.xlu1 %2182  ;;  %v8750_v58 = vpop.permute.xlu0 %1190 }
 0x1b7   :  { %7393 = vset.pattern.permute.xlu1 %v13549_v31  ;;  %7414 = vset.pattern.permute.xlu0 %v13549_v31 }
 0x1b8   :  { %1456 = vperm.xlu1 %7393, %v8633_v11   ;;  %1460 = vperm.xlu0 %7414, %v8734_v49  }
 0x1ba   :  { %v8756_v60 = vpop.permute.xlu1 %677  ;;  %v8758_v61 = vpop.permute.xlu0 %1690 }
 0x1bb   :  { %14013 = vst [vmem:[#allocation14_spill] sm:$0xff] %v8758_v61 }
 0x1bc   :  { %7397 = vset.pattern.permute.xlu1 %v13555_v32  ;;  %7418 = vset.pattern.permute.xlu0 %v13555_v32 }
 0x1bd   :  { %701 = vperm.xlu1 %7397, %v8670_v21   ;;  %721 = vperm.xlu0 %7418, %v8762_v63  }
 0x1bf   :  { %v8768_v1 = vpop.permute.xlu1 %928  ;;  %v8770_v2 = vpop.permute.xlu0 %426 }
 0x1c1   :  { %7399 = vset.pattern.permute.xlu1 %v13551_v36  ;;  %7420 = vset.pattern.permute.xlu0 %v13551_v36 }
 0x1c2   :  { %1202 = vperm.xlu1 %7399, %v8670_v21   ;;  %1222 = vperm.xlu0 %7420, %v8762_v63  }
 0x1c4   :  { %v8776_v47 = vpop.permute.xlu1 %1178  ;;  %v8778_v4 = vpop.permute.xlu0 %936 }
 0x1c5   :  { %14015 = vst [vmem:[#allocation16_spill] sm:$0xff] %v8776_v47  ;;  %14016 = vst [vmem:[#allocation17_spill] sm:$0xff] %v8778_v4 }
 0x1c6   :  { %7401 = vset.pattern.permute.xlu1 %v13545_v43  ;;  %7422 = vset.pattern.permute.xlu0 %v13545_v43 }
 0x1c7   :  { %1702 = vperm.xlu1 %7401, %v8670_v21   ;;  %1722 = vperm.xlu0 %7422, %v8762_v63  }
 0x1c9   :  { %v8784_v5 = vpop.permute.xlu1 %1428  ;;  %v8786_v9 = vpop.permute.xlu0 %1436 }
 0x1ca   :  { %14017 = vst [vmem:[#allocation18_spill] sm:$0xff] %v8786_v9 }
 0x1cb   :  { %7403 = vset.pattern.permute.xlu1 %v13543_v3  ;;  %7423 = vset.pattern.permute.xlu0 %v13543_v3 }
 0x1cc   :  { %461 = vperm.xlu1 %7403, %v8706_v34   ;;  %466 = vperm.xlu0 %7423, %v8790_v6  }
 0x1ce   :  { %v8796_v7 = vpop.permute.xlu1 %1678  ;;  %v8798_v54 = vpop.permute.xlu0 %1936 }
 0x1cf   :  { %14019 = vst [vmem:[#allocation20_spill] sm:$0xff] %v8796_v7  ;;  %14020 = vst [vmem:[#allocation21_spill] sm:$0xff] %v8798_v54  ;;  %v14045_v54 = vmov 7   ;;  %v14048_v7 = vmov 1  }
 0x1d0   :  { %7405 = vset.pattern.permute.xlu1 %v13547_v23  ;;  %7425 = vset.pattern.permute.xlu0 %v13547_v23  ;;  %v8818_v23 = vadd.f32 %v8520_v50, %v8635_v12 }
 0x1d1   :  { %964 = vperm.xlu1 %7405, %v8706_v34   ;;  %968 = vperm.xlu0 %7425, %v8790_v6  }
 0x1d2   :  { %14025 = vst [vmem:[#allocation26_spill] sm:$0xff] %v8818_v23 }
 0x1d3   :  { %v8804_v48 = vpop.permute.xlu1 %1928  ;;  %v8806_v8 = vpop.permute.xlu0 %697 }
 0x1d4   :  { %14021 = vst [vmem:[#allocation22_spill] sm:$0xff] %v8804_v48  ;;  %14022 = vst [vmem:[#allocation23_spill] sm:$0xff] %v8806_v8  ;;  %v14027_v48 = vmov 3   ;;  %v14036_v8 = vmov 6  }
 0x1d5   :  { %7407 = vset.pattern.permute.xlu1 %v13549_v31  ;;  %7427 = vset.pattern.permute.xlu0 %v13549_v31 }
 0x1d6   :  { %1464 = vperm.xlu1 %7407, %v8706_v34   ;;  %1468 = vperm.xlu0 %7427, %v8790_v6  }
 0x1d8   :  { %v8812_v3 = vpop.permute.xlu1 %2178  ;;  %v8814_v43 = vpop.permute.xlu0 %1198 }
 0x1d9   :  { %14023 = vst [vmem:[#allocation24_spill] sm:$0xff] %v8812_v3  ;;  %14024 = vst [vmem:[#allocation25_spill] sm:$0xff] %v8814_v43  ;;  %v8846_v43 = vadd.f32 %v8524_v51, %v8630_v10 }
 0x1da   :  { %7409 = vset.pattern.permute.xlu1 %v13553_v35  ;;  %7430 = vset.pattern.permute.xlu0 %v13555_v32  ;;  %v14029_v35 = vmov 5  }
 0x1db   :  { %1964 = vperm.xlu1 %7409, %v8706_v34   ;;  %729 = vperm.xlu0 %7430, %v8818_v23   ;;  %14032 = vst [vmem:[#allocation31_spill] sm:$0xff] %v8846_v43 }
 0x1dd   :  { %v8824_v31 = vpop.permute.xlu1 %431  ;;  %v8826_v36 = vpop.permute.xlu0 %1698 }
 0x1de   :  { %14026 = vst [vmem:[#allocation27_spill] sm:$0xff] %v8826_v36 }
 0x1df   :  { %7411 = vset.pattern.permute.xlu1 %v13555_v32  ;;  %7432 = vset.pattern.permute.xlu0 %v14027_v48 }
 0x1e0   :  { %709 = vperm.xlu1 %7411, %v8734_v49   ;;  %1230 = vperm.xlu0 %7432, %v8818_v23  }
 0x1e2   :  { %v8832_v50 = vpop.permute.xlu1 %940  ;;  %v8834_v12 = vpop.permute.xlu0 %436 }
 0x1e3   :  { %14028 = vst [vmem:[#allocation28_spill] sm:$0xff] %v8832_v50  ;;  %v14033_v50 = vmov 0  }
 0x1e4   :  { %7413 = vset.pattern.permute.xlu1 %v14027_v48  ;;  %7434 = vset.pattern.permute.xlu0 %v14029_v35 }
 0x1e5   :  { %1210 = vperm.xlu1 %7413, %v8734_v49   ;;  %1730 = vperm.xlu0 %7434, %v8818_v23  }
 0x1e7   :  { %v8840_v36 = vpop.permute.xlu1 %1440  ;;  %v8842_v32 = vpop.permute.xlu0 %944 }
 0x1e8   :  { %14030 = vst [vmem:[#allocation29_spill] sm:$0xff] %v8840_v36  ;;  %14031 = vst [vmem:[#allocation30_spill] sm:$0xff] %v8842_v32  ;;  %v14037_v36 = vmov 2   ;;  %v14040_v32 = vmov 4  }
 0x1e9   :  { %7415 = vset.pattern.permute.xlu1 %v14029_v35  ;;  %7435 = vset.pattern.permute.xlu0 %v14033_v50 }
 0x1ea   :  { %1710 = vperm.xlu1 %7415, %v8734_v49   ;;  %476 = vperm.xlu0 %7435, %v8846_v43  }
 0x1ec   :  { %v8852_v3 = vpop.permute.xlu1 %1940  ;;  %v8854_v9 = vpop.permute.xlu0 %1444 }
 0x1ed   :  { %14034 = vst [vmem:[#allocation32_spill] sm:$0xff] %v8852_v3  ;;  %14035 = vst [vmem:[#allocation33_spill] sm:$0xff] %v8854_v9 }
 0x1ee   :  { %7416 = vset.pattern.permute.xlu1 %v14036_v8  ;;  %7437 = vset.pattern.permute.xlu0 %v14037_v36 }
 0x1ef   :  { %1960 = vperm.xlu1 %7416, %v8734_v49   ;;  %976 = vperm.xlu0 %7437, %v8846_v43  }
 0x1f1   :  { %v8860_v51 = vpop.permute.xlu1 %2190  ;;  %v8862_v10 = vpop.permute.xlu0 %1944 }
 0x1f2   :  { %14038 = vst [vmem:[#allocation34_spill] sm:$0xff] %v8860_v51  ;;  %14039 = vst [vmem:[#allocation35_spill] sm:$0xff] %v8862_v10 }
 0x1f3   :  { %7417 = vset.pattern.permute.xlu1 %v14033_v50  ;;  %7439 = vset.pattern.permute.xlu0 %v14040_v32 }
 0x1f4   :  { %471 = vperm.xlu1 %7417, %v8762_v63   ;;  %1476 = vperm.xlu0 %7439, %v8846_v43  }
 0x1f6   :  { %v8868_v9 = vpop.permute.xlu1 %685  ;;  %v8870_v3 = vpop.permute.xlu0 %705 }
 0x1f7   :  { %14041 = vst [vmem:[#allocation36_spill] sm:$0xff] %v8868_v9  ;;  %14042 = vst [vmem:[#allocation37_spill] sm:$0xff] %v8870_v3 }
 0x1f8   :  { %7419 = vset.pattern.permute.xlu1 %v14037_v36  ;;  %7443 = vset.pattern.permute.xlu0 %v14036_v8 }
 0x1f9   :  { %972 = vperm.xlu1 %7419, %v8762_v63   ;;  %1972 = vperm.xlu0 %7443, %v8762_v63  }
 0x1fb   :  { %v8876_v51 = vpop.permute.xlu1 %1186  ;;  %v8878_v10 = vpop.permute.xlu0 %1206 }
 0x1fc   :  { %14043 = vst [vmem:[#allocation38_spill] sm:$0xff] %v8876_v51  ;;  %14044 = vst [vmem:[#allocation39_spill] sm:$0xff] %v8878_v10 }
 0x1fd   :  { %7421 = vset.pattern.permute.xlu1 %v14040_v32  ;;  %7444 = vset.pattern.permute.xlu0 %v14045_v54 }
 0x1fe   :  { %1472 = vperm.xlu1 %7421, %v8762_v63   ;;  %2174 = vperm.xlu0 %7444, %v8476_v27  }
 0x200   :  { %v8884_v3 = vpop.permute.xlu1 %1686  ;;  %v8886_v9 = vpop.permute.xlu0 %1706 }
 0x201   :  { %14046 = vst [vmem:[#allocation40_spill] sm:$0xff] %v8884_v3  ;;  %14047 = vst [vmem:[#allocation41_spill] sm:$0xff] %v8886_v9 }
 0x202   :  { %7424 = vset.pattern.permute.xlu1 %v14048_v7  ;;  %2186 = vperm.xlu0 %7444, %v8565_v59  }
 0x203   :  { %717 = vperm.xlu1 %7424, %v8790_v6  }
 0x205   :  { %v8891_v51 = vpop.permute.xlu1 %441  ;;  %v8893_v10 = vpop.permute.xlu0 %1956 }
 0x206   :  { %14049 = vst [vmem:[#allocation42_spill] sm:$0xff] %v8893_v10  ;;  %2194 = vperm.xlu0 %7444, %v8604_v0  }
 0x207   :  { %7426 = vset.pattern.permute.xlu1 %v14027_v48 }
 0x208   :  { %1218 = vperm.xlu1 %7426, %v8790_v6  }
 0x20a   :  { %v8898_v4 = vpop.permute.xlu1 %948  ;;  %2202 = vperm.xlu0 %7444, %v8670_v21   ;;  %v8901_v9 = vpop.permute.xlu0 %446 }
 0x20b   :  { %14050 = vst [vmem:[#allocation43_spill] sm:$0xff] %v8898_v4 }
 0x20c   :  { %7428 = vset.pattern.permute.xlu1 %v14029_v35 }
 0x20d   :  { %1718 = vperm.xlu1 %7428, %v8790_v6  }
 0x20e   :  { %2214 = vperm.xlu0 %7444, %v8706_v34  }
 0x20f   :  { %v8906_v3 = vpop.permute.xlu1 %1448  ;;  %v8908_v10 = vpop.permute.xlu0 %952 }
 0x210   :  { %14051 = vst [vmem:[#allocation44_spill] sm:$0xff] %v8906_v3  ;;  %14052 = vst [vmem:[#allocation45_spill] sm:$0xff] %v8908_v10  ;;  %v13557_v10 = vmov 8  }
 0x211   :  { %7429 = vset.pattern.permute.xlu1 %v14033_v50 }
 0x212   :  { %481 = vperm.xlu1 %7429, %v8818_v23   ;;  %2218 = vperm.xlu0 %7444, %v8790_v6  }
 0x214   :  { %v8913_v4 = vpop.permute.xlu1 %1948  ;;  %v8915_v47 = vpop.permute.xlu0 %1452 }
 0x215   :  { %14053 = vst [vmem:[#allocation46_spill] sm:$0xff] %v8913_v4  ;;  %14054 = vst [vmem:[#allocation47_spill] sm:$0xff] %v8915_v47 }
 0x216   :  { %7431 = vset.pattern.permute.xlu1 %v14037_v36  ;;  %2230 = vperm.xlu0 %7444, %v8818_v23  }
 0x217   :  { %980 = vperm.xlu1 %7431, %v8818_v23  }
 0x219   :  { %v8920_v61 = vpop.permute.xlu1 %2198  ;;  %v8922_v3 = vpop.permute.xlu0 %1952 }
 0x21a   :  { %14055 = vst [vmem:[#allocation48_spill] sm:$0xff] %v8920_v61  ;;  %14056 = vst [vmem:[#allocation49_spill] sm:$0xff] %v8922_v3  ;;  %7447 = vset.pattern.permute.xlu0 %v13557_v10 }
 0x21b   :  { %7433 = vset.pattern.permute.xlu1 %v14040_v32  ;;  %2424 = vperm.xlu0 %7447, %v8476_v27  }
 0x21c   :  { %1480 = vperm.xlu1 %7433, %v8818_v23  }
 0x21e   :  { %v8928_v50 = vpop.permute.xlu1 %693  ;;  %v8930_v36 = vpop.permute.xlu0 %713 }
 0x21f   :  { %14057 = vst [vmem:[#allocation50_spill] sm:$0xff] %v8928_v50  ;;  %14058 = vst [vmem:[#allocation51_spill] sm:$0xff] %v8930_v36  ;;  %2436 = vperm.xlu0 %7447, %v8565_v59   ;;  %v13563_v50 = vmov 11  }
 0x220   :  { %7436 = vset.pattern.permute.xlu1 %v14048_v7 }
 0x221   :  { %725 = vperm.xlu1 %7436, %v8846_v43  }
 0x223   :  { %v8935_v3 = vpop.permute.xlu1 %1194  ;;  %2444 = vperm.xlu0 %7447, %v8604_v0   ;;  %v8938_v10 = vpop.permute.xlu0 %1214 }
 0x224   :  { %14059 = vst [vmem:[#allocation52_spill] sm:$0xff] %v8935_v3  ;;  %14060 = vst [vmem:[#allocation53_spill] sm:$0xff] %v8938_v10  ;;  %v14084_v3 = vmov 9  }
 0x225   :  { %7438 = vset.pattern.permute.xlu1 %v14027_v48  ;;  %v13559_v48 = vmov 9  }
 0x226   :  { %1226 = vperm.xlu1 %7438, %v8846_v43  }
 0x227   :  { %2456 = vperm.xlu0 %7447, %v8633_v11  }
 0x228   :  { %v8943_v32 = vpop.permute.xlu1 %1694  ;;  %v8945_v61 = vpop.permute.xlu0 %1714 }
 0x229   :  { %14061 = vst [vmem:[#allocation54_spill] sm:$0xff] %v8943_v32  ;;  %14062 = vst [vmem:[#allocation55_spill] sm:$0xff] %v8945_v61  ;;  %v8962_v32 = vpop.f32.mrb[2].mxu1 }
 0x22a   :  { %7440 = vset.pattern.permute.xlu1 %v14029_v35  ;;  %14065 = vst [vmem:[#allocation58_spill] sm:$0xff] %v8962_v32  ;;  %v6054_v10 = vpop.f32.mrb[3].mxu1 }
 0x22b   :  { %1726 = vperm.xlu1 %7440, %v8846_v43   ;;  %2472 = vperm.xlu0 %7447, %v8762_v63  }
 0x22d   :  { %v8950_v7 = vpop.permute.xlu1 %451  ;;  %v8952_v36 = vpop.permute.xlu0 %456 }
 0x22f   :  { %7441 = vset.pattern.permute.xlu1 %v14045_v54  ;;  %7452 = vset.pattern.permute.xlu0 %v13559_v48 }
 0x230   :  { %2206 = vperm.xlu1 %7441, %v8633_v11   ;;  %2668 = vperm.xlu0 %7452, %v8496_v41  }
 0x232   :  { %v8958_v61 = vpop.permute.xlu1 %956  ;;  %v8960_v35 = vpop.permute.xlu0 %960 }
 0x233   :  { %14063 = vst [vmem:[#allocation56_spill] sm:$0xff] %v8958_v61  ;;  %14064 = vst [vmem:[#allocation57_spill] sm:$0xff] %v8960_v35 }
 0x234   :  { %2210 = vperm.xlu1 %7441, %v8734_v49   ;;  %2680 = vperm.xlu0 %7452, %v8530_v53  }
 0x237   :  { %v8966_v47 = vpop.permute.xlu1 %1456  ;;  %v8968_v4 = vpop.permute.xlu0 %1460 }
 0x238   :  { %14066 = vst [vmem:[#allocation59_spill] sm:$0xff] %v8966_v47  ;;  %14067 = vst [vmem:[#allocation60_spill] sm:$0xff] %v8968_v4  ;;  %7442 = vset.pattern.permute.xlu1 %v14036_v8  ;;  %2688 = vperm.xlu0 %7452, %v8550_v57   ;;  %v27_v8 = vld [vmem:[%s13533_s0 + $0x10] sm:$0xf] }
 0x239   :  { %1968 = vperm.xlu1 %7442, %v8790_v6   ;;  %6056 = vmatmul.mubr.f32.gmra.mrb[4].mxu1 %v27_v8 }
 0x23c   :  { %v8973_v48 = vpop.permute.xlu1 %701  ;;  %2696 = vperm.xlu0 %7452, %v8589_v62   ;;  %v8976_v32 = vpop.permute.xlu0 %721 }
 0x23d   :  { %14068 = vst [vmem:[#allocation61_spill] sm:$0xff] %v8973_v48  ;;  %14069 = vst [vmem:[#allocation62_spill] sm:$0xff] %v8976_v32  ;;  %1976 = vperm.xlu1 %7442, %v8846_v43   ;;  %v14072_v48 = vmov 0.0  }
 0x23e   :  { %6125 = vmatprep.mubr.msk.f32.mxu1 %vm8201_vm0, %v14072_v48  ;;  %v14075_v48 = vmov 8  }
 0x240   :  { %2700 = vperm.xlu0 %7452, %v8670_v21  }
 0x241   :  { %1980 = vperm.xlu1 %7442, %v8818_v23   ;;  %v8981_v10 = vpop.permute.xlu1 %1202  ;;  %v8983_v4 = vpop.permute.xlu0 %1222 }
 0x242   :  { %14070 = vst [vmem:[#allocation63_spill] sm:$0xff] %v8981_v10  ;;  %14071 = vst [vmem:[#allocation64_spill] sm:$0xff] %v8983_v4  ;;  %v13561_v10 = vmov 10  }
 0x244   :  { %2712 = vperm.xlu0 %7452, %v8706_v34  }
 0x245   :  { %7445 = vset.pattern.permute.xlu1 %v14045_v54 }
 0x246   :  { %2222 = vperm.xlu1 %7445, %v8762_v63   ;;  %v8993_v32 = vpop.permute.xlu1 %1702  ;;  %v8995_v47 = vpop.permute.xlu0 %1722 }
 0x247   :  { %14073 = vst [vmem:[#allocation65_spill] sm:$0xff] %v8993_v32  ;;  %14074 = vst [vmem:[#allocation66_spill] sm:$0xff] %v8995_v47 }
 0x248   :  { %2716 = vperm.xlu0 %7452, %v8790_v6  }
 0x24a   :  { %2226 = vperm.xlu1 %7445, %v8846_v43  }
 0x24b   :  { %v8999_v4 = vpop.permute.xlu1 %461  ;;  %v9001_v8 = vpop.permute.xlu0 %466 }
 0x24c   :  { %2728 = vperm.xlu0 %7452, %v8818_v23  }
 0x24e   :  { %7446 = vset.pattern.permute.xlu1 %v14075_v48 }
 0x24f   :  { %2420 = vperm.xlu1 %7446, %v8496_v41  }
 0x250   :  { %v9006_v54 = vpop.permute.xlu1 %964  ;;  %7455 = vset.pattern.permute.xlu0 %v13561_v10  ;;  %v9009_v47 = vpop.permute.xlu0 %968 }
 0x251   :  { %14076 = vst [vmem:[#allocation67_spill] sm:$0xff] %v9006_v54  ;;  %14077 = vst [vmem:[#allocation68_spill] sm:$0xff] %v9009_v47  ;;  %2923 = vperm.xlu0 %7455, %v8476_v27  }
 0x253   :  { %2428 = vperm.xlu1 %7446, %v8544_v55  }
 0x255   :  { %v9013_v32 = vpop.permute.xlu1 %1464  ;;  %2935 = vperm.xlu0 %7455, %v8565_v59   ;;  %v9016_v35 = vpop.permute.xlu0 %1468 }
 0x256   :  { %14078 = vst [vmem:[#allocation69_spill] sm:$0xff] %v9013_v32  ;;  %14079 = vst [vmem:[#allocation70_spill] sm:$0xff] %v9016_v35  ;;  %v484_v32 = vlaneseq }
 0x257   :  { %2432 = vperm.xlu1 %7446, %v8530_v53  }
 0x259   :  { %2943 = vperm.xlu0 %7455, %v8604_v0  }
 0x25a   :  { %v9020_v54 = vpop.permute.xlu1 %1964  ;;  %v9023_v10 = vpop.permute.xlu0 %729 }
 0x25b   :  { %14080 = vst [vmem:[#allocation71_spill] sm:$0xff] %v9020_v54  ;;  %2440 = vperm.xlu1 %7446, %v8550_v57   ;;  %14081 = vst [vmem:[#allocation72_spill] sm:$0xff] %v9023_v10  ;;  %v9037_v10 = vshrl.u32 %v484_v32, 7 }
 0x25d   :  { %2955 = vperm.xlu0 %7455, %v8633_v11   ;;  %14086 = vst [vmem:[#allocation76_spill] sm:$0xff] %v9037_v10 }
 0x25f   :  { %2448 = vperm.xlu1 %7446, %v8589_v62   ;;  %v9027_v47 = vpop.permute.xlu1 %709  ;;  %v9030_v35 = vpop.permute.xlu0 %1230 }
 0x260   :  { %14082 = vst [vmem:[#allocation73_spill] sm:$0xff] %v9027_v47  ;;  %14083 = vst [vmem:[#allocation74_spill] sm:$0xff] %v9030_v35  ;;  %v9043_v47 = vld [vmem:[%s13534_s5] ss:$0 sm:$0xff] }
 0x261   :  { %2971 = vperm.xlu0 %7455, %v8762_v63   ;;  %14087 = vst [vmem:[#allocation77_spill] sm:$0xff] %v9043_v47 }
 0x263   :  { %7448 = vset.pattern.permute.xlu1 %v14084_v3 }
 0x264   :  { %2672 = vperm.xlu1 %7448, %v8476_v27   ;;  %v9034_v54 = vpop.permute.xlu1 %1210  ;;  %v9046_v35 = vpop.permute.xlu0 %1730 }
 0x265   :  { %14085 = vst [vmem:[#allocation75_spill] sm:$0xff] %v9034_v54  ;;  %7460 = vset.pattern.permute.xlu0 %v13563_v50  ;;  %14088 = vst [vmem:[#allocation78_spill] sm:$0xff] %v9046_v35  ;;  %v391_v54 = vadd.f32 %v9043_v47, %v8494_v39  ;;  %v9053_v50 = vsub.s32 0, %v9037_v10 }
 0x266   :  { %3169 = vperm.xlu0 %7460, %v8496_v41  }
 0x267   :  { %14090 = vst [vmem:[#allocation80_spill] sm:$0xff] %v9053_v50  ;;  %v9058_v32 = vrot.slane %v391_v54, %v9053_v50 }
 0x268   :  { %2676 = vperm.xlu1 %7448, %v8544_v55  }
 0x269   :  { %v9048_v61 = vpop.permute.xlu1 %1710  ;;  %v9063_v35 = vpop.permute.xlu0 %476  ;;  %v9072_v39 = vmul.f32 %v9058_v32, %v8643_v14  ;;  %v9076_v50 = vmul.f32 %v9058_v32, %v8712_v37  ;;  %v9094_v37 = vmul.f32 %v9058_v32, %v8770_v2 }
 0x26a   :  { %14089 = vst [vmem:[#allocation79_spill] sm:$0xff] %v9048_v61  ;;  %3181 = vperm.xlu0 %7460, %v8530_v53   ;;  %v9067_v61 = vmul.f32 %v9058_v32, %v8667_v20  ;;  %v9085_v20 = vmul.f32 %v9058_v32, %v8730_v45  ;;  %v9101_v45 = vsub.s32 2, %v9037_v10 }
 0x26b   :  { %14093 = vst [vmem:[#allocation83_spill] sm:$0xff] %v9072_v39  ;;  %14094 = vst [vmem:[#allocation84_spill] sm:$0xff] %v9076_v50 }
 0x26c   :  { %2684 = vperm.xlu1 %7448, %v8565_v59   ;;  %14092 = vst [vmem:[#allocation82_spill] sm:$0xff] %v9067_v61  ;;  %v504_v47 = vmax.f32 %v9067_v61, %v9072_v39  ;;  %14095 = vst [vmem:[#allocation85_spill] sm:$0xff] %v9085_v20 }
 0x26d   :  { %14097 = vst [vmem:[#allocation87_spill] sm:$0xff] %v9094_v37  ;;  %14099 = vst [vmem:[#allocation89_spill] sm:$0xff] %v9101_v45 }
 0x26e   :  { %v9060_v41 = vpop.permute.xlu1 %1960  ;;  %3189 = vperm.xlu0 %7460, %v8550_v57   ;;  %v9088_v55 = vpop.permute.xlu0 %976  ;;  %v505_v14 = vmax.f32 %v9076_v50, %v504_v47  ;;  %v9108_v47 = vmul.f32 %v9058_v32, %v8824_v31  ;;  %v9113_v50 = vsub.s32 3, %v9037_v10 }
 0x26f   :  { %14091 = vst [vmem:[#allocation81_spill] sm:$0xff] %v9060_v41  ;;  %14096 = vst [vmem:[#allocation86_spill] sm:$0xff] %v9088_v55  ;;  %v9128_v55 = vrot.slane %v391_v54, %v9101_v45  ;;  %v14107_v45 = vsub.s32 5, %v9037_v10 }
 0x270   :  { %2692 = vperm.xlu1 %7448, %v8604_v0   ;;  %v506_v39 = vmax.f32 %v9085_v20, %v505_v14  ;;  %14101 = vst [vmem:[#allocation91_spill] sm:$0xff] %v9113_v50  ;;  %v9121_v14 = vmul.f32 %v9058_v32, %v8834_v12 }
 0x271   :  { %v9150_v53 = vrot.slane %v391_v54, %v14107_v45 }
 0x272   :  { %3197 = vperm.xlu0 %7460, %v8589_v62   ;;  %v9098_v62 = vsub.s32 1, %v9037_v10  ;;  %v507_v57 = vmax.f32 %v9094_v37, %v506_v39  ;;  %v14104_v39 = vsub.s32 6, %v9037_v10 }
 0x273   :  { %v9079_v41 = vpop.permute.xlu1 %471  ;;  %v9134_v61 = vpop.permute.xlu0 %1476 }
 0x274   :  { %7449 = vset.pattern.permute.xlu1 %v14075_v48  ;;  %14098 = vst [vmem:[#allocation88_spill] sm:$0xff] %v9098_v62  ;;  %v9125_v31 = vrot.slane %v391_v54, %v9098_v62  ;;  %14103 = vst [vmem:[#allocation92_spill] sm:$0xff] %v9134_v61  ;;  %v9138_v37 = vrot.slane %v391_v54, %v14104_v39  ;;  %v508_v12 = vmax.f32 %v9108_v47, %v507_v57 }
 0x275   :  { %2452 = vperm.xlu1 %7449, %v8670_v21   ;;  %v9146_v62 = vrot.slane %v391_v54, %v9113_v50  ;;  %v9158_v39 = vmul.f32 %v9128_v55, %v8676_v22  ;;  %v9179_v22 = vmul.f32 %v9128_v55, %v8641_v13 }
 0x276   :  { %3201 = vperm.xlu0 %7460, %v8670_v21   ;;  %v14102_v21 = vsub.s32 4, %v9037_v10  ;;  %14105 = vst [vmem:[#allocation93_spill] sm:$0xff] %v9138_v37  ;;  %v9199_v13 = vmul.f32 %v9138_v37, %v8692_v28  ;;  %v9218_v28 = vmul.f32 %v9150_v53, %v8694_v29 }
 0x277   :  { %14109 = vst [vmem:[#allocation95_spill] sm:$0xff] %v9158_v39  ;;  %14113 = vst [vmem:[#allocation99_spill] sm:$0xff] %v9179_v22 }
 0x278   :  { %v9110_v2 = vpop.permute.xlu1 %972  ;;  %v9132_v20 = vrot.slane %v391_v54, %v14102_v21  ;;  %v14108_v21 = vsub.s32 7, %v9037_v10  ;;  %v509_v10 = vmax.f32 %v9121_v14, %v508_v12  ;;  %v9191_v12 = vmul.f32 %v9146_v62, %v8686_v26  ;;  %14118 = vst [vmem:[#allocation104_spill] sm:$0xff] %v9199_v13  ;;  %14122 = vst [vmem:[#allocation108_spill] sm:$0xff] %v9218_v28 }
 0x279   :  { %14100 = vst [vmem:[#allocation90_spill] sm:$0xff] %v9110_v2  ;;  %2460 = vperm.xlu1 %7449, %v8734_v49   ;;  %v9143_v2 = vmul.f32 %v9058_v32, %v8891_v51  ;;  %v9165_v51 = vmul.f32 %v9125_v31, %v8678_v24  ;;  %v9212_v26 = vmul.f32 %v9150_v53, %v8665_v19 }
 0x27a   :  { %3213 = vperm.xlu0 %7460, %v8706_v34   ;;  %v9154_v61 = vrot.slane %v391_v54, %v14108_v21  ;;  %v9169_v45 = vmul.f32 %v9132_v20, %v8684_v25  ;;  %v9174_v54 = vmul.f32 %v9058_v32, %v8901_v9  ;;  %v9183_v24 = vmul.f32 %v9132_v20, %v8649_v15 }
 0x27b   :  { %14106 = vst [vmem:[#allocation94_spill] sm:$0xff] %v9143_v2  ;;  %14110 = vst [vmem:[#allocation96_spill] sm:$0xff] %v9165_v51  ;;  %v9187_v25 = vmul.f32 %v9125_v31, %v8651_v16  ;;  %v9195_v9 = vmul.f32 %v9138_v37, %v8657_v17  ;;  %v510_v21 = vmax.f32 %v9143_v2, %v509_v10  ;;  %v9220_v10 = vpop.permute.xlu0 %1972 }
 0x27c   :  { %14111 = vst [vmem:[#allocation97_spill] sm:$0xff] %v9169_v45  ;;  %14112 = vst [vmem:[#allocation98_spill] sm:$0xff] %v9174_v54  ;;  %v9204_v15 = vmul.f32 %v9058_v32, %v8950_v7  ;;  %v9208_v16 = vmul.f32 %v9146_v62, %v8659_v18  ;;  %v1003_v17 = vmax.f32 %v9158_v39, %v9179_v22  ;;  %v14215_v39 = vld [vmem:[#allocation51_spill] sm:$0xff] }
 0x27d   :  { %2464 = vperm.xlu1 %7449, %v8706_v34   ;;  %v9161_v57 = vpop.permute.xlu1 %1472  ;;  %14114 = vst [vmem:[#allocation100_spill] sm:$0xff] %v9183_v24  ;;  %14115 = vst [vmem:[#allocation101_spill] sm:$0xff] %v9187_v25  ;;  %v753_v7 = vmax.f32 %v9187_v25, %v9165_v51  ;;  %v1503_v18 = vmax.f32 %v9169_v45, %v9183_v24  ;;  %v511_v19 = vmax.f32 %v9174_v54, %v510_v21 }
 0x27e   :  { %3217 = vperm.xlu0 %7460, %v8790_v6   ;;  %14116 = vst [vmem:[#allocation102_spill] sm:$0xff] %v9191_v12  ;;  %14117 = vst [vmem:[#allocation103_spill] sm:$0xff] %v9195_v9  ;;  %v1254_v29 = vmax.f32 %v9208_v16, %v9191_v12  ;;  %v9236_v22 = vmul.f32 %v9125_v31, %v8702_v33  ;;  %v9240_v25 = vmul.f32 %v9146_v62, %v8714_v38 }
 0x27f   :  { %14119 = vst [vmem:[#allocation105_spill] sm:$0xff] %v9204_v15  ;;  %14120 = vst [vmem:[#allocation106_spill] sm:$0xff] %v9208_v16  ;;  %v2003_v21 = vmax.f32 %v9199_v13, %v9195_v9  ;;  %v9246_v24 = vmul.f32 %v9128_v55, %v8720_v40  ;;  %v9250_v45 = vmul.f32 %v9150_v53, %v8722_v42 }
 0x280   :  { %14121 = vst [vmem:[#allocation107_spill] sm:$0xff] %v9212_v26  ;;  %14123 = vst [vmem:[#allocation109_spill] sm:$0xff] %v9236_v22  ;;  %v512_v16 = vmax.f32 %v9204_v15, %v511_v19  ;;  %v1754_v33 = vmax.f32 %v9212_v26, %v9218_v28  ;;  %v9257_v38 = vmul.f32 %v9132_v20, %v8728_v44  ;;  %v9291_v26 = vpop.permute.xlu0 %2174  ;;  %v14242_v15 = vld [vmem:[#allocation77_spill] sm:$0xff] }
 0x281   :  { %7450 = vset.pattern.permute.xlu1 %v14084_v3  ;;  %14124 = vst [vmem:[#allocation110_spill] sm:$0xff] %v9240_v25  ;;  %14125 = vst [vmem:[#allocation111_spill] sm:$0xff] %v9246_v24  ;;  %v9261_v9 = vmul.f32 %v9138_v37, %v8740_v52  ;;  %v9265_v40 = vmul.f32 %v9125_v31, %v8742_v56  ;;  %v9269_v42 = vmul.f32 %v9154_v61, %v8748_v46  ;;  %v13601_v52 = vmov 12  }
 0x282   :  { %2704 = vperm.xlu1 %7450, %v8633_v11   ;;  %v9229_v2 = vpop.permute.xlu1 %717  ;;  %3229 = vperm.xlu0 %7460, %v8818_v23   ;;  %14126 = vst [vmem:[#allocation112_spill] sm:$0xff] %v9250_v45  ;;  %14127 = vst [vmem:[#allocation113_spill] sm:$0xff] %v9257_v38  ;;  %v9273_v19 = vmul.f32 %v9058_v32, %v8952_v36  ;;  %v9277_v44 = vmul.f32 %v9058_v32, %v8999_v4 }
 0x283   :  { %14128 = vst [vmem:[#allocation114_spill] sm:$0xff] %v9261_v9  ;;  %14129 = vst [vmem:[#allocation115_spill] sm:$0xff] %v9265_v40  ;;  %v9283_v56 = vmul.f32 %v9154_v61, %v8700_v30  ;;  %v755_v46 = vmax.f32 %v9236_v22, %v753_v7  ;;  %v1256_v13 = vmax.f32 %v9240_v25, %v1254_v29 }
 0x284   :  { %14130 = vst [vmem:[#allocation116_spill] sm:$0xff] %v9269_v42  ;;  %14131 = vst [vmem:[#allocation117_spill] sm:$0xff] %v9273_v19  ;;  %v9289_v36 = vmul.f32 %v9146_v62, %v8750_v58  ;;  %v1756_v28 = vmax.f32 %v9250_v45, %v1754_v33  ;;  %v9300_v30 = vmul.f32 %v9132_v20, %v8784_v5  ;;  %v14138_v45 = vld [vmem:[#allocation14_spill] sm:$0xff] }
 0x285   :  { %14132 = vst [vmem:[#allocation118_spill] sm:$0xff] %v9277_v44  ;;  %14133 = vst [vmem:[#allocation119_spill] sm:$0xff] %v9283_v56  ;;  %v514_v7 = vmax.f32 %v9273_v19, %v512_v16  ;;  %v1504_v29 = vmax.f32 %v9257_v38, %v1503_v18  ;;  %v9305_v58 = vmax.f32 %v9261_v9, %v2003_v21  ;;  %v14140_v21 = vld [vmem:[#allocation16_spill] sm:$0xff]  ;;  %v14241_v19 = vld [vmem:[#allocation58_spill] sm:$0xff] }
 0x286   :  { %2708 = vperm.xlu1 %7450, %v8734_v49   ;;  %7463 = vset.pattern.permute.xlu0 %v13601_v52  ;;  %14134 = vst [vmem:[#allocation120_spill] sm:$0xff] %v9289_v36  ;;  %v1004_v52 = vmax.f32 %v9246_v24, %v1003_v17  ;;  %14135 = vst [vmem:[#allocation121_spill] sm:$0xff] %v9300_v30  ;;  %v9309_v25 = vmul.f32 %v9125_v31, %v8756_v60 }
 0x287   :  { %v9293_v4 = vpop.permute.xlu1 %1218  ;;  %3423 = vperm.xlu0 %7463, %v8476_v27   ;;  %v9313_v17 = vmul.f32 %v9128_v55, %v8768_v1  ;;  %v752_v33 = vmax.f32 %v9265_v40, %v755_v46  ;;  %v2256_v5 = vmax.f32 %v9269_v42, %v9283_v56  ;;  %v9320_v16 = vmul.f32 %v9150_v53, %v14138_v45  ;;  %v14142_v1 = vld [vmem:[#allocation17_spill] sm:$0xff]  ;;  %v14144_v42 = vld [vmem:[#allocation20_spill] sm:$0xff] }
 0x288   :  { %14136 = vst [vmem:[#allocation122_spill] sm:$0xff] %v9309_v25  ;;  %v513_v18 = vmax.f32 %v9277_v44, %v514_v7  ;;  %v1253_v60 = vmax.f32 %v9289_v36, %v1256_v13  ;;  %v9327_v9 = vmul.f32 %v9146_v62, %v14140_v21  ;;  %v9331_v46 = vmul.f32 %v9128_v55, %v14142_v1  ;;  %v14148_v36 = vld [vmem:[#allocation21_spill] sm:$0xff] }
 0x289   :  { %14137 = vst [vmem:[#allocation123_spill] sm:$0xff] %v9313_v17  ;;  %14139 = vst [vmem:[#allocation14_spill] sm:$0xff] %v9320_v16  ;;  %v1505_v45 = vmax.f32 %v9300_v30, %v1504_v29  ;;  %v9338_v7 = vmul.f32 %v9150_v53, %v14144_v42  ;;  %v9346_v13 = vmul.f32 %v9058_v32, %v9063_v35  ;;  %v14150_v42 = vld [vmem:[#allocation23_spill] sm:$0xff]  ;;  %v14152_v35 = vld [vmem:[#allocation18_spill] sm:$0xff] }
 0x28a   :  { %7451 = vset.pattern.permute.xlu1 %v14075_v48  ;;  %14141 = vst [vmem:[#allocation16_spill] sm:$0xff] %v9327_v9  ;;  %14143 = vst [vmem:[#allocation17_spill] sm:$0xff] %v9331_v46  ;;  %v9342_v48 = vmul.f32 %v9058_v32, %v9001_v8  ;;  %v757_v1 = vmax.f32 %v9309_v25, %v752_v33  ;;  %v1005_v56 = vmax.f32 %v9313_v17, %v1004_v52  ;;  %v9360_v8 = vpop.permute.xlu0 %2186  ;;  %v14161_v25 = vld [vmem:[#allocation28_spill] sm:$0xff] }
 0x28b   :  { %2468 = vperm.xlu1 %7451, %v8790_v6   ;;  %3435 = vperm.xlu0 %7463, %v8565_v59   ;;  %14145 = vst [vmem:[#allocation20_spill] sm:$0xff] %v9338_v7  ;;  %14147 = vst [vmem:[#allocation125_spill] sm:$0xff] %v9346_v13  ;;  %v9354_v29 = vmul.f32 %v9138_v37, %v14148_v36  ;;  %v9358_v12 = vmul.f32 %v9125_v31, %v14150_v42  ;;  %v14155_v42 = vld [vmem:[#allocation24_spill] sm:$0xff] }
 0x28c   :  { %14146 = vst [vmem:[#allocation124_spill] sm:$0xff] %v9342_v48  ;;  %v9348_v21 = vpop.permute.xlu1 %1718  ;;  %v1753_v38 = vmax.f32 %v9320_v16, %v1756_v28  ;;  %v9365_v30 = vmul.f32 %v9132_v20, %v14152_v35  ;;  %v516_v33 = vmax.f32 %v9342_v48, %v513_v18  ;;  %v9370_v52 = vmul.f32 %v9058_v32, %v9079_v41  ;;  %v14157_v35 = vld [vmem:[#allocation25_spill] sm:$0xff] }
 0x28d   :  { %14149 = vst [vmem:[#allocation21_spill] sm:$0xff] %v9354_v29  ;;  %14151 = vst [vmem:[#allocation23_spill] sm:$0xff] %v9358_v12  ;;  %v1258_v36 = vmax.f32 %v9327_v9, %v1253_v60  ;;  %v1006_v40 = vmax.f32 %v9331_v46, %v1005_v56  ;;  %v9376_v22 = vmul.f32 %v9154_v61, %v14155_v42  ;;  %v14159_v42 = vld [vmem:[#allocation22_spill] sm:$0xff] }
 0x28e   :  { %14153 = vst [vmem:[#allocation18_spill] sm:$0xff] %v9365_v30  ;;  %14154 = vst [vmem:[#allocation126_spill] sm:$0xff] %v9370_v52  ;;  %v1506_v28 = vmax.f32 %v9365_v30, %v1505_v45  ;;  %v9382_v18 = vmax.f32 %v9338_v7, %v1753_v38  ;;  %v9386_v41 = vmul.f32 %v9146_v62, %v14157_v35  ;;  %v14163_v7 = vld [vmem:[#allocation27_spill] sm:$0xff]  ;;  %v14165_v30 = vld [vmem:[#allocation29_spill] sm:$0xff]  ;;  %v9423_v51 = vpop.permute.xlu0 %2194 }
 0x28f   :  { %14156 = vst [vmem:[#allocation24_spill] sm:$0xff] %v9376_v22  ;;  %2476 = vperm.xlu1 %7451, %v8846_v43   ;;  %3443 = vperm.xlu0 %7463, %v8604_v0   ;;  %v515_v60 = vmax.f32 %v9346_v13, %v516_v33  ;;  %v2008_v56 = vmax.f32 %v9305_v58, %v9354_v29  ;;  %v14168_v29 = vld [vmem:[#allocation30_spill] sm:$0xff] }
 0x290   :  { %14158 = vst [vmem:[#allocation25_spill] sm:$0xff] %v9386_v41  ;;  %v9393_v16 = vmul.f32 %v9138_v37, %v14159_v42  ;;  %v754_v9 = vmax.f32 %v9358_v12, %v757_v1  ;;  %v9398_v45 = vmul.f32 %v9128_v55, %v14161_v25  ;;  %v9402_v35 = vmul.f32 %v9150_v53, %v14163_v7  ;;  %v14170_v12 = vld [vmem:[#allocation35_spill] sm:$0xff]  ;;  %v14178_v46 = vld [vmem:[#allocation38_spill] sm:$0xff] }
 0x291   :  { %v482_v38 = vpop.permute.xlu1 %481  ;;  %v9406_v33 = vmul.f32 %v9132_v20, %v14165_v30  ;;  %v517_v58 = vmax.f32 %v9370_v52, %v515_v60  ;;  %v9413_v1 = vmax.f32 %v9376_v22, %v2256_v5  ;;  %v9417_v25 = vmul.f32 %v9128_v55, %v14168_v29  ;;  %v14172_v30 = vld [vmem:[#allocation32_spill] sm:$0xff]  ;;  %v14174_v60 = vld [vmem:[#allocation33_spill] sm:$0xff]  ;;  %v14238_v52 = vld [vmem:[#allocation63_spill] sm:$0xff] }
 0x292   :  { %14160 = vst [vmem:[#allocation22_spill] sm:$0xff] %v9393_v16  ;;  %14162 = vst [vmem:[#allocation28_spill] sm:$0xff] %v9398_v45  ;;  %v9410_v42 = vmul.f32 %v9058_v32, %v482_v38  ;;  %v9421_v7 = vmul.f32 %v9138_v37, %v14170_v12  ;;  %v1255_v32 = vmax.f32 %v9386_v41, %v1258_v36  ;;  %v14176_v22 = vld [vmem:[#allocation36_spill] sm:$0xff]  ;;  %v14180_v36 = vld [vmem:[#allocation43_spill] sm:$0xff] }
 0x293   :  { %14164 = vst [vmem:[#allocation27_spill] sm:$0xff] %v9402_v35  ;;  %14166 = vst [vmem:[#allocation29_spill] sm:$0xff] %v9406_v33  ;;  %2480 = vperm.xlu1 %7451, %v8818_v23   ;;  %3455 = vperm.xlu0 %7463, %v8633_v11   ;;  %v9430_v5 = vmul.f32 %v9138_v37, %v14172_v30  ;;  %v9434_v29 = vmul.f32 %v9132_v20, %v14174_v60  ;;  %v14184_v11 = vld [vmem:[#allocation45_spill] sm:$0xff] }
 0x294   :  { %14167 = vst [vmem:[#allocation127_spill] sm:$0xff] %v9410_v42  ;;  %14169 = vst [vmem:[#allocation30_spill] sm:$0xff] %v9417_v25  ;;  %v518_v38 = vmax.f32 %v9410_v42, %v517_v58  ;;  %v1007_v12 = vmax.f32 %v9398_v45, %v1006_v40  ;;  %v9440_v49 = vmul.f32 %v9125_v31, %v14176_v22  ;;  %v14182_v58 = vld [vmem:[#allocation34_spill] sm:$0xff]  ;;  %v14217_v42 = vld [vmem:[#allocation53_spill] sm:$0xff] }
 0x295   :  { %14171 = vst [vmem:[#allocation35_spill] sm:$0xff] %v9421_v7  ;;  %14173 = vst [vmem:[#allocation32_spill] sm:$0xff] %v9430_v5  ;;  %v9444_v24 = vmul.f32 %v9146_v62, %v14178_v46  ;;  %v9448_v30 = vmul.f32 %v9128_v55, %v14180_v36  ;;  %v1755_v60 = vmax.f32 %v9402_v35, %v9382_v18 }
 0x296   :  { %14175 = vst [vmem:[#allocation33_spill] sm:$0xff] %v9434_v29  ;;  %14177 = vst [vmem:[#allocation36_spill] sm:$0xff] %v9440_v49  ;;  %v1507_v41 = vmax.f32 %v9406_v33, %v1506_v28  ;;  %v9455_v40 = vmul.f32 %v9154_v61, %v14182_v58  ;;  %v519_v45 = vrot.slane %v518_v38, 4  ;;  %v9457_v22 = vpop.permute.xlu1 %980  ;;  %v1008_v17 = vmax.f32 %v9417_v25, %v1007_v12  ;;  %v14203_v25 = vld [vmem:[#allocation41_spill] sm:$0xff] }
 0x297   :  { %14179 = vst [vmem:[#allocation38_spill] sm:$0xff] %v9444_v24  ;;  %14181 = vst [vmem:[#allocation43_spill] sm:$0xff] %v9448_v30  ;;  %v2005_v46 = vmax.f32 %v9393_v16, %v9421_v7  ;;  %v9464_v36 = vmul.f32 %v9128_v55, %v14184_v11  ;;  %7453 = vset.pattern.permute.xlu1 %v14084_v3  ;;  %3471 = vperm.xlu0 %7463, %v8762_v63   ;;  %v14186_v16 = vld [vmem:[#allocation56_spill] sm:$0xff]  ;;  %v9478_v3 = vpop.permute.xlu0 %2202 }
 0x298   :  { %14183 = vst [vmem:[#allocation34_spill] sm:$0xff] %v9455_v40  ;;  %v2006_v28 = vmax.f32 %v9430_v5, %v2008_v56  ;;  %v1508_v18 = vmax.f32 %v9434_v29, %v1507_v41  ;;  %v520_v58 = vmax.f32 %v518_v38, %v519_v45  ;;  %2720 = vperm.xlu1 %7453, %v8762_v63   ;;  %v14188_v5 = vld [vmem:[#allocation40_spill] sm:$0xff]  ;;  %v14190_v45 = vld [vmem:[#allocation42_spill] sm:$0xff] }
 0x299   :  { %14185 = vst [vmem:[#allocation45_spill] sm:$0xff] %v9464_v36  ;;  %v759_v12 = vmax.f32 %v9440_v49, %v754_v9  ;;  %v1260_v35 = vmax.f32 %v9444_v24, %v1255_v32  ;;  %v1009_v7 = vmax.f32 %v9448_v30, %v1008_v17  ;;  %v9476_v11 = vmul.f32 %v9128_v55, %v14186_v16  ;;  %v14192_v17 = vld [vmem:[#allocation37_spill] sm:$0xff]  ;;  %v14194_v16 = vld [vmem:[#allocation39_spill] sm:$0xff]  ;;  %v14196_v49 = vld [vmem:[#allocation50_spill] sm:$0xff] }
 0x29a   :  { %v9484_v41 = vmul.f32 %v9150_v53, %v14188_v5  ;;  %v9488_v9 = vmul.f32 %v9138_v37, %v14190_v45  ;;  %v521_v32 = vrot.slane %v520_v58, 2  ;;  %v2007_v38 = vmax.f32 %v2005_v46, %v2006_v28  ;;  %v14198_v46 = vld [vmem:[#allocation52_spill] sm:$0xff] }
 0x29b   :  { %14187 = vst [vmem:[#allocation56_spill] sm:$0xff] %v9476_v11  ;;  %v9492_v24 = vmul.f32 %v9125_v31, %v14192_v17  ;;  %v9496_v29 = vmul.f32 %v9146_v62, %v14194_v16  ;;  %v1010_v56 = vmax.f32 %v9464_v36, %v1009_v7  ;;  %v9499_v33 = vpop.permute.xlu1 %1480  ;;  %v13649_v5 = vmov 13   ;;  %v14200_v16 = vld [vmem:[#allocation3_spill] sm:$0xff]  ;;  %v14201_v36 = vld [vmem:[#allocation44_spill] sm:$0xff] }
 0x29c   :  { %14189 = vst [vmem:[#allocation40_spill] sm:$0xff] %v9484_v41  ;;  %14191 = vst [vmem:[#allocation42_spill] sm:$0xff] %v9488_v9  ;;  %7468 = vset.pattern.permute.xlu0 %v13649_v5  ;;  %v9504_v45 = vmul.f32 %v9125_v31, %v14196_v49  ;;  %v9508_v28 = vmul.f32 %v9146_v62, %v14198_v46  ;;  %v522_v17 = vmax.f32 %v520_v58, %v521_v32 }
 0x29d   :  { %14193 = vst [vmem:[#allocation37_spill] sm:$0xff] %v9492_v24  ;;  %14195 = vst [vmem:[#allocation39_spill] sm:$0xff] %v9496_v29  ;;  %2724 = vperm.xlu1 %7453, %v8846_v43   ;;  %3669 = vperm.xlu0 %7468, %v14200_v16   ;;  %v756_v7 = vmax.f32 %v9492_v24, %v759_v12  ;;  %v1257_v63 = vmax.f32 %v9496_v29, %v1260_v35  ;;  %v14205_v43 = vld [vmem:[#allocation46_spill] sm:$0xff]  ;;  %v14207_v35 = vld [vmem:[#allocation47_spill] sm:$0xff]  ;;  %v14213_v24 = vmov 10  }
 0x29e   :  { %14197 = vst [vmem:[#allocation50_spill] sm:$0xff] %v9504_v45  ;;  %14199 = vst [vmem:[#allocation52_spill] sm:$0xff] %v9508_v28  ;;  %v9516_v5 = vmul.f32 %v9132_v20, %v14201_v36  ;;  %v1011_v49 = vmax.f32 %v9476_v11, %v1010_v56  ;;  %v1760_v30 = vmax.f32 %v9484_v41, %v1755_v60  ;;  %v523_v32 = vrot.slane %v522_v17, 1  ;;  %v14209_v36 = vld [vmem:[#allocation57_spill] sm:$0xff]  ;;  %v14211_v60 = vld [vmem:[#allocation67_spill] sm:$0xff] }
 0x29f   :  { %v9522_v46 = vmul.f32 %v9150_v53, %v14203_v25  ;;  %v2010_v58 = vmax.f32 %v9488_v9, %v2007_v38  ;;  %v9527_v12 = vmul.f32 %v9138_v37, %v14205_v43  ;;  %v9531_v29 = vmul.f32 %v9132_v20, %v14207_v35  ;;  %v9541_v25 = vpop.permute.xlu0 %2214  ;;  %v14214_v11 = vld [vmem:[#allocation4_spill] sm:$0xff] }
 0x2a0   :  { %14202 = vst [vmem:[#allocation44_spill] sm:$0xff] %v9516_v5  ;;  %v9535_v56 = vmul.f32 %v9128_v55, %v14209_v36  ;;  %v9539_v41 = vmul.f32 %v9128_v55, %v14211_v60  ;;  %v761_v38 = vmax.f32 %v9504_v45, %v756_v7  ;;  %v1262_v9 = vmax.f32 %v9508_v28, %v1257_v63  ;;  %v9548_v35 = vpop.permute.xlu1 %725 }
 0x2a1   :  { %14204 = vst [vmem:[#allocation41_spill] sm:$0xff] %v9522_v46  ;;  %14206 = vst [vmem:[#allocation46_spill] sm:$0xff] %v9527_v12  ;;  %v9545_v43 = vmax.f32 %v522_v17, %v523_v32  ;;  %7454 = vset.pattern.permute.xlu1 %v14213_v24  ;;  %3681 = vperm.xlu0 %7468, %v14214_v11   ;;  %v1509_v36 = vmax.f32 %v9516_v5, %v1508_v18  ;;  %v14219_v17 = vld [vmem:[#allocation54_spill] sm:$0xff]  ;;  %v14221_v32 = vld [vmem:[#allocation59_spill] sm:$0xff] }
 0x2a2   :  { %14208 = vst [vmem:[#allocation47_spill] sm:$0xff] %v9531_v29  ;;  %14210 = vst [vmem:[#allocation57_spill] sm:$0xff] %v9535_v56  ;;  %v9554_v60 = vmul.f32 %v9125_v31, %v14215_v39  ;;  %v9558_v0 = vmul.f32 %v9146_v62, %v14217_v42  ;;  %v1013_v63 = vmax.f32 %v9535_v56, %v1011_v49  ;;  %2919 = vperm.xlu1 %7454, %v14200_v16   ;;  %v14223_v18 = vld [vmem:[#allocation82_spill] sm:$0xff]  ;;  %v14224_v5 = vld [vmem:[#allocation83_spill] sm:$0xff] }
 0x2a3   :  { %14212 = vst [vmem:[#allocation67_spill] sm:$0xff] %v9539_v41  ;;  %v9564_v7 = vmul.f32 %v9150_v53, %v14219_v17  ;;  %v9568_v28 = vmul.f32 %v9132_v20, %v14221_v32  ;;  %v525_v39 = vsub.f32 %v14223_v18, %v9545_v43  ;;  %v526_v45 = vsub.f32 %v14224_v5, %v9545_v43  ;;  %v14225_v56 = vld [vmem:[#allocation48_spill] sm:$0xff]  ;;  %v14227_v32 = vld [vmem:[#allocation49_spill] sm:$0xff] }
 0x2a4   :  { %14216 = vst [vmem:[#allocation51_spill] sm:$0xff] %v9554_v60  ;;  %14218 = vst [vmem:[#allocation53_spill] sm:$0xff] %v9558_v0  ;;  %v1757_v42 = vmax.f32 %v9522_v46, %v1760_v30  ;;  %v9576_v49 = vmax.f32 %v9527_v12, %v2010_v58  ;;  %v1510_v16 = vmax.f32 %v9531_v29, %v1509_v36  ;;  %v14229_v30 = vld [vmem:[#allocation6_spill] sm:$0xff]  ;;  %v14230_v58 = vld [vmem:[#allocation55_spill] sm:$0xff] }
 0x2a5   :  { %14220 = vst [vmem:[#allocation54_spill] sm:$0xff] %v9564_v7  ;;  %14222 = vst [vmem:[#allocation59_spill] sm:$0xff] %v9568_v28  ;;  %v1012_v17 = vmax.f32 %v9539_v41, %v1013_v63  ;;  %v9582_v24 = vmul.f32 %v9154_v61, %v14225_v56  ;;  %v9586_v13 = vmul.f32 %v9138_v37, %v14227_v32  ;;  %3689 = vperm.xlu0 %7468, %v14229_v30   ;;  %v14232_v36 = vld [vmem:[#allocation61_spill] sm:$0xff]  ;;  %v14234_v56 = vld [vmem:[#allocation68_spill] sm:$0xff] }
 0x2a6   :  { %v763_v18 = vmax.f32 %v9554_v60, %v761_v38  ;;  %v1264_v5 = vmax.f32 %v9558_v0, %v1262_v9  ;;  %v9593_v12 = vmul.f32 %v9150_v53, %v14230_v58  ;;  %v9597_v63 = vmul.f32 %v9125_v31, %v14232_v36  ;;  %v14235_v32 = vld [vmem:[#allocation86_spill] sm:$0xff]  ;;  %v9607_v38 = vpop.permute.xlu0 %2218  ;;  %v14236_v9 = vld [vmem:[#allocation5_spill] sm:$0xff]  ;;  %v9610_v0 = vpop.permute.xlu1 %1226 }
 0x2a7   :  { %14226 = vst [vmem:[#allocation82_spill] sm:$0xff] %v9582_v24  ;;  %14228 = vst [vmem:[#allocation83_spill] sm:$0xff] %v9586_v13  ;;  %v9601_v46 = vmul.f32 %v9128_v55, %v14234_v56  ;;  %v9605_v29 = vmul.f32 %v9128_v55, %v14235_v32  ;;  %2927 = vperm.xlu1 %7454, %v14236_v9   ;;  %v1762_v58 = vmax.f32 %v9564_v7, %v1757_v42  ;;  %v14240_v32 = vld [vmem:[#allocation90_spill] sm:$0xff]  ;;  %v14253_v7 = vld [vmem:[#allocation72_spill] sm:$0xff] }
 0x2a8   :  { %14231 = vst [vmem:[#allocation48_spill] sm:$0xff] %v9593_v12  ;;  %14233 = vst [vmem:[#allocation49_spill] sm:$0xff] %v9597_v63  ;;  %v1511_v60 = vmax.f32 %v9568_v28, %v1510_v16  ;;  %v541_v36 = vmul.f32 1.442695, %v525_v39  ;;  %v543_v41 = vmul.f32 1.442695, %v526_v45  ;;  %v9616_v56 = vmul.f32 %v9146_v62, %v14238_v52 }
 0x2a9   :  { %14237 = vst [vmem:[#allocation55_spill] sm:$0xff] %v9610_v0  ;;  %v1015_v48 = vmax.f32 %v9601_v46, %v1012_v17  ;;  %v9621_v44 = vmul.f32 %v9128_v55, %v14240_v32  ;;  %v9625_v54 = vadd.f32 %v14242_v15, %v14241_v19  ;;  %v14244_v0 = vld [vmem:[#allocation60_spill] sm:$0xff]  ;;  %v14246_v16 = vld [vmem:[#allocation65_spill] sm:$0xff]  ;;  %v758_v32 = vmax.f32 %v9597_v63, %v763_v18 }
 0x2aa   :  { %14239 = vst [vmem:[#allocation61_spill] sm:$0xff] %v9616_v56  ;;  %v9629_v42 = vmul.f32 %v9132_v20, %v14244_v0  ;;  %v9633_v45 = vmul.f32 %v9150_v53, %v14246_v16  ;;  %v14248_v52 = vld [vmem:[#allocation69_spill] sm:$0xff]  ;;  %7494 = vpow2.f32 %v541_v36  ;;  %v14250_v17 = vld [vmem:[#allocation8_spill] sm:$0xff]  ;;  %v9644_v0 = vmul.f32 %v9128_v55, %v9457_v22 }
 0x2ab   :  { %14243 = vst [vmem:[#allocation68_spill] sm:$0xff] %v9625_v54  ;;  %v9637_v39 = vmul.f32 %v9132_v20, %v14248_v52  ;;  %3697 = vperm.xlu0 %7468, %v14250_v17   ;;  %v1014_v15 = vmax.f32 %v9605_v29, %v1015_v48  ;;  %7496 = vpow2.f32 %v543_v41  ;;  %2931 = vperm.xlu1 %7454, %v14214_v11   ;;  %v9655_v48 = vpop.permute.xlu1 %1726  ;;  %v14252_v41 = vld [vmem:[#allocation62_spill] sm:$0xff]  ;;  %v14261_v11 = vld [vmem:[#allocation73_spill] sm:$0xff] }
 0x2ac   :  { %14245 = vst [vmem:[#allocation86_spill] sm:$0xff] %v9629_v42  ;;  %14247 = vst [vmem:[#allocation63_spill] sm:$0xff] %v9633_v45  ;;  %v14251_v19 = vmax.f32 %v9455_v40, %v9413_v1  ;;  %v2012_v36 = vmax.f32 %v9586_v13, %v9576_v49  ;;  %v1764_v52 = vmax.f32 %v9593_v12, %v1762_v58  ;;  %v14254_v58 = vld [vmem:[#allocation71_spill] sm:$0xff]  ;;  %v14259_v12 = vld [vmem:[#allocation64_spill] sm:$0xff] }
 0x2ad   :  { %14249 = vst [vmem:[#allocation90_spill] sm:$0xff] %v9637_v39  ;;  %v1513_v18 = vmax.f32 %v9629_v42, %v1511_v60  ;;  %v9659_v55 = vmul.f32 %v9125_v31, %v14252_v41  ;;  %v1259_v22 = vmax.f32 %v9616_v56, %v1264_v5  ;;  %v9664_v1 = vmul.f32 %v9125_v31, %v14253_v7  ;;  %v14256_v41 = vld [vmem:[#allocation80_spill] sm:$0xff]  ;;  %v14258_v5 = vld [vmem:[#allocation11_spill] sm:$0xff] }
 0x2ae   :  { %v2255_v16 = vmax.f32 %v9582_v24, %v14251_v19  ;;  %v1016_v19 = vmax.f32 %v9621_v44, %v1014_v15  ;;  %v9667_v24 = vpop.permute.xlu0 %2230  ;;  %v1759_v49 = vmax.f32 %v9633_v45, %v1764_v52  ;;  %v9673_v40 = vmul.f32 %v9138_v37, %v14254_v58  ;;  %v14262_v58 = vld [vmem:[#allocation66_spill] sm:$0xff]  ;;  %v14271_v42 = vld [vmem:[#allocation88_spill] sm:$0xff] }
 0x2af   :  { %v1512_v60 = vmax.f32 %v9637_v39, %v1513_v18  ;;  %v9677_v13 = vrot.slane %v9625_v54, %v14256_v41  ;;  %3701 = vperm.xlu0 %7468, %v14258_v5   ;;  %v760_v7 = vmax.f32 %v9659_v55, %v758_v32  ;;  %v9683_v15 = vmul.f32 %v9146_v62, %v14259_v12  ;;  %v14264_v45 = vld [vmem:[#allocation70_spill] sm:$0xff]  ;;  %v14269_v39 = vld [vmem:[#allocation92_spill] sm:$0xff]  ;;  %v9717_v28 = vpop.permute.xlu1 %2206 }
 0x2b0   :  { %14255 = vst [vmem:[#allocation58_spill] sm:$0xff] %v9673_v40  ;;  %v9687_v52 = vmul.f32 %v9125_v31, %v14261_v11  ;;  %v1017_v18 = vmax.f32 %v9644_v0, %v1016_v19  ;;  %2939 = vperm.xlu1 %7454, %v14229_v30   ;;  %v9693_v41 = vmul.f32 %v9150_v53, %v14262_v58  ;;  %v14266_v32 = vld [vmem:[#allocation74_spill] sm:$0xff]  ;;  %14273 = vst [vmem:[#allocation73_spill] sm:$0xff] %v9717_v28  ;;  %v14280_v28 = vld [vmem:[#allocation89_spill] sm:$0xff] }
 0x2b1   :  { %14257 = vst [vmem:[#allocation77_spill] sm:$0xff] %v9677_v13  ;;  %14260 = vst [vmem:[#allocation60_spill] sm:$0xff] %v9683_v15  ;;  %v9697_v56 = vmul.f32 %v9132_v20, %v14264_v45  ;;  %v9701_v12 = vmul.f32 %v9146_v62, %v14266_v32  ;;  %v9705_v11 = vmul.f32 %v9154_v61, %v9291_v26 }
 0x2b2   :  { %14263 = vst [vmem:[#allocation65_spill] sm:$0xff] %v9693_v41  ;;  %v1261_v19 = vmax.f32 %v9683_v15, %v1259_v22  ;;  %v764_v30 = vmax.f32 %v760_v7, %v9664_v1  ;;  %v9711_v58 = vmul.f32 %v9132_v20, %v14269_v39  ;;  %v9715_v45 = vrot.slane %v9625_v54, %v14271_v42  ;;  %v14275_v7 = vld [vmem:[#allocation75_spill] sm:$0xff] }
 0x2b3   :  { %14265 = vst [vmem:[#allocation69_spill] sm:$0xff] %v9697_v56  ;;  %14267 = vst [vmem:[#allocation62_spill] sm:$0xff] %v9701_v12  ;;  %v1761_v32 = vmax.f32 %v9693_v41, %v1759_v49  ;;  %v1515_v63 = vmax.f32 %v9697_v56, %v1512_v60  ;;  %v2011_v26 = vmax.f32 %v9673_v40, %v2012_v36  ;;  %3713 = vperm.xlu0 %7468, %v8706_v34   ;;  %v2425_v60 = vpop.permute.xlu0 %2424  ;;  %v14277_v40 = vld [vmem:[#allocation78_spill] sm:$0xff] }
 0x2b4   :  { %14268 = vst [vmem:[#allocation72_spill] sm:$0xff] %v9705_v11  ;;  %14270 = vst [vmem:[#allocation71_spill] sm:$0xff] %v9711_v58  ;;  %v9724_v22 = vmul.f32 %v9154_v61, %v9360_v8  ;;  %v762_v39 = vmax.f32 %v9687_v52, %v764_v30  ;;  %v9730_v42 = vmul.f32 %v9146_v62, %v14275_v7  ;;  %v1018_v49 = vrot.slane %v1017_v18, 4  ;;  %v9737_v36 = vpop.eup %7494 }
 0x2b5   :  { %14272 = vst [vmem:[#allocation64_spill] sm:$0xff] %v9715_v45  ;;  %v9734_v45 = vmul.f32 %v9132_v20, %v9161_v57  ;;  %2947 = vperm.xlu1 %7454, %v14250_v17   ;;  %v1265_v8 = vmax.f32 %v1261_v19, %v9701_v12  ;;  %v9742_v41 = vmul.f32 %v9150_v53, %v14277_v40  ;;  %v9749_v57 = vpop.eup %7496 }
 0x2b6   :  { %14274 = vst [vmem:[#allocation66_spill] sm:$0xff] %v9724_v22  ;;  %v2257_v30 = vmax.f32 %v9705_v11, %v2255_v16  ;;  %v9747_v7 = vmul.f32 %v9154_v61, %v9423_v51  ;;  %v1514_v15 = vmax.f32 %v9711_v58, %v1515_v63  ;;  %v9754_v17 = vmul.f32 %v9125_v31, %v9229_v2  ;;  %v9764_v16 = vpop.permute.xlu1 %2210  ;;  %v14283_v51 = vld [vmem:[#allocation81_spill] sm:$0xff] }
 0x2b7   :  { %14276 = vst [vmem:[#allocation70_spill] sm:$0xff] %v9734_v45  ;;  %14278 = vst [vmem:[#allocation74_spill] sm:$0xff] %v9742_v41  ;;  %v9758_v19 = vrot.slane %v9625_v54, %v14280_v28  ;;  %v9762_v40 = vmul.f32 %v9132_v20, %v9499_v33  ;;  %v9768_v11 = vmul.f32 %v9138_v37, %v14283_v51  ;;  %3717 = vperm.xlu0 %7468, %v8790_v6  }
 0x2b8   :  { %14279 = vst [vmem:[#allocation92_spill] sm:$0xff] %v9747_v7  ;;  %v2260_v63 = vmax.f32 %v9724_v22, %v2257_v30  ;;  %v9773_v2 = vmul.f32 %v9154_v61, %v9478_v3  ;;  %v9777_v28 = vadd.f32 %v9749_v57, %v9737_v36  ;;  %v1263_v20 = vmax.f32 %v9730_v42, %v1265_v8  ;;  %v14287_v22 = vld [vmem:[#allocation79_spill] sm:$0xff] }
 0x2b9   :  { %14281 = vst [vmem:[#allocation75_spill] sm:$0xff] %v9758_v19  ;;  %14282 = vst [vmem:[#allocation78_spill] sm:$0xff] %v9762_v40  ;;  %v1516_v33 = vmax.f32 %v9734_v45, %v1514_v15  ;;  %v1019_v19 = vmax.f32 %v1017_v18, %v1018_v49  ;;  %v9784_v51 = vmul.f32 %v9125_v31, %v9548_v35  ;;  %v14286_v30 = vmov 11   ;;  %v14291_v49 = vld [vmem:[#allocation85_spill] sm:$0xff] }
 0x2ba   :  { %14284 = vst [vmem:[#allocation81_spill] sm:$0xff] %v9768_v11  ;;  %14285 = vst [vmem:[#allocation128_spill] sm:$0xff] %v9773_v2  ;;  %7456 = vset.pattern.permute.xlu1 %v14286_v30  ;;  %v1765_v3 = vmax.f32 %v1761_v32, %v9742_v41  ;;  %v9790_v58 = vmul.f32 %v9150_v53, %v14287_v22  ;;  %v2261_v12 = vmax.f32 %v9747_v7, %v2260_v63  ;;  %v2437_v32 = vpop.permute.xlu0 %2436  ;;  %v9816_v7 = vpop.permute.xlu1 %1968 }
 0x2bb   :  { %v9795_v8 = vmul.f32 %v9154_v61, %v9541_v25  ;;  %3173 = vperm.xlu1 %7456, %v8476_v27   ;;  %v9800_v31 = vmul.f32 %v9138_v37, %v9220_v10  ;;  %v765_v35 = vmax.f32 %v762_v39, %v9754_v17  ;;  %v9805_v15 = vmul.f32 %v9146_v62, %v9293_v4 }
 0x2bc   :  { %14288 = vst [vmem:[#allocation79_spill] sm:$0xff] %v9790_v58  ;;  %v1517_v18 = vmax.f32 %v9762_v40, %v1516_v33  ;;  %v2015_v22 = vmax.f32 %v2011_v26, %v9768_v11  ;;  %v2264_v25 = vmax.f32 %v9773_v2, %v2261_v12  ;;  %v527_v63 = vsub.f32 %v14291_v49, %v9545_v43 }
 0x2bd   :  { %14289 = vst [vmem:[#allocation129_spill] sm:$0xff] %v9795_v8  ;;  %14290 = vst [vmem:[#allocation130_spill] sm:$0xff] %v9800_v31  ;;  %v9814_v10 = vmul.f32 %v9154_v61, %v9607_v38  ;;  %3729 = vperm.xlu0 %7468, %v8818_v23   ;;  %v9821_v4 = vmul.f32 %v9150_v53, %v9348_v21  ;;  %v1020_v39 = vrot.slane %v1019_v19, 2 }
 0x2be   :  { %14293 = vst [vmem:[#allocation131_spill] sm:$0xff] %v9816_v7  ;;  %v766_v26 = vmax.f32 %v9784_v51, %v765_v35  ;;  %v2258_v12 = vmax.f32 %v9795_v8, %v2264_v25  ;;  %v9827_v33 = vmul.f32 %v9154_v61, %v9667_v24  ;;  %v9831_v38 = vrot.slane %v9625_v54, %v9113_v50  ;;  %v14299_v24 = vld [vmem:[#allocation84_spill] sm:$0xff]  ;;  %v9852_v54 = vpop.permute.xlu1 %1976  ;;  %v2445_v41 = vpop.permute.xlu0 %2444 }
 0x2bf   :  { %14292 = vst [vmem:[#allocation85_spill] sm:$0xff] %v9814_v10  ;;  %14294 = vst [vmem:[#allocation132_spill] sm:$0xff] %v9821_v4  ;;  %v9834_v49 = vmul.f32 %v9677_v13, %v2437_v32  ;;  %3177 = vperm.xlu1 %7456, %v14236_v9   ;;  %v1763_v21 = vmax.f32 %v9790_v58, %v1765_v3  ;;  %v9839_v40 = vmax.f32 %v9800_v31, %v2015_v22  ;;  %v13721_v3 = vmov 14  }
 0x2c0   :  { %14295 = vst [vmem:[#allocation133_spill] sm:$0xff] %v9827_v33  ;;  %14296 = vst [vmem:[#allocation134_spill] sm:$0xff] %v9831_v38  ;;  %v9842_v35 = vmax.f32 %v1263_v20, %v9805_v15  ;;  %v1518_v25 = vrot.slane %v1517_v18, 4  ;;  %v528_v8 = vsub.f32 %v14299_v24, %v9545_v43  ;;  %v545_v2 = vmul.f32 1.442695, %v527_v63  ;;  %v14303_v20 = vld [vmem:[#allocation87_spill] sm:$0xff] }
 0x2c1   :  { %14297 = vst [vmem:[#allocation135_spill] sm:$0xff] %v9834_v49  ;;  %14298 = vst [vmem:[#allocation136_spill] sm:$0xff] %v9839_v40  ;;  %v9847_v50 = vmax.f32 %v9814_v10, %v2258_v12  ;;  %v9850_v32 = vmul.f32 %v9677_v13, %v2425_v60  ;;  %7471 = vset.pattern.permute.xlu0 %v13721_v3  ;;  %v9856_v22 = vmax.f32 %v1763_v21, %v9821_v4  ;;  %v14306_v10 = vld [vmem:[#allocation105_spill] sm:$0xff]  ;;  %v14308_v12 = vld [vmem:[#allocation118_spill] sm:$0xff] }
 0x2c2   :  { %14302 = vst [vmem:[#allocation138_spill] sm:$0xff] %v9852_v54  ;;  %v529_v38 = vsub.f32 %v14303_v20, %v9545_v43  ;;  %v1021_v31 = vmax.f32 %v1019_v19, %v1020_v39  ;;  %v767_v24 = vrot.slane %v766_v26, 4  ;;  %3923 = vperm.xlu0 %7471, %v8476_v27   ;;  %v530_v63 = vsub.f32 %v9108_v47, %v9545_v43  ;;  %v14304_v20 = vld [vmem:[#allocation94_spill] sm:$0xff] }
 0x2c3   :  { %14300 = vst [vmem:[#allocation84_spill] sm:$0xff] %v9847_v50  ;;  %14301 = vst [vmem:[#allocation137_spill] sm:$0xff] %v9850_v32  ;;  %v531_v60 = vsub.f32 %v9121_v14, %v9545_v43  ;;  %v2503_v21 = vmax.f32 %v9850_v32, %v9834_v49  ;;  %3185 = vperm.xlu1 %7456, %v8565_v59   ;;  %v532_v19 = vsub.f32 %v14304_v20, %v9545_v43  ;;  %v14305_v39 = vld [vmem:[#allocation98_spill] sm:$0xff]  ;;  %v14307_v14 = vld [vmem:[#allocation117_spill] sm:$0xff]  ;;  %v9880_v32 = vpop.permute.xlu1 %1980  ;;  %v2457_v50 = vpop.permute.xlu0 %2456 }
 0x2c4   :  { %v533_v3 = vsub.f32 %v14305_v39, %v9545_v43  ;;  %v534_v47 = vsub.f32 %v14306_v10, %v9545_v43  ;;  %v1519_v11 = vmax.f32 %v1517_v18, %v1518_v25  ;;  %v535_v4 = vsub.f32 %v14307_v14, %v9545_v43  ;;  %14309 = vst [vmem:[#allocation87_spill] sm:$0xff] %v9880_v32  ;;  %v14310_v20 = vld [vmem:[#allocation124_spill] sm:$0xff]  ;;  %v14311_v18 = vld [vmem:[#allocation126_spill] sm:$0xff]  ;;  %v14312_v25 = vld [vmem:[#allocation125_spill] sm:$0xff] }
 0x2c5   :  { %v536_v27 = vsub.f32 %v14308_v12, %v9545_v43  ;;  %7498 = vpow2.f32 %v545_v2  ;;  %v547_v49 = vmul.f32 1.442695, %v528_v8  ;;  %v537_v58 = vsub.f32 %v14310_v20, %v9545_v43  ;;  %v14313_v2 = vld [vmem:[#allocation9_spill] sm:$0xff]  ;;  %v14314_v8 = vld [vmem:[#allocation127_spill] sm:$0xff] }
 0x2c6   :  { %v549_v54 = vmul.f32 1.442695, %v529_v38  ;;  %v1022_v39 = vrot.slane %v1021_v31, 1  ;;  %v768_v40 = vmax.f32 %v766_v26, %v767_v24  ;;  %3935 = vperm.xlu0 %7471, %v8565_v59   ;;  %v538_v10 = vsub.f32 %v14311_v18, %v9545_v43  ;;  %v14316_v59 = vld [vmem:[#allocation55_spill] sm:$0xff] }
 0x2c7   :  { %v539_v14 = vsub.f32 %v14312_v25, %v9545_v43  ;;  %v551_v37 = vmul.f32 1.442695, %v530_v63  ;;  %v553_v12 = vmul.f32 1.442695, %v531_v60  ;;  %3193 = vperm.xlu1 %7456, %v14313_v2   ;;  %v540_v32 = vsub.f32 %v14314_v8, %v9545_v43  ;;  %v9901_v33 = vpop.permute.xlu1 %2222  ;;  %v14329_v8 = vld [vmem:[#allocation28_spill] sm:$0xff] }
 0x2c8   :  { %v555_v7 = vmul.f32 1.442695, %v532_v19  ;;  %v557_v20 = vmul.f32 1.442695, %v533_v3  ;;  %v1520_v38 = vrot.slane %v1519_v11, 2  ;;  %7500 = vpow2.f32 %v547_v49  ;;  %14317 = vst [vmem:[#allocation98_spill] sm:$0xff] %v9901_v33 }
 0x2c9   :  { %v559_v26 = vmul.f32 1.442695, %v534_v47  ;;  %v9893_v24 = vmul.f32 %v9677_v13, %v2445_v41  ;;  %v9897_v18 = vmul.f32 %v9146_v62, %v14316_v59  ;;  %7502 = vpow2.f32 %v549_v54 }
 0x2ca   :  { %v561_v63 = vmul.f32 1.442695, %v535_v4  ;;  %v9899_v60 = vmax.f32 %v1021_v31, %v1022_v39  ;;  %v769_v25 = vrot.slane %v768_v40, 2  ;;  %3943 = vperm.xlu0 %7471, %v14313_v2   ;;  %7504 = vpow2.f32 %v551_v37  ;;  %v14321_v37 = vld [vmem:[#allocation95_spill] sm:$0xff] }
 0x2cb   :  { %14315 = vst [vmem:[#allocation94_spill] sm:$0xff] %v9893_v24  ;;  %v563_v43 = vmul.f32 1.442695, %v536_v27  ;;  %v565_v49 = vmul.f32 1.442695, %v537_v58  ;;  %v14318_v41 = vmov 10   ;;  %7506 = vpow2.f32 %v553_v12  ;;  %v9922_v47 = vpop.permute.xlu1 %2226 }
 0x2cc   :  { %v567_v3 = vmul.f32 1.442695, %v538_v10  ;;  %7457 = vset.pattern.permute.xlu1 %v14318_v41  ;;  %v569_v19 = vmul.f32 1.442695, %v539_v14  ;;  %v571_v59 = vmul.f32 1.442695, %v540_v32  ;;  %v9905_v62 = vmax.f32 %v1519_v11, %v1520_v38 }
 0x2cd   :  { %2951 = vperm.xlu1 %7457, %v14258_v5   ;;  %7508 = vpow2.f32 %v555_v7  ;;  %v9909_v54 = vmax.f32 %v2503_v21, %v9893_v24  ;;  %v9913_v31 = vmax.f32 %v9897_v18, %v9842_v35  ;;  %v9916_v27 = vmul.f32 %v9677_v13, %v2457_v50  ;;  %v14322_v11 = vld [vmem:[#allocation99_spill] sm:$0xff]  ;;  %14323 = vst [vmem:[#allocation118_spill] sm:$0xff] %v9922_v47  ;;  %v14324_v7 = vld [vmem:[#allocation10_spill] sm:$0xff]  ;;  %v14328_v14 = vld [vmem:[#allocation17_spill] sm:$0xff] }
 0x2ce   :  { %7510 = vpow2.f32 %v557_v20  ;;  %v1024_v58 = vsub.f32 %v14321_v37, %v9899_v60  ;;  %v1025_v4 = vsub.f32 %v14322_v11, %v9899_v60  ;;  %v770_v32 = vmax.f32 %v768_v40, %v769_v25  ;;  %3955 = vperm.xlu0 %7471, %v14324_v7   ;;  %v14326_v35 = vld [vmem:[#allocation123_spill] sm:$0xff]  ;;  %v14330_v38 = vld [vmem:[#allocation30_spill] sm:$0xff] }
 0x2cf   :  { %14319 = vst [vmem:[#allocation105_spill] sm:$0xff] %v9909_v54  ;;  %14320 = vst [vmem:[#allocation117_spill] sm:$0xff] %v9916_v27  ;;  %v9925_v21 = vpop.eup %7498  ;;  %7512 = vpow2.f32 %v559_v26  ;;  %v1026_v39 = vsub.f32 %v14326_v35, %v9899_v60  ;;  %v14327_v50 = vld [vmem:[#allocation111_spill] sm:$0xff]  ;;  %v1028_v12 = vsub.f32 %v14328_v14, %v9899_v60  ;;  %v1029_v20 = vsub.f32 %v14329_v8, %v9899_v60  ;;  %v14331_v26 = vld [vmem:[#allocation13_spill] sm:$0xff]  ;;  %v9955_v33 = vpop.permute.xlu1 %2420 }
 0x2d0   :  { %14325 = vst [vmem:[#allocation124_spill] sm:$0xff] %v9925_v21  ;;  %v1027_v10 = vsub.f32 %v14327_v50, %v9899_v60  ;;  %7514 = vpow2.f32 %v561_v63  ;;  %v644_v40 = vadd.f32 %v9925_v21, %v9777_v28  ;;  %v1030_v25 = vsub.f32 %v14330_v38, %v9899_v60  ;;  %v14332_v37 = vld [vmem:[#allocation43_spill] sm:$0xff]  ;;  %v14333_v35 = vld [vmem:[#allocation45_spill] sm:$0xff]  ;;  %v14334_v63 = vld [vmem:[#allocation56_spill] sm:$0xff] }
 0x2d1   :  { %2959 = vperm.xlu1 %7457, %v14331_v26   ;;  %7516 = vpow2.f32 %v563_v43  ;;  %v1031_v11 = vsub.f32 %v14332_v37, %v9899_v60  ;;  %v1032_v50 = vsub.f32 %v14333_v35, %v9899_v60  ;;  %v1033_v14 = vsub.f32 %v14334_v63, %v9899_v60  ;;  %v14335_v28 = vld [vmem:[#allocation57_spill] sm:$0xff]  ;;  %v14336_v2 = vld [vmem:[#allocation15_spill] sm:$0xff]  ;;  %14339 = vst [vmem:[#allocation125_spill] sm:$0xff] %v9955_v33 }
 0x2d2   :  { %7518 = vpow2.f32 %v565_v49  ;;  %v1034_v24 = vsub.f32 %v14335_v28, %v9899_v60  ;;  %v1040_v8 = vmul.f32 1.442695, %v1024_v58  ;;  %v771_v5 = vrot.slane %v770_v32, 1  ;;  %3971 = vperm.xlu0 %7471, %v14336_v2   ;;  %v9949_v38 = vpop.eup %7500  ;;  %v14338_v43 = vld [vmem:[#allocation67_spill] sm:$0xff] }
 0x2d3   :  { %14337 = vst [vmem:[#allocation126_spill] sm:$0xff] %v9949_v38  ;;  %7520 = vpow2.f32 %v567_v3  ;;  %v1035_v37 = vsub.f32 %v14338_v43, %v9899_v60  ;;  %v1036_v35 = vsub.f32 %v9601_v46, %v9899_v60  ;;  %v1042_v47 = vmul.f32 1.442695, %v1025_v4  ;;  %v9957_v49 = vpop.eup %7502  ;;  %v14385_v54 = vld [vmem:[#allocation51_spill] sm:$0xff] }
 0x2d4   :  { %7522 = vpow2.f32 %v569_v19  ;;  %v645_v58 = vadd.f32 %v9949_v38, %v644_v40  ;;  %v1037_v63 = vsub.f32 %v9621_v44, %v9899_v60  ;;  %v1044_v28 = vmul.f32 1.442695, %v1026_v39  ;;  %v9963_v3 = vpop.eup %7504 }
 0x2d5   :  { %2963 = vperm.xlu1 %7457, %v8706_v34   ;;  %7524 = vpow2.f32 %v571_v59  ;;  %v1046_v43 = vmul.f32 1.442695, %v1027_v10  ;;  %v9965_v21 = vmax.f32 %v770_v32, %v771_v5  ;;  %v1268_v46 = vrot.slane %v9913_v31, 4  ;;  %v9968_v4 = vpop.eup %7506  ;;  %v9976_v5 = vpop.permute.xlu1 %2428 }
 0x2d6   :  { %v1038_v19 = vsub.f32 %v9605_v29, %v9899_v60  ;;  %v1039_v40 = vsub.f32 %v9644_v0, %v9899_v60  ;;  %7526 = vpow2.f32 %v1040_v8  ;;  %v1048_v44 = vmul.f32 1.442695, %v1028_v12  ;;  %14340 = vst [vmem:[#allocation127_spill] sm:$0xff] %v9976_v5  ;;  %v14344_v8 = vld [vmem:[#allocation122_spill] sm:$0xff] }
 0x2d7   :  { %v9974_v39 = vpop.eup %7508  ;;  %7528 = vpow2.f32 %v1042_v47  ;;  %v1050_v33 = vmul.f32 1.442695, %v1029_v20  ;;  %v1052_v59 = vmul.f32 1.442695, %v1030_v25  ;;  %v1054_v10 = vmul.f32 1.442695, %v1031_v11 }
 0x2d8   :  { %v9978_v32 = vpop.eup %7510  ;;  %v646_v34 = vadd.f32 %v9957_v49, %v645_v58  ;;  %7530 = vpow2.f32 %v1044_v28  ;;  %v1056_v38 = vmul.f32 1.442695, %v1032_v50  ;;  %v1058_v29 = vmul.f32 1.442695, %v1033_v14  ;;  %v14341_v47 = vld [vmem:[#allocation96_spill] sm:$0xff]  ;;  %v14343_v50 = vld [vmem:[#allocation101_spill] sm:$0xff] }
 0x2d9   :  { %7458 = vset.pattern.permute.xlu1 %v14286_v30  ;;  %v9982_v0 = vpop.eup %7512  ;;  %7532 = vpow2.f32 %v1046_v43  ;;  %v1060_v60 = vmul.f32 1.442695, %v1034_v24  ;;  %v773_v12 = vsub.f32 %v14341_v47, %v9965_v21  ;;  %v1269_v20 = vmax.f32 %v9913_v31, %v1268_v46  ;;  %v10001_v46 = vpop.permute.xlu1 %2432 }
 0x2da   :  { %3205 = vperm.xlu1 %7458, %v14324_v7   ;;  %v9988_v25 = vpop.eup %7514  ;;  %7534 = vpow2.f32 %v1048_v44  ;;  %v1062_v11 = vmul.f32 1.442695, %v1035_v37  ;;  %v774_v14 = vsub.f32 %v14343_v50, %v9965_v21  ;;  %v775_v58 = vsub.f32 %v14344_v8, %v9965_v21  ;;  %14346 = vst [vmem:[#allocation99_spill] sm:$0xff] %v10001_v46  ;;  %v14348_v44 = vld [vmem:[#allocation109_spill] sm:$0xff] }
 0x2db   :  { %14342 = vst [vmem:[#allocation55_spill] sm:$0xff] %v9988_v25  ;;  %v9994_v28 = vpop.eup %7516  ;;  %7536 = vpow2.f32 %v1050_v33  ;;  %v9996_v24 = vmul.f32 1.442695, %v1036_v35  ;;  %v9998_v43 = vmul.f32 1.442695, %v1037_v63  ;;  %v1522_v31 = vrot.slane %v9905_v62, 1 }
 0x2dc   :  { %14345 = vst [vmem:[#allocation95_spill] sm:$0xff] %v9994_v28  ;;  %v10003_v47 = vpop.eup %7518  ;;  %v647_v37 = vadd.f32 %v9963_v3, %v646_v34  ;;  %7538 = vpow2.f32 %v1052_v59  ;;  %v776_v50 = vsub.f32 %v14348_v44, %v9965_v21  ;;  %v789_v35 = vmul.f32 1.442695, %v773_v12  ;;  %v14351_v34 = vld [vmem:[#allocation36_spill] sm:$0xff] }
 0x2dd   :  { %14347 = vst [vmem:[#allocation123_spill] sm:$0xff] %v10003_v47  ;;  %v10010_v33 = vpop.eup %7520  ;;  %7540 = vpow2.f32 %v1054_v10  ;;  %v1270_v63 = vrot.slane %v1269_v20, 2  ;;  %v10014_v5 = vmul.f32 %v9150_v53, %v9655_v48  ;;  %v777_v59 = vsub.f32 %v14351_v34, %v9965_v21  ;;  %v2473_v53 = vpop.permute.xlu0 %2472 }
 0x2de   :  { %14349 = vst [vmem:[#allocation111_spill] sm:$0xff] %v10010_v33  ;;  %3209 = vperm.xlu1 %7458, %v14331_v26   ;;  %v10017_v46 = vpop.eup %7522  ;;  %7542 = vpow2.f32 %v1056_v38  ;;  %v791_v44 = vmul.f32 1.442695, %v774_v14  ;;  %v793_v7 = vmul.f32 1.442695, %v775_v58  ;;  %v10028_v12 = vmax.f32 %v9905_v62, %v1522_v31  ;;  %v10030_v48 = vpop.permute.xlu1 %2440  ;;  %v14355_v14 = vld [vmem:[#allocation115_spill] sm:$0xff] }
 0x2df   :  { %14350 = vst [vmem:[#allocation17_spill] sm:$0xff] %v10017_v46  ;;  %v10021_v8 = vpop.eup %7524  ;;  %v10023_v33 = vmul.f32 1.442695, %v1038_v19  ;;  %v10025_v10 = vmul.f32 1.442695, %v1039_v40  ;;  %7544 = vpow2.f32 %v789_v35  ;;  %14353 = vst [vmem:[#allocation30_spill] sm:$0xff] %v10030_v48  ;;  %v648_v38 = vadd.f32 %v9968_v4, %v647_v37 }
 0x2e0   :  { %14352 = vst [vmem:[#allocation28_spill] sm:$0xff] %v10021_v8  ;;  %v10032_v26 = vpop.eup %7526  ;;  %v778_v58 = vsub.f32 %v14355_v14, %v9965_v21  ;;  %7546 = vpow2.f32 %v791_v44  ;;  %v795_v34 = vmul.f32 1.442695, %v776_v50  ;;  %v1271_v40 = vmax.f32 %v1269_v20, %v1270_v63  ;;  %v14358_v37 = vld [vmem:[#allocation50_spill] sm:$0xff]  ;;  %v14361_v20 = vld [vmem:[#allocation97_spill] sm:$0xff] }
 0x2e1   :  { %14354 = vst [vmem:[#allocation43_spill] sm:$0xff] %v10032_v26  ;;  %v10037_v19 = vpop.eup %7528  ;;  %7548 = vpow2.f32 %v1058_v29  ;;  %v1767_v31 = vmax.f32 %v10014_v5, %v9856_v22  ;;  %v779_v48 = vsub.f32 %v14358_v37, %v9965_v21  ;;  %v797_v44 = vmul.f32 1.442695, %v777_v59  ;;  %v14363_v14 = vld [vmem:[#allocation121_spill] sm:$0xff] }
 0x2e2   :  { %14356 = vst [vmem:[#allocation45_spill] sm:$0xff] %v10037_v19  ;;  %7459 = vset.pattern.permute.xlu1 %v14318_v41  ;;  %v10044_v35 = vpop.eup %7530  ;;  %7550 = vpow2.f32 %v793_v7  ;;  %v10049_v50 = vmul.f32 %v9677_v13, %v2473_v53  ;;  %v1524_v22 = vsub.f32 %v14361_v20, %v10028_v12  ;;  %v14362_v41 = vld [vmem:[#allocation100_spill] sm:$0xff]  ;;  %v10060_v37 = vpop.permute.xlu1 %2448  ;;  %v10065_v59 = vadd.f32 %v9974_v39, %v648_v38  ;;  %v14367_v53 = vld [vmem:[#allocation23_spill] sm:$0xff]  ;;  %v14369_v20 = vld [vmem:[#allocation113_spill] sm:$0xff] }
 0x2e3   :  { %14357 = vst [vmem:[#allocation56_spill] sm:$0xff] %v10044_v35  ;;  %2967 = vperm.xlu1 %7459, %v8790_v6   ;;  %v10052_v29 = vpop.eup %7532  ;;  %7552 = vpow2.f32 %v1060_v60  ;;  %14364 = vst [vmem:[#allocation96_spill] sm:$0xff] %v10060_v37  ;;  %v780_v13 = vsub.f32 %v14367_v53, %v9965_v21  ;;  %v799_v60 = vmul.f32 1.442695, %v778_v58  ;;  %v1272_v37 = vrot.slane %v1271_v40, 1  ;;  %v14372_v38 = vld [vmem:[#allocation49_spill] sm:$0xff] }
 0x2e4   :  { %14359 = vst [vmem:[#allocation57_spill] sm:$0xff] %v10049_v50  ;;  %14360 = vst [vmem:[#allocation67_spill] sm:$0xff] %v10052_v29  ;;  %v10062_v7 = vpop.eup %7534  ;;  %7554 = vpow2.f32 %v795_v34  ;;  %v1768_v53 = vrot.slane %v1767_v31, 4  ;;  %v14373_v34 = vld [vmem:[#allocation31_spill] sm:$0xff]  ;;  %v10089_v29 = vpop.permute.xlu0 %2668  ;;  %v1540_v50 = vmul.f32 1.442695, %v1524_v22 }
 0x2e5   :  { %14365 = vst [vmem:[#allocation101_spill] sm:$0xff] %v10062_v7  ;;  %14366 = vst [vmem:[#allocation122_spill] sm:$0xff] %v10065_v59  ;;  %v10069_v6 = vpop.eup %7536  ;;  %7556 = vpow2.f32 %v1062_v11  ;;  %v781_v59 = vsub.f32 %v14372_v38, %v9965_v21  ;;  %v801_v7 = vmul.f32 1.442695, %v779_v48  ;;  %v14379_v48 = vld [vmem:[#allocation37_spill] sm:$0xff]  ;;  %v10095_v35 = vmax.f32 %v1271_v40, %v1272_v37  ;;  %v14424_v19 = vld [vmem:[#allocation107_spill] sm:$0xff] }
 0x2e6   :  { %14368 = vst [vmem:[#allocation109_spill] sm:$0xff] %v10069_v6  ;;  %v10075_v27 = vpop.eup %7538  ;;  %7558 = vpow2.f32 %v797_v44  ;;  %v782_v38 = vsub.f32 %v14379_v48, %v9965_v21  ;;  %v14430_v11 = vld [vmem:[#allocation4_spill] sm:$0xff] }
 0x2e7   :  { %14371 = vst [vmem:[#allocation36_spill] sm:$0xff] %v10075_v27  ;;  %2975 = vperm.xlu1 %7459, %v14373_v34   ;;  %v10080_v58 = vpop.eup %7540  ;;  %7560 = vpow2.f32 %v9996_v24  ;;  %v10097_v24 = vpop.permute.xlu1 %2672  ;;  %v805_v37 = vmul.f32 1.442695, %v781_v59  ;;  %v784_v27 = vsub.f32 %v14385_v54, %v9965_v21  ;;  %v14387_v59 = vld [vmem:[#allocation106_spill] sm:$0xff] }
 0x2e8   :  { %14374 = vst [vmem:[#allocation115_spill] sm:$0xff] %v10080_v58  ;;  %v10091_v44 = vpop.eup %7542  ;;  %7562 = vpow2.f32 %v799_v60  ;;  %v803_v58 = vmul.f32 1.442695, %v780_v13  ;;  %14380 = vst [vmem:[#allocation97_spill] sm:$0xff] %v10097_v24  ;;  %v1769_v60 = vmax.f32 %v1767_v31, %v1768_v53  ;;  %v807_v40 = vmul.f32 1.442695, %v782_v38 }
 0x2e9   :  { %14378 = vst [vmem:[#allocation50_spill] sm:$0xff] %v10091_v44  ;;  %v10099_v63 = vpop.eup %7544  ;;  %7564 = vpow2.f32 %v9998_v43  ;;  %v783_v44 = vsub.f32 %v9687_v52, %v9965_v21  ;;  %v1275_v53 = vsub.f32 %v14387_v59, %v10095_v35  ;;  %v14390_v24 = vld [vmem:[#allocation16_spill] sm:$0xff]  ;;  %v785_v59 = vsub.f32 %v9754_v17, %v9965_v21 }
 0x2ea   :  { %v10108_v48 = vpop.eup %7546  ;;  %7566 = vpow2.f32 %v801_v7  ;;  %v14386_v7 = vld [vmem:[#allocation102_spill] sm:$0xff]  ;;  %v811_v17 = vmul.f32 1.442695, %v784_v27 }
 0x2eb   :  { %2979 = vperm.xlu1 %7459, %v8818_v23   ;;  %v10113_v43 = vpop.eup %7548  ;;  %7568 = vpow2.f32 %v10023_v33  ;;  %v894_v52 = vadd.f32 %v10108_v48, %v10099_v63  ;;  %v1274_v31 = vsub.f32 %v14386_v7, %v10095_v35  ;;  %v10126_v13 = vpop.permute.xlu1 %2676  ;;  %v809_v54 = vmul.f32 1.442695, %v783_v44 }
 0x2ec   :  { %14384 = vst [vmem:[#allocation100_spill] sm:$0xff] %v10113_v43  ;;  %v10120_v6 = vpop.eup %7550  ;;  %7570 = vpow2.f32 %v803_v58  ;;  %14388 = vst [vmem:[#allocation121_spill] sm:$0xff] %v10126_v13  ;;  %v1276_v43 = vsub.f32 %v14390_v24, %v10095_v35  ;;  %v10134_v58 = vpop.permute.xlu0 %2680  ;;  %v1770_v13 = vrot.slane %v1769_v60, 2  ;;  %v1292_v7 = vmul.f32 1.442695, %v1275_v53 }
 0x2ed   :  { %v10128_v33 = vpop.eup %7552  ;;  %7572 = vpow2.f32 %v10025_v10  ;;  %v895_v22 = vadd.f32 %v10120_v6, %v894_v52  ;;  %v14393_v52 = vld [vmem:[#allocation110_spill] sm:$0xff] }
 0x2ee   :  { %14389 = vst [vmem:[#allocation23_spill] sm:$0xff] %v10128_v33  ;;  %v10136_v38 = vpop.eup %7554  ;;  %7574 = vpow2.f32 %v805_v37  ;;  %v1277_v33 = vsub.f32 %v14393_v52, %v10095_v35  ;;  %v1290_v37 = vmul.f32 1.442695, %v1274_v31  ;;  %v1294_v56 = vmul.f32 1.442695, %v1276_v43 }
 0x2ef   :  { %7461 = vset.pattern.permute.xlu1 %v14286_v30  ;;  %v10143_v10 = vpop.eup %7556  ;;  %7576 = vpow2.f32 %v1540_v50  ;;  %v896_v24 = vadd.f32 %v10136_v38, %v895_v22  ;;  %v10153_v30 = vpop.permute.xlu1 %2684  ;;  %v14396_v22 = vld [vmem:[#allocation38_spill] sm:$0xff]  ;;  %v1771_v27 = vmax.f32 %v1769_v60, %v1770_v13  ;;  %v788_v13 = vsub.f32 %v9664_v1, %v9965_v21 }
 0x2f0   :  { %14392 = vst [vmem:[#allocation113_spill] sm:$0xff] %v10143_v10  ;;  %3221 = vperm.xlu1 %7461, %v14336_v2   ;;  %v10151_v23 = vpop.eup %7558  ;;  %7578 = vpow2.f32 %v807_v40  ;;  %14394 = vst [vmem:[#allocation49_spill] sm:$0xff] %v10153_v30  ;;  %v1278_v44 = vsub.f32 %v14396_v22, %v10095_v35  ;;  %v787_v2 = vsub.f32 %v9784_v51, %v9965_v21  ;;  %v813_v40 = vmul.f32 1.442695, %v785_v59 }
 0x2f1   :  { %v10155_v10 = vpop.eup %7560  ;;  %7580 = vpow2.f32 %v809_v54  ;;  %v897_v50 = vadd.f32 %v10151_v23, %v896_v24  ;;  %v14398_v54 = vld [vmem:[#allocation120_spill] sm:$0xff]  ;;  %v1296_v24 = vmul.f32 1.442695, %v1277_v33  ;;  %v14399_v60 = vsub.f32 %v9659_v55, %v9965_v21  ;;  %v14404_v21 = vld [vmem:[#allocation25_spill] sm:$0xff] }
 0x2f2   :  { %14395 = vst [vmem:[#allocation37_spill] sm:$0xff] %v10155_v10  ;;  %v10160_v52 = vpop.eup %7562  ;;  %7582 = vpow2.f32 %v1290_v37  ;;  %v1279_v30 = vsub.f32 %v14398_v54, %v10095_v35  ;;  %v10169_v10 = vpop.permute.xlu0 %2688  ;;  %v1298_v54 = vmul.f32 1.442695, %v1278_v44  ;;  %v14403_v1 = vsub.f32 %v14362_v41, %v10028_v12 }
 0x2f3   :  { %v10164_v31 = vpop.eup %7564  ;;  %v898_v53 = vadd.f32 %v10160_v52, %v897_v50  ;;  %7584 = vpow2.f32 %v1292_v7  ;;  %v815_v59 = vmul.f32 1.442695, %v14399_v60  ;;  %v10181_v37 = vpop.permute.xlu1 %2692  ;;  %v14402_v50 = vld [vmem:[#allocation52_spill] sm:$0xff]  ;;  %v817_v55 = vmul.f32 1.442695, %v787_v2  ;;  %v14408_v2 = vld [vmem:[#allocation39_spill] sm:$0xff] }
 0x2f4   :  { %14397 = vst [vmem:[#allocation51_spill] sm:$0xff] %v10164_v31  ;;  %3225 = vperm.xlu1 %7461, %v14373_v34   ;;  %v10172_v43 = vpop.eup %7566  ;;  %7586 = vpow2.f32 %v811_v17  ;;  %14400 = vst [vmem:[#allocation102_spill] sm:$0xff] %v10181_v37  ;;  %v1280_v22 = vsub.f32 %v14402_v50, %v10095_v35  ;;  %v10193_v17 = vmul.f32 1.442695, %v14403_v1  ;;  %v1281_v60 = vsub.f32 %v14404_v21, %v10095_v35  ;;  %v14407_v1 = vld [vmem:[#allocation61_spill] sm:$0xff]  ;;  %v14409_v21 = vld [vmem:[#allocation3_spill] sm:$0xff] }
 0x2f5   :  { %v10183_v33 = vpop.eup %7568  ;;  %v899_v7 = vadd.f32 %v10172_v43, %v898_v53  ;;  %7588 = vpow2.f32 %v1294_v56  ;;  %v1300_v50 = vmul.f32 1.442695, %v1279_v30  ;;  %v1772_v56 = vrot.slane %v1771_v27, 1 }
 0x2f6   :  { %14401 = vst [vmem:[#allocation106_spill] sm:$0xff] %v10183_v33  ;;  %v10188_v51 = vpop.eup %7570  ;;  %7590 = vpow2.f32 %v813_v40  ;;  %v14406_v44 = vmov 12   ;;  %v819_v41 = vmul.f32 1.442695, %v788_v13  ;;  %v1282_v40 = vsub.f32 %v14407_v1, %v10095_v35  ;;  %v10213_v31 = vpop.permute.xlu0 %2696 }
 0x2f7   :  { %v10197_v45 = vpop.eup %7572  ;;  %v900_v53 = vadd.f32 %v10188_v51, %v899_v7  ;;  %7592 = vpow2.f32 %v1296_v24  ;;  %v1283_v37 = vsub.f32 %v14408_v2, %v10095_v35  ;;  %v1302_v30 = vmul.f32 1.442695, %v1280_v22  ;;  %v10215_v13 = vpop.permute.xlu1 %2452 }
 0x2f8   :  { %14405 = vst [vmem:[#allocation16_spill] sm:$0xff] %v10197_v45  ;;  %7462 = vset.pattern.permute.xlu1 %v14406_v44  ;;  %v10201_v33 = vpop.eup %7574  ;;  %7594 = vpow2.f32 %v815_v59  ;;  %v6822_v7 = vpack.c.bf16 %v9749_v57, %v9737_v36  ;;  %14411 = vst [vmem:[#allocation38_spill] sm:$0xff] %v10215_v13  ;;  %v14412_v1 = vsub.f32 %v14363_v14, %v10028_v12  ;;  %v14414_v57 = vld [vmem:[#allocation53_spill] sm:$0xff]  ;;  %v1304_v13 = vmul.f32 1.442695, %v1281_v60 }
 0x2f9   :  { %3419 = vperm.xlu1 %7462, %v14409_v21   ;;  %v10208_v45 = vpop.eup %7576  ;;  %v901_v24 = vadd.f32 %v10201_v33, %v900_v53  ;;  %7596 = vpow2.f32 %v1298_v54  ;;  %v1284_v53 = vsub.f32 %v9730_v42, %v10095_v35  ;;  %v10226_v54 = vmax.f32 %v1771_v27, %v1772_v56 }
 0x2fa   :  { %14410 = vst [vmem:[#allocation110_spill] sm:$0xff] %v10208_v45  ;;  %v10217_v59 = vpop.eup %7578  ;;  %v10222_v2 = vmul.f32 1.442695, %v14412_v1  ;;  %7598 = vpow2.f32 %v817_v55  ;;  %v1285_v45 = vsub.f32 %v14414_v57, %v10095_v35  ;;  %6823 = vmatpush3.bf16.msra.mxu0 %v6822_v7  ;;  %v1306_v14 = vmul.f32 1.442695, %v1282_v40  ;;  %v14416_v55 = vld [vmem:[#allocation73_spill] sm:$0xff] }
 0x2fb   :  { %v10228_v22 = vpop.eup %7580  ;;  %v902_v36 = vadd.f32 %v10217_v59, %v901_v24  ;;  %7600 = vpow2.f32 %v1300_v50  ;;  %v10237_v1 = vmul.f32 %v9154_v61, %v14416_v55  ;;  %v10241_v42 = vmul.f32 %v9154_v61, %v9764_v16  ;;  %v10250_v40 = vpop.permute.xlu1 %2460  ;;  %v14423_v57 = vld [vmem:[#allocation108_spill] sm:$0xff] }
 0x2fc   :  { %14413 = vst [vmem:[#allocation120_spill] sm:$0xff] %v10228_v22  ;;  %v10233_v34 = vpop.eup %7582  ;;  %7602 = vpow2.f32 %v819_v41  ;;  %v14419_v27 = vmov 0.0|0.0   ;;  %v1286_v50 = vsub.f32 %v9805_v15, %v10095_v35  ;;  %v1308_v41 = vmul.f32 1.442695, %v1283_v37  ;;  %14421 = vst [vmem:[#allocation53_spill] sm:$0xff] %v10250_v40 }
 0x2fd   :  { %14415 = vst [vmem:[#allocation52_spill] sm:$0xff] %v10233_v34  ;;  %14417 = vst [vmem:[#allocation25_spill] sm:$0xff] %v10237_v1  ;;  %6824 = vmatprep.subr.bf16.mxu0 %v14419_v27  ;;  %3427 = vperm.xlu1 %7462, %v14236_v9   ;;  %v10245_v56 = vpop.eup %7584  ;;  %v903_v60 = vadd.f32 %v10228_v22, %v902_v36  ;;  %7604 = vpow2.f32 %v1302_v30  ;;  %v1310_v7 = vmul.f32 1.442695, %v1284_v53  ;;  %v1312_v37 = vmul.f32 1.442695, %v1285_v45  ;;  %v10265_v22 = vpop.permute.xlu0 %2700 }
 0x2fe   :  { %14418 = vst [vmem:[#allocation61_spill] sm:$0xff] %v10241_v42  ;;  %14420 = vst [vmem:[#allocation39_spill] sm:$0xff] %v10245_v56  ;;  %v10252_v24 = vpop.eup %7586  ;;  %v1394_v16 = vadd.f32 %v10245_v56, %v10233_v34  ;;  %v1774_v55 = vsub.f32 %v14423_v57, %v10226_v54  ;;  %v1775_v26 = vsub.f32 %v14424_v19, %v10226_v54  ;;  %7606 = vpow2.f32 %v1304_v13  ;;  %v14426_v30 = vld [vmem:[#allocation20_spill] sm:$0xff] }
 0x2ff   :  { %14422 = vst [vmem:[#allocation73_spill] sm:$0xff] %v10252_v24  ;;  %v10260_v36 = vpop.eup %7588  ;;  %v904_v15 = vadd.f32 %v10252_v24, %v903_v60  ;;  %v1776_v40 = vsub.f32 %v14426_v30, %v10226_v54  ;;  %14427 = vst [vmem:[#allocation107_spill] sm:$0xff] %v10265_v22  ;;  %v14429_v56 = vld [vmem:[#allocation60_spill] sm:$0xff]  ;;  %v1288_v57 = vsub.f32 %v9897_v18, %v10095_v35  ;;  %7608 = vpow2.f32 %v1306_v14  ;;  %v10280_v22 = vpop.permute.xlu1 %2464 }
 0x300   :  { %14425 = vst [vmem:[#allocation108_spill] sm:$0xff] %v10260_v36  ;;  %v10267_v53 = vpop.eup %7590  ;;  %v1287_v34 = vsub.f32 %v14429_v56, %v10095_v35  ;;  %v1395_v19 = vadd.f32 %v10260_v36, %v1394_v16  ;;  %7610 = vpow2.f32 %v1308_v41  ;;  %v1314_v60 = vmul.f32 1.442695, %v1286_v50  ;;  %v14432_v30 = vld [vmem:[#allocation112_spill] sm:$0xff] }
 0x301   :  { %14428 = vst [vmem:[#allocation20_spill] sm:$0xff] %v10267_v53  ;;  %3431 = vperm.xlu1 %7462, %v14430_v11   ;;  %v10275_v13 = vpop.eup %7592  ;;  %v905_v45 = vadd.f32 %v10267_v53, %v904_v15  ;;  %v1777_v24 = vsub.f32 %v14432_v30, %v10226_v54  ;;  %14433 = vst [vmem:[#allocation112_spill] sm:$0xff] %v10280_v22  ;;  %7612 = vpow2.f32 %v1310_v7  ;;  %v1790_v14 = vmul.f32 1.442695, %v1774_v55  ;;  %v14436_v41 = vld [vmem:[#allocation40_spill] sm:$0xff]  ;;  %v14438_v30 = vld [vmem:[#allocation62_spill] sm:$0xff] }
 0x302   :  { %14431 = vst [vmem:[#allocation60_spill] sm:$0xff] %v10275_v13  ;;  %v10282_v56 = vpop.eup %7594  ;;  %v1396_v18 = vadd.f32 %v10275_v13, %v1395_v19  ;;  %v1792_v16 = vmul.f32 1.442695, %v1775_v26  ;;  %7614 = vpow2.f32 %v1312_v37  ;;  %v1778_v50 = vsub.f32 %v14436_v41, %v10226_v54  ;;  %v14439_v55 = vld [vmem:[#allocation6_spill] sm:$0xff]  ;;  %v10301_v41 = vpop.permute.xlu0 %2712 }
 0x303   :  { %14434 = vst [vmem:[#allocation139_spill] sm:$0xff] %v10282_v56  ;;  %v10285_v36 = vpop.eup %7596  ;;  %v906_v62 = vadd.f32 %v10282_v56, %v905_v45  ;;  %v1794_v15 = vmul.f32 1.442695, %v1776_v40  ;;  %v1289_v22 = vsub.f32 %v14438_v30, %v10095_v35  ;;  %v1316_v8 = vmul.f32 1.442695, %v1287_v34  ;;  %v14441_v37 = vld [vmem:[#allocation14_spill] sm:$0xff] }
 0x304   :  { %14435 = vst [vmem:[#allocation140_spill] sm:$0xff] %v10285_v36  ;;  %v10290_v53 = vpop.eup %7598  ;;  %v1397_v7 = vadd.f32 %v10285_v36, %v1396_v18  ;;  %7616 = vpow2.f32 %v1790_v14  ;;  %v1779_v45 = vsub.f32 %v14441_v37, %v10226_v54  ;;  %v1796_v40 = vmul.f32 1.442695, %v1777_v24  ;;  %14442 = vst [vmem:[#allocation14_spill] sm:$0xff] %v10301_v41  ;;  %v14444_v34 = vld [vmem:[#allocation133_spill] sm:$0xff]  ;;  %v14445_v18 = vld [vmem:[#allocation84_spill] sm:$0xff]  ;;  %v10316_v37 = vpop.permute.xlu1 %2704 }
 0x305   :  { %14437 = vst [vmem:[#allocation40_spill] sm:$0xff] %v10290_v53  ;;  %3439 = vperm.xlu1 %7462, %v14439_v55   ;;  %v10296_v26 = vpop.eup %7600  ;;  %v907_v19 = vadd.f32 %v10290_v53, %v906_v62  ;;  %7618 = vpow2.f32 %v1792_v16  ;;  %v14446_v14 = vmax.f32 %v14444_v34, %v14445_v18  ;;  %v14447_v36 = vld [vmem:[#allocation131_spill] sm:$0xff]  ;;  %v14448_v62 = vld [vmem:[#allocation93_spill] sm:$0xff]  ;;  %v1318_v18 = vmul.f32 1.442695, %v1288_v57  ;;  %v14458_v57 = vld [vmem:[#allocation136_spill] sm:$0xff] }
 0x306   :  { %14440 = vst [vmem:[#allocation62_spill] sm:$0xff] %v10296_v26  ;;  %v10303_v13 = vpop.eup %7602  ;;  %7620 = vpow2.f32 %v1314_v60  ;;  %v1398_v35 = vadd.f32 %v10296_v26, %v1397_v7  ;;  %v10314_v53 = vmul.f32 %v14448_v62, %v14447_v36  ;;  %14450 = vst [vmem:[#allocation131_spill] sm:$0xff] %v10316_v37  ;;  %v14453_v60 = vld [vmem:[#allocation54_spill] sm:$0xff]  ;;  %v1798_v26 = vmul.f32 1.442695, %v1778_v50  ;;  %v14456_v37 = vld [vmem:[#allocation27_spill] sm:$0xff] }
 0x307   :  { %14443 = vst [vmem:[#allocation141_spill] sm:$0xff] %v10303_v13  ;;  %v10310_v30 = vmax.f32 %v10237_v1, %v14446_v14  ;;  %v10318_v24 = vpop.eup %7604  ;;  %v10321_v16 = vadd.f32 %v10303_v13, %v907_v19  ;;  %v1780_v7 = vsub.f32 %v14453_v60, %v10226_v54  ;;  %7622 = vpow2.f32 %v1794_v15  ;;  %v14454_v1 = vld [vmem:[#allocation8_spill] sm:$0xff]  ;;  %v14460_v15 = vld [vmem:[#allocation126_spill] sm:$0xff] }
 0x308   :  { %14449 = vst [vmem:[#allocation84_spill] sm:$0xff] %v10314_v53  ;;  %14451 = vst [vmem:[#allocation93_spill] sm:$0xff] %v10318_v24  ;;  %7624 = vpow2.f32 %v1316_v8  ;;  %v1320_v14 = vmul.f32 1.442695, %v1289_v22  ;;  %v1399_v34 = vadd.f32 %v10318_v24, %v1398_v35  ;;  %v10327_v36 = vpop.eup %7606  ;;  %v1781_v56 = vsub.f32 %v14456_v37, %v10226_v54  ;;  %v14459_v50 = vld [vmem:[#allocation124_spill] sm:$0xff]  ;;  %v14461_v24 = vld [vmem:[#allocation138_spill] sm:$0xff]  ;;  %v10344_v37 = vpop.permute.xlu1 %2708 }
 0x309   :  { %14452 = vst [vmem:[#allocation142_spill] sm:$0xff] %v10321_v16  ;;  %3447 = vperm.xlu1 %7462, %v14454_v1   ;;  %14455 = vst [vmem:[#allocation54_spill] sm:$0xff] %v10327_v36  ;;  %7626 = vpow2.f32 %v1796_v40  ;;  %v1800_v19 = vmul.f32 1.442695, %v1779_v45  ;;  %v2263_v16 = vmax.f32 %v10241_v42, %v10310_v30  ;;  %v10333_v60 = vpop.eup %7608  ;;  %v2014_v22 = vmax.f32 %v10314_v53, %v14458_v57  ;;  %v14464_v40 = vld [vmem:[#allocation63_spill] sm:$0xff]  ;;  %v14465_v42 = vld [vmem:[#allocation41_spill] sm:$0xff]  ;;  %v10352_v57 = vpop.permute.xlu0 %2716 }
 0x30a   :  { %14457 = vst [vmem:[#allocation27_spill] sm:$0xff] %v10333_v60  ;;  %v1400_v8 = vadd.f32 %v10327_v36, %v1399_v34  ;;  %v6825_v35 = vpack.c.bf16 %v14460_v15, %v14459_v50  ;;  %v10342_v13 = vmul.f32 %v14448_v62, %v14461_v24  ;;  %14462 = vst [vmem:[#allocation136_spill] sm:$0xff] %v10344_v37  ;;  %v10346_v45 = vpop.eup %7610  ;;  %7628 = vpow2.f32 %v1798_v26  ;;  %v14468_v15 = vld [vmem:[#allocation87_spill] sm:$0xff] }
 0x30b   :  { %14463 = vst [vmem:[#allocation124_spill] sm:$0xff] %v10346_v45  ;;  %v1782_v30 = vsub.f32 %v14464_v40, %v10226_v54  ;;  %v1783_v34 = vsub.f32 %v14465_v42, %v10226_v54  ;;  %v1802_v36 = vmul.f32 1.442695, %v1780_v7  ;;  %14466 = vst [vmem:[#allocation126_spill] sm:$0xff] %v10352_v57  ;;  %v10354_v53 = vpop.eup %7612  ;;  %7630 = vpow2.f32 %v1318_v18  ;;  %v14470_v42 = vld [vmem:[#allocation79_spill] sm:$0xff]  ;;  %v14471_v7 = vld [vmem:[#allocation48_spill] sm:$0xff] }
 0x30c   :  { %14467 = vst [vmem:[#allocation138_spill] sm:$0xff] %v10354_v53  ;;  %v1401_v24 = vadd.f32 %v10333_v60, %v1400_v8  ;;  %6826 = vmatpush3.bf16.msra.mxu0 %v6825_v35  ;;  %v2016_v50 = vmax.f32 %v10342_v13, %v2014_v22  ;;  %v10360_v37 = vmul.f32 %v14448_v62, %v14468_v15  ;;  %v14469_v40 = vmov 13   ;;  %v10363_v41 = vpop.eup %7614  ;;  %v14472_v8 = vld [vmem:[#allocation2_spill] sm:$0xff] }
 0x30d   :  { %7464 = vset.pattern.permute.xlu1 %v14469_v40  ;;  %v1784_v26 = vsub.f32 %v14470_v42, %v10226_v54  ;;  %v1785_v57 = vsub.f32 %v14471_v7, %v10226_v54  ;;  %7632 = vpow2.f32 %v1800_v19  ;;  %v1804_v18 = vmul.f32 1.442695, %v1781_v56  ;;  %6827 = vmatprep.subr.bf16.mxu0 %v14419_v27  ;;  %v14475_v19 = vld [vmem:[#allocation98_spill] sm:$0xff] }
 0x30e   :  { %3673 = vperm.xlu1 %7464, %v14472_v8   ;;  %v10371_v22 = vpop.eup %7616  ;;  %7634 = vpow2.f32 %v1320_v14  ;;  %v1402_v62 = vadd.f32 %v10346_v45, %v1401_v24  ;;  %v6828_v35 = vpack.c.bf16 %v9963_v3, %v9957_v49  ;;  %v2017_v15 = vmax.f32 %v10360_v37, %v2016_v50  ;;  %v10385_v8 = vpop.permute.xlu1 %2468  ;;  %v14476_v49 = vld [vmem:[#allocation132_spill] sm:$0xff] }
 0x30f   :  { %14473 = vst [vmem:[#allocation63_spill] sm:$0xff] %v10371_v22  ;;  %v10377_v42 = vpop.eup %7618  ;;  %7636 = vpow2.f32 %v1802_v36  ;;  %v1806_v7 = vmul.f32 1.442695, %v1782_v30  ;;  %v10381_v56 = vmul.f32 %v9154_v61, %v14475_v19  ;;  %v6846_v60 = vpack.c.bf16 %v10108_v48, %v10099_v63  ;;  %v14478_v19 = vld [vmem:[#allocation65_spill] sm:$0xff] }
 0x310   :  { %14474 = vst [vmem:[#allocation41_spill] sm:$0xff] %v10377_v42  ;;  %v10387_v14 = vpop.eup %7620  ;;  %v1403_v24 = vadd.f32 %v10354_v53, %v1402_v62  ;;  %v1786_v3 = vsub.f32 %v14476_v49, %v10226_v54  ;;  %v1894_v36 = vadd.f32 %v10377_v42, %v10371_v22  ;;  %6829 = vmatpush3.bf16.msra.mxu0 %v6828_v35  ;;  %v2018_v30 = vrot.slane %v2017_v15, 4  ;;  %v10401_v62 = vpop.permute.xlu0 %2728 }
 0x311   :  { %v10394_v50 = vpop.eup %7622  ;;  %v1787_v45 = vsub.f32 %v14478_v19, %v10226_v54  ;;  %7638 = vpow2.f32 %v1804_v18  ;;  %v1808_v63 = vmul.f32 1.442695, %v1783_v34  ;;  %6830 = vmatprep.subr.bf16.mxu0 %v14419_v27  ;;  %v6831_v48 = vpack.c.bf16 %v9974_v39, %v9968_v4  ;;  %6847 = vmatpush3.bf16.msra.mxu1 %v6846_v60  ;;  %v14480_v39 = vld [vmem:[#allocation118_spill] sm:$0xff] }
 0x312   :  { %14477 = vst [vmem:[#allocation87_spill] sm:$0xff] %v10394_v50  ;;  %v10403_v49 = vpop.eup %7624  ;;  %v1404_v35 = vadd.f32 %v10363_v41, %v1403_v24  ;;  %v1810_v42 = vmul.f32 1.442695, %v1784_v26  ;;  %v1895_v22 = vadd.f32 %v10394_v50, %v1894_v36  ;;  %v2019_v53 = vmax.f32 %v2017_v15, %v2018_v30  ;;  %6848 = vmatprep.subr.bf16.mxu1 %v14419_v27  ;;  %v10418_v26 = vpop.permute.xlu1 %2476  ;;  %v14536_v50 = vld [vmem:[#allocation14_spill] sm:$0xff] }
 0x313   :  { %3677 = vperm.xlu1 %7464, %v14236_v9   ;;  %v10409_v34 = vpop.eup %7626  ;;  %7640 = vpow2.f32 %v1806_v7  ;;  %v2266_v4 = vmax.f32 %v2263_v16, %v10381_v56  ;;  %v10414_v60 = vmul.f32 %v9154_v61, %v14480_v39  ;;  %v6849_v18 = vpack.c.bf16 %v10136_v38, %v10120_v6 }
 0x314   :  { %14479 = vst [vmem:[#allocation79_spill] sm:$0xff] %v10409_v34  ;;  %v1405_v15 = vadd.f32 %v10387_v14, %v1404_v35  ;;  %v1788_v24 = vsub.f32 %v10014_v5, %v10226_v54  ;;  %v1896_v36 = vadd.f32 %v10409_v34, %v1895_v22  ;;  %v2020_v30 = vrot.slane %v2019_v53, 2  ;;  %6832 = vmatpush3.bf16.msra.mxu0 %v6831_v48  ;;  %v10424_v7 = vpop.eup %7628 }
 0x315   :  { %14481 = vst [vmem:[#allocation48_spill] sm:$0xff] %v10424_v7  ;;  %7642 = vpow2.f32 %v1808_v63  ;;  %v1812_v16 = vmul.f32 1.442695, %v1785_v57  ;;  %6833 = vmatprep.subr.bf16.mxu0 %v14419_v27  ;;  %v2267_v61 = vmax.f32 %v10414_v60, %v2266_v4  ;;  %6850 = vmatpush3.bf16.msra.mxu1 %v6849_v18  ;;  %v10428_v6 = vpop.eup %7630  ;;  %v6834_v22 = vpack.c.bf16 %v9982_v0, %v9978_v32  ;;  %v10439_v4 = vpop.permute.xlu0 %2923  ;;  %v14483_v18 = vld [vmem:[#allocation7_spill] sm:$0xff] }
 0x316   :  { %v1406_v38 = vadd.f32 %v10403_v49, %v1405_v15  ;;  %v1897_v19 = vadd.f32 %v10424_v7, %v1896_v36  ;;  %v2021_v5 = vmax.f32 %v2019_v53, %v2020_v30  ;;  %6851 = vmatprep.subr.bf16.mxu1 %v14419_v27  ;;  %7644 = vpow2.f32 %v1810_v42  ;;  %v10443_v53 = vpop.permute.xlu1 %2480 }
 0x317   :  { %v10435_v48 = vpop.eup %7632  ;;  %v1814_v57 = vmul.f32 1.442695, %v1786_v3  ;;  %v2268_v63 = vrot.slane %v2267_v61, 4  ;;  %v6852_v35 = vpack.c.bf16 %v10160_v52, %v10151_v23  ;;  %v13804_v39 = vmov 15   ;;  %3685 = vperm.xlu1 %7464, %v14483_v18   ;;  %v14485_v52 = vld [vmem:[#allocation71_spill] sm:$0xff] }
 0x318   :  { %14482 = vst [vmem:[#allocation98_spill] sm:$0xff] %v10435_v48  ;;  %7476 = vset.pattern.permute.xlu0 %v13804_v39  ;;  %v10445_v15 = vpop.eup %7634  ;;  %7646 = vpow2.f32 %v10193_v17  ;;  %v1407_v42 = vadd.f32 %v10428_v6, %v1406_v38  ;;  %v1898_v3 = vadd.f32 %v10435_v48, %v1897_v19  ;;  %v2022_v36 = vrot.slane %v2021_v5, 1  ;;  %6835 = vmatpush3.bf16.msra.mxu0 %v6834_v22  ;;  %v14486_v39 = vld [vmem:[#allocation74_spill] sm:$0xff] }
 0x319   :  { %4169 = vperm.xlu0 %7476, %v14409_v21   ;;  %v10451_v23 = vpop.eup %7636  ;;  %v1789_v7 = vsub.f32 %v14486_v39, %v10226_v54  ;;  %7648 = vpow2.f32 %v1812_v16  ;;  %v1816_v9 = vmul.f32 1.442695, %v1787_v45  ;;  %6836 = vmatprep.subr.bf16.mxu0 %v14419_v27  ;;  %v6837_v22 = vpack.c.bf16 %v9994_v28, %v9988_v25  ;;  %v14490_v39 = vld [vmem:[#allocation9_spill] sm:$0xff] }
 0x31a   :  { %14484 = vst [vmem:[#allocation132_spill] sm:$0xff] %v10451_v23  ;;  %6853 = vmatpush3.bf16.msra.mxu1 %v6852_v35  ;;  %v10459_v17 = vadd.f32 %v10445_v15, %v1407_v42  ;;  %v1899_v38 = vadd.f32 %v10451_v23, %v1898_v3  ;;  %v10462_v19 = vmax.f32 %v2021_v5, %v2022_v36  ;;  %7650 = vpow2.f32 %v1814_v57  ;;  %v14491_v42 = vld [vmem:[#allocation104_spill] sm:$0xff] }
 0x31b   :  { %6854 = vmatprep.subr.bf16.mxu1 %v14419_v27  ;;  %v10467_v30 = vpop.eup %7638  ;;  %v14489_v54 = vsub.f32 %v14369_v20, %v10028_v12  ;;  %v1818_v16 = vmul.f32 1.442695, %v1788_v24  ;;  %v2269_v35 = vmax.f32 %v2267_v61, %v2268_v63  ;;  %3693 = vperm.xlu1 %7464, %v14490_v39   ;;  %7652 = vpow2.f32 %v10222_v2  ;;  %v14493_v61 = vld [vmem:[#allocation103_spill] sm:$0xff]  ;;  %v14494_v2 = vld [vmem:[#allocation22_spill] sm:$0xff] }
 0x31c   :  { %14487 = vst [vmem:[#allocation65_spill] sm:$0xff] %v10459_v17  ;;  %14488 = vst [vmem:[#allocation118_spill] sm:$0xff] %v10467_v30  ;;  %v1900_v5 = vadd.f32 %v10467_v30, %v1899_v38  ;;  %v2024_v3 = vsub.f32 %v14491_v42, %v10462_v19  ;;  %6838 = vmatpush3.bf16.msra.mxu0 %v6837_v22  ;;  %v6855_v36 = vpack.c.bf16 %v10188_v51, %v10172_v43  ;;  %v10479_v17 = vpop.permute.xlu1 %2720  ;;  %v10488_v38 = vpop.permute.xlu0 %2935  ;;  %v14495_v43 = vld [vmem:[#allocation64_spill] sm:$0xff] }
 0x31d   :  { %v1546_v45 = vmul.f32 1.442695, %v14489_v54  ;;  %v10481_v20 = vpop.eup %7640  ;;  %7654 = vpow2.f32 %v1816_v9  ;;  %v1820_v24 = vmul.f32 1.442695, %v1789_v7  ;;  %v2025_v57 = vsub.f32 %v14493_v61, %v10462_v19  ;;  %6839 = vmatprep.subr.bf16.mxu0 %v14419_v27  ;;  %v14498_v7 = vld [vmem:[#allocation111_spill] sm:$0xff]  ;;  %4181 = vperm.xlu0 %7476, %v14430_v11   ;;  %v14563_v11 = vld [vmem:[#allocation84_spill] sm:$0xff] }
 0x31e   :  { %14492 = vst [vmem:[#allocation71_spill] sm:$0xff] %v10481_v20  ;;  %v2026_v63 = vsub.f32 %v14494_v2, %v10462_v19  ;;  %v1901_v22 = vadd.f32 %v10481_v20, %v1900_v5  ;;  %v10493_v51 = vmul.f32 %v14495_v43, %v10089_v29  ;;  %v10497_v9 = vmul.f32 %v14495_v43, %v10213_v31  ;;  %v14501_v5 = vld [vmem:[#allocation114_spill] sm:$0xff] }
 0x31f   :  { %v6840_v54 = vpack.c.bf16 %v14498_v7, %v10003_v47  ;;  %6856 = vmatpush3.bf16.msra.mxu1 %v6855_v36  ;;  %v10501_v42 = vpop.eup %7642  ;;  %7656 = vpow2.f32 %v1818_v16  ;;  %v10505_v61 = vmul.f32 %v14495_v43, %v10134_v58  ;;  %v2027_v2 = vsub.f32 %v14501_v5, %v10462_v19  ;;  %v14504_v5 = vld [vmem:[#allocation21_spill] sm:$0xff]  ;;  %7465 = vset.pattern.permute.xlu1 %v14406_v44 }
 0x320   :  { %14496 = vst [vmem:[#allocation74_spill] sm:$0xff] %v10493_v51  ;;  %14497 = vst [vmem:[#allocation104_spill] sm:$0xff] %v10497_v9  ;;  %v2270_v29 = vrot.slane %v2269_v35, 2  ;;  %6857 = vmatprep.subr.bf16.mxu1 %v14419_v27  ;;  %v1902_v31 = vadd.f32 %v10501_v42, %v1901_v22  ;;  %v10513_v28 = vmul.f32 %v14495_v43, %v10169_v10  ;;  %v2040_v36 = vmul.f32 1.442695, %v2024_v3  ;;  %v10518_v16 = vpop.permute.xlu1 %2724  ;;  %v10520_v7 = vpop.eup %7644 }
 0x321   :  { %14499 = vst [vmem:[#allocation103_spill] sm:$0xff] %v10501_v42  ;;  %14500 = vst [vmem:[#allocation22_spill] sm:$0xff] %v10505_v61  ;;  %6841 = vmatpush3.bf16.msra.mxu0 %v6840_v54  ;;  %v6858_v58 = vpack.c.bf16 %v10217_v59, %v10201_v33  ;;  %7658 = vpow2.f32 %v1820_v24  ;;  %v2028_v47 = vsub.f32 %v14504_v5, %v10462_v19  ;;  %v2042_v22 = vmul.f32 1.442695, %v2025_v57  ;;  %v14506_v59 = vld [vmem:[#allocation28_spill] sm:$0xff]  ;;  %v14507_v54 = vld [vmem:[#allocation11_spill] sm:$0xff]  ;;  %v10538_v23 = vpop.permute.xlu0 %2943 }
 0x322   :  { %14502 = vst [vmem:[#allocation64_spill] sm:$0xff] %v10513_v28  ;;  %14503 = vst [vmem:[#allocation114_spill] sm:$0xff] %v10520_v7  ;;  %v2044_v42 = vmul.f32 1.442695, %v2026_v63  ;;  %6842 = vmatprep.subr.bf16.mxu0 %v14419_v27  ;;  %v10526_v10 = vpop.eup %7646  ;;  %v1903_v3 = vadd.f32 %v10520_v7, %v1902_v31  ;;  %v2754_v33 = vmax.f32 %v10505_v61, %v10497_v9  ;;  %7660 = vpow2.f32 %v2040_v36  ;;  %v14509_v63 = vld [vmem:[#allocation32_spill] sm:$0xff]  ;;  %v14510_v31 = vld [vmem:[#allocation18_spill] sm:$0xff] }
 0x323   :  { %14505 = vst [vmem:[#allocation21_spill] sm:$0xff] %v10526_v10  ;;  %v6843_v24 = vpack.c.bf16 %v14506_v59, %v10017_v46  ;;  %6859 = vmatpush3.bf16.msra.mxu1 %v6858_v58  ;;  %3451 = vperm.xlu1 %7465, %v14507_v54   ;;  %v10534_v57 = vpop.eup %7648  ;;  %v2029_v5 = vsub.f32 %v14509_v63, %v10462_v19  ;;  %7662 = vpow2.f32 %v2042_v22  ;;  %v2046_v20 = vmul.f32 1.442695, %v2027_v2 }
 0x324   :  { %14508 = vst [vmem:[#allocation143_spill] sm:$0xff] %v10534_v57  ;;  %v2271_v30 = vmax.f32 %v2269_v35, %v2270_v29  ;;  %6860 = vmatprep.subr.bf16.mxu1 %v14419_v27  ;;  %7664 = vpow2.f32 %v1546_v45  ;;  %v14511_v36 = vsub.f32 %v14510_v31, %v10028_v12  ;;  %v1904_v58 = vadd.f32 %v10534_v57, %v1903_v3  ;;  %v10548_v22 = vpop.eup %7650  ;;  %v14513_v35 = vld [vmem:[#allocation29_spill] sm:$0xff]  ;;  %v14515_v45 = vld [vmem:[#allocation35_spill] sm:$0xff]  ;;  %v10556_v3 = vpop.permute.xlu1 %2919 }
 0x325   :  { %v2758_v46 = vmax.f32 %v10513_v28, %v10493_v51  ;;  %6844 = vmatpush3.bf16.msra.mxu0 %v6843_v24  ;;  %4189 = vperm.xlu0 %7476, %v14439_v55   ;;  %14512 = vst [vmem:[#allocation32_spill] sm:$0xff] %v10548_v22  ;;  %v14514_v2 = vsub.f32 %v14513_v35, %v10028_v12  ;;  %7666 = vpow2.f32 %v2044_v42  ;;  %v2048_v31 = vmul.f32 1.442695, %v2028_v47  ;;  %v14518_v28 = vld [vmem:[#allocation107_spill] sm:$0xff]  ;;  %v14520_v35 = vld [vmem:[#allocation46_spill] sm:$0xff]  ;;  %v14521_v51 = vld [vmem:[#allocation13_spill] sm:$0xff]  ;;  %v10593_v34 = vpop.permute.xlu0 %2955 }
 0x326   :  { %v1548_v59 = vmul.f32 1.442695, %v14511_v36  ;;  %v2030_v63 = vsub.f32 %v14515_v45, %v10462_v19  ;;  %6869 = vmatprep.subr.bf16.mxu0 %v14419_v27  ;;  %14516 = vst [vmem:[#allocation18_spill] sm:$0xff] %v10556_v3  ;;  %v10558_v36 = vpop.eup %7652  ;;  %v1905_v24 = vadd.f32 %v10548_v22, %v1904_v58  ;;  %v10563_v61 = vmul.f32 %v14495_v43, %v14518_v28  ;;  %v10573_v3 = vld [vmem:[%s13533_s0] sm:$0xff]  ;;  %v14525_v28 = vld [vmem:[#allocation45_spill] sm:$0xff] }
 0x327   :  { %v1550_v29 = vmul.f32 1.442695, %v14514_v2  ;;  %14517 = vst [vmem:[#allocation29_spill] sm:$0xff] %v10558_v36  ;;  %v2762_v9 = vmax.f32 %v2758_v46, %v2754_v33  ;;  %v2031_v2 = vsub.f32 %v14520_v35, %v10462_v19  ;;  %3459 = vperm.xlu1 %7465, %v14521_v51   ;;  %v10568_v42 = vpop.eup %7654  ;;  %7668 = vpow2.f32 %v2046_v20  ;;  %14523 = vst [vmem:[#allocation46_spill] sm:$0xff] %v10573_v3  ;;  %v14524_v46 = vld [vmem:[#allocation43_spill] sm:$0xff]  ;;  %v14526_v58 = vld [vmem:[#allocation33_spill] sm:$0xff] }
 0x328   :  { %14519 = vst [vmem:[#allocation35_spill] sm:$0xff] %v10563_v61  ;;  %14522 = vst [vmem:[#allocation107_spill] sm:$0xff] %v10568_v42  ;;  %v2050_v47 = vmul.f32 1.442695, %v2029_v5  ;;  %v2272_v45 = vrot.slane %v2271_v30, 1  ;;  %6091 = vmatmul.mubr.f32.vlgmr.msra.gmra.mrb[16].mxu0 %v10573_v3  ;;  %v6870_v33 = vpack.c.bf16 %v14525_v28, %v14524_v46  ;;  %7670 = vpow2.f32 %v1548_v59  ;;  %v14528_v20 = vld [vmem:[#allocation83_spill] sm:$0xff] }
 0x329   :  { %v14527_v35 = vsub.f32 %v14526_v58, %v10028_v12  ;;  %v1906_v57 = vadd.f32 %v10568_v42, %v1905_v24  ;;  %v2032_v5 = vsub.f32 %v14528_v20, %v10462_v19  ;;  %4197 = vperm.xlu0 %7476, %v14454_v1   ;;  %v14529_v7 = vmov 0.0   ;;  %v10587_v48 = vpop.eup %7656  ;;  %v14531_v59 = vld [vmem:[#allocation120_spill] sm:$0xff]  ;;  %v14532_v58 = vld [vmem:[#allocation73_spill] sm:$0xff]  ;;  %14533 = vst [vmem:[#allocation83_spill] sm:$0xff] %v10593_v34  ;;  %v10595_v24 = vpop.permute.xlu1 %2927  ;;  %v14535_v42 = vld [vmem:[#allocation42_spill] sm:$0xff] }
 0x32a   :  { %6160 = vmatprep.mubr.msk.f32.mxu0 %vm8201_vm0, %v14529_v7  ;;  %14530 = vst [vmem:[#allocation33_spill] sm:$0xff] %v10587_v48  ;;  %7672 = vpow2.f32 %v2048_v31  ;;  %v2052_v25 = vmul.f32 1.442695, %v2030_v63  ;;  %v10589_v55 = vmax.f32 %v2271_v30, %v2272_v45  ;;  %6871 = vmatpush3.bf16.msra.mxu0 %v6870_v33  ;;  %14534 = vst [vmem:[#allocation120_spill] sm:$0xff] %v10595_v24  ;;  %v14538_v30 = vld [vmem:[#allocation12_spill] sm:$0xff]  ;;  %v14545_v24 = vld [vmem:[#allocation126_spill] sm:$0xff] }
 0x32b   :  { %v1552_v22 = vmul.f32 1.442695, %v14527_v35  ;;  %v6861_v35 = vpack.c.bf16 %v14532_v58, %v14531_v59  ;;  %7674 = vpow2.f32 %v1550_v29  ;;  %v1907_v20 = vadd.f32 %v10587_v48, %v1906_v57  ;;  %6872 = vmatprep.subr.bf16.mxu0 %v14419_v27  ;;  %3463 = vperm.xlu1 %7465, %v14538_v30   ;;  %v10606_v63 = vpop.eup %7658  ;;  %v14540_v29 = vld [vmem:[#allocation56_spill] sm:$0xff]  ;;  %v14541_v57 = vld [vmem:[#allocation67_spill] sm:$0xff] }
 0x32c   :  { %v2033_v1 = vsub.f32 %v14535_v42, %v10462_v19  ;;  %v10602_v31 = vmul.f32 %v14495_v43, %v14536_v50  ;;  %14539 = vst [vmem:[#allocation42_spill] sm:$0xff] %v10606_v63  ;;  %v2752_v45 = vmax.f32 %v10563_v61, %v2762_v9  ;;  %7676 = vpow2.f32 %v2050_v47  ;;  %v10611_v58 = vpop.eup %7660  ;;  %v14544_v42 = vld [vmem:[#allocation81_spill] sm:$0xff] }
 0x32d   :  { %v2054_v33 = vmul.f32 1.442695, %v2031_v2  ;;  %6862 = vmatpush3.bf16.msra.mxu1 %v6861_v35  ;;  %v6873_v59 = vpack.c.bf16 %v14541_v57, %v14540_v29  ;;  %14542 = vst [vmem:[#allocation14_spill] sm:$0xff] %v10611_v58  ;;  %7678 = vpow2.f32 %v1552_v22  ;;  %v10614_v50 = vadd.f32 %v10606_v63, %v1907_v20  ;;  %4201 = vperm.xlu0 %7476, %v14507_v54   ;;  %v10624_v9 = vpop.eup %7662  ;;  %v14548_v22 = vld [vmem:[#allocation119_spill] sm:$0xff]  ;;  %v14549_v35 = vld [vmem:[#allocation72_spill] sm:$0xff]  ;;  %v14558_v63 = vld [vmem:[#allocation105_spill] sm:$0xff] }
 0x32e   :  { %14537 = vst [vmem:[#allocation73_spill] sm:$0xff] %v10602_v31  ;;  %v2034_v48 = vsub.f32 %v14544_v42, %v10462_v19  ;;  %v10620_v34 = vmul.f32 %v14495_v43, %v14545_v24  ;;  %6863 = vmatprep.subr.bf16.mxu1 %v14419_v27  ;;  %14547 = vst [vmem:[#allocation126_spill] sm:$0xff] %v10624_v9  ;;  %7680 = vpow2.f32 %v2052_v25  ;;  %v2056_v2 = vmul.f32 1.442695, %v2032_v5  ;;  %v10630_v42 = vpop.permute.xlu1 %2931  ;;  %v14552_v25 = vld [vmem:[#allocation24_spill] sm:$0xff] }
 0x32f   :  { %14543 = vst [vmem:[#allocation144_spill] sm:$0xff] %v10614_v50  ;;  %v2274_v47 = vsub.f32 %v14548_v22, %v10589_v55  ;;  %v2275_v20 = vsub.f32 %v14549_v35, %v10589_v55  ;;  %6874 = vmatpush3.bf16.msra.mxu0 %v6873_v59  ;;  %14550 = vst [vmem:[#allocation119_spill] sm:$0xff] %v10630_v42  ;;  %v10632_v50 = vpop.eup %7664  ;;  %v2058_v24 = vmul.f32 1.442695, %v2033_v1  ;;  %7466 = vset.pattern.permute.xlu1 %v14469_v40  ;;  %v14554_v59 = vld [vmem:[#allocation44_spill] sm:$0xff]  ;;  %v14556_v1 = vld [vmem:[#allocation57_spill] sm:$0xff] }
 0x330   :  { %14546 = vst [vmem:[#allocation81_spill] sm:$0xff] %v10620_v34  ;;  %14551 = vst [vmem:[#allocation72_spill] sm:$0xff] %v10632_v50  ;;  %v2144_v57 = vadd.f32 %v10624_v9, %v10611_v58  ;;  %v10637_v29 = vmax.f32 %v10602_v31, %v2752_v45  ;;  %v2276_v5 = vsub.f32 %v14552_v25, %v10589_v55  ;;  %6875 = vmatprep.subr.bf16.mxu0 %v14419_v27  ;;  %v10643_v22 = vpop.eup %7666  ;;  %v14557_v42 = vld [vmem:[#allocation117_spill] sm:$0xff]  ;;  %v14560_v31 = vld [vmem:[#allocation58_spill] sm:$0xff]  ;;  %v10658_v9 = vpop.permute.xlu0 %2971 }
 0x331   :  { %14553 = vst [vmem:[#allocation24_spill] sm:$0xff] %v10643_v22  ;;  %v14555_v35 = vsub.f32 %v14554_v59, %v10028_v12  ;;  %v14559_v54 = vmax.f32 %v14557_v42, %v14558_v63  ;;  %v2035_v25 = vsub.f32 %v14560_v31, %v10462_v19  ;;  %7682 = vpow2.f32 %v2054_v33  ;;  %14561 = vst [vmem:[#allocation44_spill] sm:$0xff] %v10658_v9  ;;  %v14562_v58 = vld [vmem:[#allocation10_spill] sm:$0xff]  ;;  %v14564_v63 = vld [vmem:[#allocation116_spill] sm:$0xff] }
 0x332   :  { %3705 = vperm.xlu1 %7466, %v14562_v58   ;;  %v2036_v28 = vsub.f32 %v14563_v11, %v10462_v19  ;;  %v2145_v59 = vadd.f32 %v10643_v22, %v2144_v57  ;;  %4213 = vperm.xlu0 %7476, %v14538_v30   ;;  %7684 = vpow2.f32 %v2056_v2  ;;  %v2060_v31 = vmul.f32 1.442695, %v2034_v48  ;;  %v10671_v9 = vpop.permute.xlu1 %2939  ;;  %v14570_v30 = vld [vmem:[#allocation130_spill] sm:$0xff] }
 0x333   :  { %v10648_v61 = vmul.f32 1.442695, %v14555_v35  ;;  %v10654_v45 = vmax.f32 %v14559_v54, %v14556_v1  ;;  %v2755_v35 = vmax.f32 %v10637_v29, %v10620_v34  ;;  %v2277_v54 = vsub.f32 %v14564_v63, %v10589_v55  ;;  %v10669_v1 = vpop.eup %7668  ;;  %14566 = vst [vmem:[#allocation58_spill] sm:$0xff] %v10671_v9  ;;  %v14568_v29 = vld [vmem:[#allocation66_spill] sm:$0xff] }
 0x334   :  { %14565 = vst [vmem:[#allocation105_spill] sm:$0xff] %v10669_v1  ;;  %v2290_v33 = vmul.f32 1.442695, %v2274_v47  ;;  %v2292_v42 = vmul.f32 1.442695, %v2275_v20  ;;  %v10673_v46 = vpop.eup %7670  ;;  %7686 = vpow2.f32 %v2058_v24  ;;  %v2146_v11 = vadd.f32 %v10669_v1, %v2145_v59  ;;  %v14571_v48 = vld [vmem:[#allocation34_spill] sm:$0xff] }
 0x335   :  { %14567 = vst [vmem:[#allocation84_spill] sm:$0xff] %v10673_v46  ;;  %v2278_v57 = vsub.f32 %v14568_v29, %v10589_v55  ;;  %v2294_v34 = vmul.f32 1.442695, %v2276_v5  ;;  %v10678_v63 = vpop.eup %7672  ;;  %v2037_v22 = vsub.f32 %v14570_v30, %v10462_v19  ;;  %v2062_v2 = vmul.f32 1.442695, %v2035_v25  ;;  %v14574_v29 = vld [vmem:[#allocation19_spill] sm:$0xff] }
 0x336   :  { %14569 = vst [vmem:[#allocation116_spill] sm:$0xff] %v10678_v63  ;;  %v2279_v47 = vsub.f32 %v14571_v48, %v10589_v55  ;;  %7688 = vpow2.f32 %v2290_v33  ;;  %3709 = vperm.xlu1 %7466, %v14521_v51   ;;  %v10685_v20 = vpop.eup %7674  ;;  %v2147_v24 = vadd.f32 %v10678_v63, %v2146_v11  ;;  %v2296_v59 = vmul.f32 1.442695, %v2277_v54  ;;  %4217 = vperm.xlu0 %7476, %v14574_v29   ;;  %v10699_v51 = vpop.permute.xlu0 %3169  ;;  %v14579_v11 = vld [vmem:[#allocation92_spill] sm:$0xff] }
 0x337   :  { %14572 = vst [vmem:[#allocation66_spill] sm:$0xff] %v10685_v20  ;;  %7690 = vpow2.f32 %v2292_v42  ;;  %v10690_v5 = vmul.f32 %v14495_v43, %v10401_v62  ;;  %v10693_v30 = vpop.eup %7676  ;;  %v2038_v25 = vsub.f32 %v10342_v13, %v10462_v19  ;;  %v2039_v33 = vsub.f32 %v10360_v37, %v10462_v19  ;;  %14576 = vst [vmem:[#allocation145_spill] sm:$0xff] %v10699_v51  ;;  %v10701_v42 = vpop.permute.xlu1 %2947  ;;  %v14581_v37 = vld [vmem:[#allocation82_spill] sm:$0xff]  ;;  %v14584_v51 = vld [vmem:[#allocation101_spill] sm:$0xff] }
 0x338   :  { %14575 = vst [vmem:[#allocation34_spill] sm:$0xff] %v10693_v30  ;;  %7692 = vpow2.f32 %v2060_v31  ;;  %v2064_v48 = vmul.f32 1.442695, %v2036_v28  ;;  %14577 = vst [vmem:[#allocation146_spill] sm:$0xff] %v10701_v42  ;;  %v10703_v54 = vpop.eup %7678  ;;  %v2148_v62 = vadd.f32 %v10693_v30, %v2147_v24  ;;  %v2280_v9 = vsub.f32 %v14579_v11, %v10589_v55  ;;  %v14582_v42 = vld [vmem:[#allocation20_spill] sm:$0xff]  ;;  %v14583_v24 = vld [vmem:[#allocation139_spill] sm:$0xff] }
 0x339   :  { %14573 = vst [vmem:[#allocation130_spill] sm:$0xff] %v10690_v5  ;;  %14578 = vst [vmem:[#allocation147_spill] sm:$0xff] %v10703_v54  ;;  %7694 = vpow2.f32 %v2294_v34  ;;  %v2298_v63 = vmul.f32 1.442695, %v2278_v57  ;;  %v10708_v1 = vpop.eup %7680  ;;  %v2066_v13 = vmul.f32 1.442695, %v2037_v22  ;;  %v2281_v19 = vsub.f32 %v14581_v37, %v10589_v55 }
 0x33a   :  { %14580 = vst [vmem:[#allocation92_spill] sm:$0xff] %v10708_v1  ;;  %7696 = vpow2.f32 %v2062_v2  ;;  %v2300_v28 = vmul.f32 1.442695, %v2279_v47  ;;  %7467 = vset.pattern.permute.xlu1 %v14406_v44  ;;  %v2149_v31 = vadd.f32 %v10708_v1, %v2148_v62  ;;  %v6864_v30 = vpack.c.bf16 %v14583_v24, %v14582_v42  ;;  %v14585_v11 = vld [vmem:[#allocation109_spill] sm:$0xff]  ;;  %v14586_v57 = vld [vmem:[#allocation26_spill] sm:$0xff]  ;;  %v14591_v37 = vld [vmem:[#allocation128_spill] sm:$0xff] }
 0x33b   :  { %7698 = vpow2.f32 %v2296_v59  ;;  %v6876_v34 = vpack.c.bf16 %v14585_v11, %v14584_v51  ;;  %4229 = vperm.xlu0 %7476, %v14586_v57   ;;  %3467 = vperm.xlu1 %7467, %v14574_v29   ;;  %v10720_v22 = vpop.eup %7682  ;;  %v2068_v2 = vmul.f32 1.442695, %v2038_v25  ;;  %v10723_v47 = vmax.f32 %v10690_v5, %v2755_v35  ;;  %v14588_v44 = vld [vmem:[#allocation125_spill] sm:$0xff]  ;;  %v10732_v51 = vpop.permute.xlu1 %3173  ;;  %v14601_v29 = vld [vmem:[#allocation31_spill] sm:$0xff] }
 0x33c   :  { %14587 = vst [vmem:[#allocation82_spill] sm:$0xff] %v10720_v22  ;;  %7700 = vpow2.f32 %v2064_v48  ;;  %v14589_v62 = vld [vmem:[#allocation77_spill] sm:$0xff]  ;;  %v2150_v42 = vadd.f32 %v10720_v22, %v2149_v31  ;;  %v2282_v24 = vsub.f32 %v14591_v37, %v10589_v55  ;;  %v2302_v11 = vmul.f32 1.442695, %v2280_v9  ;;  %6865 = vmatpush3.bf16.msra.mxu1 %v6864_v30  ;;  %14592 = vst [vmem:[#allocation139_spill] sm:$0xff] %v10732_v51  ;;  %v10734_v48 = vpop.eup %7684  ;;  %v10740_v31 = vpop.permute.xlu0 %3181  ;;  %v14597_v30 = vld [vmem:[#allocation40_spill] sm:$0xff] }
 0x33d   :  { %v10727_v59 = vmul.f32 %v14589_v62, %v14588_v44  ;;  %7702 = vpow2.f32 %v2298_v63  ;;  %6877 = vmatpush3.bf16.msra.mxu0 %v6876_v34  ;;  %14593 = vst [vmem:[#allocation125_spill] sm:$0xff] %v10734_v48  ;;  %v2070_v35 = vmul.f32 1.442695, %v2039_v33  ;;  %v14594_v25 = vld [vmem:[#allocation25_spill] sm:$0xff]  ;;  %v2304_v44 = vmul.f32 1.442695, %v2281_v19  ;;  %6866 = vmatprep.subr.bf16.mxu1 %v14419_v27 }
 0x33e   :  { %7704 = vpow2.f32 %v2066_v13  ;;  %v2283_v5 = vsub.f32 %v14594_v25, %v10589_v55  ;;  %6878 = vmatprep.subr.bf16.mxu0 %v14419_v27  ;;  %14595 = vst [vmem:[#allocation77_spill] sm:$0xff] %v10740_v31  ;;  %v10742_v63 = vpop.eup %7686  ;;  %v2151_v9 = vadd.f32 %v10734_v48, %v2150_v42  ;;  %v14598_v34 = vld [vmem:[#allocation141_spill] sm:$0xff]  ;;  %v14599_v13 = vld [vmem:[#allocation36_spill] sm:$0xff]  ;;  %v14600_v33 = vld [vmem:[#allocation115_spill] sm:$0xff]  ;;  %v13877_v31 = vmov 16  }
 0x33f   :  { %14590 = vst [vmem:[#allocation20_spill] sm:$0xff] %v10727_v59  ;;  %14596 = vst [vmem:[#allocation128_spill] sm:$0xff] %v10742_v63  ;;  %7706 = vpow2.f32 %v2300_v28  ;;  %v6867_v37 = vpack.c.bf16 %v14598_v34, %v14597_v30  ;;  %v6879_v51 = vpack.c.bf16 %v14600_v33, %v14599_v13  ;;  %3475 = vperm.xlu1 %7467, %v14601_v29   ;;  %v14603_v22 = vld [vmem:[#allocation127_spill] sm:$0xff]  ;;  %v14605_v34 = vld [vmem:[#allocation61_spill] sm:$0xff]  ;;  %v2306_v13 = vmul.f32 1.442695, %v2282_v24 }
 0x340   :  { %v10750_v19 = vpop.eup %7688  ;;  %7708 = vpow2.f32 %v2068_v2  ;;  %v2507_v25 = vmax.f32 %v10727_v59, %v10654_v45  ;;  %v10756_v1 = vmul.f32 %v14589_v62, %v14603_v22  ;;  %v2152_v30 = vadd.f32 %v10742_v63, %v2151_v9  ;;  %v10764_v2 = vpop.permute.xlu1 %3177  ;;  %v14608_v22 = vld [vmem:[#allocation129_spill] sm:$0xff]  ;;  %v14610_v24 = vld [vmem:[#allocation52_spill] sm:$0xff]  ;;  %v14611_v9 = vld [vmem:[#allocation39_spill] sm:$0xff]  ;;  %7479 = vset.pattern.permute.xlu0 %v13877_v31 }
 0x341   :  { %14602 = vst [vmem:[#allocation25_spill] sm:$0xff] %v10750_v19  ;;  %v10759_v42 = vpop.eup %7690  ;;  %v2284_v33 = vsub.f32 %v14605_v34, %v10589_v55  ;;  %7710 = vpow2.f32 %v2302_v11  ;;  %6868 = vmatpush3.bf16.msra.mxu1 %v6867_v37  ;;  %6880 = vmatpush3.bf16.msra.mxu0 %v6879_v51  ;;  %14606 = vst [vmem:[#allocation141_spill] sm:$0xff] %v10764_v2  ;;  %v2285_v48 = vsub.f32 %v14608_v22, %v10589_v55  ;;  %v14613_v34 = vld [vmem:[#allocation100_spill] sm:$0xff]  ;;  %v14615_v63 = vld [vmem:[#allocation99_spill] sm:$0xff] }
 0x342   :  { %14604 = vst [vmem:[#allocation40_spill] sm:$0xff] %v10759_v42  ;;  %v10766_v45 = vpop.eup %7692  ;;  %7712 = vpow2.f32 %v2070_v35  ;;  %v2308_v28 = vmul.f32 1.442695, %v2283_v5  ;;  %v2394_v59 = vadd.f32 %v10759_v42, %v10750_v19  ;;  %6893 = vmatprep.subr.bf16.mxu1 %v14419_v27  ;;  %6881 = vmatprep.subr.bf16.mxu0 %v14419_v27  ;;  %v6894_v37 = vpack.c.bf16 %v14611_v9, %v14610_v24  ;;  %v14612_v35 = vld [vmem:[#allocation50_spill] sm:$0xff] }
 0x343   :  { %14607 = vst [vmem:[#allocation127_spill] sm:$0xff] %v10766_v45  ;;  %v10774_v11 = vpop.eup %7694  ;;  %v2153_v51 = vadd.f32 %v10766_v45, %v2152_v30  ;;  %7714 = vpow2.f32 %v2304_v44  ;;  %v6882_v2 = vpack.c.bf16 %v14613_v34, %v14612_v35  ;;  %3479 = vperm.xlu1 %7467, %v14586_v57   ;;  %v10787_v42 = vmul.f32 %v14589_v62, %v14615_v63  ;;  %v14616_v19 = vld [vmem:[#allocation30_spill] sm:$0xff]  ;;  %v14618_v44 = vld [vmem:[#allocation96_spill] sm:$0xff]  ;;  %v10799_v34 = vpop.permute.xlu0 %3189  ;;  %v14623_v63 = vld [vmem:[#allocation85_spill] sm:$0xff] }
 0x344   :  { %14609 = vst [vmem:[#allocation61_spill] sm:$0xff] %v10774_v11  ;;  %v10782_v5 = vpop.eup %7696  ;;  %v2395_v22 = vadd.f32 %v10774_v11, %v2394_v59  ;;  %v10791_v30 = vmul.f32 %v14589_v62, %v14616_v19  ;;  %v10795_v24 = vmul.f32 %v14589_v62, %v14618_v44  ;;  %v14620_v9 = vrot.slane %v10573_v3, 1  ;;  %14621 = vst [vmem:[#allocation99_spill] sm:$0xff] %v10799_v34  ;;  %v10806_v19 = vpop.permute.xlu1 %3185 }
 0x345   :  { %14614 = vst [vmem:[#allocation129_spill] sm:$0xff] %v10782_v5  ;;  %v10801_v35 = vpop.eup %7698  ;;  %v2154_v59 = vadd.f32 %v10782_v5, %v2153_v51  ;;  %v2286_v57 = vsub.f32 %v14623_v63, %v10589_v55  ;;  %7716 = vpow2.f32 %v2306_v13  ;;  %v2310_v45 = vmul.f32 1.442695, %v2284_v33  ;;  %6883 = vmatpush3.bf16.msra.mxu0 %v6882_v2  ;;  %14624 = vst [vmem:[#allocation96_spill] sm:$0xff] %v10806_v19  ;;  %v14627_v33 = vld [vmem:[#allocation108_spill] sm:$0xff]  ;;  %v14629_v63 = vld [vmem:[#allocation23_spill] sm:$0xff] }
 0x346   :  { %14617 = vst [vmem:[#allocation52_spill] sm:$0xff] %v10791_v30  ;;  %14619 = vst [vmem:[#allocation39_spill] sm:$0xff] %v10795_v24  ;;  %6126 = vmatmul.mubr.f32.vlgmr.msra.gmra.mrb[6].mxu1 %v14620_v9  ;;  %v10808_v44 = vpop.eup %7700  ;;  %v2287_v9 = vsub.f32 %v10381_v56, %v10589_v55  ;;  %v2312_v11 = vmul.f32 1.442695, %v2285_v48  ;;  %v2396_v34 = vadd.f32 %v10801_v35, %v2395_v22  ;;  %6884 = vmatprep.subr.bf16.mxu0 %v14419_v27  ;;  %v14628_v2 = vld [vmem:[#allocation60_spill] sm:$0xff]  ;;  %v14630_v19 = vld [vmem:[#allocation113_spill] sm:$0xff] }
 0x347   :  { %14622 = vst [vmem:[#allocation30_spill] sm:$0xff] %v10801_v35  ;;  %6895 = vmatpush3.bf16.msra.mxu1 %v6894_v37  ;;  %14625 = vst [vmem:[#allocation85_spill] sm:$0xff] %v10808_v44  ;;  %v10815_v51 = vpop.eup %7702  ;;  %v2155_v13 = vadd.f32 %v10808_v44, %v2154_v59  ;;  %7718 = vpow2.f32 %v2308_v28  ;;  %v6897_v37 = vpack.c.bf16 %v14628_v2, %v14627_v33  ;;  %v14632_v59 = vld [vmem:[#allocation2_spill] sm:$0xff]  ;;  %v2314_v31 = vmul.f32 1.442695, %v2286_v57  ;;  %v10849_v57 = vpop.permute.xlu0 %3197 }
 0x348   :  { %6896 = vmatprep.subr.bf16.mxu1 %v14419_v27  ;;  %14626 = vst [vmem:[#allocation148_spill] sm:$0xff] %v10815_v51  ;;  %v6885_v5 = vpack.c.bf16 %v14630_v19, %v14629_v63  ;;  %v10823_v56 = vpop.eup %7704  ;;  %v2288_v48 = vsub.f32 %v10414_v60, %v10589_v55  ;;  %v2397_v22 = vadd.f32 %v10815_v51, %v2396_v34  ;;  %7720 = vpow2.f32 %v2310_v45  ;;  %v14634_v19 = vld [vmem:[#allocation97_spill] sm:$0xff]  ;;  %v10839_v60 = vpop.permute.xlu1 %3193 }
 0x349   :  { %14631 = vst [vmem:[#allocation108_spill] sm:$0xff] %v10823_v56  ;;  %v2509_v35 = vmax.f32 %v10756_v1, %v2507_v25  ;;  %v2506_v28 = vmax.f32 %v10787_v42, %v10795_v24  ;;  %4423 = vperm.xlu0 %7479, %v14632_v59   ;;  %v10832_v33 = vpop.eup %7706  ;;  %v2156_v2 = vadd.f32 %v10823_v56, %v2155_v13  ;;  %14635 = vst [vmem:[#allocation97_spill] sm:$0xff] %v10839_v60  ;;  %v14637_v34 = vld [vmem:[#allocation133_spill] sm:$0xff]  ;;  %v14644_v24 = vld [vmem:[#allocation38_spill] sm:$0xff] }
 0x34a   :  { %14633 = vst [vmem:[#allocation60_spill] sm:$0xff] %v10832_v33  ;;  %v10837_v63 = vmul.f32 %v14495_v43, %v14634_v19  ;;  %6886 = vmatpush3.bf16.msra.mxu0 %v6885_v5  ;;  %v10841_v25 = vpop.eup %7708  ;;  %v2289_v44 = vsub.f32 %v14637_v34, %v10589_v55  ;;  %v2316_v59 = vmul.f32 1.442695, %v2287_v9  ;;  %v2398_v51 = vadd.f32 %v10832_v33, %v2397_v22  ;;  %v14639_v19 = vld [vmem:[#allocation140_spill] sm:$0xff]  ;;  %v14641_v55 = vld [vmem:[#allocation37_spill] sm:$0xff]  ;;  %v14642_v9 = vld [vmem:[#allocation51_spill] sm:$0xff] }
 0x34b   :  { %6898 = vmatpush3.bf16.msra.mxu1 %v6897_v37  ;;  %14636 = vst [vmem:[#allocation149_spill] sm:$0xff] %v10841_v25  ;;  %v2510_v13 = vmax.f32 %v10791_v30, %v2509_v35  ;;  %6887 = vmatprep.subr.bf16.mxu0 %v14419_v27  ;;  %v10851_v45 = vpop.eup %7710  ;;  %v2157_v5 = vadd.f32 %v10841_v25, %v2156_v2  ;;  %7722 = vpow2.f32 %v2312_v11  ;;  %v14640_v37 = vld [vmem:[#allocation62_spill] sm:$0xff]  ;;  %v2318_v22 = vmul.f32 1.442695, %v2288_v48  ;;  %v10905_v25 = vpop.permute.xlu0 %3201 }
 0x34c   :  { %6899 = vmatprep.subr.bf16.mxu1 %v14419_v27  ;;  %14638 = vst [vmem:[#allocation133_spill] sm:$0xff] %v10851_v45  ;;  %v6900_v60 = vpack.c.bf16 %v14640_v37, %v14639_v19  ;;  %v6888_v34 = vpack.c.bf16 %v14642_v9, %v14641_v55  ;;  %6195 = vmatprep.mubr.msk.f32.mxu1 %vm8201_vm0, %v14529_v7  ;;  %v10860_v35 = vpop.eup %7712  ;;  %7724 = vpow2.f32 %v2314_v31  ;;  %v14647_v48 = vld [vmem:[#allocation102_spill] sm:$0xff]  ;;  %v14649_v31 = vld [vmem:[#allocation53_spill] sm:$0xff]  ;;  %v14656_v9 = vld [vmem:[#allocation16_spill] sm:$0xff] }
 0x34d   :  { %14643 = vst [vmem:[#allocation140_spill] sm:$0xff] %v10860_v35  ;;  %v2399_v56 = vadd.f32 %v10851_v45, %v2398_v51  ;;  %v2511_v33 = vmax.f32 %v2506_v28, %v2510_v13  ;;  %v10865_v30 = vmul.f32 %v14589_v62, %v14644_v24  ;;  %4435 = vperm.xlu0 %7479, %v14483_v18   ;;  %v10868_v11 = vpop.eup %7714  ;;  %v2320_v28 = vmul.f32 1.442695, %v2289_v44  ;;  %v14648_v13 = vld [vmem:[#allocation49_spill] sm:$0xff] }
 0x34e   :  { %14645 = vst [vmem:[#allocation62_spill] sm:$0xff] %v10868_v11  ;;  %v10871_v2 = vadd.f32 %v10860_v35, %v2157_v5  ;;  %v2757_v19 = vmax.f32 %v10837_v63, %v10723_v47  ;;  %v10877_v51 = vmul.f32 %v14495_v43, %v14647_v48  ;;  %6889 = vmatpush3.bf16.msra.mxu0 %v6888_v34  ;;  %7726 = vpow2.f32 %v2316_v59  ;;  %v14652_v44 = vld [vmem:[#allocation121_spill] sm:$0xff]  ;;  %v14654_v48 = vld [vmem:[#allocation54_spill] sm:$0xff] }
 0x34f   :  { %6901 = vmatpush3.bf16.msra.mxu1 %v6900_v60  ;;  %v2400_v24 = vadd.f32 %v10868_v11, %v2399_v56  ;;  %v10882_v37 = vmul.f32 %v14495_v43, %v14648_v13  ;;  %6890 = vmatprep.subr.bf16.mxu0 %v14419_v27  ;;  %v10888_v47 = vmul.f32 %v14589_v62, %v14649_v31  ;;  %v10890_v60 = vpop.permute.xlu1 %2951  ;;  %v10892_v5 = vpop.eup %7716  ;;  %v14653_v34 = vld [vmem:[#allocation93_spill] sm:$0xff]  ;;  %7728 = vpow2.f32 %v2318_v22  ;;  %v14670_v11 = vld [vmem:[#allocation86_spill] sm:$0xff] }
 0x350   :  { %14646 = vst [vmem:[#allocation38_spill] sm:$0xff] %v10871_v2  ;;  %6902 = vmatprep.subr.bf16.mxu1 %v14419_v27  ;;  %14650 = vst [vmem:[#allocation102_spill] sm:$0xff] %v10890_v60  ;;  %v10896_v56 = vmul.f32 %v14495_v43, %v14652_v44  ;;  %v6903_v13 = vpack.c.bf16 %v14654_v48, %v14653_v34  ;;  %v14655_v2 = vld [vmem:[#allocation106_spill] sm:$0xff]  ;;  %7469 = vset.pattern.permute.xlu1 %v14469_v40  ;;  %v14657_v44 = vld [vmem:[#allocation112_spill] sm:$0xff]  ;;  %7730 = vpow2.f32 %v10648_v61 }
 0x351   :  { %14651 = vst [vmem:[#allocation49_spill] sm:$0xff] %v10892_v5  ;;  %v6891_v55 = vpack.c.bf16 %v14656_v9, %v14655_v2  ;;  %v2401_v31 = vadd.f32 %v10892_v5, %v2400_v24  ;;  %v2512_v35 = vmax.f32 %v10865_v30, %v2511_v33  ;;  %4443 = vperm.xlu0 %7479, %v14490_v39   ;;  %v10913_v34 = vpop.eup %7718  ;;  %v14659_v48 = vld [vmem:[#allocation47_spill] sm:$0xff]  ;;  %7732 = vpow2.f32 %v2320_v28 }
 0x352   :  { %v10911_v60 = vmul.f32 %v14589_v62, %v14657_v44  ;;  %14658 = vst [vmem:[#allocation53_spill] sm:$0xff] %v10913_v34  ;;  %v14660_v9 = vsub.f32 %v14659_v48, %v10028_v12  ;;  %v14661_v2 = vld [vmem:[#allocation59_spill] sm:$0xff]  ;;  %v2753_v59 = vmax.f32 %v10896_v56, %v10877_v51  ;;  %v2759_v5 = vmax.f32 %v10882_v37, %v2757_v19  ;;  %v10931_v22 = vpop.eup %7720 }
 0x353   :  { %v14662_v24 = vsub.f32 %v14661_v2, %v10028_v12  ;;  %6904 = vmatpush3.bf16.msra.mxu1 %v6903_v13  ;;  %6892 = vmatpush3.bf16.msra.mxu0 %v6891_v55  ;;  %v2402_v44 = vadd.f32 %v10913_v34, %v2401_v31  ;;  %v10929_v2 = vpop.permute.xlu1 %2959  ;;  %14664 = vst [vmem:[#allocation93_spill] sm:$0xff] %v10931_v22  ;;  %v14665_v48 = vld [vmem:[#allocation27_spill] sm:$0xff]  ;;  %v14666_v13 = vld [vmem:[#allocation124_spill] sm:$0xff]  ;;  %v14669_v34 = vld [vmem:[#allocation78_spill] sm:$0xff] }
 0x354   :  { %v1556_v40 = vmul.f32 1.442695, %v14660_v9  ;;  %6905 = vmatprep.subr.bf16.mxu1 %v14419_v27  ;;  %6917 = vmatprep.subr.bf16.mxu0 %v14419_v27  ;;  %v2515_v9 = vmax.f32 %v10888_v47, %v2512_v35  ;;  %14663 = vst [vmem:[#allocation121_spill] sm:$0xff] %v10929_v2  ;;  %v6906_v55 = vpack.c.bf16 %v14666_v13, %v14665_v48  ;;  %v14668_v31 = vld [vmem:[#allocation15_spill] sm:$0xff]  ;;  %v14672_v48 = vrot.slane %v10573_v3, 2 }
 0x355   :  { %v1558_v33 = vmul.f32 1.442695, %v14662_v24  ;;  %v14667_v24 = vld [vmem:[#allocation110_spill] sm:$0xff]  ;;  %v10939_v19 = vmul.f32 %v14589_v62, %v10385_v8  ;;  %3721 = vperm.xlu1 %7469, %v14668_v31   ;;  %v14671_v2 = vsub.f32 %v14670_v11, %v10028_v12  ;;  %v2403_v28 = vadd.f32 %v10931_v22, %v2402_v44  ;;  %4455 = vperm.xlu0 %7479, %v14562_v58   ;;  %v10952_v8 = vpop.eup %7722  ;;  %v14676_v11 = vld [vmem:[#allocation131_spill] sm:$0xff] }
 0x356   :  { %v6918_v61 = vpack.c.bf16 %v10526_v10, %v14667_v24  ;;  %6161 = vmatmul.mubr.f32.vlgmr.msra.gmra.mrb[18].mxu0 %v14672_v48  ;;  %v2513_v13 = vmax.f32 %v10911_v60, %v2515_v9  ;;  %14673 = vst [vmem:[#allocation54_spill] sm:$0xff] %v10952_v8  ;;  %7734 = vpow2.f32 %v1556_v40  ;;  %v14674_v10 = vld [vmem:[#allocation90_spill] sm:$0xff]  ;;  %v2760_v39 = vmax.f32 %v2753_v59, %v2759_v5  ;;  %v10962_v9 = vpop.permute.xlu0 %3213  ;;  %v10973_v59 = vpop.eup %7724 }
 0x357   :  { %v1560_v45 = vmul.f32 1.442695, %v14671_v2  ;;  %v14675_v24 = vsub.f32 %v14674_v10, %v10028_v12  ;;  %6907 = vmatpush3.bf16.msra.mxu1 %v6906_v55  ;;  %v10959_v44 = vmul.f32 %v14495_v43, %v14676_v11  ;;  %7736 = vpow2.f32 %v1558_v33  ;;  %v10971_v5 = vpop.permute.xlu1 %2963  ;;  %14677 = vst [vmem:[#allocation112_spill] sm:$0xff] %v10973_v59  ;;  %v14678_v55 = vld [vmem:[#allocation138_spill] sm:$0xff]  ;;  %6230 = vmatprep.mubr.msk.f32.mxu0 %vm8201_vm0, %v14529_v7 }
 0x358   :  { %6919 = vmatpush3.bf16.msra.mxu0 %v6918_v61  ;;  %v2404_v2 = vadd.f32 %v10952_v8, %v2403_v28  ;;  %6908 = vmatprep.subr.bf16.mxu1 %v14419_v27  ;;  %v2514_v40 = vmax.f32 %v10939_v19, %v2513_v13  ;;  %v10969_v10 = vmul.f32 %v14589_v62, %v10418_v26  ;;  %v14679_v61 = vld [vmem:[#allocation136_spill] sm:$0xff]  ;;  %v14680_v26 = vld [vmem:[#allocation69_spill] sm:$0xff]  ;;  %v14682_v8 = vld [vmem:[#allocation70_spill] sm:$0xff] }
 0x359   :  { %v1562_v35 = vmul.f32 1.442695, %v14675_v24  ;;  %6920 = vmatprep.subr.bf16.mxu0 %v14419_v27  ;;  %v6909_v33 = vpack.c.bf16 %v10363_v41, %v14678_v55  ;;  %v6921_v24 = vpack.c.bf16 %v10632_v50, %v10558_v36  ;;  %v10981_v28 = vmul.f32 %v14495_v43, %v14679_v61  ;;  %4471 = vperm.xlu0 %7479, %v14668_v31   ;;  %v10998_v36 = vpop.eup %7726  ;;  %v14799_v31 = vld [vmem:[#allocation26_spill] sm:$0xff] }
 0x35a   :  { %v10985_v48 = vmul.f32 %v14589_v62, %v10443_v53  ;;  %v14681_v13 = vsub.f32 %v14680_v26, %v10028_v12  ;;  %v14683_v41 = vsub.f32 %v14682_v8, %v10028_v12  ;;  %v2405_v50 = vadd.f32 %v10973_v59, %v2404_v2  ;;  %14684 = vst [vmem:[#allocation47_spill] sm:$0xff] %v10998_v36  ;;  %v14685_v53 = vld [vmem:[#allocation75_spill] sm:$0xff] }
 0x35b   :  { %v2516_v61 = vmax.f32 %v10969_v10, %v2514_v40  ;;  %7738 = vpow2.f32 %v1560_v45  ;;  %v11002_v62 = vmul.f32 %v14685_v53, %v10488_v38  ;;  %6910 = vmatpush3.bf16.msra.mxu1 %v6909_v33  ;;  %v2763_v26 = vmax.f32 %v10959_v44, %v2760_v39  ;;  %v11011_v40 = vpop.eup %7728  ;;  %3725 = vperm.xlu1 %7469, %v14601_v29  }
 0x35c   :  { %v1564_v11 = vmul.f32 1.442695, %v14681_v13  ;;  %v1566_v55 = vmul.f32 1.442695, %v14683_v41  ;;  %6922 = vmatpush3.bf16.msra.mxu0 %v6921_v24  ;;  %7740 = vpow2.f32 %v1562_v35  ;;  %v2406_v8 = vadd.f32 %v10998_v36, %v2405_v50  ;;  %6911 = vmatprep.subr.bf16.mxu1 %v14419_v27  ;;  %14687 = vst [vmem:[#allocation27_spill] sm:$0xff] %v11011_v40  ;;  %v14690_v35 = vld [vmem:[#allocation122_spill] sm:$0xff] }
 0x35d   :  { %14686 = vst [vmem:[#allocation59_spill] sm:$0xff] %v11002_v62  ;;  %v6912_v2 = vpack.c.bf16 %v10403_v49, %v10387_v14  ;;  %6923 = vmatprep.subr.bf16.mxu0 %v14419_v27  ;;  %v2517_v45 = vmax.f32 %v10985_v48, %v2516_v61  ;;  %v6924_v38 = vpack.c.bf16 %v10685_v20, %v10673_v46  ;;  %v11025_v14 = vpop.permute.xlu1 %3205  ;;  %v11027_v49 = vpop.eup %7730 }
 0x35e   :  { %v2761_v33 = vmax.f32 %v10981_v28, %v2763_v26  ;;  %v11018_v39 = vmul.f32 %v14495_v43, %v10479_v17  ;;  %v11022_v50 = vmul.f32 %v14495_v43, %v10518_v16  ;;  %14688 = vst [vmem:[#allocation124_spill] sm:$0xff] %v11025_v14  ;;  %14689 = vst [vmem:[#allocation78_spill] sm:$0xff] %v11027_v49  ;;  %v11035_v61 = vpop.permute.xlu0 %3217  ;;  %v13902_v26 = vmov 17   ;;  %v11038_v16 = vpop.eup %7732  ;;  %v14797_v14 = vld [vmem:[#allocation60_spill] sm:$0xff] }
 0x35f   :  { %v650_v24 = vadd.f32 %v9978_v32, %v14690_v35  ;;  %v14691_v13 = vsub.f32 %v14485_v52, %v10028_v12  ;;  %v2407_v17 = vadd.f32 %v11011_v40, %v2406_v8  ;;  %7484 = vset.pattern.permute.xlu0 %v13902_v26  ;;  %v2518_v43 = vrot.slane %v2517_v45, 4  ;;  %14692 = vst [vmem:[#allocation86_spill] sm:$0xff] %v11038_v16  ;;  %v14754_v40 = vld [vmem:[#allocation11_spill] sm:$0xff] }
 0x360   :  { %7742 = vpow2.f32 %v1564_v11  ;;  %v11042_v20 = vmul.f32 %v14685_v53, %v10439_v4  ;;  %v11046_v32 = vmul.f32 %v14685_v53, %v10538_v23  ;;  %6913 = vmatpush3.bf16.msra.mxu1 %v6912_v2  ;;  %6925 = vmatpush3.bf16.msra.mxu0 %v6924_v38  ;;  %v2764_v52 = vmax.f32 %v2761_v33, %v11018_v39  ;;  %v11057_v11 = vpop.eup %7734  ;;  %v14700_v33 = vld [vmem:[#allocation43_spill] sm:$0xff] }
 0x361   :  { %v1568_v41 = vmul.f32 1.442695, %v14691_v13  ;;  %7744 = vpow2.f32 %v1566_v55  ;;  %v14695_v8 = vsub.f32 %v14669_v34, %v10028_v12  ;;  %v11053_v13 = vadd.f32 %v11038_v16, %v2407_v17  ;;  %6914 = vmatprep.subr.bf16.mxu1 %v14419_v27  ;;  %6926 = vmatprep.subr.bf16.mxu0 %v14419_v27  ;;  %14697 = vst [vmem:[#allocation136_spill] sm:$0xff] %v11057_v11  ;;  %v11067_v2 = vpop.permute.xlu1 %3209  ;;  %v11069_v38 = vpop.eup %7736  ;;  %v14701_v17 = vld [vmem:[#allocation45_spill] sm:$0xff] }
 0x362   :  { %14693 = vst [vmem:[#allocation90_spill] sm:$0xff] %v11042_v20  ;;  %14694 = vst [vmem:[#allocation131_spill] sm:$0xff] %v11046_v32  ;;  %v2519_v4 = vmax.f32 %v2517_v45, %v2518_v43  ;;  %v3002_v23 = vmax.f32 %v11042_v20, %v11002_v62  ;;  %v6915_v55 = vpack.c.bf16 %v10445_v15, %v10428_v6  ;;  %4667 = vperm.xlu0 %7484, %v14409_v21   ;;  %v14735_v20 = vld [vmem:[#allocation5_spill] sm:$0xff] }
 0x363   :  { %v1570_v35 = vmul.f32 1.442695, %v14695_v8  ;;  %14696 = vst [vmem:[#allocation138_spill] sm:$0xff] %v11053_v13  ;;  %v6927_v12 = vpack.c.bf16 %v11027_v49, %v10703_v54  ;;  %v2765_v34 = vmax.f32 %v11022_v50, %v2764_v52  ;;  %14698 = vst [vmem:[#allocation69_spill] sm:$0xff] %v11067_v2  ;;  %v11072_v45 = vadd.f32 %v9982_v0, %v650_v24  ;;  %v14704_v52 = vld [vmem:[#allocation134_spill] sm:$0xff]  ;;  %v14706_v24 = vld [vmem:[#allocation77_spill] sm:$0xff]  ;;  %v3230_v49 = vpop.permute.xlu0 %3229 }
 0x364   :  { %14699 = vst [vmem:[#allocation70_spill] sm:$0xff] %v11069_v38  ;;  %v11076_v43 = vadd.f32 %v14701_v17, %v14700_v33  ;;  %v2520_v15 = vrot.slane %v2519_v4, 2  ;;  %v14703_v8 = vmov 14   ;;  %7746 = vpow2.f32 %v1568_v41  ;;  %6916 = vmatpush3.bf16.msra.mxu1 %v6915_v55  ;;  %v14708_v17 = vld [vmem:[#allocation99_spill] sm:$0xff]  ;;  %v14713_v55 = vld [vmem:[#allocation41_spill] sm:$0xff] }
 0x365   :  { %7470 = vset.pattern.permute.xlu1 %v14703_v8  ;;  %v3004_v26 = vmax.f32 %v3002_v23, %v11046_v32  ;;  %v11083_v13 = vmul.f32 %v14704_v52, %v10849_v57  ;;  %6928 = vmatpush3.bf16.msra.mxu0 %v6927_v12  ;;  %v2766_v0 = vrot.slane %v2765_v34, 4  ;;  %7748 = vpow2.f32 %v1570_v35  ;;  %v11095_v57 = vpop.eup %7738  ;;  %v14712_v35 = vld [vmem:[#allocation63_spill] sm:$0xff] }
 0x366   :  { %14702 = vst [vmem:[#allocation75_spill] sm:$0xff] %v11076_v43  ;;  %v11087_v33 = vmul.f32 %v14704_v52, %v14706_v24  ;;  %v11091_v6 = vmul.f32 %v14704_v52, %v14708_v17  ;;  %6941 = vmatprep.subr.bf16.mxu1 %v14419_v27  ;;  %6929 = vmatprep.subr.bf16.mxu0 %v14419_v27  ;;  %14710 = vst [vmem:[#allocation134_spill] sm:$0xff] %v11095_v57  ;;  %v14714_v17 = vld [vmem:[#allocation4_spill] sm:$0xff]  ;;  %v11106_v46 = vpop.eup %7740  ;;  %v14716_v32 = vld [vmem:[#allocation83_spill] sm:$0xff] }
 0x367   :  { %14705 = vst [vmem:[#allocation122_spill] sm:$0xff] %v11083_v13  ;;  %v2521_v41 = vmax.f32 %v2519_v4, %v2520_v15  ;;  %v11099_v23 = vmul.f32 %v14704_v52, %v10962_v9  ;;  %v6942_v12 = vpack.c.bf16 %v14713_v55, %v14712_v35  ;;  %v6930_v24 = vpack.c.bf16 %v11069_v38, %v11057_v11  ;;  %v14718_v15 = vld [vmem:[#allocation145_spill] sm:$0xff]  ;;  %v14775_v43 = vld [vmem:[#allocation82_spill] sm:$0xff] }
 0x368   :  { %14707 = vst [vmem:[#allocation43_spill] sm:$0xff] %v11087_v33  ;;  %14709 = vst [vmem:[#allocation45_spill] sm:$0xff] %v11091_v6  ;;  %4679 = vperm.xlu0 %7484, %v14714_v17   ;;  %v2767_v54 = vmax.f32 %v2765_v34, %v2766_v0  ;;  %v11110_v4 = vmul.f32 %v14685_v53, %v14716_v32  ;;  %v11114_v29 = vmul.f32 %v14704_v52, %v14718_v15  ;;  %v11123_v34 = vpop.permute.xlu1 %2967  ;;  %v14723_v0 = vld [vmem:[#allocation44_spill] sm:$0xff] }
 0x369   :  { %14711 = vst [vmem:[#allocation77_spill] sm:$0xff] %v11099_v23  ;;  %14715 = vst [vmem:[#allocation99_spill] sm:$0xff] %v11106_v46  ;;  %v11118_v9 = vmul.f32 %v14704_v52, %v10905_v25  ;;  %v14721_v35 = vrot.slane %v10573_v3, 3  ;;  %v2522_v55 = vrot.slane %v2521_v41, 1  ;;  %3919 = vperm.xlu1 %7470, %v14409_v21   ;;  %v11127_v32 = vmul.f32 %v14685_v53, %v14723_v0  ;;  %v14776_v21 = vld [vmem:[#allocation117_spill] sm:$0xff] }
 0x36a   :  { %14717 = vst [vmem:[#allocation63_spill] sm:$0xff] %v11110_v4  ;;  %14719 = vst [vmem:[#allocation41_spill] sm:$0xff] %v11114_v29  ;;  %v3255_v15 = vmax.f32 %v11087_v33, %v11083_v13  ;;  %v11132_v38 = vmul.f32 %v14704_v52, %v3230_v49  ;;  %6931 = vmatpush3.bf16.msra.mxu0 %v6930_v24  ;;  %v2768_v25 = vrot.slane %v2767_v54, 2  ;;  %v11144_v13 = vpop.f32.mrb[4].mxu1  ;;  %v11146_v49 = vpop.eup %7742  ;;  %v14729_v24 = vld [vmem:[#allocation87_spill] sm:$0xff] }
 0x36b   :  { %14720 = vst [vmem:[#allocation83_spill] sm:$0xff] %v11118_v9  ;;  %6196 = vmatmul.mubr.f32.vlgmr.msra.gmra.mrb[8].mxu1 %v14721_v35  ;;  %14722 = vst [vmem:[#allocation145_spill] sm:$0xff] %v11123_v34  ;;  %v3253_v35 = vmax.f32 %v11114_v29, %v11091_v6  ;;  %v11138_v11 = vmul.f32 %v14704_v52, %v11035_v61  ;;  %6932 = vmatprep.subr.bf16.mxu0 %v14419_v27  ;;  %v14730_v33 = vld [vmem:[#allocation79_spill] sm:$0xff]  ;;  %v14731_v61 = vld [vmem:[#allocation6_spill] sm:$0xff]  ;;  %v6057_v29 = vpop.f32.mrb[5].mxu1 }
 0x36c   :  { %14724 = vst [vmem:[#allocation44_spill] sm:$0xff] %v11127_v32  ;;  %14725 = vst [vmem:[#allocation150_spill] sm:$0xff] %v11132_v38  ;;  %6943 = vmatpush3.bf16.msra.mxu1 %v6942_v12  ;;  %v11142_v0 = vmax.f32 %v2521_v41, %v2522_v55  ;;  %v3259_v12 = vmax.f32 %v3255_v15, %v11099_v23  ;;  %v6945_v62 = vpack.c.bf16 %v14730_v33, %v14729_v24  ;;  %v11156_v41 = vpop.eup %7744  ;;  %v14733_v15 = vld [vmem:[#allocation20_spill] sm:$0xff]  ;;  %v14734_v33 = vld [vmem:[#allocation137_spill] sm:$0xff] }
 0x36d   :  { %14726 = vst [vmem:[#allocation151_spill] sm:$0xff] %v11138_v11  ;;  %6944 = vmatprep.subr.bf16.mxu1 %v14419_v27  ;;  %14727 = vst [vmem:[#allocation152_spill] sm:$0xff] %v11144_v13  ;;  %v6933_v6 = vpack.c.bf16 %v11106_v46, %v11095_v57  ;;  %4687 = vperm.xlu0 %7484, %v14731_v61   ;;  %v3003_v55 = vmax.f32 %v11110_v4, %v3004_v26  ;;  %v11165_v46 = vpop.permute.xlu1 %2975  ;;  %v14748_v4 = vld [vmem:[#allocation132_spill] sm:$0xff] }
 0x36e   :  { %14728 = vst [vmem:[#allocation153_spill] sm:$0xff] %v11146_v49  ;;  %6265 = vmatprep.mubr.msk.f32.mxu1 %vm8201_vm0, %v14529_v7  ;;  %14732 = vst [vmem:[#allocation87_spill] sm:$0xff] %v11156_v41  ;;  %v3252_v13 = vmax.f32 %v11118_v9, %v3253_v35  ;;  %v2524_v23 = vsub.f32 %v14733_v15, %v11142_v0  ;;  %v2525_v24 = vsub.f32 %v14734_v33, %v11142_v0  ;;  %v14737_v35 = vld [vmem:[#allocation55_spill] sm:$0xff] }
 0x36f   :  { %3927 = vperm.xlu1 %7470, %v14735_v20   ;;  %14736 = vst [vmem:[#allocation79_spill] sm:$0xff] %v11165_v46  ;;  %v3263_v57 = vmax.f32 %v3259_v12, %v11132_v38  ;;  %6934 = vmatpush3.bf16.msra.mxu0 %v6933_v6  ;;  %v2526_v29 = vsub.f32 %v10756_v1, %v11142_v0  ;;  %v11181_v6 = vpop.eup %7746  ;;  %v14781_v46 = vld [vmem:[#allocation125_spill] sm:$0xff] }
 0x370   :  { %6946 = vmatpush3.bf16.msra.mxu1 %v6945_v62  ;;  %v2769_v26 = vmax.f32 %v2767_v54, %v2768_v25  ;;  %v11172_v9 = vadd.f32 %v14737_v35, %v11072_v45  ;;  %v11175_v15 = vmax.f32 %v3003_v55, %v11127_v32  ;;  %6935 = vmatprep.subr.bf16.mxu0 %v14419_v27  ;;  %v2540_v62 = vmul.f32 1.442695, %v2524_v23  ;;  %v14740_v54 = vld [vmem:[#allocation48_spill] sm:$0xff]  ;;  %v14741_v25 = vld [vmem:[#allocation98_spill] sm:$0xff]  ;;  %v11190_v38 = vpop.eup %7748  ;;  %v14744_v32 = vld [vmem:[#allocation135_spill] sm:$0xff] }
 0x371   :  { %6947 = vmatprep.subr.bf16.mxu1 %v14419_v27  ;;  %v2527_v12 = vsub.f32 %v10787_v42, %v11142_v0  ;;  %14739 = vst [vmem:[#allocation137_spill] sm:$0xff] %v11181_v6  ;;  %v3256_v1 = vmax.f32 %v3252_v13, %v11138_v11  ;;  %v6948_v33 = vpack.c.bf16 %v14741_v25, %v14740_v54  ;;  %v14742_v55 = vld [vmem:[#allocation8_spill] sm:$0xff]  ;;  %14743 = vst [vmem:[#allocation55_spill] sm:$0xff] %v11190_v38  ;;  %v11196_v13 = vpop.permute.xlu1 %2979  ;;  %v11200_v25 = vpop.permute.xlu0 %3423 }
 0x372   :  { %14738 = vst [vmem:[#allocation20_spill] sm:$0xff] %v11172_v9  ;;  %v6936_v45 = vpack.c.bf16 %v11156_v41, %v11146_v49  ;;  %4695 = vperm.xlu0 %7484, %v14742_v55   ;;  %v2528_v42 = vsub.f32 %v14744_v32, %v11142_v0  ;;  %7750 = vpow2.f32 %v2540_v62  ;;  %v2542_v23 = vmul.f32 1.442695, %v2525_v24  ;;  %14745 = vst [vmem:[#allocation48_spill] sm:$0xff] %v11196_v13  ;;  %v14747_v32 = vld [vmem:[#allocation52_spill] sm:$0xff]  ;;  %v14749_v49 = vld [vmem:[#allocation118_spill] sm:$0xff] }
 0x373   :  { %3931 = vperm.xlu1 %7470, %v14714_v17   ;;  %v11198_v54 = vmax.f32 %v3263_v57, %v3256_v1  ;;  %14746 = vst [vmem:[#allocation98_spill] sm:$0xff] %v11200_v25  ;;  %v2544_v35 = vmul.f32 1.442695, %v2526_v29  ;;  %v2770_v41 = vrot.slane %v2769_v26, 1  ;;  %v2529_v62 = vsub.f32 %v14747_v32, %v11142_v0  ;;  %v14750_v1 = vld [vmem:[#allocation71_spill] sm:$0xff]  ;;  %v14752_v29 = vld [vmem:[#allocation14_spill] sm:$0xff] }
 0x374   :  { %6949 = vmatpush3.bf16.msra.mxu1 %v6948_v33  ;;  %6937 = vmatpush3.bf16.msra.mxu0 %v6936_v45  ;;  %7752 = vpow2.f32 %v2542_v23  ;;  %v2546_v24 = vmul.f32 1.442695, %v2527_v12  ;;  %v6951_v11 = vpack.c.bf16 %v14749_v49, %v14748_v4  ;;  %v6939_v57 = vpack.c.bf16 %v11190_v38, %v11181_v6  ;;  %v14751_v33 = vld [vmem:[#allocation103_spill] sm:$0xff]  ;;  %v14753_v25 = vld [vmem:[#allocation126_spill] sm:$0xff]  ;;  %v14762_v38 = vld [vmem:[#allocation32_spill] sm:$0xff] }
 0x375   :  { %6950 = vmatprep.subr.bf16.mxu1 %v14419_v27  ;;  %6938 = vmatprep.subr.bf16.mxu0 %v14419_v27  ;;  %v6954_v45 = vpack.c.bf16 %v14751_v33, %v14750_v1  ;;  %v6966_v16 = vpack.c.bf16 %v14753_v25, %v14752_v29  ;;  %v14755_v17 = vld [vmem:[#allocation114_spill] sm:$0xff]  ;;  %v14756_v32 = vld [vmem:[#allocation143_spill] sm:$0xff]  ;;  %7754 = vpow2.f32 %v2544_v35  ;;  %v2548_v59 = vmul.f32 1.442695, %v2528_v42  ;;  %v14760_v25 = vld [vmem:[#allocation24_spill] sm:$0xff]  ;;  %v11231_v35 = vpop.permute.xlu1 %3221 }
 0x376   :  { %4699 = vperm.xlu0 %7484, %v14754_v40   ;;  %v6957_v23 = vpack.c.bf16 %v14756_v32, %v14755_v17  ;;  %v14757_v12 = vld [vmem:[#allocation94_spill] sm:$0xff]  ;;  %v11224_v1 = vmax.f32 %v2769_v26, %v2770_v41  ;;  %v14761_v33 = vld [vmem:[#allocation105_spill] sm:$0xff]  ;;  %v14763_v17 = vld [vmem:[#allocation107_spill] sm:$0xff]  ;;  %14764 = vst [vmem:[#allocation52_spill] sm:$0xff] %v11231_v35  ;;  %7756 = vpow2.f32 %v2546_v24  ;;  %v2550_v6 = vmul.f32 1.442695, %v2529_v62  ;;  %v11241_v26 = vpop.permute.xlu0 %3435 }
 0x377   :  { %v2530_v36 = vsub.f32 %v14757_v12, %v11142_v0  ;;  %v14758_v4 = vld [vmem:[#allocation18_spill] sm:$0xff]  ;;  %3939 = vperm.xlu1 %7470, %v14731_v61   ;;  %v6969_v29 = vpack.c.bf16 %v14761_v33, %v14760_v25  ;;  %v14765_v42 = vld [vmem:[#allocation39_spill] sm:$0xff]  ;;  %14768 = vst [vmem:[#allocation118_spill] sm:$0xff] %v11241_v26  ;;  %v14769_v25 = vld [vmem:[#allocation12_spill] sm:$0xff]  ;;  %7758 = vpow2.f32 %v2548_v59  ;;  %v14777_v26 = vrot.slane %v10573_v3, 4 }
 0x378   :  { %v11221_v49 = vmul.f32 %v14685_v53, %v14758_v4  ;;  %6952 = vmatpush3.bf16.msra.mxu1 %v6951_v11  ;;  %6940 = vmatpush3.bf16.msra.mxu0 %v6939_v57  ;;  %v2531_v4 = vsub.f32 %v14765_v42, %v11142_v0  ;;  %v14766_v11 = vld [vmem:[#allocation120_spill] sm:$0xff]  ;;  %v2532_v57 = vsub.f32 %v10865_v30, %v11142_v0  ;;  %v14771_v12 = vld [vmem:[#allocation34_spill] sm:$0xff]  ;;  %v14772_v24 = vld [vmem:[#allocation33_spill] sm:$0xff]  ;;  %7760 = vpow2.f32 %v2550_v6 }
 0x379   :  { %6953 = vmatprep.subr.bf16.mxu1 %v14419_v27  ;;  %6965 = vmatprep.subr.bf16.mxu0 %v14419_v27  ;;  %v11239_v41 = vmul.f32 %v14685_v53, %v14766_v11  ;;  %v14770_v33 = vld [vmem:[#allocation116_spill] sm:$0xff]  ;;  %v14773_v62 = vld [vmem:[#allocation42_spill] sm:$0xff]  ;;  %v2533_v11 = vsub.f32 %v14776_v21, %v11142_v0  ;;  %v2552_v35 = vmul.f32 1.442695, %v2530_v36  ;;  %v11265_v36 = vpop.permute.xlu1 %3225  ;;  %v14785_v59 = vld [vmem:[#allocation19_spill] sm:$0xff] }
 0x37a   :  { %14759 = vst [vmem:[#allocation135_spill] sm:$0xff] %v11221_v49  ;;  %4711 = vperm.xlu0 %7484, %v14769_v25   ;;  %v14774_v61 = vld [vmem:[#allocation92_spill] sm:$0xff]  ;;  %v3006_v30 = vmax.f32 %v11221_v49, %v11175_v15  ;;  %v14778_v32 = vld [vmem:[#allocation74_spill] sm:$0xff]  ;;  %v14779_v25 = vld [vmem:[#allocation25_spill] sm:$0xff] }
 0x37b   :  { %14767 = vst [vmem:[#allocation132_spill] sm:$0xff] %v11239_v41  ;;  %6231 = vmatmul.mubr.f32.vlgmr.msra.gmra.mrb[20].mxu0 %v14777_v26  ;;  %3947 = vperm.xlu1 %7470, %v14742_v55   ;;  %v2772_v42 = vsub.f32 %v14778_v32, %v11224_v1  ;;  %v14780_v9 = vld [vmem:[#allocation40_spill] sm:$0xff]  ;;  %14783 = vst [vmem:[#allocation71_spill] sm:$0xff] %v11265_v36  ;;  %v2554_v26 = vmul.f32 1.442695, %v2531_v4  ;;  %v14786_v13 = vld [vmem:[#allocation119_spill] sm:$0xff]  ;;  %7762 = vpow2.f32 %v2552_v35 }
 0x37c   :  { %6955 = vmatpush3.bf16.msra.mxu1 %v6954_v45  ;;  %6967 = vmatpush3.bf16.msra.mxu0 %v6966_v16  ;;  %v14782_v21 = vld [vmem:[#allocation128_spill] sm:$0xff]  ;;  %v11267_v34 = vpop.eup %7750  ;;  %v2773_v16 = vsub.f32 %v10837_v63, %v11224_v1  ;;  %v11274_v15 = vmax.f32 %v11239_v41, %v3006_v30  ;;  %v2534_v45 = vsub.f32 %v10888_v47, %v11142_v0  ;;  %v2556_v32 = vmul.f32 1.442695, %v2532_v57  ;;  %v14787_v4 = vld [vmem:[#allocation61_spill] sm:$0xff]  ;;  %v14788_v49 = vld [vmem:[#allocation30_spill] sm:$0xff] }
 0x37d   :  { %14784 = vst [vmem:[#allocation103_spill] sm:$0xff] %v11267_v34  ;;  %6956 = vmatprep.subr.bf16.mxu1 %v14419_v27  ;;  %6968 = vmatprep.subr.bf16.mxu0 %v14419_v27  ;;  %v11281_v6 = vmul.f32 %v14685_v53, %v14786_v13  ;;  %v2558_v30 = vmul.f32 1.442695, %v2533_v11  ;;  %v2774_v47 = vsub.f32 %v10896_v56, %v11224_v1  ;;  %v14790_v57 = vld [vmem:[#allocation127_spill] sm:$0xff]  ;;  %v14791_v41 = vld [vmem:[#allocation129_spill] sm:$0xff]  ;;  %v14792_v36 = vmov 15   ;;  %v11294_v13 = vpop.permute.xlu0 %3443 }
 0x37e   :  { %4715 = vperm.xlu0 %7484, %v14785_v59   ;;  %6300 = vmatprep.mubr.msk.f32.mxu0 %vm8201_vm0, %v14529_v7  ;;  %v11287_v63 = vpop.eup %7752  ;;  %14793 = vst [vmem:[#allocation126_spill] sm:$0xff] %v11294_v13  ;;  %v2535_v55 = vsub.f32 %v10911_v60, %v11142_v0  ;;  %v2788_v22 = vmul.f32 1.442695, %v2772_v42  ;;  %v14794_v35 = vld [vmem:[#allocation58_spill] sm:$0xff]  ;;  %7764 = vpow2.f32 %v2554_v26  ;;  %v2790_v13 = vmul.f32 1.442695, %v2773_v16  ;;  %v11312_v42 = vpop.permute.xlu1 %3419 }
 0x37f   :  { %14789 = vst [vmem:[#allocation14_spill] sm:$0xff] %v11287_v63  ;;  %7472 = vset.pattern.permute.xlu1 %v14792_v36  ;;  %v2642_v2 = vadd.f32 %v11287_v63, %v11267_v34  ;;  %v11302_v11 = vmul.f32 %v14685_v53, %v14794_v35  ;;  %v11304_v56 = vpop.eup %7754  ;;  %v14795_v59 = vld [vmem:[#allocation22_spill] sm:$0xff]  ;;  %v14796_v60 = vld [vmem:[#allocation148_spill] sm:$0xff]  ;;  %14798 = vst [vmem:[#allocation114_spill] sm:$0xff] %v11312_v42  ;;  %7766 = vpow2.f32 %v2556_v32  ;;  %v2560_v35 = vmul.f32 1.442695, %v2534_v45 }
 0x380   :  { %6958 = vmatpush3.bf16.msra.mxu1 %v6957_v23  ;;  %6970 = vmatpush3.bf16.msra.mxu0 %v6969_v29  ;;  %v2775_v36 = vsub.f32 %v14795_v59, %v11224_v1  ;;  %v2536_v29 = vsub.f32 %v10939_v19, %v11142_v0  ;;  %v14800_v59 = vld [vmem:[#allocation2_spill] sm:$0xff]  ;;  %v11319_v16 = vpop.eup %7756  ;;  %v14801_v63 = vld [vmem:[#allocation57_spill] sm:$0xff]  ;;  %7768 = vpow2.f32 %v2558_v30  ;;  %v2776_v23 = vsub.f32 %v10882_v37, %v11224_v1  ;;  %v14804_v30 = vld [vmem:[#allocation64_spill] sm:$0xff] }
 0x381   :  { %6959 = vmatprep.subr.bf16.mxu1 %v14419_v27  ;;  %6971 = vmatprep.subr.bf16.mxu0 %v14419_v27  ;;  %v2643_v26 = vadd.f32 %v11304_v56, %v2642_v2  ;;  %v2537_v34 = vsub.f32 %v14801_v63, %v11142_v0  ;;  %v2792_v42 = vmul.f32 1.442695, %v2774_v47  ;;  %v2538_v19 = vsub.f32 %v10969_v10, %v11142_v0  ;;  %v11334_v63 = vpop.eup %7758 }
 0x382   :  { %4727 = vperm.xlu0 %7484, %v14799_v31   ;;  %4173 = vperm.xlu1 %7472, %v14800_v59   ;;  %v2562_v45 = vmul.f32 1.442695, %v2535_v55  ;;  %7770 = vpow2.f32 %v2788_v22  ;;  %v14802_v32 = vpack.c.bf16 %v14763_v17, %v14762_v38  ;;  %v14803_v31 = vpack.c.bf16 %v14771_v12, %v14770_v33  ;;  %v11342_v22 = vpop.permute.xlu1 %3427  ;;  %v11345_v17 = vpop.permute.xlu0 %3455 }
 0x383   :  { %v2644_v2 = vadd.f32 %v11319_v16, %v2643_v26  ;;  %v2539_v37 = vsub.f32 %v10985_v48, %v11142_v0  ;;  %v2777_v10 = vsub.f32 %v14804_v30, %v11224_v1  ;;  %7772 = vpow2.f32 %v2790_v13  ;;  %v14805_v48 = vld [vmem:[#allocation85_spill] sm:$0xff]  ;;  %v14806_v0 = vld [vmem:[#allocation108_spill] sm:$0xff] }
 0x384   :  { %6961 = vmatpush3.bf16.msra.mxu1 %v14802_v32  ;;  %6973 = vmatpush3.bf16.msra.mxu0 %v14803_v31  ;;  %v2794_v55 = vmul.f32 1.442695, %v2775_v36  ;;  %7774 = vpow2.f32 %v2560_v35  ;;  %v2564_v38 = vmul.f32 1.442695, %v2536_v29  ;;  %v13944_v12 = vmov 18   ;;  %v11351_v36 = vpop.eup %7760  ;;  %v14830_v29 = vld [vmem:[#allocation102_spill] sm:$0xff] }
 0x385   :  { %6962 = vmatprep.subr.bf16.mxu1 %v14419_v27  ;;  %6974 = vmatprep.subr.bf16.mxu0 %v14419_v27  ;;  %v2645_v31 = vadd.f32 %v11334_v63, %v2644_v2  ;;  %v2778_v47 = vsub.f32 %v10877_v51, %v11224_v1  ;;  %7776 = vpow2.f32 %v2792_v42  ;;  %v2796_v13 = vmul.f32 1.442695, %v2776_v23  ;;  %v11365_v51 = vpop.eup %7762  ;;  %v14809_v42 = vld [vmem:[#allocation104_spill] sm:$0xff] }
 0x386   :  { %7487 = vset.pattern.permute.xlu0 %v13944_v12  ;;  %4177 = vperm.xlu1 %7472, %v14735_v20   ;;  %7778 = vpow2.f32 %v2562_v45  ;;  %v2566_v35 = vmul.f32 1.442695, %v2537_v34  ;;  %v2568_v26 = vmul.f32 1.442695, %v2538_v19  ;;  %v14807_v32 = vpack.c.bf16 %v14773_v62, %v14772_v24  ;;  %v11371_v34 = vpop.permute.xlu1 %3431 }
 0x387   :  { %4922 = vperm.xlu0 %7487, %v14800_v59   ;;  %v2646_v2 = vadd.f32 %v11351_v36, %v2645_v31  ;;  %v14808_v30 = vpack.c.bf16 %v14775_v43, %v14774_v61  ;;  %v2570_v23 = vmul.f32 1.442695, %v2539_v37  ;;  %v2779_v12 = vsub.f32 %v14809_v42, %v11224_v1  ;;  %14810 = vst [vmem:[#allocation143_spill] sm:$0xff] %v11371_v34  ;;  %v14811_v43 = vld [vmem:[#allocation35_spill] sm:$0xff] }
 0x388   :  { %6964 = vmatpush3.bf16.msra.mxu1 %v14807_v32  ;;  %7780 = vpow2.f32 %v2794_v55  ;;  %v2798_v45 = vmul.f32 1.442695, %v2777_v10  ;;  %v2780_v61 = vsub.f32 %v14811_v43, %v11224_v1  ;;  %v2781_v62 = vsub.f32 %v10959_v44, %v11224_v1  ;;  %v11379_v19 = vpop.eup %7764  ;;  %v11393_v32 = vpop.permute.xlu0 %3471 }
 0x389   :  { %6976 = vmatpush3.bf16.msra.mxu0 %v14808_v30  ;;  %6989 = vmatprep.subr.bf16.mxu1 %v14419_v27  ;;  %7782 = vpow2.f32 %v2564_v38  ;;  %v2647_v24 = vadd.f32 %v11365_v51, %v2646_v2  ;;  %v2782_v37 = vsub.f32 %v10981_v28, %v11224_v1  ;;  %v2800_v10 = vmul.f32 1.442695, %v2778_v47  ;;  %v14813_v38 = vld [vmem:[#allocation146_spill] sm:$0xff]  ;;  %v11390_v2 = vpop.eup %7766  ;;  %v14814_v28 = vld [vmem:[#allocation73_spill] sm:$0xff] }
 0x38a   :  { %6977 = vmatprep.subr.bf16.mxu0 %v14419_v27  ;;  %4185 = vperm.xlu1 %7472, %v14483_v18   ;;  %7784 = vpow2.f32 %v2796_v13  ;;  %v14812_v55 = vrot.slane %v10573_v3, 5  ;;  %v11388_v31 = vmul.f32 %v14685_v53, %v14813_v38  ;;  %v2783_v13 = vsub.f32 %v14814_v28, %v11224_v1  ;;  %v14815_v47 = vld [vmem:[#allocation81_spill] sm:$0xff] }
 0x38b   :  { %4934 = vperm.xlu0 %7487, %v14483_v18   ;;  %7786 = vpow2.f32 %v2566_v35  ;;  %v2648_v44 = vadd.f32 %v11379_v19, %v2647_v24  ;;  %v2784_v30 = vsub.f32 %v14815_v47, %v11224_v1  ;;  %v14816_v42 = vpack.c.bf16 %v14780_v9, %v14779_v25  ;;  %v11413_v9 = vpop.permute.xlu1 %3439 }
 0x38c   :  { %6266 = vmatmul.mubr.f32.vlgmr.msra.gmra.mrb[10].mxu1 %v14812_v55  ;;  %v14817_v43 = vpack.c.bf16 %v14782_v21, %v14781_v46  ;;  %v11405_v55 = vpop.eup %7768  ;;  %v2785_v35 = vsub.f32 %v11018_v39, %v11224_v1  ;;  %7788 = vpow2.f32 %v2798_v45  ;;  %v2802_v38 = vmul.f32 1.442695, %v2779_v12  ;;  %14818 = vst [vmem:[#allocation94_spill] sm:$0xff] %v11413_v9  ;;  %v14819_v21 = vld [vmem:[#allocation130_spill] sm:$0xff]  ;;  %v14820_v45 = vld [vmem:[#allocation9_spill] sm:$0xff] }
 0x38d   :  { %6991 = vmatpush3.bf16.msra.mxu1 %v14816_v42  ;;  %v11415_v25 = vpop.eup %7770  ;;  %7790 = vpow2.f32 %v2568_v26  ;;  %v2649_v46 = vadd.f32 %v11390_v2, %v2648_v44  ;;  %v2804_v39 = vmul.f32 1.442695, %v2780_v61  ;;  %6335 = vmatprep.mubr.msk.f32.mxu1 %vm8201_vm0, %v14529_v7  ;;  %v2806_v47 = vmul.f32 1.442695, %v2781_v62 }
 0x38e   :  { %6979 = vmatpush3.bf16.msra.mxu0 %v14817_v43  ;;  %6992 = vmatprep.subr.bf16.mxu1 %v14419_v27  ;;  %v11423_v12 = vpop.eup %7772  ;;  %7792 = vpow2.f32 %v2800_v10  ;;  %v2808_v42 = vmul.f32 1.442695, %v2782_v37  ;;  %v3005_v43 = vmax.f32 %v11281_v6, %v11388_v31  ;;  %v2810_v44 = vmul.f32 1.442695, %v2783_v13 }
 0x38f   :  { %6980 = vmatprep.subr.bf16.mxu0 %v14419_v27  ;;  %4193 = vperm.xlu1 %7472, %v14820_v45   ;;  %v11428_v26 = vpop.eup %7774  ;;  %7794 = vpow2.f32 %v2570_v23  ;;  %v2650_v61 = vadd.f32 %v11405_v55, %v2649_v46  ;;  %v2893_v28 = vadd.f32 %v11423_v12, %v11415_v25  ;;  %v14821_v24 = vpack.c.bf16 %v14788_v49, %v14787_v4  ;;  %v14823_v23 = vld [vmem:[#allocation139_spill] sm:$0xff]  ;;  %v14825_v46 = vld [vmem:[#allocation97_spill] sm:$0xff]  ;;  %v11453_v4 = vpop.permute.xlu1 %3447 }
 0x390   :  { %4942 = vperm.xlu0 %7487, %v14820_v45   ;;  %v14822_v62 = vpack.c.bf16 %v14791_v41, %v14790_v57  ;;  %v11439_v37 = vpop.eup %7776  ;;  %7796 = vpow2.f32 %v2802_v38  ;;  %v11441_v10 = vmul.f32 1.442695, %v2784_v30  ;;  %v11447_v13 = vmul.f32 %v14704_v52, %v14823_v23  ;;  %14827 = vst [vmem:[#allocation105_spill] sm:$0xff] %v11453_v4  ;;  %v14828_v38 = vld [vmem:[#allocation133_spill] sm:$0xff] }
 0x391   :  { %6994 = vmatpush3.bf16.msra.mxu1 %v14821_v24  ;;  %v11451_v49 = vmul.f32 %v14704_v52, %v14825_v46  ;;  %v11455_v41 = vpop.eup %7778  ;;  %v2651_v57 = vadd.f32 %v11428_v26, %v2650_v61  ;;  %v2894_v30 = vadd.f32 %v11439_v37, %v2893_v28  ;;  %v11459_v24 = vpop.permute.xlu0 %3669  ;;  %v11465_v23 = vmul.f32 %v14685_v53, %v14830_v29  ;;  %v14832_v28 = vld [vmem:[#allocation141_spill] sm:$0xff] }
 0x392   :  { %6982 = vmatpush3.bf16.msra.mxu0 %v14822_v62  ;;  %6995 = vmatprep.subr.bf16.mxu1 %v14419_v27  ;;  %14824 = vst [vmem:[#allocation18_spill] sm:$0xff] %v11447_v13  ;;  %v14829_v62 = vld [vmem:[#allocation62_spill] sm:$0xff]  ;;  %v11468_v46 = vpop.eup %7780  ;;  %7798 = vpow2.f32 %v2804_v39  ;;  %v14831_v45 = vmax.f32 %v11302_v11, %v11274_v15  ;;  %v11476_v18 = vmul.f32 %v14704_v52, %v14832_v28  ;;  %v2814_v59 = vmul.f32 1.442695, %v2785_v35  ;;  %v14838_v28 = vld [vmem:[#allocation121_spill] sm:$0xff] }
 0x393   :  { %6983 = vmatprep.subr.bf16.mxu0 %v14419_v27  ;;  %14826 = vst [vmem:[#allocation24_spill] sm:$0xff] %v11451_v49  ;;  %v6999_v33 = vpack.c.bf16 %v14829_v62, %v14828_v38  ;;  %7473 = vset.pattern.permute.xlu1 %v14703_v8  ;;  %v14834_v38 = vld [vmem:[#allocation96_spill] sm:$0xff]  ;;  %v11483_v29 = vpop.eup %7782  ;;  %v2652_v39 = vadd.f32 %v11455_v41, %v2651_v57  ;;  %7800 = vpow2.f32 %v2806_v47  ;;  %v14840_v35 = vld [vmem:[#allocation149_spill] sm:$0xff] }
 0x394   :  { %v3010_v61 = vmax.f32 %v3005_v43, %v14831_v45  ;;  %4954 = vperm.xlu0 %7487, %v14562_v58   ;;  %14833 = vst [vmem:[#allocation32_spill] sm:$0xff] %v11476_v18  ;;  %v11480_v62 = vmul.f32 %v14704_v52, %v14834_v38  ;;  %3951 = vperm.xlu1 %7473, %v14754_v40   ;;  %v11497_v20 = vpop.eup %7784  ;;  %v14841_v57 = vld [vmem:[#allocation140_spill] sm:$0xff]  ;;  %7802 = vpow2.f32 %v2808_v42  ;;  %v14856_v4 = vld [vmem:[#allocation13_spill] sm:$0xff] }
 0x395   :  { %v2895_v15 = vadd.f32 %v11468_v46, %v2894_v30  ;;  %v14836_v45 = vpack.c.bf16 %v14797_v14, %v14796_v60  ;;  %v14837_v43 = vpack.c.bf16 %v14806_v0, %v14805_v48  ;;  %v11495_v38 = vmul.f32 %v14685_v53, %v14838_v28  ;;  %v11507_v48 = vpop.eup %7786  ;;  %v11516_v28 = vpop.permute.xlu1 %3673 }
 0x396   :  { %14835 = vst [vmem:[#allocation107_spill] sm:$0xff] %v11480_v62  ;;  %v6987_v30 = vpack.c.bf16 %v14841_v57, %v14840_v35  ;;  %v3258_v14 = vmax.f32 %v11447_v13, %v11198_v54  ;;  %v3254_v60 = vmax.f32 %v11476_v18, %v11451_v49  ;;  %v2653_v0 = vadd.f32 %v11483_v29, %v2652_v39  ;;  %v11518_v35 = vpop.eup %7788  ;;  %v14844_v54 = vld [vmem:[#allocation103_spill] sm:$0xff]  ;;  %v14845_v57 = vld [vmem:[#allocation14_spill] sm:$0xff]  ;;  %v14847_v13 = vld [vmem:[#allocation124_spill] sm:$0xff]  ;;  %v11535_v34 = vpop.permute.xlu0 %3681 }
 0x397   :  { %6997 = vmatpush3.bf16.msra.mxu1 %v14836_v45  ;;  %6985 = vmatpush3.bf16.msra.mxu0 %v14837_v43  ;;  %14839 = vst [vmem:[#allocation39_spill] sm:$0xff] %v11495_v38  ;;  %v2896_v45 = vadd.f32 %v11497_v20, %v2895_v15  ;;  %v3011_v47 = vmax.f32 %v11465_v23, %v3010_v61  ;;  %14843 = vst [vmem:[#allocation116_spill] sm:$0xff] %v11516_v28  ;;  %v14846_v18 = vld [vmem:[#allocation15_spill] sm:$0xff]  ;;  %v11528_v61 = vpop.eup %7790  ;;  %7804 = vpow2.f32 %v2810_v44  ;;  %v14854_v44 = vld [vmem:[#allocation69_spill] sm:$0xff] }
 0x398   :  { %6998 = vmatprep.subr.bf16.mxu1 %v14419_v27  ;;  %6986 = vmatprep.subr.bf16.mxu0 %v14419_v27  ;;  %v11514_v43 = vmul.f32 %v14685_v53, %v10971_v5  ;;  %v7014_v49 = vpack.c.bf16 %v14845_v57, %v14844_v54  ;;  %v3260_v39 = vmax.f32 %v11480_v62, %v3258_v14  ;;  %v11538_v54 = vpop.eup %7792  ;;  %v14851_v57 = vld [vmem:[#allocation53_spill] sm:$0xff]  ;;  %7806 = vpow2.f32 %v11441_v10 }
 0x399   :  { %4970 = vperm.xlu0 %7487, %v14846_v18   ;;  %v11526_v15 = vmul.f32 %v14704_v52, %v14847_v13  ;;  %v2654_v5 = vadd.f32 %v11507_v48, %v2653_v0  ;;  %v14849_v28 = vsub.f32 %v11022_v50, %v11224_v1  ;;  %v2897_v42 = vadd.f32 %v11518_v35, %v2896_v45  ;;  %v14850_v13 = vld [vmem:[#allocation49_spill] sm:$0xff]  ;;  %v11546_v18 = vpop.eup %7794 }
 0x39a   :  { %14842 = vst [vmem:[#allocation120_spill] sm:$0xff] %v11514_v43  ;;  %v3014_v14 = vmax.f32 %v11495_v38, %v3011_v47  ;;  %v7002_v0 = vpack.c.bf16 %v14851_v57, %v14850_v13  ;;  %v14852_v50 = vld [vmem:[#allocation93_spill] sm:$0xff]  ;;  %v3261_v45 = vmax.f32 %v3254_v60, %v3260_v39  ;;  %v11553_v38 = vmul.f32 %v14704_v52, %v14854_v44  ;;  %v11556_v13 = vpop.eup %7796  ;;  %v14860_v57 = vld [vmem:[#allocation79_spill] sm:$0xff] }
 0x39b   :  { %14848 = vst [vmem:[#allocation34_spill] sm:$0xff] %v11526_v15  ;;  %v2816_v9 = vmul.f32 1.442695, %v14849_v28  ;;  %7000 = vmatpush3.bf16.msra.mxu1 %v6999_v33  ;;  %6988 = vmatpush3.bf16.msra.mxu0 %v6987_v30  ;;  %v14853_v28 = vld [vmem:[#allocation54_spill] sm:$0xff]  ;;  %v2655_v33 = vadd.f32 %v11528_v61, %v2654_v5  ;;  %v2898_v30 = vadd.f32 %v11538_v54, %v2897_v42  ;;  %v14857_v60 = vrot.slane %v10573_v3, 6  ;;  %v14858_v42 = vld [vmem:[#allocation145_spill] sm:$0xff] }
 0x39c   :  { %7001 = vmatprep.subr.bf16.mxu1 %v14419_v27  ;;  %7013 = vmatprep.subr.bf16.mxu0 %v14419_v27  ;;  %v7005_v62 = vpack.c.bf16 %v14853_v28, %v14852_v50  ;;  %v3012_v47 = vmax.f32 %v11514_v43, %v3014_v14  ;;  %14855 = vst [vmem:[#allocation33_spill] sm:$0xff] %v11553_v38  ;;  %v13955_v39 = vmov 19   ;;  %v11571_v28 = vpop.permute.xlu1 %3677  ;;  %v11584_v3 = vpop.eup %7798  ;;  %7808 = vpow2.f32 %v2814_v59  ;;  %v14869_v59 = vld [vmem:[#allocation3_spill] sm:$0xff]  ;;  %v14897_v43 = vld [vmem:[#allocation98_spill] sm:$0xff] }
 0x39d   :  { %3959 = vperm.xlu1 %7473, %v14856_v4   ;;  %7492 = vset.pattern.permute.xlu0 %v13955_v39  ;;  %v3264_v5 = vmax.f32 %v11526_v15, %v3261_v45  ;;  %v11565_v14 = vmul.f32 %v14685_v53, %v14858_v42  ;;  %v11569_v50 = vmul.f32 %v14685_v53, %v14860_v57  ;;  %v14865_v45 = vld [vmem:[#allocation48_spill] sm:$0xff]  ;;  %v14870_v57 = vld [vmem:[#allocation71_spill] sm:$0xff]  ;;  %7810 = vpow2.f32 %v2816_v9 }
 0x39e   :  { %6301 = vmatmul.mubr.f32.vlgmr.msra.gmra.mrb[22].mxu0 %v14857_v60  ;;  %14862 = vst [vmem:[#allocation82_spill] sm:$0xff] %v11571_v28  ;;  %v11574_v10 = vadd.f32 %v11546_v18, %v2655_v33  ;;  %v14864_v44 = vsub.f32 %v14819_v21, %v11224_v1  ;;  %v2899_v39 = vadd.f32 %v11556_v13, %v2898_v30  ;;  %v14867_v21 = vld [vmem:[#allocation52_spill] sm:$0xff] }
 0x39f   :  { %14859 = vst [vmem:[#allocation42_spill] sm:$0xff] %v11565_v14  ;;  %14861 = vst [vmem:[#allocation92_spill] sm:$0xff] %v11569_v50  ;;  %7003 = vmatpush3.bf16.msra.mxu1 %v7002_v0  ;;  %7015 = vmatpush3.bf16.msra.mxu0 %v7014_v49  ;;  %v11582_v42 = vmul.f32 %v14685_v53, %v14865_v45  ;;  %v3262_v33 = vmax.f32 %v11553_v38, %v3264_v5  ;;  %v11595_v0 = vpop.permute.xlu0 %3689  ;;  %v14873_v45 = vld [vmem:[#allocation95_spill] sm:$0xff]  ;;  %v14876_v28 = vld [vmem:[#allocation56_spill] sm:$0xff] }
 0x3a0   :  { %14863 = vst [vmem:[#allocation117_spill] sm:$0xff] %v11574_v10  ;;  %v2818_v60 = vmul.f32 1.442695, %v14864_v44  ;;  %7004 = vmatprep.subr.bf16.mxu1 %v14419_v27  ;;  %7016 = vmatprep.subr.bf16.mxu0 %v14419_v27  ;;  %v3013_v1 = vmax.f32 %v11565_v14, %v3012_v47  ;;  %v11592_v30 = vmul.f32 %v14704_v52, %v14867_v21  ;;  %v11606_v47 = vpop.eup %7800  ;;  %v14872_v44 = vld [vmem:[#allocation20_spill] sm:$0xff] }
 0x3a1   :  { %14866 = vst [vmem:[#allocation74_spill] sm:$0xff] %v11582_v42  ;;  %v2900_v49 = vadd.f32 %v11584_v3, %v2899_v39  ;;  %v7017_v53 = vpack.c.bf16 %v11319_v16, %v11304_v56  ;;  %5168 = vperm.xlu0 %7492, %v14869_v59   ;;  %6370 = vmatprep.mubr.msk.f32.mxu0 %vm8201_vm0, %v14529_v7  ;;  %v14874_v56 = vld [vmem:[#allocation12_spill] sm:$0xff]  ;;  %v14875_v16 = vld [vmem:[#allocation75_spill] sm:$0xff] }
 0x3a2   :  { %14868 = vst [vmem:[#allocation25_spill] sm:$0xff] %v11592_v30  ;;  %v11604_v5 = vmul.f32 %v14704_v52, %v14870_v57  ;;  %v653_v21 = vadd.f32 %v14873_v45, %v14872_v44  ;;  %v3015_v39 = vmax.f32 %v11569_v50, %v3013_v1  ;;  %v3265_v10 = vmax.f32 %v3262_v33, %v11592_v30  ;;  %v11616_v52 = vpop.permute.xlu1 %3685  ;;  %v11618_v57 = vpop.eup %7802  ;;  %v14879_v44 = vld [vmem:[#allocation47_spill] sm:$0xff] }
 0x3a3   :  { %3963 = vperm.xlu1 %7473, %v14874_v56   ;;  %v1145_v38 = vadd.f32 %v14876_v28, %v14875_v16  ;;  %v2901_v15 = vadd.f32 %v11606_v47, %v2900_v49  ;;  %7006 = vmatpush3.bf16.msra.mxu1 %v7005_v62  ;;  %14877 = vst [vmem:[#allocation125_spill] sm:$0xff] %v11616_v52  ;;  %7812 = vpow2.f32 %v2818_v60  ;;  %v14878_v28 = vld [vmem:[#allocation112_spill] sm:$0xff]  ;;  %v11630_v45 = vpop.eup %7804  ;;  %v14881_v60 = vld [vmem:[#allocation123_spill] sm:$0xff]  ;;  %v14882_v30 = vmov 15  }
 0x3a4   :  { %14871 = vst [vmem:[#allocation40_spill] sm:$0xff] %v11604_v5  ;;  %7018 = vmatpush3.bf16.msra.mxu0 %v7017_v53  ;;  %7007 = vmatprep.subr.bf16.mxu1 %v14419_v27  ;;  %v3016_v9 = vmax.f32 %v11582_v42, %v3015_v39  ;;  %v3266_v33 = vmax.f32 %v11604_v5, %v3265_v10  ;;  %v14880_v53 = vld [vmem:[#allocation4_spill] sm:$0xff]  ;;  %v14883_v39 = vld [vmem:[#allocation67_spill] sm:$0xff] }
 0x3a5   :  { %7019 = vmatprep.subr.bf16.mxu0 %v14419_v27  ;;  %v2902_v1 = vadd.f32 %v11618_v57, %v2901_v15  ;;  %v7008_v49 = vpack.c.bf16 %v14879_v44, %v14878_v28  ;;  %v7020_v62 = vpack.c.bf16 %v11351_v36, %v11334_v63  ;;  %5180 = vperm.xlu0 %7492, %v14880_v53   ;;  %v11636_v15 = vpop.permute.xlu0 %3697  ;;  %v11638_v28 = vpop.eup %7806  ;;  %v14888_v5 = vld [vmem:[#allocation111_spill] sm:$0xff]  ;;  %v14891_v42 = vld [vmem:[#allocation68_spill] sm:$0xff] }
 0x3a6   :  { %v654_v16 = vadd.f32 %v14881_v60, %v653_v21  ;;  %v3017_v52 = vrot.slane %v3016_v9, 4  ;;  %v1146_v59 = vadd.f32 %v14883_v39, %v1145_v38  ;;  %v3267_v36 = vrot.slane %v3266_v33, 4  ;;  %v11642_v21 = vpop.permute.xlu1 %3693  ;;  %v14885_v60 = vld [vmem:[#allocation27_spill] sm:$0xff]  ;;  %v14886_v38 = vld [vmem:[#allocation86_spill] sm:$0xff] }
 0x3a7   :  { %7474 = vset.pattern.permute.xlu1 %v14882_v30  ;;  %v2903_v10 = vadd.f32 %v11630_v45, %v2902_v1  ;;  %7009 = vmatpush3.bf16.msra.mxu1 %v7008_v49  ;;  %14884 = vst [vmem:[#allocation128_spill] sm:$0xff] %v11642_v21  ;;  %v7011_v39 = vpack.c.bf16 %v14886_v38, %v14885_v60  ;;  %v14887_v49 = vld [vmem:[#allocation6_spill] sm:$0xff]  ;;  %v14893_v60 = vld [vmem:[#allocation101_spill] sm:$0xff] }
 0x3a8   :  { %7021 = vmatpush3.bf16.msra.mxu0 %v7020_v62  ;;  %7010 = vmatprep.subr.bf16.mxu1 %v14419_v27  ;;  %v3018_v63 = vmax.f32 %v3016_v9, %v3017_v52  ;;  %v7023_v1 = vpack.c.bf16 %v11379_v19, %v11365_v51  ;;  %v11651_v62 = vpop.eup %7808  ;;  %v655_v53 = vadd.f32 %v14888_v5, %v654_v16  ;;  %v14889_v52 = vld [vmem:[#allocation76_spill] sm:$0xff]  ;;  %v14894_v16 = vld [vmem:[#allocation118_spill] sm:$0xff] }
 0x3a9   :  { %7022 = vmatprep.subr.bf16.mxu0 %v14419_v27  ;;  %v2904_v44 = vadd.f32 %v11638_v28, %v2903_v10  ;;  %5188 = vperm.xlu0 %7492, %v14887_v49   ;;  %v14890_v9 = vsub.s32 4, %v14889_v52  ;;  %v11662_v10 = vld [vmem:[%s13533_s0] sm:$0xff]  ;;  %v1147_v38 = vadd.f32 %v14893_v60, %v1146_v59  ;;  %v11667_v5 = vpop.eup %7810  ;;  %v3268_v50 = vmax.f32 %v3266_v33, %v3267_v36  ;;  %v3702_v14 = vpop.permute.xlu0 %3701  ;;  %v14896_v60 = vld [vmem:[#allocation17_spill] sm:$0xff] }
 0x3aa   :  { %4205 = vperm.xlu1 %7474, %v14562_v58   ;;  %14892 = vst [vmem:[#allocation119_spill] sm:$0xff] %v11662_v10  ;;  %v3019_v19 = vrot.slane %v3018_v63, 2  ;;  %v7038_v59 = vpack.c.bf16 %v11423_v12, %v11415_v25  ;;  %v14899_v25 = vrot.slane %v11662_v10, 7 }
 0x3ab   :  { %v11657_v21 = vrot.slane %v14891_v42, %v14890_v9  ;;  %v2905_v58 = vadd.f32 %v11651_v62, %v2904_v44  ;;  %7012 = vmatpush3.bf16.msra.mxu1 %v7011_v39  ;;  %v7026_v44 = vpack.c.bf16 %v11405_v55, %v11390_v2  ;;  %v14895_v39 = vld [vmem:[#allocation8_spill] sm:$0xff]  ;;  %v11695_v55 = vpop.permute.xlu1 %3451 }
 0x3ac   :  { %7024 = vmatpush3.bf16.msra.mxu0 %v7023_v1  ;;  %7037 = vmatprep.subr.bf16.mxu1 %v14419_v27  ;;  %v3020_v49 = vmax.f32 %v3018_v63, %v3019_v19 }
 0x3ad   :  { %v11671_v9 = vmul.f32 %v11657_v21, %v14894_v16  ;;  %7025 = vmatprep.subr.bf16.mxu0 %v14419_v27  ;;  %v2906_v51 = vadd.f32 %v11667_v5, %v2905_v58  ;;  %5196 = vperm.xlu0 %7492, %v14895_v39   ;;  %v11682_v1 = vpop.eup %7812  ;;  %v656_v16 = vadd.f32 %v14896_v60, %v655_v53  ;;  %v14898_v58 = vld [vmem:[#allocation126_spill] sm:$0xff]  ;;  %v14901_v53 = vsub.s32 5, %v14889_v52 }
 0x3ae   :  { %4209 = vperm.xlu1 %7474, %v14856_v4   ;;  %v11687_v33 = vmul.f32 %v11657_v21, %v14897_v43  ;;  %v11691_v63 = vmul.f32 %v11657_v21, %v14898_v58  ;;  %6336 = vmatmul.mubr.f32.vlgmr.msra.gmra.mrb[12].mxu1 %v14899_v25  ;;  %v3021_v2 = vrot.slane %v3020_v49, 1  ;;  %v3269_v60 = vrot.slane %v3268_v50, 2  ;;  %v14902_v58 = vld [vmem:[#allocation28_spill] sm:$0xff] }
 0x3af   :  { %v11698_v12 = vadd.f32 %v11682_v1, %v2906_v51  ;;  %7039 = vmatpush3.bf16.msra.mxu1 %v7038_v59  ;;  %v11703_v43 = vrot.slane %v14891_v42, %v14901_v53  ;;  %v11713_v51 = vmul.f32 %v11657_v21, %v11345_v17  ;;  %v7041_v59 = vpack.c.bf16 %v11468_v46, %v11439_v37  ;;  %v14904_v53 = vld [vmem:[#allocation135_spill] sm:$0xff]  ;;  %v11732_v37 = vpop.permute.xlu1 %3459  ;;  %v14905_v46 = vld [vmem:[#allocation90_spill] sm:$0xff] }
 0x3b0   :  { %7027 = vmatpush3.bf16.msra.mxu0 %v7026_v44  ;;  %v3502_v36 = vmax.f32 %v11687_v33, %v11671_v9  ;;  %7040 = vmatprep.subr.bf16.mxu1 %v14419_v27  ;;  %v11709_v19 = vmax.f32 %v3020_v49, %v3021_v2  ;;  %v7029_v44 = vpack.c.bf16 %v11455_v41, %v11428_v26  ;;  %v14903_v49 = vld [vmem:[#allocation109_spill] sm:$0xff]  ;;  %v3714_v41 = vpop.permute.xlu0 %3713 }
 0x3b1   :  { %14900 = vst [vmem:[#allocation61_spill] sm:$0xff] %v11698_v12  ;;  %7028 = vmatprep.subr.bf16.mxu0 %v14419_v27  ;;  %5200 = vperm.xlu0 %7492, %v14754_v40   ;;  %v11723_v25 = vadd.f32 %v14902_v58, %v656_v16  ;;  %v11726_v2 = vadd.f32 %v14903_v49, %v1147_v38  ;;  %v14906_v16 = vld [vmem:[#allocation132_spill] sm:$0xff] }
 0x3b2   :  { %6405 = vmatprep.mubr.msk.f32.mxu1 %vm8201_vm0, %v14529_v7  ;;  %v3504_v17 = vmax.f32 %v3502_v36, %v11691_v63  ;;  %v3023_v10 = vsub.f32 %v14904_v53, %v11709_v19  ;;  %7475 = vset.pattern.permute.xlu1 %v14703_v8  ;;  %v11736_v26 = vmul.f32 %v11657_v21, %v11393_v32 }
 0x3b3   :  { %7042 = vmatpush3.bf16.msra.mxu1 %v7041_v59  ;;  %v3024_v38 = vsub.f32 %v14905_v46, %v11709_v19  ;;  %v3025_v36 = vsub.f32 %v14906_v16, %v11709_v19  ;;  %v11744_v58 = vmul.f32 %v11703_v43, %v11595_v0  ;;  %v11748_v8 = vmul.f32 %v11703_v43, %v11636_v15 }
 0x3b4   :  { %7030 = vmatpush3.bf16.msra.mxu0 %v7029_v44  ;;  %7043 = vmatprep.subr.bf16.mxu1 %v14419_v27  ;;  %v3039_v32 = vmul.f32 1.442695, %v3023_v10  ;;  %v3270_v59 = vmax.f32 %v3268_v50, %v3269_v60  ;;  %v3503_v44 = vmax.f32 %v11713_v51, %v3504_v17  ;;  %v7044_v49 = vpack.c.bf16 %v11518_v35, %v11497_v20 }
 0x3b5   :  { %14907 = vst [vmem:[#allocation30_spill] sm:$0xff] %v11744_v58  ;;  %14908 = vst [vmem:[#allocation127_spill] sm:$0xff] %v11748_v8  ;;  %7031 = vmatprep.subr.bf16.mxu0 %v14419_v27  ;;  %v7032_v53 = vpack.c.bf16 %v11507_v48, %v11483_v29  ;;  %5212 = vperm.xlu0 %7492, %v14874_v56   ;;  %v3026_v0 = vsub.f32 %v11281_v6, %v11709_v19  ;;  %v14913_v29 = vld [vmem:[#allocation19_spill] sm:$0xff]  ;;  %v11775_v48 = vpop.permute.xlu1 %3463  ;;  %v3041_v35 = vmul.f32 1.442695, %v3024_v38 }
 0x3b6   :  { %v11762_v15 = vmul.f32 %v11703_v43, %v11459_v24  ;;  %v11766_v50 = vmul.f32 %v11703_v43, %v11535_v34  ;;  %v11769_v10 = vmul.f32 %v11703_v43, %v3702_v14  ;;  %v11772_v20 = vmul.f32 %v11703_v43, %v3714_v41  ;;  %3967 = vperm.xlu1 %7475, %v14913_v29   ;;  %v14914_v6 = vld [vmem:[#allocation59_spill] sm:$0xff] }
 0x3b7   :  { %7045 = vmatpush3.bf16.msra.mxu1 %v7044_v49  ;;  %v3027_v24 = vsub.f32 %v14914_v6, %v11709_v19  ;;  %7814 = vpow2.f32 %v3039_v32  ;;  %v3043_v60 = vmul.f32 1.442695, %v3025_v36  ;;  %v7047_v17 = vpack.c.bf16 %v11556_v13, %v11538_v54  ;;  %v14915_v13 = vld [vmem:[#allocation114_spill] sm:$0xff] }
 0x3b8   :  { %14909 = vst [vmem:[#allocation129_spill] sm:$0xff] %v11762_v15  ;;  %14910 = vst [vmem:[#allocation58_spill] sm:$0xff] %v11766_v50  ;;  %7033 = vmatpush3.bf16.msra.mxu0 %v7032_v53  ;;  %v3753_v34 = vmax.f32 %v11762_v15, %v11744_v58  ;;  %v3755_v14 = vmax.f32 %v11766_v50, %v11748_v8  ;;  %7046 = vmatprep.subr.bf16.mxu1 %v14419_v27  ;;  %v3271_v41 = vrot.slane %v3270_v59, 1 }
 0x3b9   :  { %14911 = vst [vmem:[#allocation22_spill] sm:$0xff] %v11769_v10  ;;  %14912 = vst [vmem:[#allocation148_spill] sm:$0xff] %v11772_v20  ;;  %7034 = vmatprep.subr.bf16.mxu0 %v14419_v27  ;;  %v7035_v46 = vpack.c.bf16 %v11546_v18, %v11528_v61  ;;  %5216 = vperm.xlu0 %7492, %v14913_v29   ;;  %v3028_v38 = vsub.f32 %v11302_v11, %v11709_v19  ;;  %7816 = vpow2.f32 %v3041_v35  ;;  %v14916_v18 = vld [vmem:[#allocation31_spill] sm:$0xff]  ;;  %v14938_v29 = vmov 16  }
 0x3ba   :  { %v3045_v16 = vmul.f32 1.442695, %v3026_v0  ;;  %v3507_v36 = vmax.f32 %v3503_v44, %v11736_v26  ;;  %v11794_v32 = vmax.f32 %v11769_v10, %v3753_v34  ;;  %v11797_v54 = vmax.f32 %v3755_v14, %v11772_v20  ;;  %3975 = vperm.xlu1 %7475, %v14916_v18   ;;  %v14917_v61 = vld [vmem:[#allocation131_spill] sm:$0xff]  ;;  %v11808_v0 = vpop.permute.xlu1 %3705 }
 0x3bb   :  { %v11801_v49 = vmul.f32 %v11657_v21, %v14915_v13  ;;  %7048 = vmatpush3.bf16.msra.mxu1 %v7047_v17  ;;  %v7050_v11 = vpack.c.bf16 %v11606_v47, %v11584_v3  ;;  %v3029_v44 = vsub.f32 %v14917_v61, %v11709_v19  ;;  %7818 = vpow2.f32 %v3043_v60  ;;  %v14918_v3 = vld [vmem:[#allocation26_spill] sm:$0xff]  ;;  %v14919_v60 = vld [vmem:[#allocation105_spill] sm:$0xff] }
 0x3bc   :  { %7036 = vmatpush3.bf16.msra.mxu0 %v7035_v46  ;;  %v3047_v53 = vmul.f32 1.442695, %v3027_v24  ;;  %7049 = vmatprep.subr.bf16.mxu1 %v14419_v27  ;;  %v3030_v6 = vsub.f32 %v11388_v31, %v11709_v19  ;;  %v11813_v35 = vmax.f32 %v3270_v59, %v3271_v41  ;;  %v11817_v34 = vmul.f32 %v11657_v21, %v11342_v22  ;;  %v11830_v31 = vld [vmem:[%s13533_s0 + $0x8] sm:$0xff]  ;;  %v14924_v61 = vld [vmem:[#allocation94_spill] sm:$0xff] }
 0x3bd   :  { %7061 = vmatprep.subr.bf16.mxu0 %v14419_v27  ;;  %5228 = vperm.xlu0 %7492, %v14918_v3   ;;  %v3031_v47 = vsub.f32 %v11465_v23, %v11709_v19  ;;  %7820 = vpow2.f32 %v3045_v16  ;;  %v3049_v24 = vmul.f32 1.442695, %v3028_v38  ;;  %v11825_v14 = vmul.f32 %v11657_v21, %v14919_v60  ;;  %14920 = vst [vmem:[#allocation60_spill] sm:$0xff] %v11830_v31  ;;  %v14921_v22 = vld [vmem:[#allocation63_spill] sm:$0xff]  ;;  %v14926_v17 = vld [vmem:[#allocation18_spill] sm:$0xff] }
 0x3be   :  { %v3032_v59 = vsub.f32 %v14921_v22, %v11709_v19  ;;  %v3506_v23 = vmax.f32 %v11801_v49, %v3507_v36  ;;  %v14922_v41 = vld [vmem:[#allocation143_spill] sm:$0xff]  ;;  %3979 = vperm.xlu1 %7475, %v14918_v3   ;;  %7822 = vpow2.f32 %v3047_v53  ;;  %v3051_v13 = vmul.f32 1.442695, %v3029_v44  ;;  %v11856_v53 = vpop.permute.xlu1 %3709 }
 0x3bf   :  { %6371 = vmatmul.mubr.f32.vlgmr.msra.gmra.mrb[24].mxu0 %v11830_v31  ;;  %v11839_v46 = vmul.f32 %v11657_v21, %v14922_v41  ;;  %7051 = vmatpush3.bf16.msra.mxu1 %v7050_v11  ;;  %v14923_v38 = vld [vmem:[#allocation39_spill] sm:$0xff]  ;;  %v11846_v60 = vmul.f32 %v11657_v21, %v14924_v61  ;;  %v7053_v36 = vpack.c.bf16 %v11630_v45, %v11618_v57  ;;  %v3053_v22 = vmul.f32 1.442695, %v3030_v6  ;;  %v14925_v11 = vld [vmem:[#allocation41_spill] sm:$0xff] }
 0x3c0   :  { %v3033_v16 = vsub.f32 %v14923_v38, %v11709_v19  ;;  %6440 = vmatprep.mubr.msk.f32.mxu0 %vm8201_vm0, %v14529_v7  ;;  %7052 = vmatprep.subr.bf16.mxu1 %v14419_v27  ;;  %v3273_v41 = vsub.f32 %v14925_v11, %v11813_v35  ;;  %v3508_v38 = vmax.f32 %v11817_v34, %v3506_v23  ;;  %7824 = vpow2.f32 %v3049_v24  ;;  %v14927_v23 = vld [vmem:[#allocation32_spill] sm:$0xff]  ;;  %v14929_v3 = vld [vmem:[#allocation15_spill] sm:$0xff] }
 0x3c1   :  { %v11858_v44 = vpop.eup %7814  ;;  %v3055_v61 = vmul.f32 1.442695, %v3031_v47  ;;  %v3274_v12 = vsub.f32 %v14926_v17, %v11813_v35  ;;  %v3505_v42 = vmax.f32 %v11839_v46, %v11825_v14  ;;  %v7056_v57 = vpack.c.bf16 %v11651_v62, %v11638_v28  ;;  %v14928_v17 = vld [vmem:[#allocation43_spill] sm:$0xff]  ;;  %v14930_v28 = vld [vmem:[#allocation120_spill] sm:$0xff] }
 0x3c2   :  { %v7059_v45 = vpack.c.bf16 %v11682_v1, %v11667_v5  ;;  %v3057_v6 = vmul.f32 1.442695, %v3032_v59  ;;  %v3275_v11 = vsub.f32 %v14927_v23, %v11813_v35  ;;  %7477 = vset.pattern.permute.xlu1 %v14882_v30  ;;  %7826 = vpow2.f32 %v3051_v13  ;;  %v14931_v59 = vld [vmem:[#allocation42_spill] sm:$0xff]  ;;  %v14932_v23 = vld [vmem:[#allocation107_spill] sm:$0xff] }
 0x3c3   :  { %v7817_v24 = vpop.eup %7816  ;;  %7054 = vmatpush3.bf16.msra.mxu1 %v7053_v36  ;;  %v3059_v47 = vmul.f32 1.442695, %v3033_v16  ;;  %v3276_v52 = vsub.f32 %v14928_v17, %v11813_v35  ;;  %v3509_v20 = vmax.f32 %v11846_v60, %v3508_v38  ;;  %4221 = vperm.xlu1 %7477, %v14929_v3   ;;  %v3034_v62 = vsub.f32 %v14930_v28, %v11709_v19 }
 0x3c4   :  { %7055 = vmatprep.subr.bf16.mxu1 %v14419_v27  ;;  %7828 = vpow2.f32 %v3053_v22  ;;  %v3143_v5 = vadd.f32 %v7817_v24, %v11858_v44  ;;  %v3289_v30 = vmul.f32 1.442695, %v3273_v41  ;;  %v3035_v16 = vsub.f32 %v14931_v59, %v11709_v19  ;;  %v11888_v22 = vpop.permute.xlu1 %3467  ;;  %v14933_v41 = vld [vmem:[#allocation45_spill] sm:$0xff] }
 0x3c5   :  { %v11879_v1 = vpop.eup %7818  ;;  %7830 = vpow2.f32 %v3055_v61  ;;  %v3291_v13 = vmul.f32 1.442695, %v3274_v12  ;;  %v11883_v36 = vmax.f32 %v3505_v42, %v3509_v20  ;;  %v3277_v17 = vsub.f32 %v14932_v23, %v11813_v35  ;;  %v14934_v12 = vld [vmem:[#allocation44_spill] sm:$0xff] }
 0x3c6   :  { %7832 = vpow2.f32 %v3057_v6  ;;  %v3144_v38 = vadd.f32 %v11879_v1, %v3143_v5  ;;  %v3293_v28 = vmul.f32 1.442695, %v3275_v11  ;;  %v3278_v10 = vsub.f32 %v14933_v41, %v11813_v35  ;;  %v14935_v11 = vld [vmem:[#allocation92_spill] sm:$0xff] }
 0x3c7   :  { %v7821_v3 = vpop.eup %7820  ;;  %7057 = vmatpush3.bf16.msra.mxu1 %v7056_v57  ;;  %7834 = vpow2.f32 %v3059_v47  ;;  %v3295_v59 = vmul.f32 1.442695, %v3276_v52  ;;  %4225 = vperm.xlu1 %7477, %v14916_v18   ;;  %v11895_v42 = vmul.f32 %v11657_v21, %v11695_v55  ;;  %v3036_v20 = vsub.f32 %v14934_v12, %v11709_v19  ;;  %v14936_v5 = vld [vmem:[#allocation24_spill] sm:$0xff] }
 0x3c8   :  { %7058 = vmatprep.subr.bf16.mxu1 %v14419_v27  ;;  %v3061_v61 = vmul.f32 1.442695, %v3034_v62  ;;  %v3145_v6 = vadd.f32 %v7821_v3, %v3144_v38  ;;  %7836 = vpow2.f32 %v3289_v30  ;;  %v11900_v57 = vpop.eup %7822  ;;  %v3037_v47 = vsub.f32 %v14935_v11, %v11709_v19  ;;  %v14937_v62 = vld [vmem:[#allocation122_spill] sm:$0xff] }
 0x3c9   :  { %v3063_v52 = vmul.f32 1.442695, %v3035_v16  ;;  %v3279_v23 = vsub.f32 %v14936_v5, %v11813_v35  ;;  %7838 = vpow2.f32 %v3291_v13  ;;  %v3297_v41 = vmul.f32 1.442695, %v3277_v17  ;;  %v14939_v13 = vld [vmem:[#allocation74_spill] sm:$0xff]  ;;  %v11934_v5 = vpop.permute.xlu0 %3717 }
 0x3ca   :  { %v3146_v55 = vadd.f32 %v11900_v57, %v3145_v6  ;;  %7840 = vpow2.f32 %v3293_v28  ;;  %v7062_v18 = vpack.c.bf16 %v7817_v24, %v11858_v44  ;;  %v7825_v12 = vpop.eup %7824  ;;  %v3280_v30 = vsub.f32 %v14937_v62, %v11813_v35  ;;  %v3476_v44 = vpop.permute.xlu1 %3475 }
 0x3cb   :  { %7060 = vmatpush3.bf16.msra.mxu1 %v7059_v45  ;;  %7842 = vpow2.f32 %v3295_v59  ;;  %v3299_v38 = vmul.f32 1.442695, %v3278_v10  ;;  %7478 = vset.pattern.permute.xlu1 %v14938_v29  ;;  %v3511_v16 = vmax.f32 %v11895_v42, %v11883_v36  ;;  %v3038_v11 = vsub.f32 %v14939_v13, %v11709_v19  ;;  %v14940_v10 = vld [vmem:[#allocation83_spill] sm:$0xff] }
 0x3cc   :  { %7844 = vpow2.f32 %v3061_v61  ;;  %v3065_v28 = vmul.f32 1.442695, %v3036_v20  ;;  %v3147_v17 = vadd.f32 %v7825_v12, %v3146_v55  ;;  %7063 = vmatpush3.bf16.msra.mxu0 %v7062_v18  ;;  %7085 = vmatprep.subr.bf16.mxu1 %v14419_v27  ;;  %v11916_v45 = vpop.eup %7826  ;;  %v3067_v24 = vmul.f32 1.442695, %v3037_v47  ;;  %v14941_v36 = vld [vmem:[#allocation3_spill] sm:$0xff]  ;;  %v14943_v55 = vld [vmem:[#allocation34_spill] sm:$0xff] }
 0x3cd   :  { %7846 = vpow2.f32 %v3063_v52  ;;  %v3281_v59 = vsub.f32 %v14940_v10, %v11813_v35  ;;  %7064 = vmatprep.subr.bf16.mxu0 %v14419_v27  ;;  %4419 = vperm.xlu1 %7478, %v14941_v36   ;;  %v11924_v19 = vmul.f32 %v11657_v21, %v11732_v37  ;;  %v14942_v61 = vrot.slane %v11830_v31, 1 }
 0x3ce   :  { %v11926_v20 = vpop.eup %7828  ;;  %v3148_v18 = vadd.f32 %v11916_v45, %v3147_v17  ;;  %7848 = vpow2.f32 %v3297_v41  ;;  %v3301_v6 = vmul.f32 1.442695, %v3279_v23  ;;  %v7065_v47 = vpack.c.bf16 %v7821_v3, %v11879_v1  ;;  %v14944_v23 = vld [vmem:[#allocation33_spill] sm:$0xff] }
 0x3cf   :  { %6406 = vmatmul.mubr.f32.vlgmr.msra.gmra.mrb[14].mxu1 %v14942_v61  ;;  %v11932_v52 = vpop.eup %7830  ;;  %v3282_v62 = vsub.f32 %v14943_v55, %v11813_v35  ;;  %7850 = vpow2.f32 %v3299_v38  ;;  %v3303_v37 = vmul.f32 1.442695, %v3280_v30  ;;  %v11940_v13 = vmul.f32 %v11657_v21, %v11775_v48  ;;  %v14945_v30 = vld [vmem:[#allocation77_spill] sm:$0xff]  ;;  %v3480_v55 = vpop.permute.xlu1 %3479 }
 0x3d0   :  { %6475 = vmatprep.mubr.msk.f32.mxu1 %vm8201_vm0, %v14529_v7  ;;  %v11944_v41 = vpop.eup %7832  ;;  %7852 = vpow2.f32 %v3065_v28  ;;  %v3069_v3 = vmul.f32 1.442695, %v3038_v11  ;;  %v3149_v1 = vadd.f32 %v11926_v20, %v3148_v18  ;;  %v3283_v17 = vsub.f32 %v14944_v23, %v11813_v35  ;;  %7066 = vmatpush3.bf16.msra.mxu0 %v7065_v47  ;;  %v14946_v38 = vld [vmem:[#allocation5_spill] sm:$0xff] }
 0x3d1   :  { %v11949_v10 = vpop.eup %7834  ;;  %7854 = vpow2.f32 %v3067_v24  ;;  %v3284_v48 = vsub.f32 %v14945_v30, %v11813_v35  ;;  %7067 = vmatprep.subr.bf16.mxu0 %v14419_v27  ;;  %4427 = vperm.xlu1 %7478, %v14946_v38   ;;  %v3514_v61 = vmax.f32 %v11924_v19, %v3511_v16  ;;  %v11958_v11 = vmul.f32 %v11657_v21, %v11888_v22  ;;  %v14947_v30 = vld [vmem:[#allocation151_spill] sm:$0xff] }
 0x3d2   :  { %v7837_v28 = vpop.eup %7836  ;;  %v3150_v18 = vadd.f32 %v11932_v52, %v3149_v1  ;;  %7856 = vpow2.f32 %v3301_v6  ;;  %v3305_v47 = vmul.f32 1.442695, %v3281_v59  ;;  %v7068_v24 = vpack.c.bf16 %v7825_v12, %v11900_v57  ;;  %v3730_v59 = vpop.permute.xlu0 %3729  ;;  %v14948_v57 = vld [vmem:[#allocation4_spill] sm:$0xff] }
 0x3d3   :  { %v7839_v23 = vpop.eup %7838  ;;  %v3285_v36 = vsub.f32 %v14947_v30, %v11813_v35  ;;  %7858 = vpow2.f32 %v3303_v37  ;;  %v3307_v8 = vmul.f32 1.442695, %v3282_v62  ;;  %v3512_v16 = vmax.f32 %v11940_v13, %v3514_v61 }
 0x3d4   :  { %v7841_v58 = vpop.eup %7840  ;;  %7860 = vpow2.f32 %v3069_v3  ;;  %v3151_v22 = vadd.f32 %v11944_v41, %v3150_v18  ;;  %v3393_v50 = vadd.f32 %v7839_v23, %v7837_v28  ;;  %7069 = vmatpush3.bf16.msra.mxu0 %v7068_v24  ;;  %v7086_v1 = vpack.c.bf16 %v7839_v23, %v7837_v28  ;;  %v14949_v24 = vld [vmem:[#allocation25_spill] sm:$0xff] }
 0x3d5   :  { %v7843_v6 = vpop.eup %7842  ;;  %v3309_v15 = vmul.f32 1.442695, %v3283_v17  ;;  %7070 = vmatprep.subr.bf16.mxu0 %v14419_v27  ;;  %4431 = vperm.xlu1 %7478, %v14948_v57   ;;  %v3513_v12 = vmax.f32 %v11958_v11, %v3512_v16  ;;  %v11970_v62 = vmul.f32 %v11657_v21, %v3476_v44  ;;  %v11973_v37 = vmul.f32 %v11657_v21, %v3480_v55 }
 0x3d6   :  { %v11975_v3 = vpop.eup %7844  ;;  %v3152_v61 = vadd.f32 %v11949_v10, %v3151_v22  ;;  %7862 = vpow2.f32 %v3305_v47  ;;  %v3394_v28 = vadd.f32 %v7841_v58, %v3393_v50  ;;  %7087 = vmatpush3.bf16.msra.mxu1 %v7086_v1  ;;  %v7071_v17 = vpack.c.bf16 %v11926_v20, %v11916_v45  ;;  %v14951_v1 = vld [vmem:[#allocation6_spill] sm:$0xff] }
 0x3d7   :  { %v11980_v18 = vpop.eup %7846  ;;  %v3286_v23 = vsub.f32 %v14949_v24, %v11813_v35  ;;  %7864 = vpow2.f32 %v3307_v8  ;;  %v3311_v44 = vmul.f32 1.442695, %v3284_v48  ;;  %7088 = vmatprep.subr.bf16.mxu1 %v14419_v27  ;;  %v3515_v21 = vmax.f32 %v11970_v62, %v3513_v12  ;;  %v14950_v8 = vld [vmem:[#allocation40_spill] sm:$0xff] }
 0x3d8   :  { %v7849_v55 = vpop.eup %7848  ;;  %v11987_v30 = vmul.f32 %v11703_v43, %v3730_v59  ;;  %v3153_v50 = vadd.f32 %v11975_v3, %v3152_v61  ;;  %v3395_v47 = vadd.f32 %v7843_v6, %v3394_v28  ;;  %7072 = vmatpush3.bf16.msra.mxu0 %v7071_v17  ;;  %v7089_v45 = vpack.c.bf16 %v7843_v6, %v7841_v58  ;;  %v14952_v28 = vld [vmem:[#allocation150_spill] sm:$0xff] }
 0x3d9   :  { %v7851_v20 = vpop.eup %7850  ;;  %v11992_v16 = vmul.f32 %v11703_v43, %v11934_v5  ;;  %v3287_v48 = vsub.f32 %v14950_v8, %v11813_v35  ;;  %v3313_v22 = vmul.f32 1.442695, %v3285_v36  ;;  %7073 = vmatprep.subr.bf16.mxu0 %v14419_v27  ;;  %4439 = vperm.xlu1 %7478, %v14951_v1   ;;  %v3516_v59 = vmax.f32 %v11973_v37, %v3515_v21 }
 0x3da   :  { %v7853_v12 = vpop.eup %7852  ;;  %v3154_v61 = vadd.f32 %v11980_v18, %v3153_v50  ;;  %7866 = vpow2.f32 %v3309_v15  ;;  %v3396_v58 = vadd.f32 %v7849_v55, %v3395_v47  ;;  %7090 = vmatpush3.bf16.msra.mxu1 %v7089_v45  ;;  %v7074_v5 = vpack.c.bf16 %v11944_v41, %v11932_v52 }
 0x3db   :  { %v12002_v6 = vpop.eup %7854  ;;  %v3288_v36 = vsub.f32 %v14952_v28, %v11813_v35  ;;  %7868 = vpow2.f32 %v3311_v44  ;;  %v3315_v17 = vmul.f32 1.442695, %v3286_v23  ;;  %7091 = vmatprep.subr.bf16.mxu1 %v14419_v27  ;;  %v3517_v24 = vrot.slane %v3516_v59, 4 }
 0x3dc   :  { %v7857_v21 = vpop.eup %7856  ;;  %v3763_v50 = vmax.f32 %v11797_v54, %v11987_v30  ;;  %v3155_v15 = vadd.f32 %v7853_v12, %v3154_v61  ;;  %v3397_v47 = vadd.f32 %v7851_v20, %v3396_v58  ;;  %7075 = vmatpush3.bf16.msra.mxu0 %v7074_v5  ;;  %v7092_v45 = vpack.c.bf16 %v7851_v20, %v7849_v55  ;;  %v14953_v20 = vld [vmem:[#allocation36_spill] sm:$0xff] }
 0x3dd   :  { %v7859_v8 = vpop.eup %7858  ;;  %v658_v52 = vrot.slane %v11723_v25, 4  ;;  %v3756_v41 = vmax.f32 %v11794_v32, %v11992_v16  ;;  %v3317_v35 = vmul.f32 1.442695, %v3287_v48  ;;  %7076 = vmatprep.subr.bf16.mxu0 %v14419_v27  ;;  %4447 = vperm.xlu1 %7478, %v14895_v39   ;;  %v3518_v23 = vmax.f32 %v3516_v59, %v3517_v24 }
 0x3de   :  { %v7861_v44 = vpop.eup %7860  ;;  %v3156_v28 = vadd.f32 %v12002_v6, %v3155_v15  ;;  %7870 = vpow2.f32 %v3313_v22  ;;  %v3398_v54 = vadd.f32 %v7857_v21, %v3397_v47  ;;  %7093 = vmatpush3.bf16.msra.mxu1 %v7092_v45  ;;  %v7077_v55 = vpack.c.bf16 %v11975_v3, %v11949_v10  ;;  %v14955_v47 = vld [vmem:[#allocation116_spill] sm:$0xff] }
 0x3df   :  { %v1149_v61 = vadd.f32 %v14953_v20, %v11726_v2  ;;  %7872 = vpow2.f32 %v3315_v17  ;;  %v3319_v32 = vmul.f32 1.442695, %v3288_v36  ;;  %7094 = vmatprep.subr.bf16.mxu1 %v14419_v27  ;;  %v3519_v48 = vrot.slane %v3518_v23, 2  ;;  %v14956_v10 = vld [vmem:[#allocation128_spill] sm:$0xff]  ;;  %v3722_v17 = vpop.permute.xlu1 %3721 }
 0x3e0   :  { %v7863_v58 = vpop.eup %7862  ;;  %v3757_v5 = vmax.f32 %v3763_v50, %v3756_v41  ;;  %v12020_v59 = vadd.f32 %v7861_v44, %v3156_v28  ;;  %v3399_v24 = vadd.f32 %v7859_v8, %v3398_v54  ;;  %7078 = vmatpush3.bf16.msra.mxu0 %v7077_v55  ;;  %v7095_v22 = vpack.c.bf16 %v7859_v8, %v7857_v21  ;;  %v14958_v41 = vld [vmem:[#allocation2_spill] sm:$0xff]  ;;  %v14960_v55 = vld [vmem:[#allocation125_spill] sm:$0xff] }
 0x3e1   :  { %v7865_v15 = vpop.eup %7864  ;;  %v12024_v45 = vmul.f32 %v11703_v43, %v14955_v47  ;;  %v12028_v2 = vmul.f32 %v11703_v43, %v14956_v10  ;;  %7079 = vmatprep.subr.bf16.mxu0 %v14419_v27  ;;  %v14957_v3 = vmov 17   ;;  %v3520_v36 = vmax.f32 %v3518_v23, %v3519_v48  ;;  %v14959_v28 = vld [vmem:[#allocation82_spill] sm:$0xff] }
 0x3e2   :  { %14954 = vst [vmem:[#allocation57_spill] sm:$0xff] %v12020_v59  ;;  %7480 = vset.pattern.permute.xlu1 %v14957_v3  ;;  %7874 = vpow2.f32 %v3317_v35  ;;  %v3400_v50 = vadd.f32 %v7863_v58, %v3399_v24  ;;  %7096 = vmatpush3.bf16.msra.mxu1 %v7095_v22  ;;  %v7080_v21 = vpack.c.bf16 %v7853_v12, %v11980_v18 }
 0x3e3   :  { %v659_v8 = vadd.f32 %v658_v52, %v11723_v25  ;;  %4671 = vperm.xlu1 %7480, %v14958_v41   ;;  %7876 = vpow2.f32 %v3319_v32  ;;  %v12037_v54 = vmul.f32 %v11703_v43, %v14959_v28  ;;  %v12041_v20 = vmul.f32 %v11703_v43, %v14960_v55  ;;  %7097 = vmatprep.subr.bf16.mxu1 %v14419_v27  ;;  %v14961_v25 = vld [vmem:[#allocation115_spill] sm:$0xff] }
 0x3e4   :  { %v3521_v35 = vrot.slane %v3520_v36, 1  ;;  %v7867_v23 = vpop.eup %7866  ;;  %v3401_v48 = vadd.f32 %v7865_v15, %v3400_v50  ;;  %7081 = vmatpush3.bf16.msra.mxu0 %v7080_v21  ;;  %v7098_v18 = vpack.c.bf16 %v7865_v15, %v7863_v58  ;;  %v1150_v52 = vadd.f32 %v14961_v25, %v1149_v61 }
 0x3e5   :  { %v7869_v12 = vpop.eup %7868  ;;  %v3758_v32 = vmax.f32 %v12024_v45, %v3757_v5  ;;  %v3754_v24 = vmax.f32 %v12037_v54, %v12028_v2  ;;  %7082 = vmatprep.subr.bf16.mxu0 %v14419_v27  ;;  %v7083_v10 = vpack.c.bf16 %v7861_v44, %v12002_v6  ;;  %v660_v28 = vrot.slane %v659_v8, 2  ;;  %v3726_v6 = vpop.permute.xlu1 %3725 }
 0x3e6   :  { %v12049_v22 = vmax.f32 %v3520_v36, %v3521_v35  ;;  %v3402_v47 = vadd.f32 %v7867_v23, %v3401_v48  ;;  %7099 = vmatpush3.bf16.msra.mxu1 %v7098_v18  ;;  %v13983_v50 = vrot.slane %v11830_v31, 2  ;;  %v12057_v58 = vmul.f32 %v11703_v43, %v11808_v0  ;;  %v14962_v48 = vld [vmem:[#allocation50_spill] sm:$0xff] }
 0x3e7   :  { %4675 = vperm.xlu1 %7480, %v14946_v38   ;;  %v3760_v61 = vmax.f32 %v12041_v20, %v3758_v32  ;;  %7100 = vmatprep.subr.bf16.mxu1 %v14419_v27  ;;  %v7101_v21 = vpack.c.bf16 %v7869_v12, %v7867_v23  ;;  %v1151_v0 = vadd.f32 %v14962_v48, %v1150_v52  ;;  %v14963_v23 = vld [vmem:[#allocation7_spill] sm:$0xff]  ;;  %v14966_v48 = vld [vmem:[#allocation21_spill] sm:$0xff] }
 0x3e8   :  { %v3523_v5 = vsub.f32 %v11801_v49, %v12049_v22  ;;  %v3524_v15 = vsub.f32 %v11687_v33, %v12049_v22  ;;  %v7871_v44 = vpop.eup %7870  ;;  %v3403_v36 = vadd.f32 %v7869_v12, %v3402_v47  ;;  %7084 = vmatpush3.bf16.msra.mxu0 %v7083_v10  ;;  %v3525_v55 = vsub.f32 %v11817_v34, %v12049_v22 }
 0x3e9   :  { %v7873_v35 = vpop.eup %7872  ;;  %v3761_v18 = vmax.f32 %v3754_v24, %v3760_v61  ;;  %v12069_v25 = vmul.f32 %v11703_v43, %v11856_v53  ;;  %v3526_v49 = vsub.f32 %v11839_v46, %v12049_v22  ;;  %7109 = vmatprep.subr.bf16.mxu0 %v14419_v27  ;;  %v661_v32 = vadd.f32 %v660_v28, %v659_v8  ;;  %v12088_v61 = vpop.permute.xlu0 %3923 }
 0x3ea   :  { %v3404_v33 = vadd.f32 %v7871_v44, %v3403_v36  ;;  %7102 = vmatpush3.bf16.msra.mxu1 %v7101_v21  ;;  %v3527_v34 = vsub.f32 %v11671_v9, %v12049_v22  ;;  %v3539_v12 = vmul.f32 1.442695, %v3523_v5  ;;  %v3528_v46 = vsub.f32 %v11846_v60, %v12049_v22 }
 0x3eb   :  { %4683 = vperm.xlu1 %7480, %v14963_v23   ;;  %v3764_v52 = vmax.f32 %v12057_v58, %v3761_v18  ;;  %6441 = vmatmul.mubr.f32.vlgmr.msra.gmra.mrb[26].mxu0 %v13983_v50  ;;  %v3541_v53 = vmul.f32 1.442695, %v3524_v15  ;;  %v12084_v24 = vmul.f32 %v11703_v43, %v3722_v17  ;;  %v7104_v10 = vpack.c.bf16 %v7873_v35, %v7871_v44  ;;  %v12094_v17 = vpop.permute.xlu1 %3919 }
 0x3ec   :  { %7103 = vmatprep.subr.bf16.mxu1 %v14419_v27  ;;  %v7875_v8 = vpop.eup %7874  ;;  %v3405_v47 = vadd.f32 %v7873_v35, %v3404_v33  ;;  %7878 = vpow2.f32 %v3539_v12  ;;  %v3543_v9 = vmul.f32 1.442695, %v3525_v55  ;;  %6510 = vmatprep.mubr.msk.f32.mxu0 %vm8201_vm0, %v14529_v7  ;;  %v3545_v36 = vmul.f32 1.442695, %v3526_v49  ;;  %v14964_v55 = vld [vmem:[#allocation9_spill] sm:$0xff]  ;;  %v14965_v35 = vld [vmem:[#allocation110_spill] sm:$0xff] }
 0x3ed   :  { %v7877_v28 = vpop.eup %7876  ;;  %v3762_v5 = vmax.f32 %v12069_v25, %v3764_v52  ;;  %7880 = vpow2.f32 %v3541_v53  ;;  %v12092_v60 = vmul.f32 %v11703_v43, %v3726_v6  ;;  %v3529_v44 = vsub.f32 %v11691_v63, %v12049_v22  ;;  %v14968_v63 = vld [vmem:[#allocation100_spill] sm:$0xff] }
 0x3ee   :  { %v3406_v15 = vadd.f32 %v7875_v8, %v3405_v47  ;;  %7105 = vmatpush3.bf16.msra.mxu1 %v7104_v10  ;;  %7882 = vpow2.f32 %v3543_v9  ;;  %v3547_v21 = vmul.f32 1.442695, %v3527_v34  ;;  %v1644_v18 = vadd.f32 %v14966_v48, %v14965_v35 }
 0x3ef   :  { %4691 = vperm.xlu1 %7480, %v14964_v55   ;;  %7106 = vmatprep.subr.bf16.mxu1 %v14419_v27  ;;  %v3530_v43 = vsub.f32 %v11825_v14, %v12049_v22  ;;  %7884 = vpow2.f32 %v3545_v36  ;;  %v3549_v6 = vmul.f32 1.442695, %v3528_v46  ;;  %v7107_v33 = vpack.c.bf16 %v7877_v28, %v7875_v8  ;;  %v12109_v53 = vpop.permute.xlu1 %3927  ;;  %v14969_v46 = vld [vmem:[#allocation29_spill] sm:$0xff]  ;;  %v12114_v36 = vpop.permute.xlu0 %3935 }
 0x3f0   :  { %v12104_v49 = vadd.f32 %v7877_v28, %v3406_v15  ;;  %v3765_v12 = vmax.f32 %v3762_v5, %v12084_v24  ;;  %v1152_v52 = vadd.f32 %v14968_v63, %v1151_v0  ;;  %v13982_v34 = vrot.slane %v11830_v31, 3  ;;  %v14970_v5 = vld [vmem:[#allocation23_spill] sm:$0xff]  ;;  %v14991_v31 = vld [vmem:[#allocation70_spill] sm:$0xff] }
 0x3f1   :  { %v662_v47 = vrot.slane %v661_v32, 1  ;;  %7886 = vpow2.f32 %v3547_v21  ;;  %v3551_v10 = vmul.f32 1.442695, %v3529_v44  ;;  %v1645_v9 = vadd.f32 %v14969_v46, %v1644_v18 }
 0x3f2   :  { %14967 = vst [vmem:[#allocation64_spill] sm:$0xff] %v12104_v49  ;;  %7108 = vmatpush3.bf16.msra.mxu1 %v7107_v33  ;;  %v3766_v14 = vmax.f32 %v12092_v60, %v3765_v12  ;;  %v3531_v8 = vsub.f32 %v11895_v42, %v12049_v22  ;;  %7888 = vpow2.f32 %v3549_v6  ;;  %v3553_v0 = vmul.f32 1.442695, %v3530_v43  ;;  %v14971_v43 = vld [vmem:[#allocation72_spill] sm:$0xff] }
 0x3f3   :  { %7481 = vset.pattern.permute.xlu1 %v14938_v29  ;;  %7133 = vmatprep.subr.bf16.mxu1 %v14419_v27  ;;  %v1153_v15 = vadd.f32 %v14970_v5, %v1152_v52  ;;  %v3532_v44 = vsub.f32 %v11713_v51, %v12049_v22  ;;  %v12125_v21 = vpop.permute.xlu1 %3931  ;;  %v663_v48 = vadd.f32 %v662_v47, %v661_v32  ;;  %7890 = vpow2.f32 %v3551_v10  ;;  %v14972_v47 = vld [vmem:[#allocation113_spill] sm:$0xff] }
 0x3f4   :  { %4451 = vperm.xlu1 %7481, %v14754_v40   ;;  %v3767_v28 = vrot.slane %v3766_v14, 4  ;;  %v1646_v6 = vadd.f32 %v14971_v43, %v1645_v9  ;;  %v3533_v33 = vsub.f32 %v11924_v19, %v12049_v22  ;;  %7892 = vpow2.f32 %v3553_v0  ;;  %v14973_v43 = vld [vmem:[#allocation84_spill] sm:$0xff] }
 0x3f5   :  { %6476 = vmatmul.mubr.f32.vlgmr.msra.gmra.mrb[16].mxu1 %v13982_v34  ;;  %v3555_v12 = vmul.f32 1.442695, %v3531_v8  ;;  %v1154_v10 = vadd.f32 %v14972_v47, %v1153_v15  ;;  %v3557_v9 = vmul.f32 1.442695, %v3532_v44  ;;  %7894 = vrcp.f32 %v663_v48  ;;  %v14974_v47 = vld [vmem:[#allocation37_spill] sm:$0xff] }
 0x3f6   :  { %v7879_v35 = vpop.eup %7878  ;;  %v3768_v42 = vmax.f32 %v3766_v14, %v3767_v28  ;;  %6545 = vmatprep.mubr.msk.f32.mxu1 %vm8201_vm0, %v14529_v7  ;;  %v12134_v14 = vpop.permute.xlu0 %3943  ;;  %v3534_v28 = vsub.f32 %v11940_v13, %v12049_v22  ;;  %v3535_v19 = vsub.f32 %v11958_v11, %v12049_v22  ;;  %v3536_v15 = vsub.f32 %v11736_v26, %v12049_v22 }
 0x3f7   :  { %v7881_v18 = vpop.eup %7880  ;;  %v12138_v5 = vpop.permute.xlu1 %3939  ;;  %7896 = vpow2.f32 %v3555_v12  ;;  %v3537_v44 = vsub.f32 %v11970_v62, %v12049_v22 }
 0x3f8   :  { %4459 = vperm.xlu1 %7481, %v14856_v4   ;;  %v7883_v51 = vpop.eup %7882  ;;  %v3643_v63 = vadd.f32 %v7881_v18, %v7879_v35  ;;  %v3769_v52 = vrot.slane %v3768_v42, 2  ;;  %v7110_v46 = vpack.c.bf16 %v7881_v18, %v7879_v35  ;;  %v1647_v35 = vadd.f32 %v14973_v43, %v1646_v6 }
 0x3f9   :  { %v7885_v32 = vpop.eup %7884  ;;  %v3559_v18 = vmul.f32 1.442695, %v3533_v33  ;;  %v3538_v6 = vsub.f32 %v11973_v37, %v12049_v22  ;;  %7898 = vpow2.f32 %v3557_v9  ;;  %v3563_v26 = vmul.f32 1.442695, %v3535_v19  ;;  %v14976_v22 = vld [vmem:[#allocation66_spill] sm:$0xff] }
 0x3fa   :  { %v3644_v8 = vadd.f32 %v7883_v51, %v3643_v63  ;;  %v3770_v0 = vmax.f32 %v3768_v42, %v3769_v52  ;;  %7111 = vmatpush3.bf16.msra.mxu0 %v7110_v46  ;;  %v7113_v63 = vpack.c.bf16 %v7885_v32, %v7883_v51  ;;  %v3561_v52 = vmul.f32 1.442695, %v3534_v28  ;;  %v12156_v34 = vpop.permute.xlu0 %3955  ;;  %v14975_v51 = vld [vmem:[#allocation142_spill] sm:$0xff] }
 0x3fb   :  { %7112 = vmatprep.subr.bf16.mxu0 %v14419_v27  ;;  %v7887_v13 = vpop.eup %7886  ;;  %v12153_v46 = vpop.permute.xlu1 %3947  ;;  %v1155_v43 = vadd.f32 %v14974_v47, %v1154_v10  ;;  %7900 = vpow2.f32 %v3559_v18  ;;  %v3565_v62 = vmul.f32 1.442695, %v3536_v15  ;;  %v1648_v28 = vadd.f32 %v14976_v22, %v1647_v35  ;;  %v14978_v18 = vld [vmem:[#allocation129_spill] sm:$0xff]  ;;  %v14979_v35 = vld [vmem:[#allocation58_spill] sm:$0xff] }
 0x3fc   :  { %4463 = vperm.xlu1 %7481, %v14874_v56   ;;  %v3645_v48 = vadd.f32 %v7885_v32, %v3644_v8  ;;  %v3771_v11 = vrot.slane %v3770_v0, 1  ;;  %v7889_v42 = vpop.eup %7888  ;;  %v909_v32 = vrot.slane %v14975_v51, 4  ;;  %v3567_v9 = vmul.f32 1.442695, %v3537_v44  ;;  %v14977_v8 = vld [vmem:[#allocation10_spill] sm:$0xff] }
 0x3fd   :  { %v7891_v37 = vpop.eup %7890  ;;  %7902 = vpow2.f32 %v3561_v52  ;;  %v3569_v10 = vmul.f32 1.442695, %v3538_v6  ;;  %v14981_v52 = vld [vmem:[#allocation147_spill] sm:$0xff] }
 0x3fe   :  { %v3646_v12 = vadd.f32 %v7887_v13, %v3645_v48  ;;  %v12151_v33 = vmax.f32 %v3770_v0, %v3771_v11  ;;  %7114 = vmatpush3.bf16.msra.mxu0 %v7113_v63  ;;  %v7116_v0 = vpack.c.bf16 %v7889_v42, %v7887_v13  ;;  %v7893_v48 = vpop.eup %7892  ;;  %7904 = vpow2.f32 %v3563_v26 }
 0x3ff   :  { %7115 = vmatprep.subr.bf16.mxu0 %v14419_v27  ;;  %7906 = vpow2.f32 %v3565_v62  ;;  %v7895_v6 = vpop.eup %7894  ;;  %v1649_v22 = vadd.f32 %v14981_v52, %v1648_v28  ;;  %v14982_v28 = vld [vmem:[#allocation30_spill] sm:$0xff] }
 0x400   :  { %7482 = vset.pattern.permute.xlu1 %v14957_v3  ;;  %v3647_v19 = vadd.f32 %v7889_v42, %v3646_v12  ;;  %v3773_v15 = vsub.f32 %v14978_v18, %v12151_v33  ;;  %v3774_v11 = vsub.f32 %v12024_v45, %v12151_v33  ;;  %v3775_v47 = vsub.f32 %v12037_v54, %v12151_v33  ;;  %v14980_v12 = vld [vmem:[#allocation51_spill] sm:$0xff] }
 0x401   :  { %4703 = vperm.xlu1 %7482, %v14977_v8   ;;  %v3776_v44 = vsub.f32 %v14979_v35, %v12151_v33  ;;  %v1156_v13 = vadd.f32 %v14980_v12, %v1155_v43  ;;  %v910_v42 = vadd.f32 %v909_v32, %v14975_v51  ;;  %7908 = vpow2.f32 %v3567_v9  ;;  %v12176_v26 = vpop.permute.xlu1 %4173  ;;  %v639_v12 = vpop.f32.mrb[16].mxu0 }
 0x402   :  { %v3648_v63 = vadd.f32 %v7891_v37, %v3647_v19  ;;  %7117 = vmatpush3.bf16.msra.mxu0 %v7116_v0  ;;  %v7119_v54 = vpack.c.bf16 %v7893_v48, %v7891_v37  ;;  %v12178_v19 = vpop.eup %7896  ;;  %v12180_v0 = vpop.permute.xlu0 %3971  ;;  %7910 = vpow2.f32 %v3569_v10  ;;  %v3777_v43 = vsub.f32 %v12041_v20, %v12151_v33  ;;  %v14983_v37 = vld [vmem:[#allocation106_spill] sm:$0xff] }
 0x403   :  { %7118 = vmatprep.subr.bf16.mxu0 %v14419_v27  ;;  %v3789_v62 = vmul.f32 1.442695, %v3773_v15  ;;  %v3791_v51 = vmul.f32 1.442695, %v3774_v11  ;;  %v3778_v9 = vsub.f32 %v14982_v28, %v12151_v33  ;;  %v3793_v18 = vmul.f32 1.442695, %v3775_v47  ;;  %v7899_v35 = vpop.eup %7898 }
 0x404   :  { %v3649_v45 = vadd.f32 %v7893_v48, %v3648_v63  ;;  %v3795_v63 = vmul.f32 1.442695, %v3776_v44  ;;  %v1157_v48 = vadd.f32 %v14983_v37, %v1156_v13  ;;  %v911_v52 = vrot.slane %v910_v42, 2  ;;  %v14984_v10 = vld [vmem:[#allocation78_spill] sm:$0xff]  ;;  %v14985_v13 = vld [vmem:[#allocation127_spill] sm:$0xff] }
 0x405   :  { %4707 = vperm.xlu1 %7482, %v14856_v4   ;;  %7912 = vpow2.f32 %v3789_v62  ;;  %v1650_v20 = vadd.f32 %v14984_v10, %v1649_v22  ;;  %v665_v15 = vmul.f32 %v7895_v6, %v639_v12  ;;  %v12191_v28 = vpop.permute.xlu1 %4177  ;;  %v12193_v47 = vpop.eup %7900  ;;  %v3779_v44 = vsub.f32 %v12028_v2, %v12151_v33  ;;  %v14986_v37 = vld [vmem:[#allocation19_spill] sm:$0xff]  ;;  %v8193_v6 = vld [vmem:[%s13533_s0] sm:$0xff]  ;;  %v14987_v12 = vld [vmem:[#allocation16_spill] sm:$0xff] }
 0x406   :  { %v3650_v32 = vadd.f32 %v12178_v19, %v3649_v45  ;;  %7120 = vmatpush3.bf16.msra.mxu0 %v7119_v54  ;;  %7914 = vpow2.f32 %v3791_v51  ;;  %v6092_v45 = vpop.f32.mrb[17].mxu0  ;;  %v3780_v54 = vsub.f32 %v14985_v13, %v12151_v33  ;;  %v3797_v62 = vmul.f32 1.442695, %v3777_v43  ;;  %v12207_v10 = vpop.permute.xlu0 %4169  ;;  %v14988_v43 = vld [vmem:[#allocation136_spill] sm:$0xff] }
 0x407   :  { %7121 = vmatprep.subr.bf16.mxu0 %v14419_v27  ;;  %7916 = vpow2.f32 %v3793_v18  ;;  %v666_v22 = vadd.f32 %v8193_v6, %v665_v15  ;;  %v3799_v51 = vmul.f32 1.442695, %v3778_v9  ;;  %v1158_v2 = vadd.f32 %v14987_v12, %v1157_v48 }
 0x408   :  { %v3651_v11 = vadd.f32 %v7899_v35, %v3650_v32  ;;  %7918 = vpow2.f32 %v3795_v63  ;;  %v12204_v32 = vpop.eup %7902  ;;  %v912_v45 = vadd.f32 %v911_v52, %v910_v42  ;;  %v1651_v13 = vadd.f32 %v14988_v43, %v1650_v20  ;;  %v14989_v63 = vld [vmem:[#allocation22_spill] sm:$0xff]  ;;  %v14990_v42 = vld [vmem:[#allocation31_spill] sm:$0xff] }
 0x409   :  { %7483 = vset.pattern.permute.xlu1 %v14938_v29  ;;  %v12209_v18 = vpop.eup %7904  ;;  %667 = vst [vmem:[%s13535_s6] sm:$0x1] %v666_v22  ;;  %v3781_v48 = vsub.f32 %v14989_v63, %v12151_v33  ;;  %7920 = vpow2.f32 %v3797_v62  ;;  %v3801_v6 = vmul.f32 1.442695, %v3779_v44  ;;  %v3782_v22 = vsub.f32 %v12057_v58, %v12151_v33 }
 0x40a   :  { %4467 = vperm.xlu1 %7483, %v14986_v37   ;;  %v3652_v29 = vadd.f32 %v12193_v47, %v3651_v11  ;;  %v12216_v11 = vpop.permute.xlu1 %4185  ;;  %v12218_v9 = vpop.eup %7906  ;;  %7922 = vpow2.f32 %v3799_v51  ;;  %v1159_v43 = vrot.slane %v1158_v2, 4  ;;  %v913_v50 = vrot.slane %v912_v45, 1  ;;  %v14992_v51 = vld [vmem:[#allocation26_spill] sm:$0xff] }
 0x40b   :  { %v12223_v52 = vpop.eup %7908  ;;  %v1652_v49 = vadd.f32 %v14991_v31, %v1651_v13  ;;  %v7122_v44 = vpack.c.bf16 %v7899_v35, %v12178_v19  ;;  %v12233_v59 = vpop.permute.xlu0 %4181  ;;  %7924 = vpow2.f32 %v3801_v6  ;;  %v3805_v58 = vmul.f32 1.442695, %v3781_v48  ;;  %v14993_v31 = vld [vmem:[#allocation148_spill] sm:$0xff]  ;;  %v14994_v6 = vld [vmem:[#allocation134_spill] sm:$0xff] }
 0x40c   :  { %v3653_v15 = vadd.f32 %v12204_v32, %v3652_v29  ;;  %v3803_v29 = vmul.f32 1.442695, %v3780_v54  ;;  %v12228_v12 = vpop.eup %7910  ;;  %v3784_v13 = vsub.f32 %v14993_v31, %v12151_v33  ;;  %v3807_v19 = vmul.f32 1.442695, %v3782_v22 }
 0x40d   :  { %7123 = vmatpush3.bf16.msra.mxu0 %v7122_v44  ;;  %v1160_v4 = vadd.f32 %v1159_v43, %v1158_v2  ;;  %v14996_v2 = vld [vmem:[#allocation15_spill] sm:$0xff]  ;;  %v3788_v31 = vsub.f32 %v11987_v30, %v12151_v33 }
 0x40e   :  { %4475 = vperm.xlu1 %7483, %v14990_v42   ;;  %v3654_v20 = vadd.f32 %v12209_v18, %v3653_v15  ;;  %v3783_v15 = vsub.f32 %v12069_v25, %v12151_v33  ;;  %v12238_v54 = vpop.permute.xlu1 %4193  ;;  %7926 = vpow2.f32 %v3803_v29  ;;  %7124 = vmatprep.subr.bf16.mxu0 %v14419_v27 }
 0x40f   :  { %v7913_v63 = vpop.eup %7912  ;;  %7928 = vpow2.f32 %v3805_v58  ;;  %v7128_v58 = vpack.c.bf16 %v12218_v9, %v12209_v18 }
 0x410   :  { %v3655_v62 = vadd.f32 %v12218_v9, %v3654_v20  ;;  %v7915_v37 = vpop.eup %7914  ;;  %v914_v20 = vadd.f32 %v913_v50, %v912_v45  ;;  %v3809_v29 = vmul.f32 1.442695, %v3783_v15  ;;  %v7125_v50 = vpack.c.bf16 %v12204_v32, %v12193_v47  ;;  %v14997_v32 = vld [vmem:[#allocation99_spill] sm:$0xff] }
 0x411   :  { %v7917_v35 = vpop.eup %7916  ;;  %v3893_v56 = vadd.f32 %v7915_v37, %v7913_v63  ;;  %v7134_v25 = vpack.c.bf16 %v7915_v37, %v7913_v63  ;;  %v3786_v37 = vsub.f32 %v12084_v24, %v12151_v33  ;;  %7930 = vpow2.f32 %v3807_v19 }
 0x412   :  { %4479 = vperm.xlu1 %7483, %v14992_v51   ;;  %v3656_v8 = vadd.f32 %v12223_v52, %v3655_v62  ;;  %v7919_v48 = vpop.eup %7918  ;;  %v1653_v51 = vadd.f32 %v14994_v6, %v1652_v49  ;;  %v3785_v62 = vsub.f32 %v11992_v16, %v12151_v33  ;;  %v3811_v49 = vmul.f32 1.442695, %v3784_v13  ;;  %v12257_v16 = vpop.permute.xlu0 %4189  ;;  %7126 = vmatpush3.bf16.msra.mxu0 %v7125_v50  ;;  %v12285_v50 = vld [vmem:[%s13533_s0 + $0x8] sm:$0xff] }
 0x413   :  { %v3894_v22 = vadd.f32 %v7917_v35, %v3893_v56  ;;  %7135 = vmatpush3.bf16.msra.mxu1 %v7134_v25  ;;  %7932 = vrcp.f32 %v914_v20  ;;  %v1161_v45 = vrot.slane %v1160_v4, 2  ;;  %v12259_v43 = vpop.permute.xlu1 %3951  ;;  %v3787_v24 = vsub.f32 %v12092_v60, %v12151_v33  ;;  %7127 = vmatprep.subr.bf16.mxu0 %v14419_v27  ;;  %v14998_v25 = vld [vmem:[#allocation153_spill] sm:$0xff]  ;;  %15001 = vst [vmem:[#allocation108_spill] sm:$0xff] %v12285_v50 }
 0x414   :  { %v12246_v40 = vadd.f32 %v12228_v12, %v3656_v8  ;;  %7136 = vmatprep.subr.bf16.mxu1 %v14419_v27  ;;  %v7921_v8 = vpop.eup %7920  ;;  %v1654_v44 = vadd.f32 %v14997_v32, %v1653_v51  ;;  %7934 = vpow2.f32 %v3809_v29  ;;  %v3813_v63 = vmul.f32 1.442695, %v3785_v62  ;;  %v14999_v62 = vld [vmem:[#allocation65_spill] sm:$0xff]  ;;  %v15005_v32 = vld [vmem:[#allocation68_spill] sm:$0xff] }
 0x415   :  { %v3895_v56 = vadd.f32 %v7919_v48, %v3894_v22  ;;  %v7923_v47 = vpop.eup %7922  ;;  %7936 = vpow2.f32 %v3811_v49  ;;  %v3815_v13 = vmul.f32 1.442695, %v3786_v37  ;;  %v1162_v19 = vadd.f32 %v1161_v45, %v1160_v4  ;;  %v15002_v45 = vld [vmem:[#allocation3_spill] sm:$0xff] }
 0x416   :  { %14995 = vst [vmem:[#allocation85_spill] sm:$0xff] %v12246_v40  ;;  %7485 = vset.pattern.permute.xlu1 %v14957_v3  ;;  %v7137_v3 = vpack.c.bf16 %v7919_v48, %v7917_v35  ;;  %v7925_v51 = vpop.eup %7924  ;;  %v7140_v35 = vpack.c.bf16 %v7923_v47, %v7921_v8  ;;  %7129 = vmatpush3.bf16.msra.mxu0 %v7128_v58  ;;  %v12273_v18 = vpop.permute.xlu0 %4197  ;;  %7938 = vpow2.f32 %v3813_v63  ;;  %v3817_v30 = vmul.f32 1.442695, %v3787_v24  ;;  %v15006_v63 = vld [vmem:[#allocation87_spill] sm:$0xff] }
 0x417   :  { %4719 = vperm.xlu1 %7485, %v14996_v2   ;;  %v3896_v15 = vadd.f32 %v7921_v8, %v3895_v56  ;;  %v1655_v48 = vadd.f32 %v14998_v25, %v1654_v44  ;;  %7130 = vmatprep.subr.bf16.mxu0 %v14419_v27  ;;  %v7131_v6 = vpack.c.bf16 %v12228_v12, %v12223_v52  ;;  %7940 = vpow2.f32 %v3815_v13 }
 0x418   :  { %7138 = vmatpush3.bf16.msra.mxu1 %v7137_v3  ;;  %v7927_v20 = vpop.eup %7926  ;;  %v3819_v4 = vmul.f32 1.442695, %v3788_v31  ;;  %v1409_v29 = vrot.slane %v14999_v62, 4  ;;  %v15000_v22 = vmov 18   ;;  %v13992_v37 = vrot.slane %v12285_v50, 4  ;;  %v15003_v3 = vld [vmem:[#allocation76_spill] sm:$0xff] }
 0x419   :  { %7139 = vmatprep.subr.bf16.mxu1 %v14419_v27  ;;  %v3897_v60 = vadd.f32 %v7923_v47, %v3896_v15  ;;  %v7929_v49 = vpop.eup %7928  ;;  %v1163_v56 = vrot.slane %v1162_v19, 1  ;;  %v7143_v52 = vpack.c.bf16 %v7927_v20, %v7925_v51  ;;  %v15004_v47 = vsub.s32 6, %v15003_v3  ;;  %v890_v58 = vpop.f32.mrb[6].mxu1 }
 0x41a   :  { %7132 = vmatpush3.bf16.msra.mxu0 %v7131_v6  ;;  %v1656_v15 = vadd.f32 %v15006_v63, %v1655_v48  ;;  %7942 = vpow2.f32 %v3817_v30  ;;  %v12304_v25 = vpop.permute.xlu0 %4201 }
 0x41b   :  { %4723 = vperm.xlu1 %7485, %v14990_v42   ;;  %v3898_v33 = vadd.f32 %v7925_v51, %v3897_v60  ;;  %v7931_v12 = vpop.eup %7930  ;;  %v12292_v44 = vrot.slane %v15005_v32, %v15004_v47  ;;  %7157 = vmatprep.subr.bf16.mxu0 %v14419_v27  ;;  %7944 = vpow2.f32 %v3819_v4  ;;  %v6127_v60 = vpop.f32.mrb[7].mxu1  ;;  %v1164_v30 = vadd.f32 %v1163_v56, %v1162_v19  ;;  %v15009_v56 = vld [vmem:[#allocation137_spill] sm:$0xff] }
 0x41c   :  { %7141 = vmatpush3.bf16.msra.mxu1 %v7140_v35  ;;  %v12275_v9 = vpop.permute.xlu1 %3959  ;;  %v1410_v35 = vadd.f32 %v1409_v29, %v14999_v62  ;;  %v15007_v29 = vld [vmem:[#allocation46_spill] sm:$0xff] }
 0x41d   :  { %7142 = vmatprep.subr.bf16.mxu1 %v14419_v27  ;;  %v3899_v8 = vadd.f32 %v7927_v20, %v3898_v33  ;;  %v7933_v24 = vpop.eup %7932  ;;  %v12298_v13 = vmul.f32 %v12292_v44, %v12114_v36  ;;  %6511 = vmatmul.mubr.f32.vlgmr.msra.gmra.mrb[28].mxu0 %v13992_v37  ;;  %v7146_v36 = vpack.c.bf16 %v7931_v12, %v7929_v49  ;;  %7946 = vrcp.f32 %v1164_v30 }
 0x41e   :  { %v916_v51 = vmul.f32 %v7933_v24, %v890_v58  ;;  %v7935_v20 = vpop.eup %7934  ;;  %6580 = vmatprep.mubr.msk.f32.mxu0 %vm8201_vm0, %v14529_v7  ;;  %v12313_v4 = vmul.f32 %v12292_v44, %v12088_v61  ;;  %v12317_v62 = vmul.f32 %v12292_v44, %v12134_v14  ;;  %v1411_v47 = vrot.slane %v1410_v35, 2 }
 0x41f   :  { %7486 = vset.pattern.permute.xlu1 %v15000_v22  ;;  %v3900_v31 = vadd.f32 %v7929_v49, %v3899_v8  ;;  %v7937_v6 = vpop.eup %7936  ;;  %v15008_v8 = vrot.slane %v15007_v29, 1  ;;  %v15010_v58 = vsub.s32 7, %v15003_v3 }
 0x420   :  { %4918 = vperm.xlu1 %7486, %v15002_v45   ;;  %7144 = vmatpush3.bf16.msra.mxu1 %v7143_v52  ;;  %v1657_v45 = vadd.f32 %v15009_v56, %v1656_v15  ;;  %v4002_v49 = vmax.f32 %v12313_v4, %v12298_v13  ;;  %v7939_v61 = vpop.eup %7938  ;;  %v7149_v24 = vpack.c.bf16 %v7937_v6, %v7935_v20 }
 0x421   :  { %7145 = vmatprep.subr.bf16.mxu1 %v14419_v27  ;;  %v3901_v48 = vadd.f32 %v7931_v12, %v3900_v31  ;;  %v917_v19 = vadd.f32 %v916_v51, %v15008_v8  ;;  %v12326_v12 = vmul.f32 %v12292_v44, %v12156_v34  ;;  %v7941_v63 = vpop.eup %7940  ;;  %v12336_v34 = vmul.f32 %v12292_v44, %v12180_v0  ;;  %v15011_v51 = vld [vmem:[#allocation55_spill] sm:$0xff] }
 0x422   :  { %v12307_v33 = vpop.permute.xlu1 %3963  ;;  %v4004_v15 = vmax.f32 %v4002_v49, %v12317_v62  ;;  %v12341_v31 = vrot.slane %v15005_v32, %v15010_v58  ;;  %v1658_v60 = vadd.f32 %v15011_v51, %v1657_v45  ;;  %v7152_v8 = vpack.c.bf16 %v7941_v63, %v7939_v61 }
 0x423   :  { %v3902_v52 = vadd.f32 %v7935_v20, %v3901_v48  ;;  %918 = vst [vmem:[%s13535_s6 + $0x1] sm:$0x1] %v917_v19  ;;  %v4214_v48 = vpop.permute.xlu0 %4213  ;;  %v12349_v20 = vmul.f32 %v12292_v44, %v12094_v17  ;;  %v12360_v45 = vmul.f32 %v12292_v44, %v12109_v53  ;;  %v12364_v17 = vmul.f32 %v12292_v44, %v12153_v46 }
 0x424   :  { %4926 = vperm.xlu1 %7486, %v14946_v38   ;;  %7147 = vmatpush3.bf16.msra.mxu1 %v7146_v36  ;;  %v7943_v0 = vpop.eup %7942  ;;  %v12354_v3 = vmul.f32 %v12341_v31, %v12273_v18  ;;  %v12368_v18 = vmul.f32 %v12341_v31, %v12233_v59  ;;  %v12376_v49 = vmul.f32 %v12341_v31, %v12207_v10 }
 0x425   :  { %7148 = vmatprep.subr.bf16.mxu1 %v14419_v27  ;;  %v3903_v14 = vadd.f32 %v7937_v6, %v3902_v52  ;;  %v1412_v6 = vadd.f32 %v1411_v47, %v1410_v35  ;;  %v7945_v19 = vpop.eup %7944  ;;  %v1659_v52 = vrot.slane %v1658_v60, 4  ;;  %v12381_v46 = vmul.f32 %v12292_v44, %v12125_v21 }
 0x426   :  { %v12385_v59 = vmul.f32 %v12292_v44, %v12138_v5 }
 0x427   :  { %v3904_v30 = vadd.f32 %v7939_v61, %v3903_v14  ;;  %v4218_v61 = vpop.permute.xlu0 %4217  ;;  %v1413_v10 = vrot.slane %v1412_v6, 1  ;;  %v4005_v5 = vmax.f32 %v12381_v46, %v12364_v17 }
 0x428   :  { %4930 = vperm.xlu1 %7486, %v14948_v57   ;;  %7150 = vmatpush3.bf16.msra.mxu1 %v7149_v24  ;;  %v4003_v57 = vmax.f32 %v12326_v12, %v4004_v15  ;;  %v7155_v24 = vpack.c.bf16 %v7945_v19, %v7943_v0  ;;  %v7947_v15 = vpop.eup %7946 }
 0x429   :  { %v12344_v36 = vpop.permute.xlu1 %4205  ;;  %7151 = vmatprep.subr.bf16.mxu1 %v14419_v27  ;;  %v3905_v32 = vadd.f32 %v7941_v63, %v3904_v30  ;;  %v13991_v63 = vrot.slane %v12285_v50, 5  ;;  %v1140_v51 = vpop.f32.mrb[18].mxu0 }
 0x42a   :  { %v4007_v56 = vmax.f32 %v4003_v57, %v12336_v34  ;;  %v1166_v30 = vmul.f32 %v7947_v15, %v1140_v51  ;;  %v12416_v15 = vmul.f32 %v12292_v44, %v12275_v9 }
 0x42b   :  { %v3906_v35 = vadd.f32 %v7943_v0, %v3905_v32  ;;  %v12404_v0 = vmul.f32 %v12292_v44, %v12259_v43  ;;  %v12422_v43 = vmul.f32 %v12341_v31, %v4214_v48  ;;  %v12436_v48 = vmul.f32 %v12341_v31, %v4218_v61 }
 0x42c   :  { %4938 = vperm.xlu1 %7486, %v14951_v1   ;;  %v12372_v1 = vmul.f32 %v12341_v31, %v12257_v16  ;;  %7153 = vmatpush3.bf16.msra.mxu1 %v7152_v8  ;;  %v4006_v53 = vmax.f32 %v12349_v20, %v4007_v56  ;;  %v4255_v16 = vmax.f32 %v12368_v18, %v12354_v3 }
 0x42d   :  { %7154 = vmatprep.subr.bf16.mxu1 %v14419_v27  ;;  %v12390_v14 = vadd.f32 %v7945_v19, %v3906_v35  ;;  %v12393_v47 = vpop.permute.xlu1 %4209  ;;  %v12409_v8 = vmul.f32 %v12341_v31, %v12304_v25  ;;  %v1414_v19 = vadd.f32 %v1413_v10, %v1412_v6  ;;  %v1660_v56 = vadd.f32 %v1659_v52, %v1658_v60  ;;  %v4230_v25 = vpop.permute.xlu0 %4229 }
 0x42e   :  { %v4008_v21 = vmax.f32 %v12360_v45, %v4006_v53  ;;  %v4259_v58 = vmax.f32 %v12372_v1, %v12376_v49  ;;  %v15013_v35 = vmov 19   ;;  %v15014_v53 = vrot.slane %v15007_v29, 2 }
 0x42f   :  { %15012 = vst [vmem:[#allocation104_spill] sm:$0xff] %v12390_v14  ;;  %7948 = vrcp.f32 %v1414_v19  ;;  %v1661_v52 = vrot.slane %v1660_v56, 2 }
 0x430   :  { %4946 = vperm.xlu1 %7486, %v14895_v39   ;;  %7156 = vmatpush3.bf16.msra.mxu1 %v7155_v24  ;;  %v4009_v57 = vmax.f32 %v12385_v59, %v4008_v21  ;;  %v6162_v39 = vpop.f32.mrb[19].mxu0  ;;  %v4263_v32 = vmax.f32 %v4259_v58, %v4255_v16  ;;  %v1167_v24 = vadd.f32 %v1166_v30, %v15014_v53 }
 0x431   :  { %7181 = vmatprep.subr.bf16.mxu1 %v14419_v27  ;;  %v12445_v58 = vmul.f32 %v12341_v31, %v4230_v25  ;;  %v12456_v39 = vmul.f32 %v12341_v31, %v12176_v26  ;;  %v15015_v26 = vld [vmem:[#allocation144_spill] sm:$0xff] }
 0x432   :  { %v4010_v21 = vmax.f32 %v4005_v5, %v4009_v57  ;;  %1168 = vst [vmem:[%s13535_s6 + $0x2] sm:$0x1] %v1167_v24  ;;  %v4253_v6 = vmax.f32 %v12409_v8, %v4263_v32  ;;  %v12452_v57 = vpop.permute.xlu0 %4423  ;;  %v1662_v32 = vadd.f32 %v1661_v52, %v1660_v56  ;;  %v12467_v24 = vmul.f32 %v12341_v31, %v12191_v28 }
 0x433   :  { %6546 = vmatmul.mubr.f32.vlgmr.msra.gmra.mrb[18].mxu1 %v13991_v63  ;;  %v1909_v25 = vrot.slane %v15015_v26, 4  ;;  %v15016_v63 = vrot.slane %v15007_v29, 3 }
 0x434   :  { %7488 = vset.pattern.permute.xlu1 %v15013_v35  ;;  %6615 = vmatprep.mubr.msk.f32.mxu1 %vm8201_vm0, %v14529_v7  ;;  %v4011_v9 = vmax.f32 %v12404_v0, %v4010_v21  ;;  %v4252_v5 = vmax.f32 %v12422_v43, %v4253_v6  ;;  %v12471_v21 = vmul.f32 %v12341_v31, %v12216_v11  ;;  %v1663_v6 = vrot.slane %v1662_v32, 1 }
 0x435   :  { %5172 = vperm.xlu1 %7488, %v14958_v41   ;;  %v3968_v60 = vpop.permute.xlu1 %3967  ;;  %v12432_v41 = vmul.f32 %v12292_v44, %v12307_v33 }
 0x436   :  { %v4014_v16 = vmax.f32 %v12416_v15, %v4011_v9  ;;  %v12440_v10 = vmul.f32 %v12292_v44, %v3968_v60  ;;  %v4256_v30 = vmax.f32 %v4252_v5, %v12436_v48  ;;  %v12483_v52 = vpop.permute.xlu0 %4435 }
 0x438   :  { %v4012_v51 = vmax.f32 %v12432_v41, %v4014_v16  ;;  %v4257_v53 = vmax.f32 %v12445_v58, %v4256_v30 }
 0x439   :  { %5176 = vperm.xlu1 %7488, %v14946_v38   ;;  %v3976_v33 = vpop.permute.xlu1 %3975  ;;  %v12460_v38 = vmul.f32 %v12341_v31, %v12238_v54  ;;  %v7949_v11 = vpop.eup %7948 }
 0x43a   :  { %v12449_v61 = vmul.f32 %v12292_v44, %v3976_v33  ;;  %v4013_v19 = vmax.f32 %v12440_v10, %v4012_v51  ;;  %v1910_v33 = vadd.f32 %v1909_v25, %v15015_v26  ;;  %v15017_v25 = vld [vmem:[#allocation11_spill] sm:$0xff] }
 0x43b   :  { %v4254_v9 = vmax.f32 %v12467_v24, %v12460_v38 }
 0x43c   :  { %v4015_v54 = vmax.f32 %v12449_v61, %v4013_v19  ;;  %v1911_v14 = vrot.slane %v1910_v33, 2 }
 0x43d   :  { %5184 = vperm.xlu1 %7488, %v14963_v23   ;;  %v3980_v60 = vpop.permute.xlu1 %3979  ;;  %v4258_v23 = vmax.f32 %v12456_v39, %v4257_v53 }
 0x43e   :  { %v12476_v56 = vmul.f32 %v12292_v44, %v3980_v60  ;;  %v1390_v16 = vpop.f32.mrb[8].mxu1  ;;  %v12488_v44 = vmul.f32 %v12341_v31, %v12344_v36 }
 0x43f   :  { %v4260_v5 = vmax.f32 %v12471_v21, %v4258_v23  ;;  %v1416_v51 = vmul.f32 %v7949_v11, %v1390_v16  ;;  %v6197_v30 = vpop.f32.mrb[9].mxu1 }
 0x440   :  { %v4016_v28 = vmax.f32 %v12476_v56, %v4015_v54  ;;  %v1664_v54 = vadd.f32 %v1663_v6, %v1662_v32  ;;  %v15019_v30 = vld [vmem:[#allocation13_spill] sm:$0xff] }
 0x441   :  { %5192 = vperm.xlu1 %7488, %v14964_v55   ;;  %v4261_v60 = vmax.f32 %v4254_v9, %v4260_v5  ;;  %v12493_v55 = vmul.f32 %v12341_v31, %v12393_v47  ;;  %v1417_v37 = vadd.f32 %v1416_v51, %v15016_v63  ;;  %v15018_v9 = vld [vmem:[#allocation38_spill] sm:$0xff]  ;;  %v12507_v63 = vpop.permute.xlu0 %4443  ;;  %v1912_v5 = vadd.f32 %v1911_v14, %v1910_v33 }
 0x442   :  { %v4017_v19 = vrot.slane %v4016_v28, 4  ;;  %v4222_v53 = vpop.permute.xlu1 %4221  ;;  %v2159_v32 = vrot.slane %v15018_v9, 4  ;;  %7950 = vrcp.f32 %v1664_v54 }
 0x443   :  { %v4264_v36 = vmax.f32 %v12488_v44, %v4261_v60  ;;  %v12500_v26 = vmul.f32 %v12341_v31, %v4222_v53  ;;  %1418 = vst [vmem:[%s13535_s6 + $0x3] sm:$0x1] %v1417_v37 }
 0x444   :  { %v4018_v23 = vmax.f32 %v4016_v28, %v4017_v19  ;;  %v2160_v53 = vadd.f32 %v2159_v32, %v15018_v9 }
 0x445   :  { %7489 = vset.pattern.permute.xlu1 %v15000_v22  ;;  %v4262_v28 = vmax.f32 %v12493_v55, %v4264_v36  ;;  %v12521_v54 = vpop.permute.xlu0 %4455  ;;  %v1913_v36 = vrot.slane %v1912_v5, 1 }
 0x446   :  { %4950 = vperm.xlu1 %7489, %v15017_v25   ;;  %v4019_v47 = vrot.slane %v4018_v23, 2  ;;  %v4226_v6 = vpop.permute.xlu1 %4225 }
 0x447   :  { %v12511_v11 = vmul.f32 %v12341_v31, %v4226_v6  ;;  %v4265_v51 = vmax.f32 %v4262_v28, %v12500_v26  ;;  %v15021_v31 = vld [vmem:[#allocation12_spill] sm:$0xff] }
 0x448   :  { %v4020_v16 = vmax.f32 %v4018_v23, %v4019_v47  ;;  %v2161_v23 = vrot.slane %v2160_v53, 2 }
 0x449   :  { %v4266_v37 = vmax.f32 %v12511_v11, %v4265_v51  ;;  %v12536_v7 = vpop.permute.xlu0 %4471 }
 0x44a   :  { %4958 = vperm.xlu1 %7489, %v15019_v30   ;;  %v4021_v19 = vrot.slane %v4020_v16, 1  ;;  %v2162_v40 = vadd.f32 %v2161_v23, %v2160_v53 }
 0x44b   :  { %v4267_v32 = vrot.slane %v4266_v37, 4 }
 0x44c   :  { %v12517_v60 = vmax.f32 %v4020_v16, %v4021_v19  ;;  %v12519_v25 = vpop.permute.xlu1 %4419  ;;  %v7951_v6 = vpop.eup %7950  ;;  %v1914_v16 = vadd.f32 %v1913_v36, %v1912_v5  ;;  %v15024_v5 = vrot.slane %v15007_v29, 4 }
 0x44d   :  { %15020 = vst [vmem:[#allocation35_spill] sm:$0xff] %v12519_v25 }
 0x44e   :  { %4962 = vperm.xlu1 %7489, %v15021_v31   ;;  %v4023_v14 = vsub.f32 %v12349_v20, %v12517_v60  ;;  %v4024_v33 = vsub.f32 %v12313_v4, %v12517_v60  ;;  %v4025_v9 = vsub.f32 %v12360_v45, %v12517_v60  ;;  %v1640_v28 = vpop.f32.mrb[20].mxu0  ;;  %v4026_v51 = vsub.f32 %v12381_v46, %v12517_v60  ;;  %v15023_v4 = vld [vmem:[#allocation10_spill] sm:$0xff] }
 0x44f   :  { %v1666_v19 = vmul.f32 %v7951_v6, %v1640_v28  ;;  %v4027_v45 = vsub.f32 %v12298_v13, %v12517_v60  ;;  %v6232_v46 = vpop.f32.mrb[21].mxu0  ;;  %v2163_v13 = vrot.slane %v2162_v40, 1 }
 0x450   :  { %v12530_v47 = vpop.permute.xlu1 %4427  ;;  %v4039_v20 = vmul.f32 1.442695, %v4023_v14  ;;  %v4041_v31 = vmul.f32 1.442695, %v4024_v33  ;;  %v4043_v50 = vmul.f32 1.442695, %v4025_v9  ;;  %v4028_v14 = vsub.f32 %v12385_v59, %v12517_v60 }
 0x451   :  { %15022 = vst [vmem:[#allocation146_spill] sm:$0xff] %v12530_v47  ;;  %v4268_v47 = vmax.f32 %v4266_v37, %v4267_v32  ;;  %v1667_v36 = vadd.f32 %v1666_v19, %v15024_v5  ;;  %v4045_v53 = vmul.f32 1.442695, %v4026_v51  ;;  %v4029_v37 = vsub.f32 %v12317_v62, %v12517_v60 }
 0x452   :  { %7490 = vset.pattern.permute.xlu1 %v15013_v35  ;;  %7952 = vpow2.f32 %v4039_v20  ;;  %v4047_v33 = vmul.f32 1.442695, %v4027_v45  ;;  %v4030_v9 = vsub.f32 %v12364_v17, %v12517_v60  ;;  %v4031_v32 = vsub.f32 %v12404_v0, %v12517_v60  ;;  %v15025_v17 = vld [vmem:[#allocation19_spill] sm:$0xff]  ;;  %v15026_v45 = vld [vmem:[#allocation138_spill] sm:$0xff] }
 0x453   :  { %5204 = vperm.xlu1 %7490, %v15023_v4   ;;  %7954 = vpow2.f32 %v4041_v31  ;;  %1668 = vst [vmem:[%s13535_s6 + $0x4] sm:$0x1] %v1667_v36  ;;  %v4269_v23 = vrot.slane %v4268_v47, 2  ;;  %v4049_v6 = vmul.f32 1.442695, %v4028_v14  ;;  %v4033_v19 = vsub.f32 %v12416_v15, %v12517_v60  ;;  %v15027_v36 = vld [vmem:[#allocation117_spill] sm:$0xff] }
 0x454   :  { %v12542_v25 = vpop.permute.xlu1 %4431  ;;  %7956 = vrcp.f32 %v1914_v16  ;;  %v12558_v16 = vpop.permute.xlu0 %4667  ;;  %v4051_v62 = vmul.f32 1.442695, %v4029_v37  ;;  %v4053_v0 = vmul.f32 1.442695, %v4030_v9  ;;  %v2409_v5 = vrot.slane %v15026_v45, 4 }
 0x455   :  { %7958 = vpow2.f32 %v4043_v50  ;;  %v4270_v28 = vmax.f32 %v4268_v47, %v4269_v23  ;;  %v4032_v50 = vsub.f32 %v12326_v12, %v12517_v60  ;;  %v4034_v47 = vsub.f32 %v12432_v41, %v12517_v60 }
 0x456   :  { %7960 = vpow2.f32 %v4045_v53  ;;  %v2657_v46 = vrot.slane %v15027_v36, 4  ;;  %v4059_v41 = vmul.f32 1.442695, %v4033_v19  ;;  %v4035_v19 = vsub.f32 %v12440_v10, %v12517_v60 }
 0x457   :  { %5208 = vperm.xlu1 %7490, %v15019_v30   ;;  %v2164_v30 = vadd.f32 %v2163_v13, %v2162_v40  ;;  %7962 = vpow2.f32 %v4047_v33  ;;  %v4271_v51 = vrot.slane %v4270_v28, 1  ;;  %v4055_v40 = vmul.f32 1.442695, %v4031_v32 }
 0x458   :  { %v12554_v59 = vpop.permute.xlu1 %4439  ;;  %7964 = vpow2.f32 %v4049_v6  ;;  %v4057_v4 = vmul.f32 1.442695, %v4032_v50  ;;  %v12579_v14 = vpop.permute.xlu0 %4679  ;;  %v4061_v33 = vmul.f32 1.442695, %v4034_v47 }
 0x459   :  { %7966 = vrcp.f32 %v2164_v30 }
 0x45a   :  { %7968 = vpow2.f32 %v4051_v62 }
 0x45b   :  { %7491 = vset.pattern.permute.xlu1 %v15000_v22  ;;  %v12570_v22 = vmax.f32 %v4270_v28, %v4271_v51  ;;  %7970 = vpow2.f32 %v4053_v0  ;;  %v2410_v0 = vadd.f32 %v2409_v5, %v15026_v45 }
 0x45c   :  { %4966 = vperm.xlu1 %7491, %v15025_v17   ;;  %v12566_v20 = vpop.permute.xlu1 %4447  ;;  %v12572_v31 = vpop.eup %7952  ;;  %7972 = vpow2.f32 %v4055_v40  ;;  %v15028_v17 = vld [vmem:[#allocation152_spill] sm:$0xff]  ;;  %v4036_v40 = vsub.f32 %v12336_v34, %v12517_v60 }
 0x45d   :  { %v12574_v12 = vpop.eup %7954  ;;  %v4273_v23 = vsub.f32 %v12376_v49, %v12570_v22  ;;  %v4274_v9 = vsub.f32 %v12456_v39, %v12570_v22  ;;  %v4275_v30 = vsub.f32 %v12467_v24, %v12570_v22  ;;  %v4276_v50 = vsub.f32 %v12368_v18, %v12570_v22  ;;  %v8195_v49 = vld [vmem:[%s13534_s5] ss:$0 sm:$0xff] }
 0x45e   :  { %v7957_v15 = vpop.eup %7956  ;;  %v4143_v53 = vadd.f32 %v12574_v12, %v12572_v31  ;;  %v12602_v39 = vadd.f32 %v8195_v49, %v15028_v17  ;;  %7974 = vpow2.f32 %v4057_v4  ;;  %v15029_v24 = vld [vmem:[#allocation26_spill] sm:$0xff]  ;;  %v15030_v18 = vrot.slane %v15007_v29, 5 }
 0x45f   :  { %v12583_v13 = vpop.eup %7958  ;;  %v1890_v37 = vpop.f32.mrb[10].mxu1  ;;  %7976 = vpow2.f32 %v4059_v41  ;;  %v4277_v10 = vsub.f32 %v12471_v21, %v12570_v22  ;;  %v4289_v4 = vmul.f32 1.442695, %v4273_v23  ;;  %v4278_v34 = vsub.f32 %v12372_v1, %v12570_v22 }
 0x460   :  { %4974 = vperm.xlu1 %7491, %v14990_v42   ;;  %v1916_v6 = vmul.f32 %v7957_v15, %v1890_v37  ;;  %v4144_v28 = vadd.f32 %v12583_v13, %v4143_v53  ;;  %v6267_v62 = vpop.f32.mrb[11].mxu1  ;;  %v12596_v51 = vpop.eup %7960  ;;  %7978 = vpow2.f32 %v4061_v33  ;;  %v4291_v37 = vmul.f32 1.442695, %v4274_v9 }
 0x461   :  { %v12613_v53 = vpop.eup %7962  ;;  %v4293_v41 = vmul.f32 1.442695, %v4275_v30  ;;  %v12627_v33 = vpop.permute.xlu0 %4687  ;;  %v4037_v21 = vsub.f32 %v12449_v61, %v12517_v60  ;;  %v4063_v23 = vmul.f32 1.442695, %v4035_v19  ;;  %7980 = vpow2.f32 %v4289_v4 }
 0x462   :  { %v12589_v32 = vpop.permute.xlu1 %4671  ;;  %v1917_v47 = vadd.f32 %v1916_v6, %v15030_v18  ;;  %v4145_v15 = vadd.f32 %v12596_v51, %v4144_v28  ;;  %v4295_v6 = vmul.f32 1.442695, %v4276_v50  ;;  %v12625_v28 = vpop.eup %7964  ;;  %v2411_v9 = vrot.slane %v2410_v0, 2  ;;  %v15031_v50 = vld [vmem:[#allocation80_spill] sm:$0xff] }
 0x463   :  { %v7967_v62 = vpop.eup %7966  ;;  %v4038_v49 = vsub.f32 %v12476_v56, %v12517_v60  ;;  %v4065_v17 = vmul.f32 1.442695, %v4036_v40  ;;  %7982 = vpow2.f32 %v4291_v37  ;;  %v12640_v61 = vrot.slane %v12602_v39, %v15031_v50 }
 0x464   :  { %4978 = vperm.xlu1 %7491, %v15029_v24   ;;  %1918 = vst [vmem:[%s13535_s6 + $0x5] sm:$0x1] %v1917_v47  ;;  %v4146_v5 = vadd.f32 %v12613_v53, %v4145_v15  ;;  %v12636_v30 = vpop.eup %7968  ;;  %v4279_v19 = vsub.f32 %v12460_v38, %v12570_v22  ;;  %7984 = vpow2.f32 %v4293_v41  ;;  %v4299_v18 = vmul.f32 1.442695, %v4278_v34 }
 0x465   :  { %v12646_v56 = vpop.eup %7970  ;;  %7986 = vpow2.f32 %v4295_v6  ;;  %v12655_v40 = vmul.f32 %v12640_v61, %v12483_v52  ;;  %v4067_v38 = vmul.f32 1.442695, %v4037_v21  ;;  %v2412_v15 = vadd.f32 %v2411_v9, %v2410_v0  ;;  %v12667_v52 = vpop.permute.xlu0 %4695 }
 0x466   :  { %v12617_v45 = vpop.permute.xlu1 %4675  ;;  %v4147_v1 = vadd.f32 %v12625_v28, %v4146_v5  ;;  %v12651_v47 = vpop.eup %7972  ;;  %7988 = vpow2.f32 %v4063_v23  ;;  %v7158_v37 = vpack.c.bf16 %v12574_v12, %v12572_v31  ;;  %v12665_v5 = vmul.f32 %v12640_v61, %v12452_v57 }
 0x467   :  { %7990 = vpow2.f32 %v4065_v17  ;;  %v4281_v0 = vsub.f32 %v12409_v8, %v12570_v22  ;;  %v4301_v34 = vmul.f32 1.442695, %v4279_v19  ;;  %v12684_v8 = vmul.f32 %v12640_v61, %v12507_v63 }
 0x468   :  { %7493 = vset.pattern.permute.xlu1 %v15013_v35  ;;  %v4297_v35 = vmul.f32 1.442695, %v4277_v10  ;;  %v4148_v60 = vadd.f32 %v12636_v30, %v4147_v1  ;;  %v4069_v10 = vmul.f32 1.442695, %v4038_v49  ;;  %7159 = vmatpush3.bf16.msra.mxu0 %v7158_v37  ;;  %v4502_v21 = vmax.f32 %v12665_v5, %v12655_v40 }
 0x469   :  { %5220 = vperm.xlu1 %7493, %v14996_v2   ;;  %v4280_v2 = vsub.f32 %v12354_v3, %v12570_v22  ;;  %v12661_v3 = vpop.eup %7974  ;;  %v2413_v23 = vrot.slane %v2412_v15, 1  ;;  %7160 = vmatprep.subr.bf16.mxu0 %v14419_v27  ;;  %v7161_v49 = vpack.c.bf16 %v12596_v51, %v12583_v13  ;;  %v4283_v63 = vsub.f32 %v12493_v55, %v12570_v22  ;;  %v12703_v55 = vpop.permute.xlu0 %4699 }
 0x46a   :  { %v12644_v24 = vpop.permute.xlu1 %4683  ;;  %v4149_v4 = vadd.f32 %v12646_v56, %v4148_v60  ;;  %7992 = vpow2.f32 %v4297_v35  ;;  %v12673_v6 = vpop.eup %7976  ;;  %v4284_v50 = vsub.f32 %v12422_v43, %v12570_v22  ;;  %v4305_v19 = vmul.f32 1.442695, %v4281_v0 }
 0x46b   :  { %7994 = vpow2.f32 %v4299_v18  ;;  %v4303_v12 = vmul.f32 1.442695, %v4280_v2  ;;  %v12678_v57 = vpop.eup %7978  ;;  %v12701_v51 = vmax.f32 %v4502_v21, %v12684_v8  ;;  %v2414_v43 = vadd.f32 %v2413_v23, %v2412_v15 }
 0x46c   :  { %v4150_v31 = vadd.f32 %v12651_v47, %v4149_v4  ;;  %7996 = vpow2.f32 %v4067_v38  ;;  %v7981_v17 = vpop.eup %7980  ;;  %7162 = vmatpush3.bf16.msra.mxu0 %v7161_v49  ;;  %v15032_v37 = vrot.slane %v15007_v29, 6  ;;  %v4309_v15 = vmul.f32 1.442695, %v4283_v63 }
 0x46d   :  { %5224 = vperm.xlu1 %7493, %v14990_v42   ;;  %v4282_v42 = vsub.f32 %v12488_v44, %v12570_v22  ;;  %7998 = vpow2.f32 %v4069_v10  ;;  %v2658_v44 = vadd.f32 %v2657_v46, %v15027_v36  ;;  %v7983_v35 = vpop.eup %7982  ;;  %7163 = vmatprep.subr.bf16.mxu0 %v14419_v27  ;;  %v4286_v29 = vsub.f32 %v12500_v26, %v12570_v22 }
 0x46e   :  { %v12671_v41 = vpop.permute.xlu1 %4691  ;;  %v4151_v9 = vadd.f32 %v12661_v3, %v4150_v31  ;;  %8000 = vpow2.f32 %v4301_v34  ;;  %v7985_v13 = vpop.eup %7984  ;;  %v4393_v38 = vadd.f32 %v7983_v35, %v7981_v17  ;;  %v7182_v10 = vpack.c.bf16 %v7983_v35, %v7981_v17 }
 0x46f   :  { %8002 = vpow2.f32 %v4303_v12  ;;  %v4307_v18 = vmul.f32 1.442695, %v4282_v42  ;;  %v7987_v4 = vpop.eup %7986  ;;  %v2659_v34 = vrot.slane %v2658_v44, 2  ;;  %v7164_v31 = vpack.c.bf16 %v12625_v28, %v12613_v53 }
 0x470   :  { %v4152_v60 = vadd.f32 %v12673_v6, %v4151_v9  ;;  %v12711_v42 = vpop.eup %7988  ;;  %v4285_v12 = vsub.f32 %v12436_v48, %v12570_v22  ;;  %8004 = vpow2.f32 %v4305_v19  ;;  %v4394_v21 = vadd.f32 %v7985_v13, %v4393_v38  ;;  %7183 = vmatpush3.bf16.msra.mxu1 %v7182_v10 }
 0x471   :  { %v2140_v1 = vpop.f32.mrb[22].mxu0  ;;  %v12715_v23 = vpop.eup %7990  ;;  %8006 = vpow2.f32 %v4307_v18  ;;  %v4311_v53 = vmul.f32 1.442695, %v4284_v50  ;;  %7165 = vmatpush3.bf16.msra.mxu0 %v7164_v31  ;;  %7184 = vmatprep.subr.bf16.mxu1 %v14419_v27  ;;  %v12728_v49 = vmul.f32 %v12640_v61, %v12521_v54  ;;  %v12733_v26 = vmul.f32 %v12640_v61, %v12536_v7 }
 0x472   :  { %v2166_v2 = vmul.f32 %v7967_v62, %v2140_v1  ;;  %v6302_v36 = vpop.f32.mrb[23].mxu0  ;;  %v4153_v62 = vadd.f32 %v12678_v57, %v4152_v60  ;;  %v4395_v17 = vadd.f32 %v7987_v4, %v4394_v21  ;;  %8008 = vrcp.f32 %v2414_v43  ;;  %7166 = vmatprep.subr.bf16.mxu0 %v14419_v27  ;;  %v12740_v54 = vpop.permute.xlu0 %4711 }
 0x473   :  { %v12698_v46 = vpop.permute.xlu1 %4451  ;;  %v7185_v1 = vpack.c.bf16 %v7987_v4, %v7985_v13  ;;  %v2660_v19 = vadd.f32 %v2659_v34, %v2658_v44  ;;  %v7167_v35 = vpack.c.bf16 %v12646_v56, %v12636_v30  ;;  %8010 = vpow2.f32 %v4309_v15 }
 0x474   :  { %v2167_v0 = vadd.f32 %v2166_v2, %v15032_v37  ;;  %v4154_v9 = vadd.f32 %v12711_v42, %v4153_v62  ;;  %v7993_v28 = vpop.eup %7992  ;;  %v4287_v2 = vsub.f32 %v12511_v11, %v12570_v22  ;;  %v4313_v18 = vmul.f32 1.442695, %v4285_v12  ;;  %v15033_v62 = vld [vmem:[#allocation88_spill] sm:$0xff] }
 0x475   :  { %v7995_v63 = vpop.eup %7994  ;;  %v4396_v36 = vadd.f32 %v7993_v28, %v4395_v17  ;;  %7186 = vmatpush3.bf16.msra.mxu1 %v7185_v1  ;;  %v4288_v44 = vsub.f32 %v12445_v58, %v12570_v22  ;;  %8012 = vpow2.f32 %v4311_v53  ;;  %v4315_v30 = vmul.f32 1.442695, %v4286_v29  ;;  %7168 = vmatpush3.bf16.msra.mxu0 %v7167_v35  ;;  %v15034_v22 = vld [vmem:[#allocation35_spill] sm:$0xff]  ;;  %v15036_v1 = vld [vmem:[#allocation146_spill] sm:$0xff] }
 0x476   :  { %2168 = vst [vmem:[%s13535_s6 + $0x6] sm:$0x1] %v2167_v0  ;;  %v4155_v50 = vadd.f32 %v12715_v23, %v4154_v9  ;;  %v12738_v60 = vpop.eup %7996  ;;  %7187 = vmatprep.subr.bf16.mxu1 %v14419_v27  ;;  %v4503_v11 = vmax.f32 %v12728_v49, %v12701_v51  ;;  %7169 = vmatprep.subr.bf16.mxu0 %v14419_v27  ;;  %8014 = vpow2.f32 %v4313_v18  ;;  %v4317_v31 = vmul.f32 1.442695, %v4287_v2  ;;  %v15035_v9 = vld [vmem:[#allocation61_spill] sm:$0xff] }
 0x477   :  { %v12724_v48 = vpop.permute.xlu1 %4459  ;;  %v12744_v13 = vpop.eup %7998  ;;  %v4397_v43 = vadd.f32 %v7995_v63, %v4396_v36  ;;  %v7188_v10 = vpack.c.bf16 %v7995_v63, %v7993_v28  ;;  %v12757_v37 = vrot.slane %v12602_v39, %v15033_v62  ;;  %v12764_v0 = vmul.f32 %v12640_v61, %v15034_v22 }
 0x478   :  { %v4156_v7 = vadd.f32 %v12738_v60, %v4155_v50  ;;  %v8001_v38 = vpop.eup %8000  ;;  %v7170_v34 = vpack.c.bf16 %v12661_v3, %v12651_v47  ;;  %v4507_v51 = vmax.f32 %v4503_v11, %v12733_v26  ;;  %8016 = vpow2.f32 %v4315_v30  ;;  %v12771_v28 = vpop.permute.xlu0 %4715 }
 0x479   :  { %v8003_v4 = vpop.eup %8002  ;;  %v4398_v12 = vadd.f32 %v8001_v38, %v4397_v43  ;;  %7189 = vmatpush3.bf16.msra.mxu1 %v7188_v10  ;;  %v4319_v15 = vmul.f32 1.442695, %v4288_v44  ;;  %v2661_v21 = vrot.slane %v2660_v19, 1  ;;  %v2908_v29 = vrot.slane %v15035_v9, 4 }
 0x47a   :  { %v12760_v58 = vadd.f32 %v12744_v13, %v4156_v7  ;;  %7171 = vmatpush3.bf16.msra.mxu0 %v7170_v34  ;;  %7190 = vmatprep.subr.bf16.mxu1 %v14419_v27  ;;  %v8005_v53 = vpop.eup %8004  ;;  %v12775_v47 = vmul.f32 %v12640_v61, %v15036_v1  ;;  %v12779_v3 = vmul.f32 %v12640_v61, %v12566_v20  ;;  %8018 = vpow2.f32 %v4317_v31 }
 0x47b   :  { %v12750_v56 = vpop.permute.xlu1 %4463  ;;  %v4399_v17 = vadd.f32 %v8003_v4, %v4398_v12  ;;  %7172 = vmatprep.subr.bf16.mxu0 %v14419_v27  ;;  %v7191_v63 = vpack.c.bf16 %v8003_v4, %v8001_v38  ;;  %v8007_v35 = vpop.eup %8006  ;;  %v12786_v2 = vmul.f32 %v12757_v37, %v12627_v33  ;;  %v4506_v18 = vmax.f32 %v12764_v0, %v4507_v51  ;;  %v15037_v51 = vld [vmem:[#allocation119_spill] sm:$0xff] }
 0x47c   :  { %v7173_v36 = vpack.c.bf16 %v12678_v57, %v12673_v6  ;;  %v8009_v7 = vpop.eup %8008  ;;  %v12793_v30 = vmul.f32 %v12640_v61, %v12542_v25  ;;  %v12797_v38 = vmul.f32 %v12640_v61, %v12554_v59  ;;  %8020 = vpow2.f32 %v4319_v15 }
 0x47d   :  { %v4400_v44 = vadd.f32 %v8005_v53, %v4399_v17  ;;  %7192 = vmatpush3.bf16.msra.mxu1 %v7191_v63  ;;  %v2662_v11 = vadd.f32 %v2661_v21, %v2660_v19  ;;  %v2909_v10 = vadd.f32 %v2908_v29, %v15035_v9  ;;  %v8011_v6 = vpop.eup %8010  ;;  %v4508_v4 = vmax.f32 %v12775_v47, %v4506_v18  ;;  %v4728_v9 = vpop.permute.xlu0 %4727 }
 0x47e   :  { %7174 = vmatpush3.bf16.msra.mxu0 %v7173_v36  ;;  %7193 = vmatprep.subr.bf16.mxu1 %v14419_v27  ;;  %v4505_v25 = vmax.f32 %v12793_v30, %v12779_v3  ;;  %v7194_v59 = vpack.c.bf16 %v8007_v35, %v8005_v53  ;;  %v12809_v19 = vmul.f32 %v12757_v37, %v12558_v16  ;;  %v15038_v31 = vrot.slane %v15037_v51, 7 }
 0x47f   :  { %v4401_v57 = vadd.f32 %v8007_v35, %v4400_v44  ;;  %7175 = vmatprep.subr.bf16.mxu0 %v14419_v27  ;;  %v8013_v22 = vpop.eup %8012  ;;  %v12813_v34 = vmul.f32 %v12757_v37, %v12667_v52  ;;  %v7176_v15 = vpack.c.bf16 %v12715_v23, %v12711_v42  ;;  %v12821_v21 = vmul.f32 %v12757_v37, %v12579_v14 }
 0x480   :  { %v12782_v50 = vpop.permute.xlu1 %4703  ;;  %v4509_v53 = vmax.f32 %v12797_v38, %v4508_v4  ;;  %v12826_v16 = vmul.f32 %v12640_v61, %v12698_v46  ;;  %v4751_v52 = vmax.f32 %v12809_v19, %v12786_v2  ;;  %v12832_v17 = vmul.f32 %v12757_v37, %v12740_v54  ;;  %v8015_v42 = vpop.eup %8014 }
 0x481   :  { %v2390_v20 = vpop.f32.mrb[12].mxu1  ;;  %v4402_v29 = vadd.f32 %v8011_v6, %v4401_v57  ;;  %7195 = vmatpush3.bf16.msra.mxu1 %v7194_v59  ;;  %8022 = vrcp.f32 %v2662_v11  ;;  %v2910_v14 = vrot.slane %v2909_v10, 2  ;;  %v12840_v1 = vmul.f32 %v12640_v61, %v12724_v48  ;;  %v15039_v11 = vld [vmem:[#allocation108_spill] sm:$0xff] }
 0x482   :  { %v2416_v33 = vmul.f32 %v8009_v7, %v2390_v20  ;;  %v6337_v43 = vpop.f32.mrb[13].mxu1  ;;  %7177 = vmatpush3.bf16.msra.mxu0 %v7176_v15  ;;  %7196 = vmatprep.subr.bf16.mxu1 %v14419_v27  ;;  %v4510_v23 = vmax.f32 %v4505_v25, %v4509_v53  ;;  %v7197_v54 = vpack.c.bf16 %v8013_v22, %v8011_v6  ;;  %v8017_v63 = vpop.eup %8016 }
 0x483   :  { %v4403_v46 = vadd.f32 %v8013_v22, %v4402_v29  ;;  %7178 = vmatprep.subr.bf16.mxu0 %v14419_v27  ;;  %v4753_v35 = vmax.f32 %v12821_v21, %v12813_v34  ;;  %v12847_v18 = vmul.f32 %v12757_v37, %v12703_v55  ;;  %v12850_v36 = vmul.f32 %v12757_v37, %v4728_v9 }
 0x484   :  { %v12805_v62 = vpop.permute.xlu1 %4707  ;;  %v2417_v12 = vadd.f32 %v2416_v33, %v15038_v31  ;;  %v7179_v7 = vpack.c.bf16 %v12744_v13, %v12738_v60  ;;  %v4511_v20 = vmax.f32 %v12826_v16, %v4510_v23  ;;  %v12857_v33 = vmul.f32 %v12640_v61, %v12750_v56  ;;  %v8019_v60 = vpop.eup %8018 }
 0x485   :  { %v4404_v48 = vadd.f32 %v8015_v42, %v4403_v46  ;;  %7198 = vmatpush3.bf16.msra.mxu1 %v7197_v54  ;;  %v13999_v43 = vrot.slane %v15039_v11, 6  ;;  %v4757_v55 = vmax.f32 %v4753_v35, %v12832_v17  ;;  %v12863_v6 = vmul.f32 %v12757_v37, %v12771_v28 }
 0x486   :  { %2418 = vst [vmem:[%s13535_s6 + $0x7] sm:$0x1] %v2417_v12  ;;  %v2911_v57 = vadd.f32 %v2910_v14, %v2909_v10  ;;  %7180 = vmatpush3.bf16.msra.mxu0 %v7179_v7  ;;  %7199 = vmatprep.subr.bf16.mxu1 %v14419_v27  ;;  %v4514_v4 = vmax.f32 %v12840_v1, %v4511_v20  ;;  %v8021_v59 = vpop.eup %8020  ;;  %v12886_v14 = vpop.permute.xlu0 %4922  ;;  %v12902_v7 = vld [vmem:[%s13533_s0 + $0x8] sm:$0xff] }
 0x487   :  { %v4405_v13 = vadd.f32 %v8017_v63, %v4404_v48  ;;  %v7200_v25 = vpack.c.bf16 %v8017_v63, %v8015_v42  ;;  %7205 = vmatprep.subr.bf16.mxu0 %v14419_v27  ;;  %v4750_v22 = vmax.f32 %v12847_v18, %v4751_v52  ;;  %v4761_v28 = vmax.f32 %v4757_v55, %v12850_v36 }
 0x488   :  { %v4512_v31 = vmax.f32 %v12857_v33, %v4514_v4  ;;  %v2912_v29 = vrot.slane %v2911_v57, 1  ;;  %v15040_v52 = vmov 0.0   ;;  %v12892_v46 = vmul.f32 %v12757_v37, %v12589_v32  ;;  %15041 = vst [vmem:[#allocation73_spill] sm:$0xff] %v12902_v7 }
 0x489   :  { %v4468_v44 = vpop.permute.xlu1 %4467  ;;  %v4406_v10 = vadd.f32 %v8019_v60, %v4405_v13  ;;  %6581 = vmatmul.mubr.f32.vlgmr.msra.gmra.mrb[30].mxu0 %v13999_v43  ;;  %7201 = vmatpush3.bf16.msra.mxu1 %v7200_v25  ;;  %v4754_v9 = vmax.f32 %v4750_v22, %v12863_v6  ;;  %v7203_v54 = vpack.c.bf16 %v8021_v59, %v8019_v60 }
 0x48a   :  { %v12868_v56 = vmul.f32 %v12640_v61, %v4468_v44  ;;  %7202 = vmatprep.subr.bf16.mxu1 %v14419_v27  ;;  %6650 = vmatprep.mubr.msk.f32.mxu0 %vm8201_vm0, %v15040_v52  ;;  %v12897_v35 = vmul.f32 %v12757_v37, %v12671_v41  ;;  %v13998_v44 = vrot.slane %v12902_v7, 7  ;;  %v12912_v4 = vmul.f32 %v12757_v37, %v12617_v45 }
 0x48b   :  { %v12888_v42 = vadd.f32 %v8021_v59, %v4406_v10  ;;  %v8023_v63 = vpop.eup %8022  ;;  %v4755_v32 = vmax.f32 %v4761_v28, %v4754_v9  ;;  %v12916_v25 = vmul.f32 %v12757_v37, %v12644_v24  ;;  %v12920_v59 = vmul.f32 %v12757_v37, %v12805_v62 }
 0x48c   :  { %v4513_v23 = vmax.f32 %v12868_v56, %v4512_v31  ;;  %v2913_v28 = vadd.f32 %v2912_v29, %v2911_v57  ;;  %v4752_v45 = vmax.f32 %v12912_v4, %v12897_v35  ;;  %v12930_v24 = vmul.f32 %v12757_v37, %v12782_v50  ;;  %v12935_v31 = vpop.permute.xlu0 %4934 }
 0x48d   :  { %v4476_v51 = vpop.permute.xlu1 %4475  ;;  %v5417_v15 = vld [vmem:[%s13535_s6] sm:$0xff]  ;;  %7204 = vmatpush3.bf16.msra.mxu1 %v7203_v54  ;;  %v15042_v54 = vld [vmem:[#allocation57_spill] sm:$0xff] }
 0x48e   :  { %v12877_v12 = vmul.f32 %v12640_v61, %v4476_v51  ;;  %v5420_v53 = vmul.f32 %v5417_v15, %v5417_v15  ;;  %7229 = vmatprep.subr.bf16.mxu1 %v14419_v27  ;;  %v4756_v9 = vmax.f32 %v4752_v45, %v12920_v59  ;;  %8024 = vrcp.f32 %v2913_v28 }
 0x490   :  { %v5438_v20 = vsel %vm5437_vm1, %v5420_v53, 0.0  ;;  %v4515_v60 = vmax.f32 %v12877_v12, %v4513_v23  ;;  %6616 = vmatmul.mubr.f32.vlgmr.msra.gmra.mrb[20].mxu1 %v13998_v44  ;;  %v5422_v62 = vsel %vm5421_vm2, %v5420_v53, 0.0 }
 0x491   :  { %v4480_v48 = vpop.permute.xlu1 %4479  ;;  %5439 = vadd.xlane.f32.xlu1 %v5438_v20  ;;  %6685 = vmatprep.mubr.msk.f32.mxu1 %vm8201_vm0, %v15040_v52 }
 0x492   :  { %v2638_v55 = vpop.f32.mrb[24].mxu0  ;;  %v12908_v13 = vmul.f32 %v12640_v61, %v4480_v48  ;;  %v4758_v61 = vmax.f32 %v12892_v46, %v4755_v32 }
 0x493   :  { %v2664_v41 = vmul.f32 %v8023_v63, %v2638_v55  ;;  %v6372_v22 = vpop.f32.mrb[25].mxu0  ;;  %v3158_v63 = vrot.slane %v15042_v54, 4 }
 0x494   :  { %v4516_v51 = vmax.f32 %v12908_v13, %v4515_v60  ;;  %v4759_v50 = vmax.f32 %v12916_v25, %v4758_v61  ;;  %v12952_v60 = vpop.permute.xlu0 %4942  ;;  %v15043_v22 = vld [vmem:[#allocation64_spill] sm:$0xff] }
 0x495   :  { %v2665_v10 = vadd.f32 %v12902_v7, %v2664_v41  ;;  %5423 = vadd.xlane.f32.xlu1 %v5422_v62  ;;  %v3408_v61 = vrot.slane %v15043_v22, 4 }
 0x496   :  { %v4517_v15 = vrot.slane %v4516_v51, 4  ;;  %v4720_v57 = vpop.permute.xlu1 %4719  ;;  %v4762_v53 = vmax.f32 %v12930_v24, %v4759_v50 }
 0x497   :  { %2666 = vst [vmem:[%s13535_s6 + $0x8] sm:$0x1] %v2665_v10  ;;  %v12946_v23 = vmul.f32 %v12757_v37, %v4720_v57  ;;  %v3159_v10 = vadd.f32 %v3158_v63, %v15042_v54  ;;  %v3409_v57 = vadd.f32 %v3408_v61, %v15043_v22  ;;  %v15044_v61 = vld [vmem:[#allocation60_spill] sm:$0xff] }
 0x498   :  { %v4518_v29 = vmax.f32 %v4516_v51, %v4517_v15  ;;  %v4760_v32 = vmax.f32 %v4756_v9, %v4762_v53  ;;  %v12963_v50 = vpop.permute.xlu0 %4954 }
 0x499   :  { %v3410_v22 = vrot.slane %v3409_v57, 2 }
 0x49a   :  { %v4519_v48 = vrot.slane %v4518_v29, 2  ;;  %v4724_v20 = vpop.permute.xlu1 %4723  ;;  %v4763_v28 = vmax.f32 %v4760_v32, %v12946_v23 }
 0x49b   :  { %v12950_v55 = vmul.f32 %v12757_v37, %v4724_v20  ;;  %v8025_v37 = vpop.eup %8024 }
 0x49c   :  { %v4520_v41 = vmax.f32 %v4518_v29, %v4519_v48  ;;  %v3160_v48 = vrot.slane %v3159_v10, 2 }
 0x49d   :  { %v4764_v45 = vmax.f32 %v12950_v55, %v4763_v28  ;;  %v15045_v28 = vrot.slane %v15044_v61, 1 }
 0x49e   :  { %v4521_v51 = vrot.slane %v4520_v41, 1  ;;  %v3161_v7 = vadd.f32 %v3160_v48, %v3159_v10 }
 0x49f   :  { %v12958_v62 = vpop.permute.xlu1 %4918  ;;  %v4765_v20 = vrot.slane %v4764_v45, 4 }
 0x4a0   :  { %v12960_v15 = vmax.f32 %v4520_v41, %v4521_v51 }
 0x4a2   :  { %v2889_v9 = vpop.f32.mrb[14].mxu1  ;;  %v4523_v29 = vsub.f32 %v12764_v0, %v12960_v15  ;;  %v4524_v53 = vsub.f32 %v12665_v5, %v12960_v15  ;;  %v4525_v63 = vsub.f32 %v12775_v47, %v12960_v15  ;;  %v4526_v44 = vsub.f32 %v12793_v30, %v12960_v15 }
 0x4a3   :  { %v2915_v54 = vmul.f32 %v8025_v37, %v2889_v9  ;;  %v12971_v32 = vpop.permute.xlu1 %4926  ;;  %v6407_v41 = vpop.f32.mrb[15].mxu1  ;;  %v4527_v5 = vsub.f32 %v12655_v40, %v12960_v15  ;;  %v4766_v37 = vmax.f32 %v4764_v45, %v4765_v20  ;;  %v4528_v30 = vsub.f32 %v12797_v38, %v12960_v15 }
 0x4a4   :  { %v4539_v0 = vmul.f32 1.442695, %v4523_v29  ;;  %v4541_v43 = vmul.f32 1.442695, %v4524_v53  ;;  %v4543_v47 = vmul.f32 1.442695, %v4525_v63  ;;  %v3411_v41 = vadd.f32 %v3410_v22, %v3409_v57 }
 0x4a5   :  { %v2916_v51 = vadd.f32 %v2915_v54, %v15045_v28  ;;  %v12984_v54 = vpop.permute.xlu0 %4970  ;;  %v4545_v10 = vmul.f32 1.442695, %v4526_v44  ;;  %v3162_v29 = vrot.slane %v3161_v7, 1  ;;  %v4529_v53 = vsub.f32 %v12684_v8, %v12960_v15 }
 0x4a6   :  { %8026 = vpow2.f32 %v4539_v0  ;;  %v4547_v48 = vmul.f32 1.442695, %v4527_v5  ;;  %v4767_v40 = vrot.slane %v4766_v37, 2  ;;  %v3412_v45 = vrot.slane %v3411_v41, 1 }
 0x4a7   :  { %2917 = vst [vmem:[%s13535_s6 + $0x9] sm:$0x1] %v2916_v51  ;;  %v12982_v9 = vpop.permute.xlu1 %4930  ;;  %8028 = vpow2.f32 %v4541_v43  ;;  %v4530_v57 = vsub.f32 %v12779_v3, %v12960_v15  ;;  %v4549_v20 = vmul.f32 1.442695, %v4528_v30  ;;  %v4531_v38 = vsub.f32 %v12826_v16, %v12960_v15 }
 0x4a8   :  { %8030 = vpow2.f32 %v4543_v47  ;;  %v4768_v22 = vmax.f32 %v4766_v37, %v4767_v40  ;;  %v3163_v43 = vadd.f32 %v3162_v29, %v3161_v7  ;;  %v4532_v8 = vsub.f32 %v12728_v49, %v12960_v15 }
 0x4a9   :  { %8032 = vpow2.f32 %v4545_v10  ;;  %v12996_v44 = vpop.permute.xlu0 %5168  ;;  %v4551_v28 = vmul.f32 1.442695, %v4529_v53  ;;  %v4533_v3 = vsub.f32 %v12840_v1, %v12960_v15  ;;  %v3413_v5 = vadd.f32 %v3412_v45, %v3411_v41 }
 0x4aa   :  { %8034 = vpow2.f32 %v4547_v48  ;;  %v4769_v51 = vrot.slane %v4768_v22, 1  ;;  %v4553_v47 = vmul.f32 1.442695, %v4530_v57  ;;  %v4534_v7 = vsub.f32 %v12857_v33, %v12960_v15 }
 0x4ab   :  { %v12990_v63 = vpop.permute.xlu1 %4938  ;;  %8036 = vpow2.f32 %v4549_v20  ;;  %v4555_v30 = vmul.f32 1.442695, %v4531_v38  ;;  %v4557_v10 = vmul.f32 1.442695, %v4532_v8  ;;  %v4559_v29 = vmul.f32 1.442695, %v4533_v3 }
 0x4ac   :  { %v13004_v37 = vmax.f32 %v4768_v22, %v4769_v51  ;;  %8038 = vrcp.f32 %v3163_v43  ;;  %v4561_v57 = vmul.f32 1.442695, %v4534_v7  ;;  %v4535_v43 = vsub.f32 %v12868_v56, %v12960_v15 }
 0x4ad   :  { %8040 = vpow2.f32 %v4551_v28  ;;  %v13018_v48 = vpop.permute.xlu0 %5180 }
 0x4ae   :  { %8042 = vrcp.f32 %v3413_v5  ;;  %v4771_v33 = vsub.f32 %v12809_v19, %v13004_v37  ;;  %v4772_v40 = vsub.f32 %v12892_v46, %v13004_v37  ;;  %v4773_v45 = vsub.f32 %v12912_v4, %v13004_v37 }
 0x4af   :  { %v13000_v0 = vpop.permute.xlu1 %4946  ;;  %8044 = vpow2.f32 %v4553_v47  ;;  %v4774_v22 = vsub.f32 %v12821_v21, %v13004_v37  ;;  %v4536_v19 = vsub.f32 %v12733_v26, %v12960_v15  ;;  %v4775_v28 = vsub.f32 %v12916_v25, %v13004_v37 }
 0x4b0   :  { %v13006_v16 = vpop.eup %8026  ;;  %8046 = vpow2.f32 %v4555_v30  ;;  %v4787_v21 = vmul.f32 1.442695, %v4771_v33  ;;  %v4789_v51 = vmul.f32 1.442695, %v4772_v40  ;;  %v4791_v3 = vmul.f32 1.442695, %v4773_v45 }
 0x4b1   :  { %v13010_v49 = vpop.eup %8028  ;;  %8048 = vpow2.f32 %v4557_v10  ;;  %v4776_v5 = vsub.f32 %v12786_v2, %v13004_v37  ;;  %v4793_v26 = vmul.f32 1.442695, %v4774_v22  ;;  %v13047_v7 = vpop.permute.xlu0 %5188  ;;  %v4537_v30 = vsub.f32 %v12877_v12, %v12960_v15 }
 0x4b2   :  { %v4641_v1 = vadd.f32 %v13010_v49, %v13006_v16  ;;  %v13016_v53 = vpop.eup %8030  ;;  %8050 = vpow2.f32 %v4559_v29  ;;  %v4563_v10 = vmul.f32 1.442695, %v4535_v43  ;;  %v4538_v29 = vsub.f32 %v12908_v13, %v12960_v15  ;;  %v15046_v43 = vld [vmem:[#allocation89_spill] sm:$0xff] }
 0x4b3   :  { %v13029_v38 = vpop.eup %8032  ;;  %8052 = vpow2.f32 %v4561_v57  ;;  %v4777_v45 = vsub.f32 %v12897_v35, %v13004_v37  ;;  %v4795_v57 = vmul.f32 1.442695, %v4775_v28  ;;  %v4778_v13 = vsub.f32 %v12813_v34, %v13004_v37 }
 0x4b4   :  { %v13014_v41 = vpop.permute.xlu1 %5172  ;;  %v4642_v20 = vadd.f32 %v13016_v53, %v4641_v1  ;;  %v13038_v8 = vpop.eup %8034  ;;  %8054 = vpow2.f32 %v4787_v21  ;;  %v4565_v1 = vmul.f32 1.442695, %v4536_v19  ;;  %v4797_v15 = vmul.f32 1.442695, %v4776_v5 }
 0x4b5   :  { %v13045_v47 = vpop.eup %8036  ;;  %8056 = vpow2.f32 %v4789_v51  ;;  %v13069_v19 = vrot.slane %v12602_v39, %v15046_v43  ;;  %v7206_v28 = vpack.c.bf16 %v13010_v49, %v13006_v16  ;;  %v4569_v51 = vmul.f32 1.442695, %v4538_v29 }
 0x4b6   :  { %v4643_v46 = vadd.f32 %v13029_v38, %v4642_v20  ;;  %v8039_v25 = vpop.eup %8038  ;;  %8058 = vpow2.f32 %v4791_v3  ;;  %v4780_v16 = vsub.f32 %v12930_v24, %v13004_v37  ;;  %v4799_v49 = vmul.f32 1.442695, %v4777_v45 }
 0x4b7   :  { %v13056_v2 = vpop.eup %8040  ;;  %8060 = vpow2.f32 %v4793_v26  ;;  %7207 = vmatpush3.bf16.msra.mxu0 %v7206_v28  ;;  %v4801_v29 = vmul.f32 1.442695, %v4778_v13  ;;  %v13098_v24 = vmul.f32 %v13069_v19, %v12935_v31  ;;  %v13106_v13 = vmul.f32 %v13069_v19, %v12886_v14 }
 0x4b8   :  { %v13036_v4 = vpop.permute.xlu1 %5176  ;;  %v4644_v56 = vadd.f32 %v13038_v8, %v4643_v46  ;;  %v13060_v12 = vpop.eup %8042  ;;  %8062 = vpow2.f32 %v4563_v10  ;;  %v4567_v46 = vmul.f32 1.442695, %v4537_v30  ;;  %v4779_v30 = vsub.f32 %v12847_v18, %v13004_v37  ;;  %7208 = vmatprep.subr.bf16.mxu0 %v14419_v27 }
 0x4b9   :  { %v13065_v22 = vpop.eup %8044  ;;  %8064 = vpow2.f32 %v4565_v1  ;;  %v15047_v1 = vrot.slane %v15044_v61, 2  ;;  %v7209_v18 = vpack.c.bf16 %v13029_v38, %v13016_v53  ;;  %v4781_v53 = vsub.f32 %v12920_v59, %v13004_v37 }
 0x4ba   :  { %v4645_v33 = vadd.f32 %v13045_v47, %v4644_v56  ;;  %v13073_v21 = vpop.eup %8046  ;;  %8066 = vpow2.f32 %v4795_v57  ;;  %v4803_v38 = vmul.f32 1.442695, %v4779_v30  ;;  %v4805_v28 = vmul.f32 1.442695, %v4780_v16 }
 0x4bb   :  { %v13078_v26 = vpop.eup %8048  ;;  %8068 = vpow2.f32 %v4797_v15  ;;  %7210 = vmatpush3.bf16.msra.mxu0 %v7209_v18  ;;  %v7212_v59 = vpack.c.bf16 %v13045_v47, %v13038_v8  ;;  %v5001_v30 = vmax.f32 %v13106_v13, %v13098_v24  ;;  %v4783_v16 = vsub.f32 %v12863_v6, %v13004_v37 }
 0x4bc   :  { %v13054_v40 = vpop.permute.xlu1 %5184  ;;  %v4646_v20 = vadd.f32 %v13056_v2, %v4645_v33  ;;  %v13080_v33 = vpop.permute.xlu0 %5196  ;;  %8070 = vpow2.f32 %v4567_v46  ;;  %7211 = vmatprep.subr.bf16.mxu0 %v14419_v27  ;;  %v4807_v8 = vmul.f32 1.442695, %v4781_v53  ;;  %v13143_v53 = vmul.f32 %v13069_v19, %v12963_v50 }
 0x4bd   :  { %v13086_v10 = vpop.eup %8050  ;;  %8072 = vpow2.f32 %v4569_v51 }
 0x4be   :  { %v3139_v35 = vpop.f32.mrb[26].mxu0  ;;  %v4647_v34 = vadd.f32 %v13065_v22, %v4646_v20  ;;  %v13094_v43 = vpop.eup %8052  ;;  %8074 = vpow2.f32 %v4799_v49  ;;  %v13124_v49 = vmul.f32 %v13069_v19, %v12952_v60 }
 0x4bf   :  { %v3165_v3 = vmul.f32 %v8039_v25, %v3139_v35  ;;  %v6442_v5 = vpop.f32.mrb[27].mxu0  ;;  %v8055_v57 = vpop.eup %8054  ;;  %v4782_v35 = vsub.f32 %v12832_v17, %v13004_v37  ;;  %8076 = vpow2.f32 %v4801_v29  ;;  %v4784_v29 = vsub.f32 %v12946_v23, %v13004_v37  ;;  %7213 = vmatpush3.bf16.msra.mxu0 %v7212_v59 }
 0x4c0   :  { %v13076_v56 = vpop.permute.xlu1 %5192  ;;  %v4648_v25 = vadd.f32 %v13073_v21, %v4647_v34  ;;  %v8057_v15 = vpop.eup %8056  ;;  %8078 = vpow2.f32 %v4803_v38  ;;  %7214 = vmatprep.subr.bf16.mxu0 %v14419_v27  ;;  %v15048_v59 = vrot.slane %v15044_v61, 3  ;;  %v4786_v61 = vsub.f32 %v12850_v36, %v13004_v37 }
 0x4c1   :  { %v3166_v20 = vadd.f32 %v3165_v3, %v15047_v1  ;;  %v8059_v14 = vpop.eup %8058  ;;  %v13116_v51 = vpop.permute.xlu0 %5200  ;;  %v4892_v34 = vadd.f32 %v8057_v15, %v8055_v57  ;;  %v7230_v3 = vpack.c.bf16 %v8057_v15, %v8055_v57  ;;  %8080 = vpow2.f32 %v4805_v28 }
 0x4c2   :  { %v4649_v45 = vadd.f32 %v13078_v26, %v4648_v25  ;;  %v8061_v5 = vpop.eup %8060  ;;  %v7215_v15 = vpack.c.bf16 %v13065_v22, %v13056_v2  ;;  %v4785_v2 = vsub.f32 %v12950_v55, %v13004_v37  ;;  %8082 = vpow2.f32 %v4807_v8 }
 0x4c3   :  { %3167 = vst [vmem:[%s13535_s6 + $0xa] sm:$0x1] %v3166_v20  ;;  %v13129_v25 = vpop.eup %8062  ;;  %v4893_v47 = vadd.f32 %v8059_v14, %v4892_v34  ;;  %7231 = vmatpush3.bf16.msra.mxu1 %v7230_v3  ;;  %v4811_v22 = vmul.f32 1.442695, %v4783_v16  ;;  %v13181_v37 = vmul.f32 %v13069_v19, %v12958_v62 }
 0x4c4   :  { %v4650_v46 = vadd.f32 %v13086_v10, %v4649_v45  ;;  %v13135_v60 = vpop.eup %8064  ;;  %v4809_v45 = vmul.f32 1.442695, %v4782_v35  ;;  %7232 = vmatprep.subr.bf16.mxu1 %v14419_v27  ;;  %v5003_v35 = vmax.f32 %v5001_v30, %v13124_v49  ;;  %7216 = vmatpush3.bf16.msra.mxu0 %v7215_v15 }
 0x4c5   :  { %v13110_v31 = vpop.permute.xlu1 %4950  ;;  %v8067_v57 = vpop.eup %8066  ;;  %v4894_v38 = vadd.f32 %v8061_v5, %v4893_v47  ;;  %v4813_v47 = vmul.f32 1.442695, %v4784_v29  ;;  %7217 = vmatprep.subr.bf16.mxu0 %v14419_v27 }
 0x4c6   :  { %v4651_v17 = vadd.f32 %v13094_v43, %v4650_v46  ;;  %v7233_v46 = vpack.c.bf16 %v8061_v5, %v8059_v14  ;;  %v8069_v34 = vpop.eup %8068  ;;  %v13157_v50 = vpop.permute.xlu0 %5212  ;;  %8084 = vpow2.f32 %v4809_v45  ;;  %v5002_v16 = vmax.f32 %v13143_v53, %v5003_v35 }
 0x4c7   :  { %v4895_v14 = vadd.f32 %v8067_v57, %v4894_v38  ;;  %8086 = vpow2.f32 %v4811_v22  ;;  %v4815_v45 = vmul.f32 1.442695, %v4785_v2  ;;  %v4817_v38 = vmul.f32 1.442695, %v4786_v61  ;;  %v15050_v22 = vld [vmem:[#allocation85_spill] sm:$0xff] }
 0x4c8   :  { %v3389_v1 = vpop.f32.mrb[16].mxu1  ;;  %v4652_v18 = vadd.f32 %v13129_v25, %v4651_v17  ;;  %v13155_v17 = vpop.eup %8070  ;;  %7234 = vmatpush3.bf16.msra.mxu1 %v7233_v46  ;;  %8088 = vpow2.f32 %v4813_v47  ;;  %v7224_v47 = vpack.c.bf16 %v13135_v60, %v13129_v25 }
 0x4c9   :  { %v13133_v20 = vpop.permute.xlu1 %4958  ;;  %v3415_v6 = vmul.f32 %v13060_v12, %v3389_v1  ;;  %v6477_v23 = vpop.f32.mrb[17].mxu1  ;;  %v13150_v12 = vmul.f32 %v13069_v19, %v12984_v54  ;;  %7235 = vmatprep.subr.bf16.mxu1 %v14419_v27  ;;  %v4896_v8 = vadd.f32 %v8069_v34, %v4895_v14  ;;  %v7218_v1 = vpack.c.bf16 %v13078_v26, %v13073_v21 }
 0x4ca   :  { %v4653_v28 = vadd.f32 %v13135_v60, %v4652_v18  ;;  %v13163_v54 = vpop.eup %8072  ;;  %v7236_v18 = vpack.c.bf16 %v8069_v34, %v8067_v57  ;;  %v13186_v21 = vmul.f32 %v13069_v19, %v12971_v32  ;;  %v13190_v26 = vmul.f32 %v13069_v19, %v13000_v0  ;;  %v5217_v15 = vpop.permute.xlu0 %5216 }
 0x4cb   :  { %v3416_v3 = vadd.f32 %v3415_v6, %v15048_v59  ;;  %v8075_v55 = vpop.eup %8074  ;;  %v5006_v29 = vmax.f32 %v5002_v16, %v13150_v12  ;;  %7219 = vmatpush3.bf16.msra.mxu0 %v7218_v1  ;;  %v7221_v34 = vpack.c.bf16 %v13094_v43, %v13086_v10  ;;  %v13201_v0 = vmul.f32 %v13069_v19, %v12982_v9 }
 0x4cc   :  { %v4654_v30 = vadd.f32 %v13155_v17, %v4653_v28  ;;  %v8077_v6 = vpop.eup %8076  ;;  %v4897_v23 = vadd.f32 %v8075_v55, %v4896_v8  ;;  %7237 = vmatpush3.bf16.msra.mxu1 %v7236_v18  ;;  %7220 = vmatprep.subr.bf16.mxu0 %v14419_v27  ;;  %v13205_v59 = vmul.f32 %v13069_v19, %v12990_v63  ;;  %v3658_v14 = vrot.slane %v15050_v22, 4 }
 0x4cd   :  { %v13161_v5 = vpop.permute.xlu1 %4962  ;;  %3417 = vst [vmem:[%s13535_s6 + $0xb] sm:$0x1] %v3416_v3  ;;  %7238 = vmatprep.subr.bf16.mxu1 %v14419_v27  ;;  %v8079_v57 = vpop.eup %8078  ;;  %v7239_v35 = vpack.c.bf16 %v8077_v6, %v8075_v55  ;;  %v5005_v32 = vmax.f32 %v13181_v37, %v5006_v29  ;;  %v15049_v3 = vld [vmem:[#allocation91_spill] sm:$0xff]  ;;  %8090 = vpow2.f32 %v4815_v45  ;;  %v5004_v9 = vmax.f32 %v13201_v0, %v13190_v26 }
 0x4ce   :  { %v13177_v36 = vadd.f32 %v13163_v54, %v4654_v30  ;;  %v4898_v46 = vadd.f32 %v8077_v6, %v4897_v23  ;;  %v8081_v28 = vpop.eup %8080  ;;  %v13209_v2 = vrot.slane %v12602_v39, %v15049_v3  ;;  %8092 = vpow2.f32 %v4817_v38  ;;  %v5229_v25 = vpop.permute.xlu0 %5228 }
 0x4cf   :  { %7222 = vmatpush3.bf16.msra.mxu0 %v7221_v34  ;;  %v5007_v43 = vmax.f32 %v13186_v21, %v5005_v32  ;;  %v8083_v39 = vpop.eup %8082  ;;  %v7242_v55 = vpack.c.bf16 %v8081_v28, %v8079_v57  ;;  %v13249_v45 = vmul.f32 %v13069_v19, %v13133_v20  ;;  %v7227_v38 = vpack.c.bf16 %v13163_v54, %v13155_v17 }
 0x4d0   :  { %v4899_v10 = vadd.f32 %v8079_v57, %v4898_v46  ;;  %7240 = vmatpush3.bf16.msra.mxu1 %v7239_v35  ;;  %7223 = vmatprep.subr.bf16.mxu0 %v14419_v27  ;;  %v13221_v30 = vmul.f32 %v13209_v2, %v13080_v33  ;;  %v8085_v16 = vpop.eup %8084  ;;  %v13227_v8 = vmul.f32 %v13209_v2, %v13018_v48 }
 0x4d1   :  { %7241 = vmatprep.subr.bf16.mxu1 %v14419_v27  ;;  %v13231_v1 = vmul.f32 %v13209_v2, %v13047_v7  ;;  %v5008_v18 = vmax.f32 %v13205_v59, %v5007_v43  ;;  %v13236_v33 = vmul.f32 %v13069_v19, %v13110_v31  ;;  %v13240_v6 = vmul.f32 %v13209_v2, %v13157_v50  ;;  %v8087_v31 = vpop.eup %8086 }
 0x4d2   :  { %v13194_v62 = vpop.permute.xlu1 %5204  ;;  %v4900_v61 = vadd.f32 %v8081_v28, %v4899_v10  ;;  %v3659_v48 = vadd.f32 %v3658_v14, %v15050_v22  ;;  %v13245_v7 = vmul.f32 %v13209_v2, %v12996_v44  ;;  %v5254_v50 = vmax.f32 %v13227_v8, %v13221_v30  ;;  %v8089_v46 = vpop.eup %8088 }
 0x4d3   :  { %7225 = vmatpush3.bf16.msra.mxu0 %v7224_v47  ;;  %v5009_v29 = vmax.f32 %v5004_v9, %v5008_v18  ;;  %v7245_v57 = vpack.c.bf16 %v8085_v16, %v8083_v39  ;;  %v13259_v34 = vmul.f32 %v13209_v2, %v13116_v51  ;;  %v13262_v20 = vmul.f32 %v13209_v2, %v5229_v25 }
 0x4d4   :  { %v4901_v60 = vadd.f32 %v8083_v39, %v4900_v61  ;;  %7243 = vmatpush3.bf16.msra.mxu1 %v7242_v55  ;;  %7226 = vmatprep.subr.bf16.mxu0 %v14419_v27  ;;  %v13267_v28 = vmul.f32 %v13069_v19, %v13161_v5  ;;  %v5252_v32 = vmax.f32 %v13245_v7, %v13231_v1  ;;  %v3660_v3 = vrot.slane %v3659_v48, 2  ;;  %v13287_v55 = vld [vmem:[%s13533_s0 + $0x10] sm:$0xf] }
 0x4d5   :  { %7244 = vmatprep.subr.bf16.mxu1 %v14419_v27  ;;  %v5010_v35 = vmax.f32 %v13236_v33, %v5009_v29  ;;  %v5258_v17 = vmax.f32 %v5254_v50, %v13240_v6  ;;  %v13273_v51 = vmul.f32 %v13209_v2, %v5217_v15  ;;  %v7248_v43 = vpack.c.bf16 %v8089_v46, %v8087_v31 }
 0x4d6   :  { %v13217_v63 = vpop.permute.xlu1 %5208  ;;  %v4902_v23 = vadd.f32 %v8085_v16, %v4901_v60  ;;  %v5251_v61 = vmax.f32 %v13259_v34, %v5252_v32  ;;  %v3661_v25 = vadd.f32 %v3660_v3, %v3659_v48  ;;  %v13302_v50 = vmul.f32 %v13209_v2, %v13014_v41 }
 0x4d7   :  { %7228 = vmatpush3.bf16.msra.mxu0 %v7227_v38  ;;  %v5013_v22 = vmax.f32 %v13249_v45, %v5010_v35  ;;  %v8091_v5 = vpop.eup %8090  ;;  %v5262_v47 = vmax.f32 %v5258_v17, %v13262_v20  ;;  %v13315_v32 = vmul.f32 %v13209_v2, %v13036_v4  ;;  %v13319_v41 = vmul.f32 %v13209_v2, %v13054_v40 }
 0x4d8   :  { %v4903_v54 = vadd.f32 %v8087_v31, %v4902_v23  ;;  %7246 = vmatpush3.bf16.msra.mxu1 %v7245_v57  ;;  %7253 = vmatprep.subr.bf16.mxu0 %v14419_v27  ;;  %v8093_v39 = vpop.eup %8092  ;;  %v5255_v60 = vmax.f32 %v5251_v61, %v13273_v51  ;;  %v13306_v23 = vmul.f32 %v13209_v2, %v13076_v56  ;;  %v3662_v17 = vrot.slane %v3661_v25, 1 }
 0x4d9   :  { %7247 = vmatprep.subr.bf16.mxu1 %v14419_v27  ;;  %v5011_v15 = vmax.f32 %v13267_v28, %v5013_v22  ;;  %v7251_v48 = vpack.c.bf16 %v8093_v39, %v8091_v5  ;;  %v13323_v56 = vmul.f32 %v13209_v2, %v13217_v63  ;;  %v13332_v3 = vmul.f32 %v13209_v2, %v13194_v62 }
 0x4da   :  { %v4904_v10 = vadd.f32 %v8089_v46, %v4903_v54  ;;  %6651 = vmatmul.mubr.f32.vlgmr.msra.gmra.mrb[32].mxu0 %v13287_v55  ;;  %v5256_v57 = vmax.f32 %v5262_v47, %v5255_v60  ;;  %v4820_v46 = vrot.slane %v13287_v55, 1  ;;  %v5253_v4 = vmax.f32 %v13315_v32, %v13306_v23  ;;  %v15051_v60 = vld [vmem:[#allocation104_spill] sm:$0xff] }
 0x4db   :  { %v4967_v44 = vpop.permute.xlu1 %4966  ;;  %6720 = vmatprep.mubr.msk.f32.mxu0 %vm8201_vm0, %v15040_v52 }
 0x4dc   :  { %v13278_v14 = vmul.f32 %v13069_v19, %v4967_v44  ;;  %v4905_v18 = vadd.f32 %v8091_v5, %v4904_v10  ;;  %7249 = vmatpush3.bf16.msra.mxu1 %v7248_v43  ;;  %v5257_v5 = vmax.f32 %v5253_v4, %v13323_v56  ;;  %v3663_v10 = vadd.f32 %v3662_v17, %v3661_v25 }
 0x4dd   :  { %7250 = vmatprep.subr.bf16.mxu1 %v14419_v27 }
 0x4de   :  { %v5012_v29 = vmax.f32 %v13278_v14, %v5011_v15  ;;  %v13298_v31 = vadd.f32 %v8093_v39, %v4905_v18  ;;  %8094 = vrcp.f32 %v3663_v10 }
 0x4df   :  { %v4975_v9 = vpop.permute.xlu1 %4974 }
 0x4e0   :  { %v13291_v16 = vmul.f32 %v13069_v19, %v4975_v9  ;;  %7252 = vmatpush3.bf16.msra.mxu1 %v7251_v48 }
 0x4e1   :  { %7277 = vmatprep.subr.bf16.mxu1 %v14419_v27 }
 0x4e2   :  { %v5014_v44 = vmax.f32 %v13291_v16, %v5012_v29  ;;  %v3908_v29 = vrot.slane %v15051_v60, 4 }
 0x4e3   :  { %v4979_v38 = vpop.permute.xlu1 %4978  ;;  %6686 = vmatmul.mubr.f32.vlgmr.msra.gmra.mrb[22].mxu1 %v4820_v46 }
 0x4e4   :  { %v13311_v35 = vmul.f32 %v13069_v19, %v4979_v38  ;;  %v5259_v19 = vmax.f32 %v13302_v50, %v5256_v57  ;;  %6755 = vmatprep.mubr.msk.f32.mxu1 %vm8201_vm0, %v15040_v52 }
 0x4e6   :  { %v5015_v54 = vmax.f32 %v13311_v35, %v5014_v44  ;;  %v5260_v22 = vmax.f32 %v13319_v41, %v5259_v19  ;;  %v3909_v44 = vadd.f32 %v3908_v29, %v15051_v60  ;;  %v15052_v29 = vrot.slane %v15039_v11, 4 }
 0x4e8   :  { %v5016_v40 = vrot.slane %v5015_v54, 4  ;;  %v5221_v63 = vpop.permute.xlu1 %5220  ;;  %v5263_v9 = vmax.f32 %v13332_v3, %v5260_v22 }
 0x4e9   :  { %v13342_v39 = vmul.f32 %v13209_v2, %v5221_v63  ;;  %v8095_v63 = vpop.eup %8094 }
 0x4ea   :  { %v5017_v43 = vmax.f32 %v5015_v54, %v5016_v40  ;;  %v5261_v47 = vmax.f32 %v5257_v5, %v5263_v9  ;;  %v3910_v40 = vrot.slane %v3909_v44, 2 }
 0x4ec   :  { %v5018_v62 = vrot.slane %v5017_v43, 2  ;;  %v5225_v61 = vpop.permute.xlu1 %5224  ;;  %v5264_v25 = vmax.f32 %v5261_v47, %v13342_v39 }
 0x4ed   :  { %v13345_v15 = vmul.f32 %v13209_v2, %v5225_v61 }
 0x4ee   :  { %v5019_v18 = vmax.f32 %v5017_v43, %v5018_v62 }
 0x4ef   :  { %v5265_v38 = vmax.f32 %v13345_v15, %v5264_v25 }
 0x4f0   :  { %v5020_v48 = vrot.slane %v5019_v18, 1  ;;  %v3639_v4 = vpop.f32.mrb[28].mxu0 }
 0x4f1   :  { %v5266_v19 = vrot.slane %v5265_v38, 4  ;;  %v6512_v5 = vpop.f32.mrb[29].mxu0  ;;  %v3665_v9 = vmul.f32 %v8095_v63, %v3639_v4 }
 0x4f2   :  { %v13350_v57 = vmax.f32 %v5019_v18, %v5020_v48 }
 0x4f3   :  { %v5267_v61 = vmax.f32 %v5265_v38, %v5266_v19  ;;  %v3666_v25 = vadd.f32 %v3665_v9, %v15052_v29 }
 0x4f4   :  { %v5022_v17 = vsub.f32 %v13181_v37, %v13350_v57  ;;  %v5023_v2 = vsub.f32 %v13106_v13, %v13350_v57  ;;  %v5024_v54 = vsub.f32 %v13186_v21, %v13350_v57  ;;  %v5025_v22 = vsub.f32 %v13201_v0, %v13350_v57 }
 0x4f5   :  { %v5026_v37 = vsub.f32 %v13098_v24, %v13350_v57  ;;  %v3911_v13 = vadd.f32 %v3910_v40, %v3909_v44  ;;  %v5027_v21 = vsub.f32 %v13205_v59, %v13350_v57  ;;  %v5028_v18 = vsub.f32 %v13124_v49, %v13350_v57  ;;  %3667 = vst [vmem:[%s13535_s6 + $0xc] sm:$0x1] %v3666_v25 }
 0x4f6   :  { %v5038_v10 = vmul.f32 1.442695, %v5022_v17  ;;  %v5040_v43 = vmul.f32 1.442695, %v5023_v2  ;;  %v5042_v62 = vmul.f32 1.442695, %v5024_v54  ;;  %v5029_v24 = vsub.f32 %v13190_v26, %v13350_v57 }
 0x4f7   :  { %v5044_v47 = vmul.f32 1.442695, %v5025_v22  ;;  %v5046_v0 = vmul.f32 1.442695, %v5026_v37  ;;  %v5268_v60 = vrot.slane %v5267_v61, 2  ;;  %v3912_v48 = vrot.slane %v3911_v13, 1 }
 0x4f8   :  { %8096 = vpow2.f32 %v5038_v10  ;;  %v5048_v38 = vmul.f32 1.442695, %v5027_v21  ;;  %v5030_v49 = vsub.f32 %v13236_v33, %v13350_v57  ;;  %v5031_v59 = vsub.f32 %v13143_v53, %v13350_v57 }
 0x4f9   :  { %8098 = vpow2.f32 %v5040_v43  ;;  %v5269_v44 = vmax.f32 %v5267_v61, %v5268_v60  ;;  %v5050_v17 = vmul.f32 1.442695, %v5028_v18  ;;  %v5032_v54 = vsub.f32 %v13249_v45, %v13350_v57 }
 0x4fa   :  { %8100 = vpow2.f32 %v5042_v62  ;;  %v3913_v26 = vadd.f32 %v3912_v48, %v3911_v13  ;;  %v5052_v19 = vmul.f32 1.442695, %v5029_v24  ;;  %v5033_v63 = vsub.f32 %v13267_v28, %v13350_v57 }
 0x4fb   :  { %8102 = vpow2.f32 %v5044_v47  ;;  %v5270_v2 = vrot.slane %v5269_v44, 1  ;;  %v5054_v22 = vmul.f32 1.442695, %v5030_v49  ;;  %v5056_v5 = vmul.f32 1.442695, %v5031_v59 }
 0x4fc   :  { %8104 = vpow2.f32 %v5046_v0  ;;  %v5058_v53 = vmul.f32 1.442695, %v5032_v54  ;;  %v5060_v28 = vmul.f32 1.442695, %v5033_v63  ;;  %v5034_v47 = vsub.f32 %v13278_v14, %v13350_v57 }
 0x4fd   :  { %8106 = vpow2.f32 %v5048_v38  ;;  %v13380_v4 = vmax.f32 %v5269_v44, %v5270_v2 }
 0x4fe   :  { %8108 = vpow2.f32 %v5050_v17  ;;  %v5062_v44 = vmul.f32 1.442695, %v5034_v47 }
 0x4ff   :  { %8110 = vrcp.f32 %v3913_v26  ;;  %v5272_v45 = vsub.f32 %v13245_v7, %v13380_v4  ;;  %v5273_v9 = vsub.f32 %v13302_v50, %v13380_v4  ;;  %v5274_v37 = vsub.f32 %v13315_v32, %v13380_v4 }
 0x500   :  { %8112 = vpow2.f32 %v5052_v19  ;;  %v5275_v61 = vsub.f32 %v13227_v8, %v13380_v4  ;;  %v5035_v7 = vsub.f32 %v13150_v12, %v13350_v57  ;;  %v5276_v32 = vsub.f32 %v13319_v41, %v13380_v4 }
 0x501   :  { %8114 = vpow2.f32 %v5054_v22  ;;  %v5288_v60 = vmul.f32 1.442695, %v5272_v45  ;;  %v5290_v29 = vmul.f32 1.442695, %v5273_v9  ;;  %v5292_v25 = vmul.f32 1.442695, %v5274_v37 }
 0x502   :  { %v8097_v40 = vpop.eup %8096  ;;  %8116 = vpow2.f32 %v5056_v5  ;;  %v5277_v14 = vsub.f32 %v13231_v1, %v13380_v4  ;;  %v5294_v24 = vmul.f32 1.442695, %v5275_v61  ;;  %v5036_v12 = vsub.f32 %v13291_v16, %v13350_v57 }
 0x503   :  { %v8099_v33 = vpop.eup %8098  ;;  %8118 = vpow2.f32 %v5058_v53  ;;  %v5037_v41 = vsub.f32 %v13311_v35, %v13350_v57  ;;  %v5064_v49 = vmul.f32 1.442695, %v5035_v7  ;;  %v5278_v1 = vsub.f32 %v13306_v23, %v13380_v4 }
 0x504   :  { %v5142_v10 = vadd.f32 %v8099_v33, %v8097_v40  ;;  %v8101_v43 = vpop.eup %8100  ;;  %v7254_v8 = vpack.c.bf16 %v8099_v33, %v8097_v40  ;;  %8120 = vpow2.f32 %v5060_v28  ;;  %v5296_v2 = vmul.f32 1.442695, %v5276_v32 }
 0x505   :  { %v8103_v21 = vpop.eup %8102  ;;  %8122 = vpow2.f32 %v5288_v60  ;;  %v5279_v16 = vsub.f32 %v13221_v30, %v13380_v4  ;;  %v5298_v19 = vmul.f32 1.442695, %v5277_v14  ;;  %v5066_v35 = vmul.f32 1.442695, %v5036_v12 }
 0x506   :  { %v5143_v62 = vadd.f32 %v8101_v43, %v5142_v10  ;;  %v3889_v13 = vpop.f32.mrb[18].mxu1  ;;  %v8105_v0 = vpop.eup %8104  ;;  %7255 = vmatpush3.bf16.msra.mxu0 %v7254_v8  ;;  %8124 = vpow2.f32 %v5290_v29  ;;  %v7257_v57 = vpack.c.bf16 %v8103_v21, %v8101_v43  ;;  %v5068_v33 = vmul.f32 1.442695, %v5037_v41 }
 0x507   :  { %v6547_v18 = vpop.f32.mrb[19].mxu1  ;;  %v8107_v38 = vpop.eup %8106  ;;  %7256 = vmatprep.subr.bf16.mxu0 %v14419_v27  ;;  %8126 = vpow2.f32 %v5292_v25  ;;  %v5280_v53 = vsub.f32 %v13259_v34, %v13380_v4  ;;  %v5300_v10 = vmul.f32 1.442695, %v5278_v1  ;;  %v15053_v30 = vrot.slane %v15039_v11, 5 }
 0x508   :  { %v5144_v50 = vadd.f32 %v8103_v21, %v5143_v62  ;;  %v8109_v17 = vpop.eup %8108  ;;  %8128 = vpow2.f32 %v5294_v24  ;;  %v5281_v37 = vsub.f32 %v13332_v3, %v13380_v4  ;;  %v5302_v28 = vmul.f32 1.442695, %v5279_v16 }
 0x509   :  { %v8111_v54 = vpop.eup %8110  ;;  %8130 = vpow2.f32 %v5062_v44  ;;  %v7260_v34 = vpack.c.bf16 %v8107_v38, %v8105_v0  ;;  %v5282_v21 = vsub.f32 %v13323_v56, %v13380_v4  ;;  %v5304_v3 = vmul.f32 1.442695, %v5280_v53 }
 0x50a   :  { %v5145_v48 = vadd.f32 %v8105_v0, %v5144_v50  ;;  %v8113_v40 = vpop.eup %8112  ;;  %v3915_v63 = vmul.f32 %v8111_v54, %v3889_v13  ;;  %8132 = vpow2.f32 %v5064_v49  ;;  %7258 = vmatpush3.bf16.msra.mxu0 %v7257_v57  ;;  %v5283_v7 = vsub.f32 %v13240_v6, %v13380_v4 }
 0x50b   :  { %v13409_v22 = vpop.eup %8114  ;;  %8134 = vpow2.f32 %v5296_v2  ;;  %7259 = vmatprep.subr.bf16.mxu0 %v14419_v27  ;;  %v5306_v50 = vmul.f32 1.442695, %v5281_v37  ;;  %v7263_v29 = vpack.c.bf16 %v8113_v40, %v8109_v17  ;;  %v5308_v14 = vmul.f32 1.442695, %v5282_v21 }
 0x50c   :  { %v5146_v59 = vadd.f32 %v8107_v38, %v5145_v48  ;;  %v8117_v23 = vpop.eup %8116  ;;  %v3916_v45 = vadd.f32 %v3915_v63, %v15053_v30  ;;  %8136 = vpow2.f32 %v5298_v19  ;;  %v5284_v48 = vsub.f32 %v13273_v51, %v13380_v4 }
 0x50d   :  { %v13415_v9 = vpop.eup %8118  ;;  %8138 = vpow2.f32 %v5066_v35  ;;  %v5285_v12 = vsub.f32 %v13342_v39, %v13380_v4  ;;  %v5310_v44 = vmul.f32 1.442695, %v5283_v7  ;;  %v7266_v51 = vpack.c.bf16 %v8117_v23, %v13409_v22 }
 0x50e   :  { %v5147_v26 = vadd.f32 %v8109_v17, %v5146_v59  ;;  %3917 = vst [vmem:[%s13535_s6 + $0xd] sm:$0x1] %v3916_v45  ;;  %v13424_v62 = vpop.eup %8120  ;;  %8140 = vpow2.f32 %v5068_v33  ;;  %7261 = vmatpush3.bf16.msra.mxu0 %v7260_v34  ;;  %v5286_v54 = vsub.f32 %v13345_v15, %v13380_v4 }
 0x50f   :  { %v8123_v13 = vpop.eup %8122  ;;  %8142 = vpow2.f32 %v5300_v10  ;;  %7262 = vmatprep.subr.bf16.mxu0 %v14419_v27  ;;  %v5314_v35 = vmul.f32 1.442695, %v5285_v12  ;;  %v7269_v15 = vpack.c.bf16 %v13424_v62, %v13415_v9 }
 0x510   :  { %v5148_v5 = vadd.f32 %v8113_v40, %v5147_v26  ;;  %v8125_v47 = vpop.eup %8124  ;;  %8144 = vpow2.f32 %v5302_v28  ;;  %v5312_v26 = vmul.f32 1.442695, %v5284_v48  ;;  %v5287_v40 = vsub.f32 %v13262_v20, %v13380_v4 }
 0x511   :  { %v8127_v32 = vpop.eup %8126  ;;  %v5392_v0 = vadd.f32 %v8125_v47, %v8123_v13  ;;  %v7278_v60 = vpack.c.bf16 %v8125_v47, %v8123_v13  ;;  %8146 = vpow2.f32 %v5304_v3  ;;  %v5070_v13 = vrot.slane %v13287_v55, 2 }
 0x512   :  { %v5149_v43 = vadd.f32 %v13409_v22, %v5148_v5  ;;  %v8129_v25 = vpop.eup %8128  ;;  %7264 = vmatpush3.bf16.msra.mxu0 %v7263_v29  ;;  %8148 = vpow2.f32 %v5306_v50  ;;  %v5318_v20 = vmul.f32 1.442695, %v5287_v40  ;;  %v5320_v48 = vrot.slane %v13287_v55, 3  ;;  %v15055_v40 = vld [vmem:[#allocation73_spill] sm:$0xff] }
 0x513   :  { %v8131_v8 = vpop.eup %8130  ;;  %v5393_v24 = vadd.f32 %v8127_v32, %v5392_v0  ;;  %7279 = vmatpush3.bf16.msra.mxu1 %v7278_v60  ;;  %7265 = vmatprep.subr.bf16.mxu0 %v14419_v27  ;;  %v7281_v59 = vpack.c.bf16 %v8129_v25, %v8127_v32  ;;  %8150 = vpow2.f32 %v5308_v14 }
 0x514   :  { %v5150_v61 = vadd.f32 %v8117_v23, %v5149_v43  ;;  %v8133_v6 = vpop.eup %8132  ;;  %7280 = vmatprep.subr.bf16.mxu1 %v14419_v27  ;;  %8152 = vpow2.f32 %v5310_v44  ;;  %v5316_v23 = vmul.f32 1.442695, %v5286_v54 }
 0x515   :  { %v8135_v41 = vpop.eup %8134  ;;  %v5394_v49 = vadd.f32 %v8129_v25, %v5393_v24  ;;  %8154 = vpow2.f32 %v5312_v26  ;;  %v7272_v45 = vpack.c.bf16 %v8133_v6, %v8131_v8  ;;  %v4408_v24 = vrot.slane %v12888_v42, 4 }
 0x516   :  { %v5151_v18 = vadd.f32 %v13415_v9, %v5150_v61  ;;  %v8137_v17 = vpop.eup %8136  ;;  %7267 = vmatpush3.bf16.msra.mxu0 %v7266_v51  ;;  %8156 = vpow2.f32 %v5314_v35  ;;  %v15056_v35 = vrot.slane %v15055_v40, 7 }
 0x517   :  { %v8139_v2 = vpop.eup %8138  ;;  %v5395_v39 = vadd.f32 %v8135_v41, %v5394_v49  ;;  %7282 = vmatpush3.bf16.msra.mxu1 %v7281_v59  ;;  %7268 = vmatprep.subr.bf16.mxu0 %v14419_v27  ;;  %v7284_v22 = vpack.c.bf16 %v8137_v17, %v8135_v41  ;;  %8158 = vpow2.f32 %v5316_v23  ;;  %v4907_v23 = vrot.slane %v13298_v31, 4 }
 0x518   :  { %v5152_v56 = vadd.f32 %v13424_v62, %v5151_v18  ;;  %v8141_v16 = vpop.eup %8140  ;;  %7283 = vmatprep.subr.bf16.mxu1 %v14419_v27  ;;  %8160 = vpow2.f32 %v5318_v20 }
 0x519   :  { %v8143_v57 = vpop.eup %8142  ;;  %v5396_v63 = vadd.f32 %v8137_v17, %v5395_v39  ;;  %v7275_v62 = vpack.c.bf16 %v8141_v16, %v8139_v2  ;;  %v4908_v20 = vadd.f32 %v4907_v23, %v13298_v31 }
 0x51a   :  { %v5153_v38 = vadd.f32 %v8131_v8, %v5152_v56  ;;  %v8145_v33 = vpop.eup %8144  ;;  %7270 = vmatpush3.bf16.msra.mxu0 %v7269_v15 }
 0x51b   :  { %v5397_v53 = vadd.f32 %v8143_v57, %v5396_v63  ;;  %7285 = vmatpush3.bf16.msra.mxu1 %v7284_v22  ;;  %7271 = vmatprep.subr.bf16.mxu0 %v14419_v27  ;;  %v8147_v4 = vpop.eup %8146  ;;  %v7287_v30 = vpack.c.bf16 %v8145_v33, %v8143_v57  ;;  %v4656_v22 = vrot.slane %v13177_v36, 4 }
 0x51c   :  { %v5154_v1 = vadd.f32 %v8133_v6, %v5153_v38  ;;  %7286 = vmatprep.subr.bf16.mxu1 %v14419_v27  ;;  %v8149_v43 = vpop.eup %8148  ;;  %v4409_v38 = vadd.f32 %v4408_v24, %v12888_v42 }
 0x51d   :  { %v5398_v10 = vadd.f32 %v8145_v33, %v5397_v53  ;;  %v8151_v37 = vpop.eup %8150  ;;  %v7290_v34 = vpack.c.bf16 %v8149_v43, %v8147_v4  ;;  %v4657_v15 = vadd.f32 %v4656_v22, %v13177_v36 }
 0x51e   :  { %v5155_v19 = vadd.f32 %v8139_v2, %v5154_v1  ;;  %7273 = vmatpush3.bf16.msra.mxu0 %v7272_v45  ;;  %v8153_v61 = vpop.eup %8152 }
 0x51f   :  { %v5399_v9 = vadd.f32 %v8147_v4, %v5398_v10  ;;  %7288 = vmatpush3.bf16.msra.mxu1 %v7287_v30  ;;  %7274 = vmatprep.subr.bf16.mxu0 %v14419_v27  ;;  %v8155_v3 = vpop.eup %8154  ;;  %v7293_v18 = vpack.c.bf16 %v8153_v61, %v8151_v37  ;;  %v4658_v33 = vrot.slane %v4657_v15, 2  ;;  %v4909_v10 = vrot.slane %v4908_v20, 2 }
 0x520   :  { %v13448_v5 = vadd.f32 %v8141_v16, %v5155_v19  ;;  %7289 = vmatprep.subr.bf16.mxu1 %v14419_v27  ;;  %v8157_v7 = vpop.eup %8156 }
 0x521   :  { %v5400_v28 = vadd.f32 %v8149_v43, %v5399_v9  ;;  %v8159_v32 = vpop.eup %8158  ;;  %v7296_v60 = vpack.c.bf16 %v8157_v7, %v8155_v3  ;;  %v4659_v53 = vadd.f32 %v4658_v33, %v4657_v15  ;;  %v4910_v45 = vadd.f32 %v4909_v10, %v4908_v20 }
 0x522   :  { %7276 = vmatpush3.bf16.msra.mxu0 %v7275_v62  ;;  %v8161_v29 = vpop.eup %8160 }
 0x523   :  { %v5401_v21 = vadd.f32 %v8151_v37, %v5400_v28  ;;  %7291 = vmatpush3.bf16.msra.mxu1 %v7290_v34  ;;  %7301 = vmatprep.subr.bf16.mxu0 %v14419_v27  ;;  %v7299_v8 = vpack.c.bf16 %v8161_v29, %v8159_v32  ;;  %v4660_v4 = vrot.slane %v4659_v53, 1  ;;  %v4911_v43 = vrot.slane %v4910_v45, 1 }
 0x524   :  { %7292 = vmatprep.subr.bf16.mxu1 %v14419_v27 }
 0x525   :  { %v5402_v47 = vadd.f32 %v8153_v61, %v5401_v21  ;;  %6721 = vmatmul.mubr.f32.vlgmr.msra.gmra.mrb[34].mxu0 %v5070_v13  ;;  %v4661_v30 = vadd.f32 %v4660_v4, %v4659_v53  ;;  %v4912_v9 = vadd.f32 %v4911_v43, %v4910_v45 }
 0x526   :  { %6762 = vmatprep.mubr.msk.f32.mxu0 %vm8201_vm0, %v15040_v52  ;;  %v4158_v52 = vrot.slane %v12760_v58, 4 }
 0x527   :  { %v5403_v50 = vadd.f32 %v8155_v3, %v5402_v47  ;;  %7294 = vmatpush3.bf16.msra.mxu1 %v7293_v18  ;;  %v5157_v18 = vrot.slane %v13448_v5, 4 }
 0x528   :  { %7295 = vmatprep.subr.bf16.mxu1 %v14419_v27  ;;  %v4159_v14 = vadd.f32 %v4158_v52, %v12760_v58  ;;  %v15054_v58 = vrot.slane %v15039_v11, 6 }
 0x529   :  { %v5404_v0 = vadd.f32 %v8157_v7, %v5403_v50  ;;  %v5158_v7 = vadd.f32 %v5157_v18, %v13448_v5 }
 0x52a   :  { %v4160_v6 = vrot.slane %v4159_v14, 2 }
 0x52b   :  { %v5405_v25 = vadd.f32 %v8159_v32, %v5404_v0  ;;  %7297 = vmatpush3.bf16.msra.mxu1 %v7296_v60  ;;  %v5159_v50 = vrot.slane %v5158_v7, 2 }
 0x52c   :  { %7298 = vmatprep.subr.bf16.mxu1 %v14419_v27  ;;  %v4161_v12 = vadd.f32 %v4160_v6, %v4159_v14  ;;  %v4410_v27 = vrot.slane %v4409_v38, 2 }
 0x52d   :  { %v13463_v56 = vadd.f32 %v8161_v29, %v5405_v25  ;;  %v5160_v32 = vadd.f32 %v5159_v50, %v5158_v7 }
 0x52e   :  { %v4162_v44 = vrot.slane %v4161_v12, 1  ;;  %v4411_v41 = vadd.f32 %v4410_v27, %v4409_v38 }
 0x52f   :  { %7300 = vmatpush3.bf16.msra.mxu1 %v7299_v8  ;;  %v5407_v0 = vrot.slane %v13463_v56, 4  ;;  %v5161_v60 = vrot.slane %v5160_v32, 1 }
 0x530   :  { %v4163_v49 = vadd.f32 %v4162_v44, %v4161_v12  ;;  %v4412_v59 = vrot.slane %v4411_v41, 1 }
 0x531   :  { %v5408_v29 = vadd.f32 %v5407_v0, %v13463_v56  ;;  %v5162_v25 = vadd.f32 %v5161_v60, %v5160_v32 }
 0x532   :  { %6756 = vmatmul.mubr.f32.vlgmr.msra.gmra.mrb[24].mxu1 %v5320_v48  ;;  %8162 = vrcp.f32 %v4163_v49  ;;  %v4413_v51 = vadd.f32 %v4412_v59, %v4411_v41 }
 0x533   :  { %v5409_v8 = vrot.slane %v5408_v29, 2 }
 0x534   :  { %8164 = vrcp.f32 %v4413_v51 }
 0x535   :  { %8166 = vrcp.f32 %v4661_v30  ;;  %v5410_v52 = vadd.f32 %v5409_v8, %v5408_v29 }
 0x536   :  { %8168 = vrcp.f32 %v4912_v9 }
 0x537   :  { %8170 = vrcp.f32 %v5162_v25 }
 0x53c   :  { %v8163_v17 = vpop.eup %8162 }
 0x53e   :  { %v8165_v42 = vpop.eup %8164 }
 0x53f   :  { %v8167_v37 = vpop.eup %8166 }
 0x540   :  { %v8169_v61 = vpop.eup %8168 }
 0x541   :  { %v8171_v24 = vpop.eup %8170 }
 0x55c   :  { %v4139_v1 = vpop.f32.mrb[30].mxu0 }
 0x55d   :  { %v4165_v2 = vmul.f32 %v8163_v17, %v4139_v1  ;;  %v6582_v54 = vpop.f32.mrb[31].mxu0  ;;  %v5440_v1 = vpop.xlane.xlu1 %5439 }
 0x55e   :  { %vm5448_vm4 = vcmp.eq.f32.partialorder %v5440_v1, inf  ;;  %vm5450_vm6 = vcmp.eq.f32.partialorder %v5440_v1, 0.0 }
 0x55f   :  { %v4166_v26 = vadd.f32 %v4165_v2, %v15054_v58 }
 0x561   :  { %4167 = vst [vmem:[%s13535_s6 + $0xe] sm:$0x1] %v4166_v26 }
 0x563   :  { %v4389_v39 = vpop.f32.mrb[20].mxu1 }
 0x564   :  { %v4415_v16 = vmul.f32 %v8165_v42, %v4389_v39  ;;  %v6617_v19 = vpop.f32.mrb[21].mxu1 }
 0x565   :  { %v5451_v19 = vand.u32 2147483648, %v5440_v1 }
 0x566   :  { %v4416_v57 = vadd.f32 %v4415_v16, %v15056_v35 }
 0x568   :  { %4417 = vst [vmem:[%s13535_s6 + $0xf] sm:$0x1] %v4416_v57 }
 0x56f   :  { %v13485_v11 = vld [vmem:[%s13535_s6 + $0x8] sm:$0xff] }
 0x570   :  { %v5435_v63 = vmul.f32 %v13485_v11, %v13485_v11 }
 0x572   :  { %5441 = vadd.xlane.f32.xlu0 %v5435_v63 }
 0x5ad   :  { %v4637_v28 = vpop.f32.mrb[32].mxu0 }
 0x5ae   :  { %v4663_v34 = vmul.f32 %v8167_v37, %v4637_v28  ;;  %v6652_v62 = vpop.f32.mrb[33].mxu0 }
 0x5af   :  { %v8198_v62 = vld [vmem:[%s13535_s6] sm:$0xff] }
 0x5b0   :  { %v4664_v36 = vadd.f32 %v13287_v55, %v4663_v34  ;;  %v5424_v55 = vpop.xlane.xlu1 %5423 }
 0x5b1   :  { %vm5427_vm9 = vcmp.eq.f32.partialorder %v5424_v55, inf  ;;  %v5430_v45 = vand.u32 2147483648, %v5424_v55  ;;  %vm5429_vm10 = vcmp.eq.f32.partialorder %v5424_v55, 0.0 }
 0x5b2   :  { %4665 = vst [vmem:[%s13535_s6 + $0x10] sm:$0x1] %v4664_v36 }
 0x5b6   :  { %v4888_v31 = vpop.f32.mrb[22].mxu1 }
 0x5b7   :  { %v4914_v21 = vmul.f32 %v8169_v61, %v4888_v31  ;;  %v6687_v3 = vpop.f32.mrb[23].mxu1 }
 0x5b9   :  { %v4915_v47 = vadd.f32 %v4914_v21, %v4820_v46  ;;  %v5411_v46 = vrot.slane %v5410_v52, 1 }
 0x5bb   :  { %4916 = vst [vmem:[%s13535_s6 + $0x11] sm:$0x1] %v4915_v47  ;;  %v5412_v14 = vadd.f32 %v5411_v46, %v5410_v52 }
 0x5bd   :  { %8172 = vrcp.f32 %v5412_v14 }
 0x5c7   :  { %v8173_v27 = vpop.eup %8172 }
 0x5f8   :  { %v5138_v6 = vpop.f32.mrb[34].mxu0 }
 0x5f9   :  { %v5164_v38 = vmul.f32 %v8171_v24, %v5138_v6  ;;  %v6722_v12 = vpop.f32.mrb[35].mxu0 }
 0x5fb   :  { %v5165_v5 = vadd.f32 %v5164_v38, %v5070_v13 }
 0x5fd   :  { %5166 = vst [vmem:[%s13535_s6 + $0x12] sm:$0x1] %v5165_v5 }
 0x5ff   :  { %v5442_v17 = vpop.xlane.xlu0 %5441 }
 0x600   :  { %8174 = vrsqrt.f32 %v5442_v17  ;;  %vm5455_vm3 = vcmp.eq.f32.partialorder %v5442_v17, inf  ;;  %v5458_v39 = vand.u32 2147483648, %v5442_v17  ;;  %vm5457_vm5 = vcmp.eq.f32.partialorder %v5442_v17, 0.0 }
 0x601   :  { %8176 = vrsqrt.f32 %v5440_v1 }
 0x602   :  { %8178 = vrsqrt.f32 %v5424_v55 }
 0x605   :  { %v5388_v56 = vpop.f32.mrb[24].mxu1 }
 0x606   :  { %v5414_v44 = vmul.f32 %v8173_v27, %v5388_v56  ;;  %v6757_v41 = vpop.f32.mrb[25].mxu1 }
 0x608   :  { %v5415_v49 = vadd.f32 %v5414_v44, %v5320_v48 }
 0x60a   :  { %5416 = vst [vmem:[%s13535_s6 + $0x13] sm:$0x1] %v5415_v49  ;;  %v8175_v2 = vpop.eup %8174 }
 0x60b   :  { %v8177_v54 = vpop.eup %8176  ;;  %v5454_v48 = vmul.f32 %v8175_v2, %v5442_v17 }
 0x60c   :  { %v5447_v58 = vmul.f32 %v8177_v54, %v5440_v1  ;;  %v8179_v63 = vpop.eup %8178 }
 0x60d   :  { %v5456_v42 = vsel %vm5455_vm3, %v5442_v17, %v5454_v48  ;;  %v5426_v53 = vmul.f32 %v8179_v63, %v5424_v55 }
 0x60e   :  { %v5449_v16 = vsel %vm5448_vm4, %v5440_v1, %v5447_v58  ;;  %v5459_v40 = vsel %vm5457_vm5, %v5458_v39, %v5456_v42 }
 0x60f   :  { %v5452_v35 = vsel %vm5450_vm6, %v5451_v19, %v5449_v16  ;;  %v5468_v57 = vmax.f32 %v5459_v40, 1e-08  ;;  %v5428_v30 = vsel %vm5427_vm9, %v5424_v55, %v5426_v53 }
 0x610   :  { %v5467_v22 = vmax.f32 %v5452_v35, 1e-08  ;;  %v5431_v43 = vsel %vm5429_vm10, %v5430_v45, %v5428_v30 }
 0x611   :  { %v5419_v59 = vld [vmem:[%s13535_s6 + $0x10] sm:$0xf]  ;;  %v5432_v28 = vmax.f32 %v5431_v43, 1e-08 }
 0x612   :  { %v5436_v13 = vmul.f32 %v5419_v59, %v5419_v59 }
 0x614   :  { %v5443_v51 = vsel %vm5421_vm2, %v5436_v13, 0.0 }
 0x615   :  { %5444 = vadd.xlane.f32.xlu0 %v5443_v51 }
 0x6a2   :  { %v5445_v26 = vpop.xlane.xlu0 %5444 }
 0x6a3   :  { %8180 = vrsqrt.f32 %v5445_v26  ;;  %vm5462_vm7 = vcmp.eq.f32.partialorder %v5445_v26, inf  ;;  %v5465_v23 = vand.u32 2147483648, %v5445_v26  ;;  %vm5464_vm8 = vcmp.eq.f32.partialorder %v5445_v26, 0.0 }
 0x6a4   :  { %8182 = vrcp.f32 %v5468_v57 }
 0x6a5   :  { %8184 = vrcp.f32 %v5467_v22 }
 0x6ad   :  { %v8181_v15 = vpop.eup %8180 }
 0x6ae   :  { %v5461_v33 = vmul.f32 %v8181_v15, %v5445_v26  ;;  %v8183_v9 = vpop.eup %8182 }
 0x6af   :  { %v8185_v37 = vpop.eup %8184  ;;  %v5473_v34 = vmul.f32 %v8183_v9, %v13485_v11 }
 0x6b0   :  { %v5463_v20 = vsel %vm5462_vm7, %v5445_v26, %v5461_v33  ;;  %v5471_v36 = vmul.f32 %v8198_v62, %v8185_v37 }
 0x6b1   :  { %v5466_v4 = vsel %vm5464_vm8, %v5465_v23, %v5463_v20  ;;  %v5480_v21 = vrot.slane %v5473_v34, 4 }
 0x6b2   :  { %v5469_v10 = vmax.f32 %v5466_v4, 1e-08  ;;  %v5479_v3 = vrot.slane %v5471_v36, 4 }
 0x6b4   :  { %8186 = vrcp.f32 %v5469_v10  ;;  %v5481_v18 = vsel %vm5421_vm2, %v5479_v3, %v5480_v21 }
 0x6b5   :  { %8188 = vrcp.f32 %v5432_v28 }
 0x6be   :  { %v8187_v61 = vpop.eup %8186 }
 0x6bf   :  { %v5475_v31 = vmul.f32 %v8187_v61, %v5419_v59  ;;  %v8189_v32 = vpop.eup %8188 }
 0x6c0   :  { %v5434_v0 = vmul.f32 %v8198_v62, %v8189_v32 }
 0x6c1   :  { %v5482_v47 = vrot.slane %v5475_v31, 4 }
 0x6c3   :  { %v5483_v7 = vsel %vm5421_vm2, %v5480_v21, %v5482_v47 }
 0x6c4   :  { %v7302_v50 = vpack.c.bf16 %v5483_v7, %v5481_v18 }
 0x6c6   :  { %7303 = vmatpush3.bf16.xpose.msra.mxu0 %v7302_v50 }
 0x6cd   :  { %6763 = vmatmul.mubr.f32.vlgmr.msra.gmra.mrb[36].mxu0 %v5434_v0 }
 0x7a0   :  { %v5552_v11 = vpop.f32.mrb[36].mxu0 }
 0x7a1   :  { %5557 = vst.msk [vmem:[%s13536_s7] sm:$0xf] %vm5556_vm11, %v5552_v11  ;;  %v6764_v60 = vpop.f32.mrb[37].mxu0 }

</bundles_post_ra>
